<compile_context>
chip_gen: v7x
topology: tpu7x:2x2x1
jax: 0.10.0
libtpu: 0.0.40
codegen_flags: <defaults>
</compile_context>

<pallas_src>
import functools

import jax
import jax.numpy as jnp
from jax.experimental import pallas as pl
from jax.experimental.pallas import tpu as pltpu  # noqa: F401  (TPU backend)

# ----------------------------- model hyper-params (small) -----------------------------
D_MODEL = 32
NHEAD = 4
NUM_ENC_LAYERS = 2
NUM_DEC_LAYERS = 2
DIM_FF = 64
NUM_QUERIES = 16
BATCH = 2
H_SP, W_SP = 4, 4          # spatial dims -> S = 16 memory tokens
NEG_INF = -1e30
USE_BF16_MATMUL = False    # optional bf16 MXU inputs (f32 accumulation); off for parity


# ===================================== fused kernel =====================================

def _detr_transformer_kernel(
    # activations / masks (all 2-D, batch folded into rows)
    src_ref, pos_ref, qpos_ref,
    enc_mask_ref, dec_sa_mask_ref, dec_ca_mask_ref,
    # encoder weights, stacked over layers: (n_enc, ...)
    e_wqkv_ref, e_bqkv_ref, e_wo_ref, e_bo_ref,
    e_ln1g_ref, e_ln1b_ref,
    e_w1_ref, e_b1_ref, e_w2_ref, e_b2_ref,
    e_ln2g_ref, e_ln2b_ref,
    # decoder weights, stacked over layers: (n_dec, ...)
    d_sa_wqkv_ref, d_sa_bqkv_ref, d_sa_wo_ref, d_sa_bo_ref,
    d_ln1g_ref, d_ln1b_ref,
    d_ca_wqkv_ref, d_ca_bqkv_ref, d_ca_wo_ref, d_ca_bo_ref,
    d_ln2g_ref, d_ln2b_ref,
    d_w1_ref, d_b1_ref, d_w2_ref, d_b2_ref,
    d_ln3g_ref, d_ln3b_ref,
    # final decoder norm
    dn_g_ref, dn_b_ref,
    # outputs
    hs_ref, mem_ref,
    *, nhead, n_enc, n_dec, batch, s_len, q_len, use_bf16):
    """Whole encoder+decoder forward.  All refs are full-array VMEM blocks."""
    f32 = jnp.float32
    d = src_ref.shape[-1]
    hd = d // nhead
    scale = 1.0 / float(hd) ** 0.5

    def cast(t):
        return t.astype(jnp.bfloat16) if use_bf16 else t

    def mm(a, b):
        return jnp.dot(cast(a), cast(b), preferred_element_type=f32)

    def linear(x, w, b):
        # x: (N, in); w: (in, out) pre-transposed on host; b: (1, out)
        return mm(x, w) + b

    def layer_norm(x, g, b):
        mu = jnp.mean(x, axis=-1, keepdims=True)
        xc = x - mu
        var = jnp.mean(xc * xc, axis=-1, keepdims=True)
        return xc * jax.lax.rsqrt(var + 1e-5) * g + b

    def add_ln(x, y, g, b):
        return layer_norm(x + y, g, b)

    def attention_core(q2d, k2d, v2d, mask2d, wo, bo):
        """q2d: (Nq, D); k2d, v2d: (Nk, D); mask2d: (Nq, Nk) additive (block-diag+pad)."""
        qs = q2d * scale                              # scale once for all heads
        ctxs = []
        for h in range(nhead):                        # static unroll
            sl = slice(h * hd, (h + 1) * hd)
            # single (B*Lq, hd) x (hd, B*Lk) score tile per head (batch folded)
            s = jnp.einsum('qd,kd->qk', cast(qs[:, sl]), cast(k2d[:, sl]),
                           preferred_element_type=f32)            # (Nq, Nk)
            s = s + mask2d                                         # no broadcast needed
            s = s - jnp.max(s, axis=-1, keepdims=True)
            e = jnp.exp(s)
            p = e * pl.reciprocal(jnp.sum(e, axis=-1, keepdims=True), approx=True)
            ctxs.append(mm(p, v2d[:, sl]))                         # (Nq, hd)
        ctx = jnp.concatenate(ctxs, axis=-1)                       # (Nq, D): merged heads
        return mm(ctx, wo) + bo                                    # ONE W_o matmul

    def mha_self(xp, xv, wqkv, bqkv, wo, bo, mask2d):
        # q_in is k_in (== xp): fuse Q and K into one (N, D) x (D, 2D) matmul.
        qk = linear(xp, wqkv[:, :2 * d], bqkv[:, :2 * d])
        v = linear(xv, wqkv[:, 2 * d:], bqkv[:, 2 * d:])
        return attention_core(qk[:, :d], qk[:, d:], v, mask2d, wo, bo)

    def mha_cross(q_in, k_in, v_in, wqkv, bqkv, wo, bo, mask2d):
        qp = linear(q_in, wqkv[:, :d], bqkv[:, :d])
        kp = linear(k_in, wqkv[:, d:2 * d], bqkv[:, d:2 * d])
        vp = linear(v_in, wqkv[:, 2 * d:], bqkv[:, 2 * d:])
        return attention_core(qp, kp, vp, mask2d, wo, bo)

    def ffn(x, w1, b1, w2, b2):
        h = jnp.maximum(linear(x, w1, b1), 0.0)
        return linear(h, w2, b2)

    src = src_ref[...]            # (B*S, D)
    pos = pos_ref[...]            # (B*S, D)
    qpos = qpos_ref[...]          # (B*Q, D)
    enc_mask = enc_mask_ref[...]          # (B*S, B*S)
    dec_sa_mask = dec_sa_mask_ref[...]    # (B*Q, B*Q)
    dec_ca_mask = dec_ca_mask_ref[...]    # (B*Q, B*S)

    # --------------------------------- encoder ---------------------------------
    x = src
    for l in range(n_enc):
        x2 = mha_self(x + pos, x,
                      e_wqkv_ref[l], e_bqkv_ref[l], e_wo_ref[l], e_bo_ref[l],
                      enc_mask)
        x = add_ln(x, x2, e_ln1g_ref[l], e_ln1b_ref[l])
        x2 = ffn(x, e_w1_ref[l], e_b1_ref[l], e_w2_ref[l], e_b2_ref[l])
        x = add_ln(x, x2, e_ln2g_ref[l], e_ln2b_ref[l])
    # NOTE: stores kept in the kernel-native (rows, D) layout; at (32, 32) the
    # in-kernel relayout to a lane-dense slab costs about what the masked vst costs.
    mem_ref[...] = x              # encoder_norm is None (normalize_before=False)

    # --------------------------------- decoder ---------------------------------
    mem_pos = x + pos             # hoisted: (memory + pos) reused by every layer
    dn_g = dn_g_ref[...]
    dn_b = dn_b_ref[...]
    n_rows_q = batch * q_len
    tgt = None
    for l in range(n_dec):
        if l == 0:
            # tgt == 0: every V row equals b_v, so self-attn output is the constant
            # row (b_v @ W_o + b_o) regardless of the attention weights -> skip MHA.
            bv = d_sa_bqkv_ref[l][:, 2 * d:]                        # (1, D)
            t2_row = mm(bv, d_sa_wo_ref[l]) + d_sa_bo_ref[l]        # (1, D)
            tgt = jnp.broadcast_to(
                layer_norm(t2_row, d_ln1g_ref[l], d_ln1b_ref[l]), (n_rows_q, d))
        else:
            t2 = mha_self(tgt + qpos, tgt,
                          d_sa_wqkv_ref[l], d_sa_bqkv_ref[l],
                          d_sa_wo_ref[l], d_sa_bo_ref[l], dec_sa_mask)
            tgt = add_ln(tgt, t2, d_ln1g_ref[l], d_ln1b_ref[l])
        t2 = mha_cross(tgt + qpos, mem_pos, x,
                       d_ca_wqkv_ref[l], d_ca_bqkv_ref[l],
                       d_ca_wo_ref[l], d_ca_bo_ref[l], dec_ca_mask)
        tgt = add_ln(tgt, t2, d_ln2g_ref[l], d_ln2b_ref[l])
        t2 = ffn(tgt, d_w1_ref[l], d_b1_ref[l], d_w2_ref[l], d_b2_ref[l])
        tgt = add_ln(tgt, t2, d_ln3g_ref[l], d_ln3b_ref[l])
        hs_ref[l] = layer_norm(tgt, dn_g, dn_b)     # return_intermediate=True


# ===================================== wrapper =====================================

def _block_diag_mask(row_batch, col_batch, key_pad=None):
    """Additive mask for batch-folded attention: -inf cross-batch (+ key padding)."""
    m = jnp.where(row_batch[:, None] == col_batch[None, :], 0.0, NEG_INF)
    if key_pad is not None:
        m = m + jnp.where(key_pad[None, :], NEG_INF, 0.0)
    return m.astype(jnp.float32)


@jax.jit
def transformer_forward(params, src, mask, query_embed, pos_embed):
    """Mirrors Transformer.forward: returns (hs.transpose(1,2), memory as (B,C,H,W))."""
    bs, c, hh, ww = src.shape
    s_len = hh * ww
    q_len, d = query_embed.shape
    enc, dec, dn = params["enc"], params["dec"], params["dec_norm"]
    n_enc = enc["wqkv"].shape[0]
    n_dec = dec["sa_wqkv"].shape[0]

    # (B, C, H, W) -> (B*S, D), batch-major row ordering
    src2d = src.reshape(bs, c, s_len).transpose(0, 2, 1).reshape(bs * s_len, c)
    pos2d = pos_embed.reshape(bs, c, s_len).transpose(0, 2, 1).reshape(bs * s_len, c)
    qpos2d = jnp.broadcast_to(query_embed[None].astype(jnp.float32),
                              (bs, q_len, d)).reshape(bs * q_len, d)

    # Precomputed additive masks for the batch-folded (rows, cols) score tiles.
    pad = mask.reshape(bs * s_len)
    rb_s = jnp.repeat(jnp.arange(bs), s_len)
    rb_q = jnp.repeat(jnp.arange(bs), q_len)
    enc_mask = _block_diag_mask(rb_s, rb_s, pad)        # (B*S, B*S)
    dec_sa_mask = _block_diag_mask(rb_q, rb_q)          # (B*Q, B*Q)
    dec_ca_mask = _block_diag_mask(rb_q, rb_s, pad)     # (B*Q, B*S)

    kernel = functools.partial(
        _detr_transformer_kernel,
        nhead=NHEAD, n_enc=n_enc, n_dec=n_dec,
        batch=bs, s_len=s_len, q_len=q_len, use_bf16=USE_BF16_MATMUL)

    # Single fused pallas_call: every operand is a whole-array VMEM block.
    hs_flat, mem_flat = pl.pallas_call(
        kernel,
        out_shape=(jax.ShapeDtypeStruct((n_dec, bs * q_len, d), jnp.float32),
                   jax.ShapeDtypeStruct((bs * s_len, d), jnp.float32)),
    )(src2d, pos2d, qpos2d, enc_mask, dec_sa_mask, dec_ca_mask,
      enc["wqkv"], enc["bqkv"], enc["wo"], enc["bo"], enc["ln1g"], enc["ln1b"],
      enc["w1"], enc["b1"], enc["w2"], enc["b2"], enc["ln2g"], enc["ln2b"],
      dec["sa_wqkv"], dec["sa_bqkv"], dec["sa_wo"], dec["sa_bo"], dec["ln1g"], dec["ln1b"],
      dec["ca_wqkv"], dec["ca_bqkv"], dec["ca_wo"], dec["ca_bo"], dec["ln2g"], dec["ln2b"],
      dec["w1"], dec["b1"], dec["w2"], dec["b2"], dec["ln3g"], dec["ln3b"],
      dn["g"], dn["b"])

    hs = hs_flat.reshape(n_dec, bs, q_len, d)
    mem_out = mem_flat.reshape(bs, s_len, d).transpose(0, 2, 1).reshape(bs, c, hh, ww)
    return hs, mem_out


# ================================= parameter init =================================

def _xavier(key, shape):
    fan_in, fan_out = shape[-2], shape[-1]
    bound = (6.0 / (fan_in + fan_out)) ** 0.5
    return jax.random.uniform(key, shape, jnp.float32, -bound, bound)


def _ln_params(n, d):
    return jnp.ones((n, 1, d), jnp.float32), jnp.zeros((n, 1, d), jnp.float32)


def init_params(key, d=D_MODEL, f=DIM_FF,
                n_enc=NUM_ENC_LAYERS, n_dec=NUM_DEC_LAYERS):
    ks = jax.random.split(key, 10)
    # All weight matrices are stored pre-transposed: (in, out).
    enc = dict(
        wqkv=_xavier(ks[0], (n_enc, d, 3 * d)),
        bqkv=jnp.zeros((n_enc, 1, 3 * d), jnp.float32),
        wo=_xavier(ks[1], (n_enc, d, d)),
        bo=jnp.zeros((n_enc, 1, d), jnp.float32),
        w1=_xavier(ks[2], (n_enc, d, f)),
        b1=jnp.zeros((n_enc, 1, f), jnp.float32),
        w2=_xavier(ks[3], (n_enc, f, d)),
        b2=jnp.zeros((n_enc, 1, d), jnp.float32),
    )
    enc["ln1g"], enc["ln1b"] = _ln_params(n_enc, d)
    enc["ln2g"], enc["ln2b"] = _ln_params(n_enc, d)

    dec = dict(
        sa_wqkv=_xavier(ks[4], (n_dec, d, 3 * d)),
        sa_bqkv=jnp.zeros((n_dec, 1, 3 * d), jnp.float32),
        sa_wo=_xavier(ks[5], (n_dec, d, d)),
        sa_bo=jnp.zeros((n_dec, 1, d), jnp.float32),
        ca_wqkv=_xavier(ks[6], (n_dec, d, 3 * d)),
        ca_bqkv=jnp.zeros((n_dec, 1, 3 * d), jnp.float32),
        ca_wo=_xavier(ks[7], (n_dec, d, d)),
        ca_bo=jnp.zeros((n_dec, 1, d), jnp.float32),
        w1=_xavier(ks[8], (n_dec, d, f)),
        b1=jnp.zeros((n_dec, 1, f), jnp.float32),
        w2=_xavier(ks[9], (n_dec, f, d)),
        b2=jnp.zeros((n_dec, 1, d), jnp.float32),
    )
    dec["ln1g"], dec["ln1b"] = _ln_params(n_dec, d)
    dec["ln2g"], dec["ln2b"] = _ln_params(n_dec, d)
    dec["ln3g"], dec["ln3b"] = _ln_params(n_dec, d)

    dec_norm = dict(g=jnp.ones((1, d), jnp.float32), b=jnp.zeros((1, d), jnp.float32))
    return dict(enc=enc, dec=dec, dec_norm=dec_norm)


# ===================================== main =====================================

if __name__ == "__main__":
    root = jax.random.PRNGKey(0)
    kp, ks, kpos, kq = jax.random.split(root, 4)

    params = init_params(kp)

    src = jax.random.normal(ks, (BATCH, D_MODEL, H_SP, W_SP), jnp.float32)
    pos_embed = jax.random.normal(kpos, (BATCH, D_MODEL, H_SP, W_SP), jnp.float32)
    query_embed = jax.random.normal(kq, (NUM_QUERIES, D_MODEL), jnp.float32)

    # key padding mask: True = padded; pad the last 3 spatial positions of batch 1
    mask = jnp.zeros((BATCH, H_SP, W_SP), dtype=bool)
    mask = mask.at[1, -1, -3:].set(True)

    hs, mem_out = transformer_forward(params, src, mask, query_embed, pos_embed)
    jax.block_until_ready((hs, mem_out))

    assert hs.shape == (NUM_DEC_LAYERS, BATCH, NUM_QUERIES, D_MODEL)
    assert mem_out.shape == (BATCH, D_MODEL, H_SP, W_SP)
    assert bool(jnp.all(jnp.isfinite(hs))) and bool(jnp.all(jnp.isfinite(mem_out)))
    print("KERNEL_OK")
</pallas_src>

<mosaic_0001>
module attributes {stable_mosaic.version = 11 : i64} {
  func.func @_detr_transformer_kernel(%arg0: memref<32x32xf32, #tpu.memory_space<vmem>>, %arg1: memref<32x32xf32, #tpu.memory_space<vmem>>, %arg2: memref<32x32xf32, #tpu.memory_space<vmem>>, %arg3: memref<32x32xf32, #tpu.memory_space<vmem>>, %arg4: memref<32x32xf32, #tpu.memory_space<vmem>>, %arg5: memref<32x32xf32, #tpu.memory_space<vmem>>, %arg6: memref<2x32x96xf32, #tpu.memory_space<vmem>>, %arg7: memref<2x1x96xf32, #tpu.memory_space<vmem>>, %arg8: memref<2x32x32xf32, #tpu.memory_space<vmem>>, %arg9: memref<2x1x32xf32, #tpu.memory_space<vmem>>, %arg10: memref<2x1x32xf32, #tpu.memory_space<vmem>>, %arg11: memref<2x1x32xf32, #tpu.memory_space<vmem>>, %arg12: memref<2x32x64xf32, #tpu.memory_space<vmem>>, %arg13: memref<2x1x64xf32, #tpu.memory_space<vmem>>, %arg14: memref<2x64x32xf32, #tpu.memory_space<vmem>>, %arg15: memref<2x1x32xf32, #tpu.memory_space<vmem>>, %arg16: memref<2x1x32xf32, #tpu.memory_space<vmem>>, %arg17: memref<2x1x32xf32, #tpu.memory_space<vmem>>, %arg18: memref<2x32x96xf32, #tpu.memory_space<vmem>>, %arg19: memref<2x1x96xf32, #tpu.memory_space<vmem>>, %arg20: memref<2x32x32xf32, #tpu.memory_space<vmem>>, %arg21: memref<2x1x32xf32, #tpu.memory_space<vmem>>, %arg22: memref<2x1x32xf32, #tpu.memory_space<vmem>>, %arg23: memref<2x1x32xf32, #tpu.memory_space<vmem>>, %arg24: memref<2x32x96xf32, #tpu.memory_space<vmem>>, %arg25: memref<2x1x96xf32, #tpu.memory_space<vmem>>, %arg26: memref<2x32x32xf32, #tpu.memory_space<vmem>>, %arg27: memref<2x1x32xf32, #tpu.memory_space<vmem>>, %arg28: memref<2x1x32xf32, #tpu.memory_space<vmem>>, %arg29: memref<2x1x32xf32, #tpu.memory_space<vmem>>, %arg30: memref<2x32x64xf32, #tpu.memory_space<vmem>>, %arg31: memref<2x1x64xf32, #tpu.memory_space<vmem>>, %arg32: memref<2x64x32xf32, #tpu.memory_space<vmem>>, %arg33: memref<2x1x32xf32, #tpu.memory_space<vmem>>, %arg34: memref<2x1x32xf32, #tpu.memory_space<vmem>>, %arg35: memref<2x1x32xf32, #tpu.memory_space<vmem>>, %arg36: memref<1x32xf32, #tpu.memory_space<vmem>>, %arg37: memref<1x32xf32, #tpu.memory_space<vmem>>, %arg38: memref<2x32x32xf32, #tpu.memory_space<vmem>>, %arg39: memref<32x32xf32, #tpu.memory_space<vmem>>) attributes {dimension_semantics = [], scalar_prefetch = 0 : i64, scratch_operands = 0 : i64, tpu.core_type = #tpu.core_type<tc>} {
    %c0 = arith.constant 0 : index
    %c0_0 = arith.constant 0 : index
    %0 = vector.load %arg0[%c0, %c0_0] : memref<32x32xf32, #tpu.memory_space<vmem>>, vector<32x32xf32>
    %c0_1 = arith.constant 0 : index
    %c0_2 = arith.constant 0 : index
    %1 = vector.load %arg1[%c0_1, %c0_2] : memref<32x32xf32, #tpu.memory_space<vmem>>, vector<32x32xf32>
    %c0_3 = arith.constant 0 : index
    %c0_4 = arith.constant 0 : index
    %2 = vector.load %arg2[%c0_3, %c0_4] : memref<32x32xf32, #tpu.memory_space<vmem>>, vector<32x32xf32>
    %c0_5 = arith.constant 0 : index
    %c0_6 = arith.constant 0 : index
    %3 = vector.load %arg3[%c0_5, %c0_6] : memref<32x32xf32, #tpu.memory_space<vmem>>, vector<32x32xf32>
    %c0_7 = arith.constant 0 : index
    %c0_8 = arith.constant 0 : index
    %4 = vector.load %arg4[%c0_7, %c0_8] : memref<32x32xf32, #tpu.memory_space<vmem>>, vector<32x32xf32>
    %c0_9 = arith.constant 0 : index
    %c0_10 = arith.constant 0 : index
    %5 = vector.load %arg5[%c0_9, %c0_10] : memref<32x32xf32, #tpu.memory_space<vmem>>, vector<32x32xf32>
    %6 = arith.addf %0, %1 : vector<32x32xf32>
    %c0_11 = arith.constant 0 : index
    %c0_12 = arith.constant 0 : index
    %c0_13 = arith.constant 0 : index
    %7 = vector.load %arg6[%c0_11, %c0_12, %c0_13] : memref<2x32x96xf32, #tpu.memory_space<vmem>>, vector<1x32x96xf32>
    %8 = vector.shape_cast %7 : vector<1x32x96xf32> to vector<32x96xf32>
    %c0_14 = arith.constant 0 : index
    %c0_15 = arith.constant 0 : index
    %c0_16 = arith.constant 0 : index
    %9 = vector.load %arg7[%c0_14, %c0_15, %c0_16] : memref<2x1x96xf32, #tpu.memory_space<vmem>>, vector<1x1x96xf32>
    %10 = vector.shape_cast %9 : vector<1x1x96xf32> to vector<1x96xf32>
    %c0_17 = arith.constant 0 : index
    %c0_18 = arith.constant 0 : index
    %c0_19 = arith.constant 0 : index
    %11 = vector.load %arg8[%c0_17, %c0_18, %c0_19] : memref<2x32x32xf32, #tpu.memory_space<vmem>>, vector<1x32x32xf32>
    %12 = vector.shape_cast %11 : vector<1x32x32xf32> to vector<32x32xf32>
    %c0_20 = arith.constant 0 : index
    %c0_21 = arith.constant 0 : index
    %c0_22 = arith.constant 0 : index
    %13 = vector.load %arg9[%c0_20, %c0_21, %c0_22] : memref<2x1x32xf32, #tpu.memory_space<vmem>>, vector<1x1x32xf32>
    %14 = vector.shape_cast %13 : vector<1x1x32xf32> to vector<1x32xf32>
    %15 = vector.extract_strided_slice %8 {offsets = [0, 0], sizes = [32, 64], strides = [1, 1]} : vector<32x96xf32> to vector<32x64xf32>
    %16 = vector.extract_strided_slice %10 {offsets = [0, 0], sizes = [1, 64], strides = [1, 1]} : vector<1x96xf32> to vector<1x64xf32>
    %cst = arith.constant dense<0.000000e+00> : vector<32x64xf32>
    %17 = tpu.matmul %6, %15, %cst {dimension_numbers = #tpu.dot_dimension_numbers<[1], [0], [0], [1], [0, 0, 1, 1], [], []>} : vector<32x32xf32>, vector<32x64xf32>, vector<32x64xf32> -> vector<32x64xf32>
    %18 = vector.broadcast %16 : vector<1x64xf32> to vector<32x64xf32>
    %19 = arith.addf %17, %18 : vector<32x64xf32>
    %20 = vector.extract_strided_slice %8 {offsets = [0, 64], sizes = [32, 32], strides = [1, 1]} : vector<32x96xf32> to vector<32x32xf32>
    %21 = vector.extract_strided_slice %10 {offsets = [0, 64], sizes = [1, 32], strides = [1, 1]} : vector<1x96xf32> to vector<1x32xf32>
    %cst_23 = arith.constant dense<0.000000e+00> : vector<32x32xf32>
    %22 = tpu.matmul %0, %20, %cst_23 {dimension_numbers = #tpu.dot_dimension_numbers<[1], [0], [0], [1], [0, 0, 1, 1], [], []>} : vector<32x32xf32>, vector<32x32xf32>, vector<32x32xf32> -> vector<32x32xf32>
    %23 = vector.broadcast %21 : vector<1x32xf32> to vector<32x32xf32>
    %24 = arith.addf %22, %23 : vector<32x32xf32>
    %25 = vector.extract_strided_slice %19 {offsets = [0, 0], sizes = [32, 32], strides = [1, 1]} : vector<32x64xf32> to vector<32x32xf32>
    %26 = vector.extract_strided_slice %19 {offsets = [0, 32], sizes = [32, 32], strides = [1, 1]} : vector<32x64xf32> to vector<32x32xf32>
    %cst_24 = arith.constant 0.353553385 : f32
    %27 = vector.broadcast %cst_24 : f32 to vector<32x32xf32>
    %28 = arith.mulf %25, %27 : vector<32x32xf32>
    %29 = vector.extract_strided_slice %28 {offsets = [0, 0], sizes = [32, 8], strides = [1, 1]} : vector<32x32xf32> to vector<32x8xf32>
    %30 = vector.extract_strided_slice %26 {offsets = [0, 0], sizes = [32, 8], strides = [1, 1]} : vector<32x32xf32> to vector<32x8xf32>
    "tpu.trace_start"() <{level = 10 : i32, message = "qd,kd->qk"}> : () -> ()
    %cst_25 = arith.constant dense<0.000000e+00> : vector<32x32xf32>
    %31 = tpu.matmul %29, %30, %cst_25 {dimension_numbers = #tpu.dot_dimension_numbers<[1], [1], [0], [0], [0, 0, 1, 0], [], []>} : vector<32x8xf32>, vector<32x8xf32>, vector<32x32xf32> -> vector<32x32xf32>
    "tpu.trace_stop"() : () -> ()
    %32 = arith.addf %31, %3 : vector<32x32xf32>
    %cst_26 = arith.constant dense<0xFF800000> : vector<32xf32>
    %33 = vector.multi_reduction <maximumf>, %32, %cst_26 [1] : vector<32x32xf32> to vector<32xf32>
    %34 = vector.shape_cast %33 : vector<32xf32> to vector<32x1xf32>
    %35 = vector.broadcast %34 : vector<32x1xf32> to vector<32x32xf32>
    %36 = arith.subf %32, %35 : vector<32x32xf32>
    %37 = math.exp %36 : vector<32x32xf32>
    %cst_27 = arith.constant dense<0.000000e+00> : vector<32xf32>
    %38 = vector.multi_reduction <add>, %37, %cst_27 [1] : vector<32x32xf32> to vector<32xf32>
    %39 = vector.shape_cast %38 : vector<32xf32> to vector<32x1xf32>
    %40 = tpu.reciprocal %39 {approx = true} : vector<32x1xf32> -> vector<32x1xf32>
    %41 = vector.broadcast %40 : vector<32x1xf32> to vector<32x32xf32>
    %42 = arith.mulf %37, %41 : vector<32x32xf32>
    %43 = vector.extract_strided_slice %24 {offsets = [0, 0], sizes = [32, 8], strides = [1, 1]} : vector<32x32xf32> to vector<32x8xf32>
    %cst_28 = arith.constant dense<0.000000e+00> : vector<32x8xf32>
    %44 = tpu.matmul %42, %43, %cst_28 {dimension_numbers = #tpu.dot_dimension_numbers<[1], [0], [0], [1], [0, 0, 1, 1], [], []>} : vector<32x32xf32>, vector<32x8xf32>, vector<32x8xf32> -> vector<32x8xf32>
    %45 = vector.extract_strided_slice %28 {offsets = [0, 8], sizes = [32, 8], strides = [1, 1]} : vector<32x32xf32> to vector<32x8xf32>
    %46 = vector.extract_strided_slice %26 {offsets = [0, 8], sizes = [32, 8], strides = [1, 1]} : vector<32x32xf32> to vector<32x8xf32>
    "tpu.trace_start"() <{level = 10 : i32, message = "qd,kd->qk"}> : () -> ()
    %cst_29 = arith.constant dense<0.000000e+00> : vector<32x32xf32>
    %47 = tpu.matmul %45, %46, %cst_29 {dimension_numbers = #tpu.dot_dimension_numbers<[1], [1], [0], [0], [0, 0, 1, 0], [], []>} : vector<32x8xf32>, vector<32x8xf32>, vector<32x32xf32> -> vector<32x32xf32>
    "tpu.trace_stop"() : () -> ()
    %48 = arith.addf %47, %3 : vector<32x32xf32>
    %cst_30 = arith.constant dense<0xFF800000> : vector<32xf32>
    %49 = vector.multi_reduction <maximumf>, %48, %cst_30 [1] : vector<32x32xf32> to vector<32xf32>
    %50 = vector.shape_cast %49 : vector<32xf32> to vector<32x1xf32>
    %51 = vector.broadcast %50 : vector<32x1xf32> to vector<32x32xf32>
    %52 = arith.subf %48, %51 : vector<32x32xf32>
    %53 = math.exp %52 : vector<32x32xf32>
    %cst_31 = arith.constant dense<0.000000e+00> : vector<32xf32>
    %54 = vector.multi_reduction <add>, %53, %cst_31 [1] : vector<32x32xf32> to vector<32xf32>
    %55 = vector.shape_cast %54 : vector<32xf32> to vector<32x1xf32>
    %56 = tpu.reciprocal %55 {approx = true} : vector<32x1xf32> -> vector<32x1xf32>
    %57 = vector.broadcast %56 : vector<32x1xf32> to vector<32x32xf32>
    %58 = arith.mulf %53, %57 : vector<32x32xf32>
    %59 = vector.extract_strided_slice %24 {offsets = [0, 8], sizes = [32, 8], strides = [1, 1]} : vector<32x32xf32> to vector<32x8xf32>
    %cst_32 = arith.constant dense<0.000000e+00> : vector<32x8xf32>
    %60 = tpu.matmul %58, %59, %cst_32 {dimension_numbers = #tpu.dot_dimension_numbers<[1], [0], [0], [1], [0, 0, 1, 1], [], []>} : vector<32x32xf32>, vector<32x8xf32>, vector<32x8xf32> -> vector<32x8xf32>
    %61 = vector.extract_strided_slice %28 {offsets = [0, 16], sizes = [32, 8], strides = [1, 1]} : vector<32x32xf32> to vector<32x8xf32>
    %62 = vector.extract_strided_slice %26 {offsets = [0, 16], sizes = [32, 8], strides = [1, 1]} : vector<32x32xf32> to vector<32x8xf32>
    "tpu.trace_start"() <{level = 10 : i32, message = "qd,kd->qk"}> : () -> ()
    %cst_33 = arith.constant dense<0.000000e+00> : vector<32x32xf32>
    %63 = tpu.matmul %61, %62, %cst_33 {dimension_numbers = #tpu.dot_dimension_numbers<[1], [1], [0], [0], [0, 0, 1, 0], [], []>} : vector<32x8xf32>, vector<32x8xf32>, vector<32x32xf32> -> vector<32x32xf32>
    "tpu.trace_stop"() : () -> ()
    %64 = arith.addf %63, %3 : vector<32x32xf32>
    %cst_34 = arith.constant dense<0xFF800000> : vector<32xf32>
    %65 = vector.multi_reduction <maximumf>, %64, %cst_34 [1] : vector<32x32xf32> to vector<32xf32>
    %66 = vector.shape_cast %65 : vector<32xf32> to vector<32x1xf32>
    %67 = vector.broadcast %66 : vector<32x1xf32> to vector<32x32xf32>
    %68 = arith.subf %64, %67 : vector<32x32xf32>
    %69 = math.exp %68 : vector<32x32xf32>
    %cst_35 = arith.constant dense<0.000000e+00> : vector<32xf32>
    %70 = vector.multi_reduction <add>, %69, %cst_35 [1] : vector<32x32xf32> to vector<32xf32>
    %71 = vector.shape_cast %70 : vector<32xf32> to vector<32x1xf32>
    %72 = tpu.reciprocal %71 {approx = true} : vector<32x1xf32> -> vector<32x1xf32>
    %73 = vector.broadcast %72 : vector<32x1xf32> to vector<32x32xf32>
    %74 = arith.mulf %69, %73 : vector<32x32xf32>
    %75 = vector.extract_strided_slice %24 {offsets = [0, 16], sizes = [32, 8], strides = [1, 1]} : vector<32x32xf32> to vector<32x8xf32>
    %cst_36 = arith.constant dense<0.000000e+00> : vector<32x8xf32>
    %76 = tpu.matmul %74, %75, %cst_36 {dimension_numbers = #tpu.dot_dimension_numbers<[1], [0], [0], [1], [0, 0, 1, 1], [], []>} : vector<32x32xf32>, vector<32x8xf32>, vector<32x8xf32> -> vector<32x8xf32>
    %77 = vector.extract_strided_slice %28 {offsets = [0, 24], sizes = [32, 8], strides = [1, 1]} : vector<32x32xf32> to vector<32x8xf32>
    %78 = vector.extract_strided_slice %26 {offsets = [0, 24], sizes = [32, 8], strides = [1, 1]} : vector<32x32xf32> to vector<32x8xf32>
    "tpu.trace_start"() <{level = 10 : i32, message = "qd,kd->qk"}> : () -> ()
    %cst_37 = arith.constant dense<0.000000e+00> : vector<32x32xf32>
    %79 = tpu.matmul %77, %78, %cst_37 {dimension_numbers = #tpu.dot_dimension_numbers<[1], [1], [0], [0], [0, 0, 1, 0], [], []>} : vector<32x8xf32>, vector<32x8xf32>, vector<32x32xf32> -> vector<32x32xf32>
    "tpu.trace_stop"() : () -> ()
    %80 = arith.addf %79, %3 : vector<32x32xf32>
    %cst_38 = arith.constant dense<0xFF800000> : vector<32xf32>
    %81 = vector.multi_reduction <maximumf>, %80, %cst_38 [1] : vector<32x32xf32> to vector<32xf32>
    %82 = vector.shape_cast %81 : vector<32xf32> to vector<32x1xf32>
    %83 = vector.broadcast %82 : vector<32x1xf32> to vector<32x32xf32>
    %84 = arith.subf %80, %83 : vector<32x32xf32>
    %85 = math.exp %84 : vector<32x32xf32>
    %cst_39 = arith.constant dense<0.000000e+00> : vector<32xf32>
    %86 = vector.multi_reduction <add>, %85, %cst_39 [1] : vector<32x32xf32> to vector<32xf32>
    %87 = vector.shape_cast %86 : vector<32xf32> to vector<32x1xf32>
    %88 = tpu.reciprocal %87 {approx = true} : vector<32x1xf32> -> vector<32x1xf32>
    %89 = vector.broadcast %88 : vector<32x1xf32> to vector<32x32xf32>
    %90 = arith.mulf %85, %89 : vector<32x32xf32>
    %91 = vector.extract_strided_slice %24 {offsets = [0, 24], sizes = [32, 8], strides = [1, 1]} : vector<32x32xf32> to vector<32x8xf32>
    %cst_40 = arith.constant dense<0.000000e+00> : vector<32x8xf32>
    %92 = tpu.matmul %90, %91, %cst_40 {dimension_numbers = #tpu.dot_dimension_numbers<[1], [0], [0], [1], [0, 0, 1, 1], [], []>} : vector<32x32xf32>, vector<32x8xf32>, vector<32x8xf32> -> vector<32x8xf32>
    %93 = tpu.concatenate %44, %60, %76, %92 in 1 : vector<32x8xf32>, vector<32x8xf32>, vector<32x8xf32>, vector<32x8xf32> -> vector<32x32xf32>
    %cst_41 = arith.constant dense<0.000000e+00> : vector<32x32xf32>
    %94 = tpu.matmul %93, %12, %cst_41 {dimension_numbers = #tpu.dot_dimension_numbers<[1], [0], [0], [1], [0, 0, 1, 1], [], []>} : vector<32x32xf32>, vector<32x32xf32>, vector<32x32xf32> -> vector<32x32xf32>
    %95 = vector.broadcast %14 : vector<1x32xf32> to vector<32x32xf32>
    %96 = arith.addf %94, %95 : vector<32x32xf32>
    %c0_42 = arith.constant 0 : index
    %c0_43 = arith.constant 0 : index
    %c0_44 = arith.constant 0 : index
    %97 = vector.load %arg10[%c0_42, %c0_43, %c0_44] : memref<2x1x32xf32, #tpu.memory_space<vmem>>, vector<1x1x32xf32>
    %98 = vector.shape_cast %97 : vector<1x1x32xf32> to vector<1x32xf32>
    %c0_45 = arith.constant 0 : index
    %c0_46 = arith.constant 0 : index
    %c0_47 = arith.constant 0 : index
    %99 = vector.load %arg11[%c0_45, %c0_46, %c0_47] : memref<2x1x32xf32, #tpu.memory_space<vmem>>, vector<1x1x32xf32>
    %100 = vector.shape_cast %99 : vector<1x1x32xf32> to vector<1x32xf32>
    %101 = arith.addf %0, %96 : vector<32x32xf32>
    %cst_48 = arith.constant dense<0.000000e+00> : vector<32xf32>
    %102 = vector.multi_reduction <add>, %101, %cst_48 [1] : vector<32x32xf32> to vector<32xf32>
    %103 = vector.shape_cast %102 : vector<32xf32> to vector<32x1xf32>
    %cst_49 = arith.constant 3.200000e+01 : f32
    %104 = vector.broadcast %cst_49 : f32 to vector<32x1xf32>
    %105 = arith.divf %103, %104 : vector<32x1xf32>
    %106 = vector.broadcast %105 : vector<32x1xf32> to vector<32x32xf32>
    %107 = arith.subf %101, %106 : vector<32x32xf32>
    %108 = arith.mulf %107, %107 : vector<32x32xf32>
    %cst_50 = arith.constant dense<0.000000e+00> : vector<32xf32>
    %109 = vector.multi_reduction <add>, %108, %cst_50 [1] : vector<32x32xf32> to vector<32xf32>
    %110 = vector.shape_cast %109 : vector<32xf32> to vector<32x1xf32>
    %cst_51 = arith.constant 3.200000e+01 : f32
    %111 = vector.broadcast %cst_51 : f32 to vector<32x1xf32>
    %112 = arith.divf %110, %111 : vector<32x1xf32>
    %cst_52 = arith.constant 9.99999974E-6 : f32
    %113 = vector.broadcast %cst_52 : f32 to vector<32x1xf32>
    %114 = arith.addf %112, %113 : vector<32x1xf32>
    %115 = math.rsqrt %114 : vector<32x1xf32>
    %116 = vector.broadcast %115 : vector<32x1xf32> to vector<32x32xf32>
    %117 = arith.mulf %107, %116 : vector<32x32xf32>
    %118 = vector.broadcast %98 : vector<1x32xf32> to vector<32x32xf32>
    %119 = arith.mulf %117, %118 : vector<32x32xf32>
    %120 = vector.broadcast %100 : vector<1x32xf32> to vector<32x32xf32>
    %121 = arith.addf %119, %120 : vector<32x32xf32>
    %c0_53 = arith.constant 0 : index
    %c0_54 = arith.constant 0 : index
    %c0_55 = arith.constant 0 : index
    %122 = vector.load %arg12[%c0_53, %c0_54, %c0_55] : memref<2x32x64xf32, #tpu.memory_space<vmem>>, vector<1x32x64xf32>
    %123 = vector.shape_cast %122 : vector<1x32x64xf32> to vector<32x64xf32>
    %c0_56 = arith.constant 0 : index
    %c0_57 = arith.constant 0 : index
    %c0_58 = arith.constant 0 : index
    %124 = vector.load %arg13[%c0_56, %c0_57, %c0_58] : memref<2x1x64xf32, #tpu.memory_space<vmem>>, vector<1x1x64xf32>
    %125 = vector.shape_cast %124 : vector<1x1x64xf32> to vector<1x64xf32>
    %c0_59 = arith.constant 0 : index
    %c0_60 = arith.constant 0 : index
    %c0_61 = arith.constant 0 : index
    %126 = vector.load %arg14[%c0_59, %c0_60, %c0_61] : memref<2x64x32xf32, #tpu.memory_space<vmem>>, vector<1x64x32xf32>
    %127 = vector.shape_cast %126 : vector<1x64x32xf32> to vector<64x32xf32>
    %c0_62 = arith.constant 0 : index
    %c0_63 = arith.constant 0 : index
    %c0_64 = arith.constant 0 : index
    %128 = vector.load %arg15[%c0_62, %c0_63, %c0_64] : memref<2x1x32xf32, #tpu.memory_space<vmem>>, vector<1x1x32xf32>
    %129 = vector.shape_cast %128 : vector<1x1x32xf32> to vector<1x32xf32>
    %cst_65 = arith.constant dense<0.000000e+00> : vector<32x64xf32>
    %130 = tpu.matmul %121, %123, %cst_65 {dimension_numbers = #tpu.dot_dimension_numbers<[1], [0], [0], [1], [0, 0, 1, 1], [], []>} : vector<32x32xf32>, vector<32x64xf32>, vector<32x64xf32> -> vector<32x64xf32>
    %131 = vector.broadcast %125 : vector<1x64xf32> to vector<32x64xf32>
    %132 = arith.addf %130, %131 : vector<32x64xf32>
    %cst_66 = arith.constant 0.000000e+00 : f32
    %133 = vector.broadcast %cst_66 : f32 to vector<32x64xf32>
    %134 = arith.maximumf %132, %133 : vector<32x64xf32>
    %cst_67 = arith.constant dense<0.000000e+00> : vector<32x32xf32>
    %135 = tpu.matmul %134, %127, %cst_67 {dimension_numbers = #tpu.dot_dimension_numbers<[1], [0], [0], [1], [0, 0, 1, 1], [], []>} : vector<32x64xf32>, vector<64x32xf32>, vector<32x32xf32> -> vector<32x32xf32>
    %136 = vector.broadcast %129 : vector<1x32xf32> to vector<32x32xf32>
    %137 = arith.addf %135, %136 : vector<32x32xf32>
    %c0_68 = arith.constant 0 : index
    %c0_69 = arith.constant 0 : index
    %c0_70 = arith.constant 0 : index
    %138 = vector.load %arg16[%c0_68, %c0_69, %c0_70] : memref<2x1x32xf32, #tpu.memory_space<vmem>>, vector<1x1x32xf32>
    %139 = vector.shape_cast %138 : vector<1x1x32xf32> to vector<1x32xf32>
    %c0_71 = arith.constant 0 : index
    %c0_72 = arith.constant 0 : index
    %c0_73 = arith.constant 0 : index
    %140 = vector.load %arg17[%c0_71, %c0_72, %c0_73] : memref<2x1x32xf32, #tpu.memory_space<vmem>>, vector<1x1x32xf32>
    %141 = vector.shape_cast %140 : vector<1x1x32xf32> to vector<1x32xf32>
    %142 = arith.addf %121, %137 : vector<32x32xf32>
    %cst_74 = arith.constant dense<0.000000e+00> : vector<32xf32>
    %143 = vector.multi_reduction <add>, %142, %cst_74 [1] : vector<32x32xf32> to vector<32xf32>
    %144 = vector.shape_cast %143 : vector<32xf32> to vector<32x1xf32>
    %cst_75 = arith.constant 3.200000e+01 : f32
    %145 = vector.broadcast %cst_75 : f32 to vector<32x1xf32>
    %146 = arith.divf %144, %145 : vector<32x1xf32>
    %147 = vector.broadcast %146 : vector<32x1xf32> to vector<32x32xf32>
    %148 = arith.subf %142, %147 : vector<32x32xf32>
    %149 = arith.mulf %148, %148 : vector<32x32xf32>
    %cst_76 = arith.constant dense<0.000000e+00> : vector<32xf32>
    %150 = vector.multi_reduction <add>, %149, %cst_76 [1] : vector<32x32xf32> to vector<32xf32>
    %151 = vector.shape_cast %150 : vector<32xf32> to vector<32x1xf32>
    %cst_77 = arith.constant 3.200000e+01 : f32
    %152 = vector.broadcast %cst_77 : f32 to vector<32x1xf32>
    %153 = arith.divf %151, %152 : vector<32x1xf32>
    %cst_78 = arith.constant 9.99999974E-6 : f32
    %154 = vector.broadcast %cst_78 : f32 to vector<32x1xf32>
    %155 = arith.addf %153, %154 : vector<32x1xf32>
    %156 = math.rsqrt %155 : vector<32x1xf32>
    %157 = vector.broadcast %156 : vector<32x1xf32> to vector<32x32xf32>
    %158 = arith.mulf %148, %157 : vector<32x32xf32>
    %159 = vector.broadcast %139 : vector<1x32xf32> to vector<32x32xf32>
    %160 = arith.mulf %158, %159 : vector<32x32xf32>
    %161 = vector.broadcast %141 : vector<1x32xf32> to vector<32x32xf32>
    %162 = arith.addf %160, %161 : vector<32x32xf32>
    %163 = arith.addf %162, %1 : vector<32x32xf32>
    %c1 = arith.constant 1 : index
    %c0_79 = arith.constant 0 : index
    %c0_80 = arith.constant 0 : index
    %164 = vector.load %arg6[%c1, %c0_79, %c0_80] : memref<2x32x96xf32, #tpu.memory_space<vmem>>, vector<1x32x96xf32>
    %165 = vector.shape_cast %164 : vector<1x32x96xf32> to vector<32x96xf32>
    %c1_81 = arith.constant 1 : index
    %c0_82 = arith.constant 0 : index
    %c0_83 = arith.constant 0 : index
    %166 = vector.load %arg7[%c1_81, %c0_82, %c0_83] : memref<2x1x96xf32, #tpu.memory_space<vmem>>, vector<1x1x96xf32>
    %167 = vector.shape_cast %166 : vector<1x1x96xf32> to vector<1x96xf32>
    %c1_84 = arith.constant 1 : index
    %c0_85 = arith.constant 0 : index
    %c0_86 = arith.constant 0 : index
    %168 = vector.load %arg8[%c1_84, %c0_85, %c0_86] : memref<2x32x32xf32, #tpu.memory_space<vmem>>, vector<1x32x32xf32>
    %169 = vector.shape_cast %168 : vector<1x32x32xf32> to vector<32x32xf32>
    %c1_87 = arith.constant 1 : index
    %c0_88 = arith.constant 0 : index
    %c0_89 = arith.constant 0 : index
    %170 = vector.load %arg9[%c1_87, %c0_88, %c0_89] : memref<2x1x32xf32, #tpu.memory_space<vmem>>, vector<1x1x32xf32>
    %171 = vector.shape_cast %170 : vector<1x1x32xf32> to vector<1x32xf32>
    %172 = vector.extract_strided_slice %165 {offsets = [0, 0], sizes = [32, 64], strides = [1, 1]} : vector<32x96xf32> to vector<32x64xf32>
    %173 = vector.extract_strided_slice %167 {offsets = [0, 0], sizes = [1, 64], strides = [1, 1]} : vector<1x96xf32> to vector<1x64xf32>
    %cst_90 = arith.constant dense<0.000000e+00> : vector<32x64xf32>
    %174 = tpu.matmul %163, %172, %cst_90 {dimension_numbers = #tpu.dot_dimension_numbers<[1], [0], [0], [1], [0, 0, 1, 1], [], []>} : vector<32x32xf32>, vector<32x64xf32>, vector<32x64xf32> -> vector<32x64xf32>
    %175 = vector.broadcast %173 : vector<1x64xf32> to vector<32x64xf32>
    %176 = arith.addf %174, %175 : vector<32x64xf32>
    %177 = vector.extract_strided_slice %165 {offsets = [0, 64], sizes = [32, 32], strides = [1, 1]} : vector<32x96xf32> to vector<32x32xf32>
    %178 = vector.extract_strided_slice %167 {offsets = [0, 64], sizes = [1, 32], strides = [1, 1]} : vector<1x96xf32> to vector<1x32xf32>
    %cst_91 = arith.constant dense<0.000000e+00> : vector<32x32xf32>
    %179 = tpu.matmul %162, %177, %cst_91 {dimension_numbers = #tpu.dot_dimension_numbers<[1], [0], [0], [1], [0, 0, 1, 1], [], []>} : vector<32x32xf32>, vector<32x32xf32>, vector<32x32xf32> -> vector<32x32xf32>
    %180 = vector.broadcast %178 : vector<1x32xf32> to vector<32x32xf32>
    %181 = arith.addf %179, %180 : vector<32x32xf32>
    %182 = vector.extract_strided_slice %176 {offsets = [0, 0], sizes = [32, 32], strides = [1, 1]} : vector<32x64xf32> to vector<32x32xf32>
    %183 = vector.extract_strided_slice %176 {offsets = [0, 32], sizes = [32, 32], strides = [1, 1]} : vector<32x64xf32> to vector<32x32xf32>
    %cst_92 = arith.constant 0.353553385 : f32
    %184 = vector.broadcast %cst_92 : f32 to vector<32x32xf32>
    %185 = arith.mulf %182, %184 : vector<32x32xf32>
    %186 = vector.extract_strided_slice %185 {offsets = [0, 0], sizes = [32, 8], strides = [1, 1]} : vector<32x32xf32> to vector<32x8xf32>
    %187 = vector.extract_strided_slice %183 {offsets = [0, 0], sizes = [32, 8], strides = [1, 1]} : vector<32x32xf32> to vector<32x8xf32>
    "tpu.trace_start"() <{level = 10 : i32, message = "qd,kd->qk"}> : () -> ()
    %cst_93 = arith.constant dense<0.000000e+00> : vector<32x32xf32>
    %188 = tpu.matmul %186, %187, %cst_93 {dimension_numbers = #tpu.dot_dimension_numbers<[1], [1], [0], [0], [0, 0, 1, 0], [], []>} : vector<32x8xf32>, vector<32x8xf32>, vector<32x32xf32> -> vector<32x32xf32>
    "tpu.trace_stop"() : () -> ()
    %189 = arith.addf %188, %3 : vector<32x32xf32>
    %cst_94 = arith.constant dense<0xFF800000> : vector<32xf32>
    %190 = vector.multi_reduction <maximumf>, %189, %cst_94 [1] : vector<32x32xf32> to vector<32xf32>
    %191 = vector.shape_cast %190 : vector<32xf32> to vector<32x1xf32>
    %192 = vector.broadcast %191 : vector<32x1xf32> to vector<32x32xf32>
    %193 = arith.subf %189, %192 : vector<32x32xf32>
    %194 = math.exp %193 : vector<32x32xf32>
    %cst_95 = arith.constant dense<0.000000e+00> : vector<32xf32>
    %195 = vector.multi_reduction <add>, %194, %cst_95 [1] : vector<32x32xf32> to vector<32xf32>
    %196 = vector.shape_cast %195 : vector<32xf32> to vector<32x1xf32>
    %197 = tpu.reciprocal %196 {approx = true} : vector<32x1xf32> -> vector<32x1xf32>
    %198 = vector.broadcast %197 : vector<32x1xf32> to vector<32x32xf32>
    %199 = arith.mulf %194, %198 : vector<32x32xf32>
    %200 = vector.extract_strided_slice %181 {offsets = [0, 0], sizes = [32, 8], strides = [1, 1]} : vector<32x32xf32> to vector<32x8xf32>
    %cst_96 = arith.constant dense<0.000000e+00> : vector<32x8xf32>
    %201 = tpu.matmul %199, %200, %cst_96 {dimension_numbers = #tpu.dot_dimension_numbers<[1], [0], [0], [1], [0, 0, 1, 1], [], []>} : vector<32x32xf32>, vector<32x8xf32>, vector<32x8xf32> -> vector<32x8xf32>
    %202 = vector.extract_strided_slice %185 {offsets = [0, 8], sizes = [32, 8], strides = [1, 1]} : vector<32x32xf32> to vector<32x8xf32>
    %203 = vector.extract_strided_slice %183 {offsets = [0, 8], sizes = [32, 8], strides = [1, 1]} : vector<32x32xf32> to vector<32x8xf32>
    "tpu.trace_start"() <{level = 10 : i32, message = "qd,kd->qk"}> : () -> ()
    %cst_97 = arith.constant dense<0.000000e+00> : vector<32x32xf32>
    %204 = tpu.matmul %202, %203, %cst_97 {dimension_numbers = #tpu.dot_dimension_numbers<[1], [1], [0], [0], [0, 0, 1, 0], [], []>} : vector<32x8xf32>, vector<32x8xf32>, vector<32x32xf32> -> vector<32x32xf32>
    "tpu.trace_stop"() : () -> ()
    %205 = arith.addf %204, %3 : vector<32x32xf32>
    %cst_98 = arith.constant dense<0xFF800000> : vector<32xf32>
    %206 = vector.multi_reduction <maximumf>, %205, %cst_98 [1] : vector<32x32xf32> to vector<32xf32>
    %207 = vector.shape_cast %206 : vector<32xf32> to vector<32x1xf32>
    %208 = vector.broadcast %207 : vector<32x1xf32> to vector<32x32xf32>
    %209 = arith.subf %205, %208 : vector<32x32xf32>
    %210 = math.exp %209 : vector<32x32xf32>
    %cst_99 = arith.constant dense<0.000000e+00> : vector<32xf32>
    %211 = vector.multi_reduction <add>, %210, %cst_99 [1] : vector<32x32xf32> to vector<32xf32>
    %212 = vector.shape_cast %211 : vector<32xf32> to vector<32x1xf32>
    %213 = tpu.reciprocal %212 {approx = true} : vector<32x1xf32> -> vector<32x1xf32>
    %214 = vector.broadcast %213 : vector<32x1xf32> to vector<32x32xf32>
    %215 = arith.mulf %210, %214 : vector<32x32xf32>
    %216 = vector.extract_strided_slice %181 {offsets = [0, 8], sizes = [32, 8], strides = [1, 1]} : vector<32x32xf32> to vector<32x8xf32>
    %cst_100 = arith.constant dense<0.000000e+00> : vector<32x8xf32>
    %217 = tpu.matmul %215, %216, %cst_100 {dimension_numbers = #tpu.dot_dimension_numbers<[1], [0], [0], [1], [0, 0, 1, 1], [], []>} : vector<32x32xf32>, vector<32x8xf32>, vector<32x8xf32> -> vector<32x8xf32>
    %218 = vector.extract_strided_slice %185 {offsets = [0, 16], sizes = [32, 8], strides = [1, 1]} : vector<32x32xf32> to vector<32x8xf32>
    %219 = vector.extract_strided_slice %183 {offsets = [0, 16], sizes = [32, 8], strides = [1, 1]} : vector<32x32xf32> to vector<32x8xf32>
    "tpu.trace_start"() <{level = 10 : i32, message = "qd,kd->qk"}> : () -> ()
    %cst_101 = arith.constant dense<0.000000e+00> : vector<32x32xf32>
    %220 = tpu.matmul %218, %219, %cst_101 {dimension_numbers = #tpu.dot_dimension_numbers<[1], [1], [0], [0], [0, 0, 1, 0], [], []>} : vector<32x8xf32>, vector<32x8xf32>, vector<32x32xf32> -> vector<32x32xf32>
    "tpu.trace_stop"() : () -> ()
    %221 = arith.addf %220, %3 : vector<32x32xf32>
    %cst_102 = arith.constant dense<0xFF800000> : vector<32xf32>
    %222 = vector.multi_reduction <maximumf>, %221, %cst_102 [1] : vector<32x32xf32> to vector<32xf32>
    %223 = vector.shape_cast %222 : vector<32xf32> to vector<32x1xf32>
    %224 = vector.broadcast %223 : vector<32x1xf32> to vector<32x32xf32>
    %225 = arith.subf %221, %224 : vector<32x32xf32>
    %226 = math.exp %225 : vector<32x32xf32>
    %cst_103 = arith.constant dense<0.000000e+00> : vector<32xf32>
    %227 = vector.multi_reduction <add>, %226, %cst_103 [1] : vector<32x32xf32> to vector<32xf32>
    %228 = vector.shape_cast %227 : vector<32xf32> to vector<32x1xf32>
    %229 = tpu.reciprocal %228 {approx = true} : vector<32x1xf32> -> vector<32x1xf32>
    %230 = vector.broadcast %229 : vector<32x1xf32> to vector<32x32xf32>
    %231 = arith.mulf %226, %230 : vector<32x32xf32>
    %232 = vector.extract_strided_slice %181 {offsets = [0, 16], sizes = [32, 8], strides = [1, 1]} : vector<32x32xf32> to vector<32x8xf32>
    %cst_104 = arith.constant dense<0.000000e+00> : vector<32x8xf32>
    %233 = tpu.matmul %231, %232, %cst_104 {dimension_numbers = #tpu.dot_dimension_numbers<[1], [0], [0], [1], [0, 0, 1, 1], [], []>} : vector<32x32xf32>, vector<32x8xf32>, vector<32x8xf32> -> vector<32x8xf32>
    %234 = vector.extract_strided_slice %185 {offsets = [0, 24], sizes = [32, 8], strides = [1, 1]} : vector<32x32xf32> to vector<32x8xf32>
    %235 = vector.extract_strided_slice %183 {offsets = [0, 24], sizes = [32, 8], strides = [1, 1]} : vector<32x32xf32> to vector<32x8xf32>
    "tpu.trace_start"() <{level = 10 : i32, message = "qd,kd->qk"}> : () -> ()
    %cst_105 = arith.constant dense<0.000000e+00> : vector<32x32xf32>
    %236 = tpu.matmul %234, %235, %cst_105 {dimension_numbers = #tpu.dot_dimension_numbers<[1], [1], [0], [0], [0, 0, 1, 0], [], []>} : vector<32x8xf32>, vector<32x8xf32>, vector<32x32xf32> -> vector<32x32xf32>
    "tpu.trace_stop"() : () -> ()
    %237 = arith.addf %236, %3 : vector<32x32xf32>
    %cst_106 = arith.constant dense<0xFF800000> : vector<32xf32>
    %238 = vector.multi_reduction <maximumf>, %237, %cst_106 [1] : vector<32x32xf32> to vector<32xf32>
    %239 = vector.shape_cast %238 : vector<32xf32> to vector<32x1xf32>
    %240 = vector.broadcast %239 : vector<32x1xf32> to vector<32x32xf32>
    %241 = arith.subf %237, %240 : vector<32x32xf32>
    %242 = math.exp %241 : vector<32x32xf32>
    %cst_107 = arith.constant dense<0.000000e+00> : vector<32xf32>
    %243 = vector.multi_reduction <add>, %242, %cst_107 [1] : vector<32x32xf32> to vector<32xf32>
    %244 = vector.shape_cast %243 : vector<32xf32> to vector<32x1xf32>
    %245 = tpu.reciprocal %244 {approx = true} : vector<32x1xf32> -> vector<32x1xf32>
    %246 = vector.broadcast %245 : vector<32x1xf32> to vector<32x32xf32>
    %247 = arith.mulf %242, %246 : vector<32x32xf32>
    %248 = vector.extract_strided_slice %181 {offsets = [0, 24], sizes = [32, 8], strides = [1, 1]} : vector<32x32xf32> to vector<32x8xf32>
    %cst_108 = arith.constant dense<0.000000e+00> : vector<32x8xf32>
    %249 = tpu.matmul %247, %248, %cst_108 {dimension_numbers = #tpu.dot_dimension_numbers<[1], [0], [0], [1], [0, 0, 1, 1], [], []>} : vector<32x32xf32>, vector<32x8xf32>, vector<32x8xf32> -> vector<32x8xf32>
    %250 = tpu.concatenate %201, %217, %233, %249 in 1 : vector<32x8xf32>, vector<32x8xf32>, vector<32x8xf32>, vector<32x8xf32> -> vector<32x32xf32>
    %cst_109 = arith.constant dense<0.000000e+00> : vector<32x32xf32>
    %251 = tpu.matmul %250, %169, %cst_109 {dimension_numbers = #tpu.dot_dimension_numbers<[1], [0], [0], [1], [0, 0, 1, 1], [], []>} : vector<32x32xf32>, vector<32x32xf32>, vector<32x32xf32> -> vector<32x32xf32>
    %252 = vector.broadcast %171 : vector<1x32xf32> to vector<32x32xf32>
    %253 = arith.addf %251, %252 : vector<32x32xf32>
    %c1_110 = arith.constant 1 : index
    %c0_111 = arith.constant 0 : index
    %c0_112 = arith.constant 0 : index
    %254 = vector.load %arg10[%c1_110, %c0_111, %c0_112] : memref<2x1x32xf32, #tpu.memory_space<vmem>>, vector<1x1x32xf32>
    %255 = vector.shape_cast %254 : vector<1x1x32xf32> to vector<1x32xf32>
    %c1_113 = arith.constant 1 : index
    %c0_114 = arith.constant 0 : index
    %c0_115 = arith.constant 0 : index
    %256 = vector.load %arg11[%c1_113, %c0_114, %c0_115] : memref<2x1x32xf32, #tpu.memory_space<vmem>>, vector<1x1x32xf32>
    %257 = vector.shape_cast %256 : vector<1x1x32xf32> to vector<1x32xf32>
    %258 = arith.addf %162, %253 : vector<32x32xf32>
    %cst_116 = arith.constant dense<0.000000e+00> : vector<32xf32>
    %259 = vector.multi_reduction <add>, %258, %cst_116 [1] : vector<32x32xf32> to vector<32xf32>
    %260 = vector.shape_cast %259 : vector<32xf32> to vector<32x1xf32>
    %cst_117 = arith.constant 3.200000e+01 : f32
    %261 = vector.broadcast %cst_117 : f32 to vector<32x1xf32>
    %262 = arith.divf %260, %261 : vector<32x1xf32>
    %263 = vector.broadcast %262 : vector<32x1xf32> to vector<32x32xf32>
    %264 = arith.subf %258, %263 : vector<32x32xf32>
    %265 = arith.mulf %264, %264 : vector<32x32xf32>
    %cst_118 = arith.constant dense<0.000000e+00> : vector<32xf32>
    %266 = vector.multi_reduction <add>, %265, %cst_118 [1] : vector<32x32xf32> to vector<32xf32>
    %267 = vector.shape_cast %266 : vector<32xf32> to vector<32x1xf32>
    %cst_119 = arith.constant 3.200000e+01 : f32
    %268 = vector.broadcast %cst_119 : f32 to vector<32x1xf32>
    %269 = arith.divf %267, %268 : vector<32x1xf32>
    %cst_120 = arith.constant 9.99999974E-6 : f32
    %270 = vector.broadcast %cst_120 : f32 to vector<32x1xf32>
    %271 = arith.addf %269, %270 : vector<32x1xf32>
    %272 = math.rsqrt %271 : vector<32x1xf32>
    %273 = vector.broadcast %272 : vector<32x1xf32> to vector<32x32xf32>
    %274 = arith.mulf %264, %273 : vector<32x32xf32>
    %275 = vector.broadcast %255 : vector<1x32xf32> to vector<32x32xf32>
    %276 = arith.mulf %274, %275 : vector<32x32xf32>
    %277 = vector.broadcast %257 : vector<1x32xf32> to vector<32x32xf32>
    %278 = arith.addf %276, %277 : vector<32x32xf32>
    %c1_121 = arith.constant 1 : index
    %c0_122 = arith.constant 0 : index
    %c0_123 = arith.constant 0 : index
    %279 = vector.load %arg12[%c1_121, %c0_122, %c0_123] : memref<2x32x64xf32, #tpu.memory_space<vmem>>, vector<1x32x64xf32>
    %280 = vector.shape_cast %279 : vector<1x32x64xf32> to vector<32x64xf32>
    %c1_124 = arith.constant 1 : index
    %c0_125 = arith.constant 0 : index
    %c0_126 = arith.constant 0 : index
    %281 = vector.load %arg13[%c1_124, %c0_125, %c0_126] : memref<2x1x64xf32, #tpu.memory_space<vmem>>, vector<1x1x64xf32>
    %282 = vector.shape_cast %281 : vector<1x1x64xf32> to vector<1x64xf32>
    %c1_127 = arith.constant 1 : index
    %c0_128 = arith.constant 0 : index
    %c0_129 = arith.constant 0 : index
    %283 = vector.load %arg14[%c1_127, %c0_128, %c0_129] : memref<2x64x32xf32, #tpu.memory_space<vmem>>, vector<1x64x32xf32>
    %284 = vector.shape_cast %283 : vector<1x64x32xf32> to vector<64x32xf32>
    %c1_130 = arith.constant 1 : index
    %c0_131 = arith.constant 0 : index
    %c0_132 = arith.constant 0 : index
    %285 = vector.load %arg15[%c1_130, %c0_131, %c0_132] : memref<2x1x32xf32, #tpu.memory_space<vmem>>, vector<1x1x32xf32>
    %286 = vector.shape_cast %285 : vector<1x1x32xf32> to vector<1x32xf32>
    %cst_133 = arith.constant dense<0.000000e+00> : vector<32x64xf32>
    %287 = tpu.matmul %278, %280, %cst_133 {dimension_numbers = #tpu.dot_dimension_numbers<[1], [0], [0], [1], [0, 0, 1, 1], [], []>} : vector<32x32xf32>, vector<32x64xf32>, vector<32x64xf32> -> vector<32x64xf32>
    %288 = vector.broadcast %282 : vector<1x64xf32> to vector<32x64xf32>
    %289 = arith.addf %287, %288 : vector<32x64xf32>
    %cst_134 = arith.constant 0.000000e+00 : f32
    %290 = vector.broadcast %cst_134 : f32 to vector<32x64xf32>
    %291 = arith.maximumf %289, %290 : vector<32x64xf32>
    %cst_135 = arith.constant dense<0.000000e+00> : vector<32x32xf32>
    %292 = tpu.matmul %291, %284, %cst_135 {dimension_numbers = #tpu.dot_dimension_numbers<[1], [0], [0], [1], [0, 0, 1, 1], [], []>} : vector<32x64xf32>, vector<64x32xf32>, vector<32x32xf32> -> vector<32x32xf32>
    %293 = vector.broadcast %286 : vector<1x32xf32> to vector<32x32xf32>
    %294 = arith.addf %292, %293 : vector<32x32xf32>
    %c1_136 = arith.constant 1 : index
    %c0_137 = arith.constant 0 : index
    %c0_138 = arith.constant 0 : index
    %295 = vector.load %arg16[%c1_136, %c0_137, %c0_138] : memref<2x1x32xf32, #tpu.memory_space<vmem>>, vector<1x1x32xf32>
    %296 = vector.shape_cast %295 : vector<1x1x32xf32> to vector<1x32xf32>
    %c1_139 = arith.constant 1 : index
    %c0_140 = arith.constant 0 : index
    %c0_141 = arith.constant 0 : index
    %297 = vector.load %arg17[%c1_139, %c0_140, %c0_141] : memref<2x1x32xf32, #tpu.memory_space<vmem>>, vector<1x1x32xf32>
    %298 = vector.shape_cast %297 : vector<1x1x32xf32> to vector<1x32xf32>
    %299 = arith.addf %278, %294 : vector<32x32xf32>
    %cst_142 = arith.constant dense<0.000000e+00> : vector<32xf32>
    %300 = vector.multi_reduction <add>, %299, %cst_142 [1] : vector<32x32xf32> to vector<32xf32>
    %301 = vector.shape_cast %300 : vector<32xf32> to vector<32x1xf32>
    %cst_143 = arith.constant 3.200000e+01 : f32
    %302 = vector.broadcast %cst_143 : f32 to vector<32x1xf32>
    %303 = arith.divf %301, %302 : vector<32x1xf32>
    %304 = vector.broadcast %303 : vector<32x1xf32> to vector<32x32xf32>
    %305 = arith.subf %299, %304 : vector<32x32xf32>
    %306 = arith.mulf %305, %305 : vector<32x32xf32>
    %cst_144 = arith.constant dense<0.000000e+00> : vector<32xf32>
    %307 = vector.multi_reduction <add>, %306, %cst_144 [1] : vector<32x32xf32> to vector<32xf32>
    %308 = vector.shape_cast %307 : vector<32xf32> to vector<32x1xf32>
    %cst_145 = arith.constant 3.200000e+01 : f32
    %309 = vector.broadcast %cst_145 : f32 to vector<32x1xf32>
    %310 = arith.divf %308, %309 : vector<32x1xf32>
    %cst_146 = arith.constant 9.99999974E-6 : f32
    %311 = vector.broadcast %cst_146 : f32 to vector<32x1xf32>
    %312 = arith.addf %310, %311 : vector<32x1xf32>
    %313 = math.rsqrt %312 : vector<32x1xf32>
    %314 = vector.broadcast %313 : vector<32x1xf32> to vector<32x32xf32>
    %315 = arith.mulf %305, %314 : vector<32x32xf32>
    %316 = vector.broadcast %296 : vector<1x32xf32> to vector<32x32xf32>
    %317 = arith.mulf %315, %316 : vector<32x32xf32>
    %318 = vector.broadcast %298 : vector<1x32xf32> to vector<32x32xf32>
    %319 = arith.addf %317, %318 : vector<32x32xf32>
    %c0_147 = arith.constant 0 : index
    %c0_148 = arith.constant 0 : index
    %320 = vector.load %arg39[%c0_147, %c0_148] : memref<32x32xf32, #tpu.memory_space<vmem>>, vector<32x32xf32>
    tpu.vector_store %arg39[%c0_147, %c0_148], %319 {strides = array<i32>} : memref<32x32xf32, #tpu.memory_space<vmem>>, vector<32x32xf32>,
    %321 = arith.addf %319, %1 : vector<32x32xf32>
    %c0_149 = arith.constant 0 : index
    %c0_150 = arith.constant 0 : index
    %322 = vector.load %arg36[%c0_149, %c0_150] : memref<1x32xf32, #tpu.memory_space<vmem>>, vector<1x32xf32>
    %c0_151 = arith.constant 0 : index
    %c0_152 = arith.constant 0 : index
    %323 = vector.load %arg37[%c0_151, %c0_152] : memref<1x32xf32, #tpu.memory_space<vmem>>, vector<1x32xf32>
    %c0_153 = arith.constant 0 : index
    %c0_154 = arith.constant 0 : index
    %c0_155 = arith.constant 0 : index
    %324 = vector.load %arg19[%c0_153, %c0_154, %c0_155] : memref<2x1x96xf32, #tpu.memory_space<vmem>>, vector<1x1x96xf32>
    %325 = vector.shape_cast %324 : vector<1x1x96xf32> to vector<1x96xf32>
    %326 = vector.extract_strided_slice %325 {offsets = [0, 64], sizes = [1, 32], strides = [1, 1]} : vector<1x96xf32> to vector<1x32xf32>
    %c0_156 = arith.constant 0 : index
    %c0_157 = arith.constant 0 : index
    %c0_158 = arith.constant 0 : index
    %327 = vector.load %arg20[%c0_156, %c0_157, %c0_158] : memref<2x32x32xf32, #tpu.memory_space<vmem>>, vector<1x32x32xf32>
    %328 = vector.shape_cast %327 : vector<1x32x32xf32> to vector<32x32xf32>
    %cst_159 = arith.constant dense<0.000000e+00> : vector<1x32xf32>
    %329 = tpu.matmul %326, %328, %cst_159 {dimension_numbers = #tpu.dot_dimension_numbers<[1], [0], [0], [1], [0, 0, 1, 1], [], []>} : vector<1x32xf32>, vector<32x32xf32>, vector<1x32xf32> -> vector<1x32xf32>
    %c0_160 = arith.constant 0 : index
    %c0_161 = arith.constant 0 : index
    %c0_162 = arith.constant 0 : index
    %330 = vector.load %arg21[%c0_160, %c0_161, %c0_162] : memref<2x1x32xf32, #tpu.memory_space<vmem>>, vector<1x1x32xf32>
    %331 = vector.shape_cast %330 : vector<1x1x32xf32> to vector<1x32xf32>
    %332 = arith.addf %329, %331 : vector<1x32xf32>
    %c0_163 = arith.constant 0 : index
    %c0_164 = arith.constant 0 : index
    %c0_165 = arith.constant 0 : index
    %333 = vector.load %arg22[%c0_163, %c0_164, %c0_165] : memref<2x1x32xf32, #tpu.memory_space<vmem>>, vector<1x1x32xf32>
    %334 = vector.shape_cast %333 : vector<1x1x32xf32> to vector<1x32xf32>
    %c0_166 = arith.constant 0 : index
    %c0_167 = arith.constant 0 : index
    %c0_168 = arith.constant 0 : index
    %335 = vector.load %arg23[%c0_166, %c0_167, %c0_168] : memref<2x1x32xf32, #tpu.memory_space<vmem>>, vector<1x1x32xf32>
    %336 = vector.shape_cast %335 : vector<1x1x32xf32> to vector<1x32xf32>
    %cst_169 = arith.constant dense<0.000000e+00> : vector<1xf32>
    %337 = vector.multi_reduction <add>, %332, %cst_169 [1] : vector<1x32xf32> to vector<1xf32>
    %338 = vector.shape_cast %337 : vector<1xf32> to vector<1x1xf32>
    %cst_170 = arith.constant 3.200000e+01 : f32
    %339 = vector.broadcast %cst_170 : f32 to vector<1x1xf32>
    %340 = arith.divf %338, %339 : vector<1x1xf32>
    %341 = vector.broadcast %340 : vector<1x1xf32> to vector<1x32xf32>
    %342 = arith.subf %332, %341 : vector<1x32xf32>
    %343 = arith.mulf %342, %342 : vector<1x32xf32>
    %cst_171 = arith.constant dense<0.000000e+00> : vector<1xf32>
    %344 = vector.multi_reduction <add>, %343, %cst_171 [1] : vector<1x32xf32> to vector<1xf32>
    %345 = vector.shape_cast %344 : vector<1xf32> to vector<1x1xf32>
    %cst_172 = arith.constant 3.200000e+01 : f32
    %346 = vector.broadcast %cst_172 : f32 to vector<1x1xf32>
    %347 = arith.divf %345, %346 : vector<1x1xf32>
    %cst_173 = arith.constant 9.99999974E-6 : f32
    %348 = vector.broadcast %cst_173 : f32 to vector<1x1xf32>
    %349 = arith.addf %347, %348 : vector<1x1xf32>
    %350 = math.rsqrt %349 : vector<1x1xf32>
    %351 = vector.broadcast %350 : vector<1x1xf32> to vector<1x32xf32>
    %352 = arith.mulf %342, %351 : vector<1x32xf32>
    %353 = arith.mulf %352, %334 : vector<1x32xf32>
    %354 = arith.addf %353, %336 : vector<1x32xf32>
    %355 = vector.shape_cast %354 : vector<1x32xf32> to vector<1x32xf32>
    %356 = vector.broadcast %355 : vector<1x32xf32> to vector<32x32xf32>
    %357 = arith.addf %356, %2 : vector<32x32xf32>
    %c0_174 = arith.constant 0 : index
    %c0_175 = arith.constant 0 : index
    %c0_176 = arith.constant 0 : index
    %358 = vector.load %arg24[%c0_174, %c0_175, %c0_176] : memref<2x32x96xf32, #tpu.memory_space<vmem>>, vector<1x32x96xf32>
    %359 = vector.shape_cast %358 : vector<1x32x96xf32> to vector<32x96xf32>
    %c0_177 = arith.constant 0 : index
    %c0_178 = arith.constant 0 : index
    %c0_179 = arith.constant 0 : index
    %360 = vector.load %arg25[%c0_177, %c0_178, %c0_179] : memref<2x1x96xf32, #tpu.memory_space<vmem>>, vector<1x1x96xf32>
    %361 = vector.shape_cast %360 : vector<1x1x96xf32> to vector<1x96xf32>
    %c0_180 = arith.constant 0 : index
    %c0_181 = arith.constant 0 : index
    %c0_182 = arith.constant 0 : index
    %362 = vector.load %arg26[%c0_180, %c0_181, %c0_182] : memref<2x32x32xf32, #tpu.memory_space<vmem>>, vector<1x32x32xf32>
    %363 = vector.shape_cast %362 : vector<1x32x32xf32> to vector<32x32xf32>
    %c0_183 = arith.constant 0 : index
    %c0_184 = arith.constant 0 : index
    %c0_185 = arith.constant 0 : index
    %364 = vector.load %arg27[%c0_183, %c0_184, %c0_185] : memref<2x1x32xf32, #tpu.memory_space<vmem>>, vector<1x1x32xf32>
    %365 = vector.shape_cast %364 : vector<1x1x32xf32> to vector<1x32xf32>
    %366 = vector.extract_strided_slice %359 {offsets = [0, 0], sizes = [32, 32], strides = [1, 1]} : vector<32x96xf32> to vector<32x32xf32>
    %367 = vector.extract_strided_slice %361 {offsets = [0, 0], sizes = [1, 32], strides = [1, 1]} : vector<1x96xf32> to vector<1x32xf32>
    %cst_186 = arith.constant dense<0.000000e+00> : vector<32x32xf32>
    %368 = tpu.matmul %357, %366, %cst_186 {dimension_numbers = #tpu.dot_dimension_numbers<[1], [0], [0], [1], [0, 0, 1, 1], [], []>} : vector<32x32xf32>, vector<32x32xf32>, vector<32x32xf32> -> vector<32x32xf32>
    %369 = vector.broadcast %367 : vector<1x32xf32> to vector<32x32xf32>
    %370 = arith.addf %368, %369 : vector<32x32xf32>
    %371 = vector.extract_strided_slice %359 {offsets = [0, 32], sizes = [32, 32], strides = [1, 1]} : vector<32x96xf32> to vector<32x32xf32>
    %372 = vector.extract_strided_slice %361 {offsets = [0, 32], sizes = [1, 32], strides = [1, 1]} : vector<1x96xf32> to vector<1x32xf32>
    %cst_187 = arith.constant dense<0.000000e+00> : vector<32x32xf32>
    %373 = tpu.matmul %321, %371, %cst_187 {dimension_numbers = #tpu.dot_dimension_numbers<[1], [0], [0], [1], [0, 0, 1, 1], [], []>} : vector<32x32xf32>, vector<32x32xf32>, vector<32x32xf32> -> vector<32x32xf32>
    %374 = vector.broadcast %372 : vector<1x32xf32> to vector<32x32xf32>
    %375 = arith.addf %373, %374 : vector<32x32xf32>
    %376 = vector.extract_strided_slice %359 {offsets = [0, 64], sizes = [32, 32], strides = [1, 1]} : vector<32x96xf32> to vector<32x32xf32>
    %377 = vector.extract_strided_slice %361 {offsets = [0, 64], sizes = [1, 32], strides = [1, 1]} : vector<1x96xf32> to vector<1x32xf32>
    %cst_188 = arith.constant dense<0.000000e+00> : vector<32x32xf32>
    %378 = tpu.matmul %319, %376, %cst_188 {dimension_numbers = #tpu.dot_dimension_numbers<[1], [0], [0], [1], [0, 0, 1, 1], [], []>} : vector<32x32xf32>, vector<32x32xf32>, vector<32x32xf32> -> vector<32x32xf32>
    %379 = vector.broadcast %377 : vector<1x32xf32> to vector<32x32xf32>
    %380 = arith.addf %378, %379 : vector<32x32xf32>
    %cst_189 = arith.constant 0.353553385 : f32
    %381 = vector.broadcast %cst_189 : f32 to vector<32x32xf32>
    %382 = arith.mulf %370, %381 : vector<32x32xf32>
    %383 = vector.extract_strided_slice %382 {offsets = [0, 0], sizes = [32, 8], strides = [1, 1]} : vector<32x32xf32> to vector<32x8xf32>
    %384 = vector.extract_strided_slice %375 {offsets = [0, 0], sizes = [32, 8], strides = [1, 1]} : vector<32x32xf32> to vector<32x8xf32>
    "tpu.trace_start"() <{level = 10 : i32, message = "qd,kd->qk"}> : () -> ()
    %cst_190 = arith.constant dense<0.000000e+00> : vector<32x32xf32>
    %385 = tpu.matmul %383, %384, %cst_190 {dimension_numbers = #tpu.dot_dimension_numbers<[1], [1], [0], [0], [0, 0, 1, 0], [], []>} : vector<32x8xf32>, vector<32x8xf32>, vector<32x32xf32> -> vector<32x32xf32>
    "tpu.trace_stop"() : () -> ()
    %386 = arith.addf %385, %5 : vector<32x32xf32>
    %cst_191 = arith.constant dense<0xFF800000> : vector<32xf32>
    %387 = vector.multi_reduction <maximumf>, %386, %cst_191 [1] : vector<32x32xf32> to vector<32xf32>
    %388 = vector.shape_cast %387 : vector<32xf32> to vector<32x1xf32>
    %389 = vector.broadcast %388 : vector<32x1xf32> to vector<32x32xf32>
    %390 = arith.subf %386, %389 : vector<32x32xf32>
    %391 = math.exp %390 : vector<32x32xf32>
    %cst_192 = arith.constant dense<0.000000e+00> : vector<32xf32>
    %392 = vector.multi_reduction <add>, %391, %cst_192 [1] : vector<32x32xf32> to vector<32xf32>
    %393 = vector.shape_cast %392 : vector<32xf32> to vector<32x1xf32>
    %394 = tpu.reciprocal %393 {approx = true} : vector<32x1xf32> -> vector<32x1xf32>
    %395 = vector.broadcast %394 : vector<32x1xf32> to vector<32x32xf32>
    %396 = arith.mulf %391, %395 : vector<32x32xf32>
    %397 = vector.extract_strided_slice %380 {offsets = [0, 0], sizes = [32, 8], strides = [1, 1]} : vector<32x32xf32> to vector<32x8xf32>
    %cst_193 = arith.constant dense<0.000000e+00> : vector<32x8xf32>
    %398 = tpu.matmul %396, %397, %cst_193 {dimension_numbers = #tpu.dot_dimension_numbers<[1], [0], [0], [1], [0, 0, 1, 1], [], []>} : vector<32x32xf32>, vector<32x8xf32>, vector<32x8xf32> -> vector<32x8xf32>
    %399 = vector.extract_strided_slice %382 {offsets = [0, 8], sizes = [32, 8], strides = [1, 1]} : vector<32x32xf32> to vector<32x8xf32>
    %400 = vector.extract_strided_slice %375 {offsets = [0, 8], sizes = [32, 8], strides = [1, 1]} : vector<32x32xf32> to vector<32x8xf32>
    "tpu.trace_start"() <{level = 10 : i32, message = "qd,kd->qk"}> : () -> ()
    %cst_194 = arith.constant dense<0.000000e+00> : vector<32x32xf32>
    %401 = tpu.matmul %399, %400, %cst_194 {dimension_numbers = #tpu.dot_dimension_numbers<[1], [1], [0], [0], [0, 0, 1, 0], [], []>} : vector<32x8xf32>, vector<32x8xf32>, vector<32x32xf32> -> vector<32x32xf32>
    "tpu.trace_stop"() : () -> ()
    %402 = arith.addf %401, %5 : vector<32x32xf32>
    %cst_195 = arith.constant dense<0xFF800000> : vector<32xf32>
    %403 = vector.multi_reduction <maximumf>, %402, %cst_195 [1] : vector<32x32xf32> to vector<32xf32>
    %404 = vector.shape_cast %403 : vector<32xf32> to vector<32x1xf32>
    %405 = vector.broadcast %404 : vector<32x1xf32> to vector<32x32xf32>
    %406 = arith.subf %402, %405 : vector<32x32xf32>
    %407 = math.exp %406 : vector<32x32xf32>
    %cst_196 = arith.constant dense<0.000000e+00> : vector<32xf32>
    %408 = vector.multi_reduction <add>, %407, %cst_196 [1] : vector<32x32xf32> to vector<32xf32>
    %409 = vector.shape_cast %408 : vector<32xf32> to vector<32x1xf32>
    %410 = tpu.reciprocal %409 {approx = true} : vector<32x1xf32> -> vector<32x1xf32>
    %411 = vector.broadcast %410 : vector<32x1xf32> to vector<32x32xf32>
    %412 = arith.mulf %407, %411 : vector<32x32xf32>
    %413 = vector.extract_strided_slice %380 {offsets = [0, 8], sizes = [32, 8], strides = [1, 1]} : vector<32x32xf32> to vector<32x8xf32>
    %cst_197 = arith.constant dense<0.000000e+00> : vector<32x8xf32>
    %414 = tpu.matmul %412, %413, %cst_197 {dimension_numbers = #tpu.dot_dimension_numbers<[1], [0], [0], [1], [0, 0, 1, 1], [], []>} : vector<32x32xf32>, vector<32x8xf32>, vector<32x8xf32> -> vector<32x8xf32>
    %415 = vector.extract_strided_slice %382 {offsets = [0, 16], sizes = [32, 8], strides = [1, 1]} : vector<32x32xf32> to vector<32x8xf32>
    %416 = vector.extract_strided_slice %375 {offsets = [0, 16], sizes = [32, 8], strides = [1, 1]} : vector<32x32xf32> to vector<32x8xf32>
    "tpu.trace_start"() <{level = 10 : i32, message = "qd,kd->qk"}> : () -> ()
    %cst_198 = arith.constant dense<0.000000e+00> : vector<32x32xf32>
    %417 = tpu.matmul %415, %416, %cst_198 {dimension_numbers = #tpu.dot_dimension_numbers<[1], [1], [0], [0], [0, 0, 1, 0], [], []>} : vector<32x8xf32>, vector<32x8xf32>, vector<32x32xf32> -> vector<32x32xf32>
    "tpu.trace_stop"() : () -> ()
    %418 = arith.addf %417, %5 : vector<32x32xf32>
    %cst_199 = arith.constant dense<0xFF800000> : vector<32xf32>
    %419 = vector.multi_reduction <maximumf>, %418, %cst_199 [1] : vector<32x32xf32> to vector<32xf32>
    %420 = vector.shape_cast %419 : vector<32xf32> to vector<32x1xf32>
    %421 = vector.broadcast %420 : vector<32x1xf32> to vector<32x32xf32>
    %422 = arith.subf %418, %421 : vector<32x32xf32>
    %423 = math.exp %422 : vector<32x32xf32>
    %cst_200 = arith.constant dense<0.000000e+00> : vector<32xf32>
    %424 = vector.multi_reduction <add>, %423, %cst_200 [1] : vector<32x32xf32> to vector<32xf32>
    %425 = vector.shape_cast %424 : vector<32xf32> to vector<32x1xf32>
    %426 = tpu.reciprocal %425 {approx = true} : vector<32x1xf32> -> vector<32x1xf32>
    %427 = vector.broadcast %426 : vector<32x1xf32> to vector<32x32xf32>
    %428 = arith.mulf %423, %427 : vector<32x32xf32>
    %429 = vector.extract_strided_slice %380 {offsets = [0, 16], sizes = [32, 8], strides = [1, 1]} : vector<32x32xf32> to vector<32x8xf32>
    %cst_201 = arith.constant dense<0.000000e+00> : vector<32x8xf32>
    %430 = tpu.matmul %428, %429, %cst_201 {dimension_numbers = #tpu.dot_dimension_numbers<[1], [0], [0], [1], [0, 0, 1, 1], [], []>} : vector<32x32xf32>, vector<32x8xf32>, vector<32x8xf32> -> vector<32x8xf32>
    %431 = vector.extract_strided_slice %382 {offsets = [0, 24], sizes = [32, 8], strides = [1, 1]} : vector<32x32xf32> to vector<32x8xf32>
    %432 = vector.extract_strided_slice %375 {offsets = [0, 24], sizes = [32, 8], strides = [1, 1]} : vector<32x32xf32> to vector<32x8xf32>
    "tpu.trace_start"() <{level = 10 : i32, message = "qd,kd->qk"}> : () -> ()
    %cst_202 = arith.constant dense<0.000000e+00> : vector<32x32xf32>
    %433 = tpu.matmul %431, %432, %cst_202 {dimension_numbers = #tpu.dot_dimension_numbers<[1], [1], [0], [0], [0, 0, 1, 0], [], []>} : vector<32x8xf32>, vector<32x8xf32>, vector<32x32xf32> -> vector<32x32xf32>
    "tpu.trace_stop"() : () -> ()
    %434 = arith.addf %433, %5 : vector<32x32xf32>
    %cst_203 = arith.constant dense<0xFF800000> : vector<32xf32>
    %435 = vector.multi_reduction <maximumf>, %434, %cst_203 [1] : vector<32x32xf32> to vector<32xf32>
    %436 = vector.shape_cast %435 : vector<32xf32> to vector<32x1xf32>
    %437 = vector.broadcast %436 : vector<32x1xf32> to vector<32x32xf32>
    %438 = arith.subf %434, %437 : vector<32x32xf32>
    %439 = math.exp %438 : vector<32x32xf32>
    %cst_204 = arith.constant dense<0.000000e+00> : vector<32xf32>
    %440 = vector.multi_reduction <add>, %439, %cst_204 [1] : vector<32x32xf32> to vector<32xf32>
    %441 = vector.shape_cast %440 : vector<32xf32> to vector<32x1xf32>
    %442 = tpu.reciprocal %441 {approx = true} : vector<32x1xf32> -> vector<32x1xf32>
    %443 = vector.broadcast %442 : vector<32x1xf32> to vector<32x32xf32>
    %444 = arith.mulf %439, %443 : vector<32x32xf32>
    %445 = vector.extract_strided_slice %380 {offsets = [0, 24], sizes = [32, 8], strides = [1, 1]} : vector<32x32xf32> to vector<32x8xf32>
    %cst_205 = arith.constant dense<0.000000e+00> : vector<32x8xf32>
    %446 = tpu.matmul %444, %445, %cst_205 {dimension_numbers = #tpu.dot_dimension_numbers<[1], [0], [0], [1], [0, 0, 1, 1], [], []>} : vector<32x32xf32>, vector<32x8xf32>, vector<32x8xf32> -> vector<32x8xf32>
    %447 = tpu.concatenate %398, %414, %430, %446 in 1 : vector<32x8xf32>, vector<32x8xf32>, vector<32x8xf32>, vector<32x8xf32> -> vector<32x32xf32>
    %cst_206 = arith.constant dense<0.000000e+00> : vector<32x32xf32>
    %448 = tpu.matmul %447, %363, %cst_206 {dimension_numbers = #tpu.dot_dimension_numbers<[1], [0], [0], [1], [0, 0, 1, 1], [], []>} : vector<32x32xf32>, vector<32x32xf32>, vector<32x32xf32> -> vector<32x32xf32>
    %449 = vector.broadcast %365 : vector<1x32xf32> to vector<32x32xf32>
    %450 = arith.addf %448, %449 : vector<32x32xf32>
    %c0_207 = arith.constant 0 : index
    %c0_208 = arith.constant 0 : index
    %c0_209 = arith.constant 0 : index
    %451 = vector.load %arg28[%c0_207, %c0_208, %c0_209] : memref<2x1x32xf32, #tpu.memory_space<vmem>>, vector<1x1x32xf32>
    %452 = vector.shape_cast %451 : vector<1x1x32xf32> to vector<1x32xf32>
    %c0_210 = arith.constant 0 : index
    %c0_211 = arith.constant 0 : index
    %c0_212 = arith.constant 0 : index
    %453 = vector.load %arg29[%c0_210, %c0_211, %c0_212] : memref<2x1x32xf32, #tpu.memory_space<vmem>>, vector<1x1x32xf32>
    %454 = vector.shape_cast %453 : vector<1x1x32xf32> to vector<1x32xf32>
    %455 = arith.addf %356, %450 : vector<32x32xf32>
    %cst_213 = arith.constant dense<0.000000e+00> : vector<32xf32>
    %456 = vector.multi_reduction <add>, %455, %cst_213 [1] : vector<32x32xf32> to vector<32xf32>
    %457 = vector.shape_cast %456 : vector<32xf32> to vector<32x1xf32>
    %cst_214 = arith.constant 3.200000e+01 : f32
    %458 = vector.broadcast %cst_214 : f32 to vector<32x1xf32>
    %459 = arith.divf %457, %458 : vector<32x1xf32>
    %460 = vector.broadcast %459 : vector<32x1xf32> to vector<32x32xf32>
    %461 = arith.subf %455, %460 : vector<32x32xf32>
    %462 = arith.mulf %461, %461 : vector<32x32xf32>
    %cst_215 = arith.constant dense<0.000000e+00> : vector<32xf32>
    %463 = vector.multi_reduction <add>, %462, %cst_215 [1] : vector<32x32xf32> to vector<32xf32>
    %464 = vector.shape_cast %463 : vector<32xf32> to vector<32x1xf32>
    %cst_216 = arith.constant 3.200000e+01 : f32
    %465 = vector.broadcast %cst_216 : f32 to vector<32x1xf32>
    %466 = arith.divf %464, %465 : vector<32x1xf32>
    %cst_217 = arith.constant 9.99999974E-6 : f32
    %467 = vector.broadcast %cst_217 : f32 to vector<32x1xf32>
    %468 = arith.addf %466, %467 : vector<32x1xf32>
    %469 = math.rsqrt %468 : vector<32x1xf32>
    %470 = vector.broadcast %469 : vector<32x1xf32> to vector<32x32xf32>
    %471 = arith.mulf %461, %470 : vector<32x32xf32>
    %472 = vector.broadcast %452 : vector<1x32xf32> to vector<32x32xf32>
    %473 = arith.mulf %471, %472 : vector<32x32xf32>
    %474 = vector.broadcast %454 : vector<1x32xf32> to vector<32x32xf32>
    %475 = arith.addf %473, %474 : vector<32x32xf32>
    %c0_218 = arith.constant 0 : index
    %c0_219 = arith.constant 0 : index
    %c0_220 = arith.constant 0 : index
    %476 = vector.load %arg30[%c0_218, %c0_219, %c0_220] : memref<2x32x64xf32, #tpu.memory_space<vmem>>, vector<1x32x64xf32>
    %477 = vector.shape_cast %476 : vector<1x32x64xf32> to vector<32x64xf32>
    %c0_221 = arith.constant 0 : index
    %c0_222 = arith.constant 0 : index
    %c0_223 = arith.constant 0 : index
    %478 = vector.load %arg31[%c0_221, %c0_222, %c0_223] : memref<2x1x64xf32, #tpu.memory_space<vmem>>, vector<1x1x64xf32>
    %479 = vector.shape_cast %478 : vector<1x1x64xf32> to vector<1x64xf32>
    %c0_224 = arith.constant 0 : index
    %c0_225 = arith.constant 0 : index
    %c0_226 = arith.constant 0 : index
    %480 = vector.load %arg32[%c0_224, %c0_225, %c0_226] : memref<2x64x32xf32, #tpu.memory_space<vmem>>, vector<1x64x32xf32>
    %481 = vector.shape_cast %480 : vector<1x64x32xf32> to vector<64x32xf32>
    %c0_227 = arith.constant 0 : index
    %c0_228 = arith.constant 0 : index
    %c0_229 = arith.constant 0 : index
    %482 = vector.load %arg33[%c0_227, %c0_228, %c0_229] : memref<2x1x32xf32, #tpu.memory_space<vmem>>, vector<1x1x32xf32>
    %483 = vector.shape_cast %482 : vector<1x1x32xf32> to vector<1x32xf32>
    %cst_230 = arith.constant dense<0.000000e+00> : vector<32x64xf32>
    %484 = tpu.matmul %475, %477, %cst_230 {dimension_numbers = #tpu.dot_dimension_numbers<[1], [0], [0], [1], [0, 0, 1, 1], [], []>} : vector<32x32xf32>, vector<32x64xf32>, vector<32x64xf32> -> vector<32x64xf32>
    %485 = vector.broadcast %479 : vector<1x64xf32> to vector<32x64xf32>
    %486 = arith.addf %484, %485 : vector<32x64xf32>
    %cst_231 = arith.constant 0.000000e+00 : f32
    %487 = vector.broadcast %cst_231 : f32 to vector<32x64xf32>
    %488 = arith.maximumf %486, %487 : vector<32x64xf32>
    %cst_232 = arith.constant dense<0.000000e+00> : vector<32x32xf32>
    %489 = tpu.matmul %488, %481, %cst_232 {dimension_numbers = #tpu.dot_dimension_numbers<[1], [0], [0], [1], [0, 0, 1, 1], [], []>} : vector<32x64xf32>, vector<64x32xf32>, vector<32x32xf32> -> vector<32x32xf32>
    %490 = vector.broadcast %483 : vector<1x32xf32> to vector<32x32xf32>
    %491 = arith.addf %489, %490 : vector<32x32xf32>
    %c0_233 = arith.constant 0 : index
    %c0_234 = arith.constant 0 : index
    %c0_235 = arith.constant 0 : index
    %492 = vector.load %arg34[%c0_233, %c0_234, %c0_235] : memref<2x1x32xf32, #tpu.memory_space<vmem>>, vector<1x1x32xf32>
    %493 = vector.shape_cast %492 : vector<1x1x32xf32> to vector<1x32xf32>
    %c0_236 = arith.constant 0 : index
    %c0_237 = arith.constant 0 : index
    %c0_238 = arith.constant 0 : index
    %494 = vector.load %arg35[%c0_236, %c0_237, %c0_238] : memref<2x1x32xf32, #tpu.memory_space<vmem>>, vector<1x1x32xf32>
    %495 = vector.shape_cast %494 : vector<1x1x32xf32> to vector<1x32xf32>
    %496 = arith.addf %475, %491 : vector<32x32xf32>
    %cst_239 = arith.constant dense<0.000000e+00> : vector<32xf32>
    %497 = vector.multi_reduction <add>, %496, %cst_239 [1] : vector<32x32xf32> to vector<32xf32>
    %498 = vector.shape_cast %497 : vector<32xf32> to vector<32x1xf32>
    %cst_240 = arith.constant 3.200000e+01 : f32
    %499 = vector.broadcast %cst_240 : f32 to vector<32x1xf32>
    %500 = arith.divf %498, %499 : vector<32x1xf32>
    %501 = vector.broadcast %500 : vector<32x1xf32> to vector<32x32xf32>
    %502 = arith.subf %496, %501 : vector<32x32xf32>
    %503 = arith.mulf %502, %502 : vector<32x32xf32>
    %cst_241 = arith.constant dense<0.000000e+00> : vector<32xf32>
    %504 = vector.multi_reduction <add>, %503, %cst_241 [1] : vector<32x32xf32> to vector<32xf32>
    %505 = vector.shape_cast %504 : vector<32xf32> to vector<32x1xf32>
    %cst_242 = arith.constant 3.200000e+01 : f32
    %506 = vector.broadcast %cst_242 : f32 to vector<32x1xf32>
    %507 = arith.divf %505, %506 : vector<32x1xf32>
    %cst_243 = arith.constant 9.99999974E-6 : f32
    %508 = vector.broadcast %cst_243 : f32 to vector<32x1xf32>
    %509 = arith.addf %507, %508 : vector<32x1xf32>
    %510 = math.rsqrt %509 : vector<32x1xf32>
    %511 = vector.broadcast %510 : vector<32x1xf32> to vector<32x32xf32>
    %512 = arith.mulf %502, %511 : vector<32x32xf32>
    %513 = vector.broadcast %493 : vector<1x32xf32> to vector<32x32xf32>
    %514 = arith.mulf %512, %513 : vector<32x32xf32>
    %515 = vector.broadcast %495 : vector<1x32xf32> to vector<32x32xf32>
    %516 = arith.addf %514, %515 : vector<32x32xf32>
    %cst_244 = arith.constant dense<0.000000e+00> : vector<32xf32>
    %517 = vector.multi_reduction <add>, %516, %cst_244 [1] : vector<32x32xf32> to vector<32xf32>
    %518 = vector.shape_cast %517 : vector<32xf32> to vector<32x1xf32>
    %cst_245 = arith.constant 3.200000e+01 : f32
    %519 = vector.broadcast %cst_245 : f32 to vector<32x1xf32>
    %520 = arith.divf %518, %519 : vector<32x1xf32>
    %521 = vector.broadcast %520 : vector<32x1xf32> to vector<32x32xf32>
    %522 = arith.subf %516, %521 : vector<32x32xf32>
    %523 = arith.mulf %522, %522 : vector<32x32xf32>
    %cst_246 = arith.constant dense<0.000000e+00> : vector<32xf32>
    %524 = vector.multi_reduction <add>, %523, %cst_246 [1] : vector<32x32xf32> to vector<32xf32>
    %525 = vector.shape_cast %524 : vector<32xf32> to vector<32x1xf32>
    %cst_247 = arith.constant 3.200000e+01 : f32
    %526 = vector.broadcast %cst_247 : f32 to vector<32x1xf32>
    %527 = arith.divf %525, %526 : vector<32x1xf32>
    %cst_248 = arith.constant 9.99999974E-6 : f32
    %528 = vector.broadcast %cst_248 : f32 to vector<32x1xf32>
    %529 = arith.addf %527, %528 : vector<32x1xf32>
    %530 = math.rsqrt %529 : vector<32x1xf32>
    %531 = vector.broadcast %530 : vector<32x1xf32> to vector<32x32xf32>
    %532 = arith.mulf %522, %531 : vector<32x32xf32>
    %533 = vector.broadcast %322 : vector<1x32xf32> to vector<32x32xf32>
    %534 = arith.mulf %532, %533 : vector<32x32xf32>
    %535 = vector.broadcast %323 : vector<1x32xf32> to vector<32x32xf32>
    %536 = arith.addf %534, %535 : vector<32x32xf32>
    %c0_249 = arith.constant 0 : index
    %c0_250 = arith.constant 0 : index
    %c0_251 = arith.constant 0 : index
    %537 = vector.load %arg38[%c0_249, %c0_250, %c0_251] : memref<2x32x32xf32, #tpu.memory_space<vmem>>, vector<1x32x32xf32>
    %538 = vector.shape_cast %537 : vector<1x32x32xf32> to vector<32x32xf32>
    %539 = vector.shape_cast %536 : vector<32x32xf32> to vector<1x32x32xf32>
    tpu.vector_store %arg38[%c0_249, %c0_250, %c0_251], %539 {strides = array<i32>} : memref<2x32x32xf32, #tpu.memory_space<vmem>>, vector<1x32x32xf32>,
    %540 = arith.addf %516, %2 : vector<32x32xf32>
    %c1_252 = arith.constant 1 : index
    %c0_253 = arith.constant 0 : index
    %c0_254 = arith.constant 0 : index
    %541 = vector.load %arg18[%c1_252, %c0_253, %c0_254] : memref<2x32x96xf32, #tpu.memory_space<vmem>>, vector<1x32x96xf32>
    %542 = vector.shape_cast %541 : vector<1x32x96xf32> to vector<32x96xf32>
    %c1_255 = arith.constant 1 : index
    %c0_256 = arith.constant 0 : index
    %c0_257 = arith.constant 0 : index
    %543 = vector.load %arg19[%c1_255, %c0_256, %c0_257] : memref<2x1x96xf32, #tpu.memory_space<vmem>>, vector<1x1x96xf32>
    %544 = vector.shape_cast %543 : vector<1x1x96xf32> to vector<1x96xf32>
    %c1_258 = arith.constant 1 : index
    %c0_259 = arith.constant 0 : index
    %c0_260 = arith.constant 0 : index
    %545 = vector.load %arg20[%c1_258, %c0_259, %c0_260] : memref<2x32x32xf32, #tpu.memory_space<vmem>>, vector<1x32x32xf32>
    %546 = vector.shape_cast %545 : vector<1x32x32xf32> to vector<32x32xf32>
    %c1_261 = arith.constant 1 : index
    %c0_262 = arith.constant 0 : index
    %c0_263 = arith.constant 0 : index
    %547 = vector.load %arg21[%c1_261, %c0_262, %c0_263] : memref<2x1x32xf32, #tpu.memory_space<vmem>>, vector<1x1x32xf32>
    %548 = vector.shape_cast %547 : vector<1x1x32xf32> to vector<1x32xf32>
    %549 = vector.extract_strided_slice %542 {offsets = [0, 0], sizes = [32, 64], strides = [1, 1]} : vector<32x96xf32> to vector<32x64xf32>
    %550 = vector.extract_strided_slice %544 {offsets = [0, 0], sizes = [1, 64], strides = [1, 1]} : vector<1x96xf32> to vector<1x64xf32>
    %cst_264 = arith.constant dense<0.000000e+00> : vector<32x64xf32>
    %551 = tpu.matmul %540, %549, %cst_264 {dimension_numbers = #tpu.dot_dimension_numbers<[1], [0], [0], [1], [0, 0, 1, 1], [], []>} : vector<32x32xf32>, vector<32x64xf32>, vector<32x64xf32> -> vector<32x64xf32>
    %552 = vector.broadcast %550 : vector<1x64xf32> to vector<32x64xf32>
    %553 = arith.addf %551, %552 : vector<32x64xf32>
    %554 = vector.extract_strided_slice %542 {offsets = [0, 64], sizes = [32, 32], strides = [1, 1]} : vector<32x96xf32> to vector<32x32xf32>
    %555 = vector.extract_strided_slice %544 {offsets = [0, 64], sizes = [1, 32], strides = [1, 1]} : vector<1x96xf32> to vector<1x32xf32>
    %cst_265 = arith.constant dense<0.000000e+00> : vector<32x32xf32>
    %556 = tpu.matmul %516, %554, %cst_265 {dimension_numbers = #tpu.dot_dimension_numbers<[1], [0], [0], [1], [0, 0, 1, 1], [], []>} : vector<32x32xf32>, vector<32x32xf32>, vector<32x32xf32> -> vector<32x32xf32>
    %557 = vector.broadcast %555 : vector<1x32xf32> to vector<32x32xf32>
    %558 = arith.addf %556, %557 : vector<32x32xf32>
    %559 = vector.extract_strided_slice %553 {offsets = [0, 0], sizes = [32, 32], strides = [1, 1]} : vector<32x64xf32> to vector<32x32xf32>
    %560 = vector.extract_strided_slice %553 {offsets = [0, 32], sizes = [32, 32], strides = [1, 1]} : vector<32x64xf32> to vector<32x32xf32>
    %cst_266 = arith.constant 0.353553385 : f32
    %561 = vector.broadcast %cst_266 : f32 to vector<32x32xf32>
    %562 = arith.mulf %559, %561 : vector<32x32xf32>
    %563 = vector.extract_strided_slice %562 {offsets = [0, 0], sizes = [32, 8], strides = [1, 1]} : vector<32x32xf32> to vector<32x8xf32>
    %564 = vector.extract_strided_slice %560 {offsets = [0, 0], sizes = [32, 8], strides = [1, 1]} : vector<32x32xf32> to vector<32x8xf32>
    "tpu.trace_start"() <{level = 10 : i32, message = "qd,kd->qk"}> : () -> ()
    %cst_267 = arith.constant dense<0.000000e+00> : vector<32x32xf32>
    %565 = tpu.matmul %563, %564, %cst_267 {dimension_numbers = #tpu.dot_dimension_numbers<[1], [1], [0], [0], [0, 0, 1, 0], [], []>} : vector<32x8xf32>, vector<32x8xf32>, vector<32x32xf32> -> vector<32x32xf32>
    "tpu.trace_stop"() : () -> ()
    %566 = arith.addf %565, %4 : vector<32x32xf32>
    %cst_268 = arith.constant dense<0xFF800000> : vector<32xf32>
    %567 = vector.multi_reduction <maximumf>, %566, %cst_268 [1] : vector<32x32xf32> to vector<32xf32>
    %568 = vector.shape_cast %567 : vector<32xf32> to vector<32x1xf32>
    %569 = vector.broadcast %568 : vector<32x1xf32> to vector<32x32xf32>
    %570 = arith.subf %566, %569 : vector<32x32xf32>
    %571 = math.exp %570 : vector<32x32xf32>
    %cst_269 = arith.constant dense<0.000000e+00> : vector<32xf32>
    %572 = vector.multi_reduction <add>, %571, %cst_269 [1] : vector<32x32xf32> to vector<32xf32>
    %573 = vector.shape_cast %572 : vector<32xf32> to vector<32x1xf32>
    %574 = tpu.reciprocal %573 {approx = true} : vector<32x1xf32> -> vector<32x1xf32>
    %575 = vector.broadcast %574 : vector<32x1xf32> to vector<32x32xf32>
    %576 = arith.mulf %571, %575 : vector<32x32xf32>
    %577 = vector.extract_strided_slice %558 {offsets = [0, 0], sizes = [32, 8], strides = [1, 1]} : vector<32x32xf32> to vector<32x8xf32>
    %cst_270 = arith.constant dense<0.000000e+00> : vector<32x8xf32>
    %578 = tpu.matmul %576, %577, %cst_270 {dimension_numbers = #tpu.dot_dimension_numbers<[1], [0], [0], [1], [0, 0, 1, 1], [], []>} : vector<32x32xf32>, vector<32x8xf32>, vector<32x8xf32> -> vector<32x8xf32>
    %579 = vector.extract_strided_slice %562 {offsets = [0, 8], sizes = [32, 8], strides = [1, 1]} : vector<32x32xf32> to vector<32x8xf32>
    %580 = vector.extract_strided_slice %560 {offsets = [0, 8], sizes = [32, 8], strides = [1, 1]} : vector<32x32xf32> to vector<32x8xf32>
    "tpu.trace_start"() <{level = 10 : i32, message = "qd,kd->qk"}> : () -> ()
    %cst_271 = arith.constant dense<0.000000e+00> : vector<32x32xf32>
    %581 = tpu.matmul %579, %580, %cst_271 {dimension_numbers = #tpu.dot_dimension_numbers<[1], [1], [0], [0], [0, 0, 1, 0], [], []>} : vector<32x8xf32>, vector<32x8xf32>, vector<32x32xf32> -> vector<32x32xf32>
    "tpu.trace_stop"() : () -> ()
    %582 = arith.addf %581, %4 : vector<32x32xf32>
    %cst_272 = arith.constant dense<0xFF800000> : vector<32xf32>
    %583 = vector.multi_reduction <maximumf>, %582, %cst_272 [1] : vector<32x32xf32> to vector<32xf32>
    %584 = vector.shape_cast %583 : vector<32xf32> to vector<32x1xf32>
    %585 = vector.broadcast %584 : vector<32x1xf32> to vector<32x32xf32>
    %586 = arith.subf %582, %585 : vector<32x32xf32>
    %587 = math.exp %586 : vector<32x32xf32>
    %cst_273 = arith.constant dense<0.000000e+00> : vector<32xf32>
    %588 = vector.multi_reduction <add>, %587, %cst_273 [1] : vector<32x32xf32> to vector<32xf32>
    %589 = vector.shape_cast %588 : vector<32xf32> to vector<32x1xf32>
    %590 = tpu.reciprocal %589 {approx = true} : vector<32x1xf32> -> vector<32x1xf32>
    %591 = vector.broadcast %590 : vector<32x1xf32> to vector<32x32xf32>
    %592 = arith.mulf %587, %591 : vector<32x32xf32>
    %593 = vector.extract_strided_slice %558 {offsets = [0, 8], sizes = [32, 8], strides = [1, 1]} : vector<32x32xf32> to vector<32x8xf32>
    %cst_274 = arith.constant dense<0.000000e+00> : vector<32x8xf32>
    %594 = tpu.matmul %592, %593, %cst_274 {dimension_numbers = #tpu.dot_dimension_numbers<[1], [0], [0], [1], [0, 0, 1, 1], [], []>} : vector<32x32xf32>, vector<32x8xf32>, vector<32x8xf32> -> vector<32x8xf32>
    %595 = vector.extract_strided_slice %562 {offsets = [0, 16], sizes = [32, 8], strides = [1, 1]} : vector<32x32xf32> to vector<32x8xf32>
    %596 = vector.extract_strided_slice %560 {offsets = [0, 16], sizes = [32, 8], strides = [1, 1]} : vector<32x32xf32> to vector<32x8xf32>
    "tpu.trace_start"() <{level = 10 : i32, message = "qd,kd->qk"}> : () -> ()
    %cst_275 = arith.constant dense<0.000000e+00> : vector<32x32xf32>
    %597 = tpu.matmul %595, %596, %cst_275 {dimension_numbers = #tpu.dot_dimension_numbers<[1], [1], [0], [0], [0, 0, 1, 0], [], []>} : vector<32x8xf32>, vector<32x8xf32>, vector<32x32xf32> -> vector<32x32xf32>
    "tpu.trace_stop"() : () -> ()
    %598 = arith.addf %597, %4 : vector<32x32xf32>
    %cst_276 = arith.constant dense<0xFF800000> : vector<32xf32>
    %599 = vector.multi_reduction <maximumf>, %598, %cst_276 [1] : vector<32x32xf32> to vector<32xf32>
    %600 = vector.shape_cast %599 : vector<32xf32> to vector<32x1xf32>
    %601 = vector.broadcast %600 : vector<32x1xf32> to vector<32x32xf32>
    %602 = arith.subf %598, %601 : vector<32x32xf32>
    %603 = math.exp %602 : vector<32x32xf32>
    %cst_277 = arith.constant dense<0.000000e+00> : vector<32xf32>
    %604 = vector.multi_reduction <add>, %603, %cst_277 [1] : vector<32x32xf32> to vector<32xf32>
    %605 = vector.shape_cast %604 : vector<32xf32> to vector<32x1xf32>
    %606 = tpu.reciprocal %605 {approx = true} : vector<32x1xf32> -> vector<32x1xf32>
    %607 = vector.broadcast %606 : vector<32x1xf32> to vector<32x32xf32>
    %608 = arith.mulf %603, %607 : vector<32x32xf32>
    %609 = vector.extract_strided_slice %558 {offsets = [0, 16], sizes = [32, 8], strides = [1, 1]} : vector<32x32xf32> to vector<32x8xf32>
    %cst_278 = arith.constant dense<0.000000e+00> : vector<32x8xf32>
    %610 = tpu.matmul %608, %609, %cst_278 {dimension_numbers = #tpu.dot_dimension_numbers<[1], [0], [0], [1], [0, 0, 1, 1], [], []>} : vector<32x32xf32>, vector<32x8xf32>, vector<32x8xf32> -> vector<32x8xf32>
    %611 = vector.extract_strided_slice %562 {offsets = [0, 24], sizes = [32, 8], strides = [1, 1]} : vector<32x32xf32> to vector<32x8xf32>
    %612 = vector.extract_strided_slice %560 {offsets = [0, 24], sizes = [32, 8], strides = [1, 1]} : vector<32x32xf32> to vector<32x8xf32>
    "tpu.trace_start"() <{level = 10 : i32, message = "qd,kd->qk"}> : () -> ()
    %cst_279 = arith.constant dense<0.000000e+00> : vector<32x32xf32>
    %613 = tpu.matmul %611, %612, %cst_279 {dimension_numbers = #tpu.dot_dimension_numbers<[1], [1], [0], [0], [0, 0, 1, 0], [], []>} : vector<32x8xf32>, vector<32x8xf32>, vector<32x32xf32> -> vector<32x32xf32>
    "tpu.trace_stop"() : () -> ()
    %614 = arith.addf %613, %4 : vector<32x32xf32>
    %cst_280 = arith.constant dense<0xFF800000> : vector<32xf32>
    %615 = vector.multi_reduction <maximumf>, %614, %cst_280 [1] : vector<32x32xf32> to vector<32xf32>
    %616 = vector.shape_cast %615 : vector<32xf32> to vector<32x1xf32>
    %617 = vector.broadcast %616 : vector<32x1xf32> to vector<32x32xf32>
    %618 = arith.subf %614, %617 : vector<32x32xf32>
    %619 = math.exp %618 : vector<32x32xf32>
    %cst_281 = arith.constant dense<0.000000e+00> : vector<32xf32>
    %620 = vector.multi_reduction <add>, %619, %cst_281 [1] : vector<32x32xf32> to vector<32xf32>
    %621 = vector.shape_cast %620 : vector<32xf32> to vector<32x1xf32>
    %622 = tpu.reciprocal %621 {approx = true} : vector<32x1xf32> -> vector<32x1xf32>
    %623 = vector.broadcast %622 : vector<32x1xf32> to vector<32x32xf32>
    %624 = arith.mulf %619, %623 : vector<32x32xf32>
    %625 = vector.extract_strided_slice %558 {offsets = [0, 24], sizes = [32, 8], strides = [1, 1]} : vector<32x32xf32> to vector<32x8xf32>
    %cst_282 = arith.constant dense<0.000000e+00> : vector<32x8xf32>
    %626 = tpu.matmul %624, %625, %cst_282 {dimension_numbers = #tpu.dot_dimension_numbers<[1], [0], [0], [1], [0, 0, 1, 1], [], []>} : vector<32x32xf32>, vector<32x8xf32>, vector<32x8xf32> -> vector<32x8xf32>
    %627 = tpu.concatenate %578, %594, %610, %626 in 1 : vector<32x8xf32>, vector<32x8xf32>, vector<32x8xf32>, vector<32x8xf32> -> vector<32x32xf32>
    %cst_283 = arith.constant dense<0.000000e+00> : vector<32x32xf32>
    %628 = tpu.matmul %627, %546, %cst_283 {dimension_numbers = #tpu.dot_dimension_numbers<[1], [0], [0], [1], [0, 0, 1, 1], [], []>} : vector<32x32xf32>, vector<32x32xf32>, vector<32x32xf32> -> vector<32x32xf32>
    %629 = vector.broadcast %548 : vector<1x32xf32> to vector<32x32xf32>
    %630 = arith.addf %628, %629 : vector<32x32xf32>
    %c1_284 = arith.constant 1 : index
    %c0_285 = arith.constant 0 : index
    %c0_286 = arith.constant 0 : index
    %631 = vector.load %arg22[%c1_284, %c0_285, %c0_286] : memref<2x1x32xf32, #tpu.memory_space<vmem>>, vector<1x1x32xf32>
    %632 = vector.shape_cast %631 : vector<1x1x32xf32> to vector<1x32xf32>
    %c1_287 = arith.constant 1 : index
    %c0_288 = arith.constant 0 : index
    %c0_289 = arith.constant 0 : index
    %633 = vector.load %arg23[%c1_287, %c0_288, %c0_289] : memref<2x1x32xf32, #tpu.memory_space<vmem>>, vector<1x1x32xf32>
    %634 = vector.shape_cast %633 : vector<1x1x32xf32> to vector<1x32xf32>
    %635 = arith.addf %516, %630 : vector<32x32xf32>
    %cst_290 = arith.constant dense<0.000000e+00> : vector<32xf32>
    %636 = vector.multi_reduction <add>, %635, %cst_290 [1] : vector<32x32xf32> to vector<32xf32>
    %637 = vector.shape_cast %636 : vector<32xf32> to vector<32x1xf32>
    %cst_291 = arith.constant 3.200000e+01 : f32
    %638 = vector.broadcast %cst_291 : f32 to vector<32x1xf32>
    %639 = arith.divf %637, %638 : vector<32x1xf32>
    %640 = vector.broadcast %639 : vector<32x1xf32> to vector<32x32xf32>
    %641 = arith.subf %635, %640 : vector<32x32xf32>
    %642 = arith.mulf %641, %641 : vector<32x32xf32>
    %cst_292 = arith.constant dense<0.000000e+00> : vector<32xf32>
    %643 = vector.multi_reduction <add>, %642, %cst_292 [1] : vector<32x32xf32> to vector<32xf32>
    %644 = vector.shape_cast %643 : vector<32xf32> to vector<32x1xf32>
    %cst_293 = arith.constant 3.200000e+01 : f32
    %645 = vector.broadcast %cst_293 : f32 to vector<32x1xf32>
    %646 = arith.divf %644, %645 : vector<32x1xf32>
    %cst_294 = arith.constant 9.99999974E-6 : f32
    %647 = vector.broadcast %cst_294 : f32 to vector<32x1xf32>
    %648 = arith.addf %646, %647 : vector<32x1xf32>
    %649 = math.rsqrt %648 : vector<32x1xf32>
    %650 = vector.broadcast %649 : vector<32x1xf32> to vector<32x32xf32>
    %651 = arith.mulf %641, %650 : vector<32x32xf32>
    %652 = vector.broadcast %632 : vector<1x32xf32> to vector<32x32xf32>
    %653 = arith.mulf %651, %652 : vector<32x32xf32>
    %654 = vector.broadcast %634 : vector<1x32xf32> to vector<32x32xf32>
    %655 = arith.addf %653, %654 : vector<32x32xf32>
    %656 = arith.addf %655, %2 : vector<32x32xf32>
    %c1_295 = arith.constant 1 : index
    %c0_296 = arith.constant 0 : index
    %c0_297 = arith.constant 0 : index
    %657 = vector.load %arg24[%c1_295, %c0_296, %c0_297] : memref<2x32x96xf32, #tpu.memory_space<vmem>>, vector<1x32x96xf32>
    %658 = vector.shape_cast %657 : vector<1x32x96xf32> to vector<32x96xf32>
    %c1_298 = arith.constant 1 : index
    %c0_299 = arith.constant 0 : index
    %c0_300 = arith.constant 0 : index
    %659 = vector.load %arg25[%c1_298, %c0_299, %c0_300] : memref<2x1x96xf32, #tpu.memory_space<vmem>>, vector<1x1x96xf32>
    %660 = vector.shape_cast %659 : vector<1x1x96xf32> to vector<1x96xf32>
    %c1_301 = arith.constant 1 : index
    %c0_302 = arith.constant 0 : index
    %c0_303 = arith.constant 0 : index
    %661 = vector.load %arg26[%c1_301, %c0_302, %c0_303] : memref<2x32x32xf32, #tpu.memory_space<vmem>>, vector<1x32x32xf32>
    %662 = vector.shape_cast %661 : vector<1x32x32xf32> to vector<32x32xf32>
    %c1_304 = arith.constant 1 : index
    %c0_305 = arith.constant 0 : index
    %c0_306 = arith.constant 0 : index
    %663 = vector.load %arg27[%c1_304, %c0_305, %c0_306] : memref<2x1x32xf32, #tpu.memory_space<vmem>>, vector<1x1x32xf32>
    %664 = vector.shape_cast %663 : vector<1x1x32xf32> to vector<1x32xf32>
    %665 = vector.extract_strided_slice %658 {offsets = [0, 0], sizes = [32, 32], strides = [1, 1]} : vector<32x96xf32> to vector<32x32xf32>
    %666 = vector.extract_strided_slice %660 {offsets = [0, 0], sizes = [1, 32], strides = [1, 1]} : vector<1x96xf32> to vector<1x32xf32>
    %cst_307 = arith.constant dense<0.000000e+00> : vector<32x32xf32>
    %667 = tpu.matmul %656, %665, %cst_307 {dimension_numbers = #tpu.dot_dimension_numbers<[1], [0], [0], [1], [0, 0, 1, 1], [], []>} : vector<32x32xf32>, vector<32x32xf32>, vector<32x32xf32> -> vector<32x32xf32>
    %668 = vector.broadcast %666 : vector<1x32xf32> to vector<32x32xf32>
    %669 = arith.addf %667, %668 : vector<32x32xf32>
    %670 = vector.extract_strided_slice %658 {offsets = [0, 32], sizes = [32, 32], strides = [1, 1]} : vector<32x96xf32> to vector<32x32xf32>
    %671 = vector.extract_strided_slice %660 {offsets = [0, 32], sizes = [1, 32], strides = [1, 1]} : vector<1x96xf32> to vector<1x32xf32>
    %cst_308 = arith.constant dense<0.000000e+00> : vector<32x32xf32>
    %672 = tpu.matmul %321, %670, %cst_308 {dimension_numbers = #tpu.dot_dimension_numbers<[1], [0], [0], [1], [0, 0, 1, 1], [], []>} : vector<32x32xf32>, vector<32x32xf32>, vector<32x32xf32> -> vector<32x32xf32>
    %673 = vector.broadcast %671 : vector<1x32xf32> to vector<32x32xf32>
    %674 = arith.addf %672, %673 : vector<32x32xf32>
    %675 = vector.extract_strided_slice %658 {offsets = [0, 64], sizes = [32, 32], strides = [1, 1]} : vector<32x96xf32> to vector<32x32xf32>
    %676 = vector.extract_strided_slice %660 {offsets = [0, 64], sizes = [1, 32], strides = [1, 1]} : vector<1x96xf32> to vector<1x32xf32>
    %cst_309 = arith.constant dense<0.000000e+00> : vector<32x32xf32>
    %677 = tpu.matmul %319, %675, %cst_309 {dimension_numbers = #tpu.dot_dimension_numbers<[1], [0], [0], [1], [0, 0, 1, 1], [], []>} : vector<32x32xf32>, vector<32x32xf32>, vector<32x32xf32> -> vector<32x32xf32>
    %678 = vector.broadcast %676 : vector<1x32xf32> to vector<32x32xf32>
    %679 = arith.addf %677, %678 : vector<32x32xf32>
    %cst_310 = arith.constant 0.353553385 : f32
    %680 = vector.broadcast %cst_310 : f32 to vector<32x32xf32>
    %681 = arith.mulf %669, %680 : vector<32x32xf32>
    %682 = vector.extract_strided_slice %681 {offsets = [0, 0], sizes = [32, 8], strides = [1, 1]} : vector<32x32xf32> to vector<32x8xf32>
    %683 = vector.extract_strided_slice %674 {offsets = [0, 0], sizes = [32, 8], strides = [1, 1]} : vector<32x32xf32> to vector<32x8xf32>
    "tpu.trace_start"() <{level = 10 : i32, message = "qd,kd->qk"}> : () -> ()
    %cst_311 = arith.constant dense<0.000000e+00> : vector<32x32xf32>
    %684 = tpu.matmul %682, %683, %cst_311 {dimension_numbers = #tpu.dot_dimension_numbers<[1], [1], [0], [0], [0, 0, 1, 0], [], []>} : vector<32x8xf32>, vector<32x8xf32>, vector<32x32xf32> -> vector<32x32xf32>
    "tpu.trace_stop"() : () -> ()
    %685 = arith.addf %684, %5 : vector<32x32xf32>
    %cst_312 = arith.constant dense<0xFF800000> : vector<32xf32>
    %686 = vector.multi_reduction <maximumf>, %685, %cst_312 [1] : vector<32x32xf32> to vector<32xf32>
    %687 = vector.shape_cast %686 : vector<32xf32> to vector<32x1xf32>
    %688 = vector.broadcast %687 : vector<32x1xf32> to vector<32x32xf32>
    %689 = arith.subf %685, %688 : vector<32x32xf32>
    %690 = math.exp %689 : vector<32x32xf32>
    %cst_313 = arith.constant dense<0.000000e+00> : vector<32xf32>
    %691 = vector.multi_reduction <add>, %690, %cst_313 [1] : vector<32x32xf32> to vector<32xf32>
    %692 = vector.shape_cast %691 : vector<32xf32> to vector<32x1xf32>
    %693 = tpu.reciprocal %692 {approx = true} : vector<32x1xf32> -> vector<32x1xf32>
    %694 = vector.broadcast %693 : vector<32x1xf32> to vector<32x32xf32>
    %695 = arith.mulf %690, %694 : vector<32x32xf32>
    %696 = vector.extract_strided_slice %679 {offsets = [0, 0], sizes = [32, 8], strides = [1, 1]} : vector<32x32xf32> to vector<32x8xf32>
    %cst_314 = arith.constant dense<0.000000e+00> : vector<32x8xf32>
    %697 = tpu.matmul %695, %696, %cst_314 {dimension_numbers = #tpu.dot_dimension_numbers<[1], [0], [0], [1], [0, 0, 1, 1], [], []>} : vector<32x32xf32>, vector<32x8xf32>, vector<32x8xf32> -> vector<32x8xf32>
    %698 = vector.extract_strided_slice %681 {offsets = [0, 8], sizes = [32, 8], strides = [1, 1]} : vector<32x32xf32> to vector<32x8xf32>
    %699 = vector.extract_strided_slice %674 {offsets = [0, 8], sizes = [32, 8], strides = [1, 1]} : vector<32x32xf32> to vector<32x8xf32>
    "tpu.trace_start"() <{level = 10 : i32, message = "qd,kd->qk"}> : () -> ()
    %cst_315 = arith.constant dense<0.000000e+00> : vector<32x32xf32>
    %700 = tpu.matmul %698, %699, %cst_315 {dimension_numbers = #tpu.dot_dimension_numbers<[1], [1], [0], [0], [0, 0, 1, 0], [], []>} : vector<32x8xf32>, vector<32x8xf32>, vector<32x32xf32> -> vector<32x32xf32>
    "tpu.trace_stop"() : () -> ()
    %701 = arith.addf %700, %5 : vector<32x32xf32>
    %cst_316 = arith.constant dense<0xFF800000> : vector<32xf32>
    %702 = vector.multi_reduction <maximumf>, %701, %cst_316 [1] : vector<32x32xf32> to vector<32xf32>
    %703 = vector.shape_cast %702 : vector<32xf32> to vector<32x1xf32>
    %704 = vector.broadcast %703 : vector<32x1xf32> to vector<32x32xf32>
    %705 = arith.subf %701, %704 : vector<32x32xf32>
    %706 = math.exp %705 : vector<32x32xf32>
    %cst_317 = arith.constant dense<0.000000e+00> : vector<32xf32>
    %707 = vector.multi_reduction <add>, %706, %cst_317 [1] : vector<32x32xf32> to vector<32xf32>
    %708 = vector.shape_cast %707 : vector<32xf32> to vector<32x1xf32>
    %709 = tpu.reciprocal %708 {approx = true} : vector<32x1xf32> -> vector<32x1xf32>
    %710 = vector.broadcast %709 : vector<32x1xf32> to vector<32x32xf32>
    %711 = arith.mulf %706, %710 : vector<32x32xf32>
    %712 = vector.extract_strided_slice %679 {offsets = [0, 8], sizes = [32, 8], strides = [1, 1]} : vector<32x32xf32> to vector<32x8xf32>
    %cst_318 = arith.constant dense<0.000000e+00> : vector<32x8xf32>
    %713 = tpu.matmul %711, %712, %cst_318 {dimension_numbers = #tpu.dot_dimension_numbers<[1], [0], [0], [1], [0, 0, 1, 1], [], []>} : vector<32x32xf32>, vector<32x8xf32>, vector<32x8xf32> -> vector<32x8xf32>
    %714 = vector.extract_strided_slice %681 {offsets = [0, 16], sizes = [32, 8], strides = [1, 1]} : vector<32x32xf32> to vector<32x8xf32>
    %715 = vector.extract_strided_slice %674 {offsets = [0, 16], sizes = [32, 8], strides = [1, 1]} : vector<32x32xf32> to vector<32x8xf32>
    "tpu.trace_start"() <{level = 10 : i32, message = "qd,kd->qk"}> : () -> ()
    %cst_319 = arith.constant dense<0.000000e+00> : vector<32x32xf32>
    %716 = tpu.matmul %714, %715, %cst_319 {dimension_numbers = #tpu.dot_dimension_numbers<[1], [1], [0], [0], [0, 0, 1, 0], [], []>} : vector<32x8xf32>, vector<32x8xf32>, vector<32x32xf32> -> vector<32x32xf32>
    "tpu.trace_stop"() : () -> ()
    %717 = arith.addf %716, %5 : vector<32x32xf32>
    %cst_320 = arith.constant dense<0xFF800000> : vector<32xf32>
    %718 = vector.multi_reduction <maximumf>, %717, %cst_320 [1] : vector<32x32xf32> to vector<32xf32>
    %719 = vector.shape_cast %718 : vector<32xf32> to vector<32x1xf32>
    %720 = vector.broadcast %719 : vector<32x1xf32> to vector<32x32xf32>
    %721 = arith.subf %717, %720 : vector<32x32xf32>
    %722 = math.exp %721 : vector<32x32xf32>
    %cst_321 = arith.constant dense<0.000000e+00> : vector<32xf32>
    %723 = vector.multi_reduction <add>, %722, %cst_321 [1] : vector<32x32xf32> to vector<32xf32>
    %724 = vector.shape_cast %723 : vector<32xf32> to vector<32x1xf32>
    %725 = tpu.reciprocal %724 {approx = true} : vector<32x1xf32> -> vector<32x1xf32>
    %726 = vector.broadcast %725 : vector<32x1xf32> to vector<32x32xf32>
    %727 = arith.mulf %722, %726 : vector<32x32xf32>
    %728 = vector.extract_strided_slice %679 {offsets = [0, 16], sizes = [32, 8], strides = [1, 1]} : vector<32x32xf32> to vector<32x8xf32>
    %cst_322 = arith.constant dense<0.000000e+00> : vector<32x8xf32>
    %729 = tpu.matmul %727, %728, %cst_322 {dimension_numbers = #tpu.dot_dimension_numbers<[1], [0], [0], [1], [0, 0, 1, 1], [], []>} : vector<32x32xf32>, vector<32x8xf32>, vector<32x8xf32> -> vector<32x8xf32>
    %730 = vector.extract_strided_slice %681 {offsets = [0, 24], sizes = [32, 8], strides = [1, 1]} : vector<32x32xf32> to vector<32x8xf32>
    %731 = vector.extract_strided_slice %674 {offsets = [0, 24], sizes = [32, 8], strides = [1, 1]} : vector<32x32xf32> to vector<32x8xf32>
    "tpu.trace_start"() <{level = 10 : i32, message = "qd,kd->qk"}> : () -> ()
    %cst_323 = arith.constant dense<0.000000e+00> : vector<32x32xf32>
    %732 = tpu.matmul %730, %731, %cst_323 {dimension_numbers = #tpu.dot_dimension_numbers<[1], [1], [0], [0], [0, 0, 1, 0], [], []>} : vector<32x8xf32>, vector<32x8xf32>, vector<32x32xf32> -> vector<32x32xf32>
    "tpu.trace_stop"() : () -> ()
    %733 = arith.addf %732, %5 : vector<32x32xf32>
    %cst_324 = arith.constant dense<0xFF800000> : vector<32xf32>
    %734 = vector.multi_reduction <maximumf>, %733, %cst_324 [1] : vector<32x32xf32> to vector<32xf32>
    %735 = vector.shape_cast %734 : vector<32xf32> to vector<32x1xf32>
    %736 = vector.broadcast %735 : vector<32x1xf32> to vector<32x32xf32>
    %737 = arith.subf %733, %736 : vector<32x32xf32>
    %738 = math.exp %737 : vector<32x32xf32>
    %cst_325 = arith.constant dense<0.000000e+00> : vector<32xf32>
    %739 = vector.multi_reduction <add>, %738, %cst_325 [1] : vector<32x32xf32> to vector<32xf32>
    %740 = vector.shape_cast %739 : vector<32xf32> to vector<32x1xf32>
    %741 = tpu.reciprocal %740 {approx = true} : vector<32x1xf32> -> vector<32x1xf32>
    %742 = vector.broadcast %741 : vector<32x1xf32> to vector<32x32xf32>
    %743 = arith.mulf %738, %742 : vector<32x32xf32>
    %744 = vector.extract_strided_slice %679 {offsets = [0, 24], sizes = [32, 8], strides = [1, 1]} : vector<32x32xf32> to vector<32x8xf32>
    %cst_326 = arith.constant dense<0.000000e+00> : vector<32x8xf32>
    %745 = tpu.matmul %743, %744, %cst_326 {dimension_numbers = #tpu.dot_dimension_numbers<[1], [0], [0], [1], [0, 0, 1, 1], [], []>} : vector<32x32xf32>, vector<32x8xf32>, vector<32x8xf32> -> vector<32x8xf32>
    %746 = tpu.concatenate %697, %713, %729, %745 in 1 : vector<32x8xf32>, vector<32x8xf32>, vector<32x8xf32>, vector<32x8xf32> -> vector<32x32xf32>
    %cst_327 = arith.constant dense<0.000000e+00> : vector<32x32xf32>
    %747 = tpu.matmul %746, %662, %cst_327 {dimension_numbers = #tpu.dot_dimension_numbers<[1], [0], [0], [1], [0, 0, 1, 1], [], []>} : vector<32x32xf32>, vector<32x32xf32>, vector<32x32xf32> -> vector<32x32xf32>
    %748 = vector.broadcast %664 : vector<1x32xf32> to vector<32x32xf32>
    %749 = arith.addf %747, %748 : vector<32x32xf32>
    %c1_328 = arith.constant 1 : index
    %c0_329 = arith.constant 0 : index
    %c0_330 = arith.constant 0 : index
    %750 = vector.load %arg28[%c1_328, %c0_329, %c0_330] : memref<2x1x32xf32, #tpu.memory_space<vmem>>, vector<1x1x32xf32>
    %751 = vector.shape_cast %750 : vector<1x1x32xf32> to vector<1x32xf32>
    %c1_331 = arith.constant 1 : index
    %c0_332 = arith.constant 0 : index
    %c0_333 = arith.constant 0 : index
    %752 = vector.load %arg29[%c1_331, %c0_332, %c0_333] : memref<2x1x32xf32, #tpu.memory_space<vmem>>, vector<1x1x32xf32>
    %753 = vector.shape_cast %752 : vector<1x1x32xf32> to vector<1x32xf32>
    %754 = arith.addf %655, %749 : vector<32x32xf32>
    %cst_334 = arith.constant dense<0.000000e+00> : vector<32xf32>
    %755 = vector.multi_reduction <add>, %754, %cst_334 [1] : vector<32x32xf32> to vector<32xf32>
    %756 = vector.shape_cast %755 : vector<32xf32> to vector<32x1xf32>
    %cst_335 = arith.constant 3.200000e+01 : f32
    %757 = vector.broadcast %cst_335 : f32 to vector<32x1xf32>
    %758 = arith.divf %756, %757 : vector<32x1xf32>
    %759 = vector.broadcast %758 : vector<32x1xf32> to vector<32x32xf32>
    %760 = arith.subf %754, %759 : vector<32x32xf32>
    %761 = arith.mulf %760, %760 : vector<32x32xf32>
    %cst_336 = arith.constant dense<0.000000e+00> : vector<32xf32>
    %762 = vector.multi_reduction <add>, %761, %cst_336 [1] : vector<32x32xf32> to vector<32xf32>
    %763 = vector.shape_cast %762 : vector<32xf32> to vector<32x1xf32>
    %cst_337 = arith.constant 3.200000e+01 : f32
    %764 = vector.broadcast %cst_337 : f32 to vector<32x1xf32>
    %765 = arith.divf %763, %764 : vector<32x1xf32>
    %cst_338 = arith.constant 9.99999974E-6 : f32
    %766 = vector.broadcast %cst_338 : f32 to vector<32x1xf32>
    %767 = arith.addf %765, %766 : vector<32x1xf32>
    %768 = math.rsqrt %767 : vector<32x1xf32>
    %769 = vector.broadcast %768 : vector<32x1xf32> to vector<32x32xf32>
    %770 = arith.mulf %760, %769 : vector<32x32xf32>
    %771 = vector.broadcast %751 : vector<1x32xf32> to vector<32x32xf32>
    %772 = arith.mulf %770, %771 : vector<32x32xf32>
    %773 = vector.broadcast %753 : vector<1x32xf32> to vector<32x32xf32>
    %774 = arith.addf %772, %773 : vector<32x32xf32>
    %c1_339 = arith.constant 1 : index
    %c0_340 = arith.constant 0 : index
    %c0_341 = arith.constant 0 : index
    %775 = vector.load %arg30[%c1_339, %c0_340, %c0_341] : memref<2x32x64xf32, #tpu.memory_space<vmem>>, vector<1x32x64xf32>
    %776 = vector.shape_cast %775 : vector<1x32x64xf32> to vector<32x64xf32>
    %c1_342 = arith.constant 1 : index
    %c0_343 = arith.constant 0 : index
    %c0_344 = arith.constant 0 : index
    %777 = vector.load %arg31[%c1_342, %c0_343, %c0_344] : memref<2x1x64xf32, #tpu.memory_space<vmem>>, vector<1x1x64xf32>
    %778 = vector.shape_cast %777 : vector<1x1x64xf32> to vector<1x64xf32>
    %c1_345 = arith.constant 1 : index
    %c0_346 = arith.constant 0 : index
    %c0_347 = arith.constant 0 : index
    %779 = vector.load %arg32[%c1_345, %c0_346, %c0_347] : memref<2x64x32xf32, #tpu.memory_space<vmem>>, vector<1x64x32xf32>
    %780 = vector.shape_cast %779 : vector<1x64x32xf32> to vector<64x32xf32>
    %c1_348 = arith.constant 1 : index
    %c0_349 = arith.constant 0 : index
    %c0_350 = arith.constant 0 : index
    %781 = vector.load %arg33[%c1_348, %c0_349, %c0_350] : memref<2x1x32xf32, #tpu.memory_space<vmem>>, vector<1x1x32xf32>
    %782 = vector.shape_cast %781 : vector<1x1x32xf32> to vector<1x32xf32>
    %cst_351 = arith.constant dense<0.000000e+00> : vector<32x64xf32>
    %783 = tpu.matmul %774, %776, %cst_351 {dimension_numbers = #tpu.dot_dimension_numbers<[1], [0], [0], [1], [0, 0, 1, 1], [], []>} : vector<32x32xf32>, vector<32x64xf32>, vector<32x64xf32> -> vector<32x64xf32>
    %784 = vector.broadcast %778 : vector<1x64xf32> to vector<32x64xf32>
    %785 = arith.addf %783, %784 : vector<32x64xf32>
    %cst_352 = arith.constant 0.000000e+00 : f32
    %786 = vector.broadcast %cst_352 : f32 to vector<32x64xf32>
    %787 = arith.maximumf %785, %786 : vector<32x64xf32>
    %cst_353 = arith.constant dense<0.000000e+00> : vector<32x32xf32>
    %788 = tpu.matmul %787, %780, %cst_353 {dimension_numbers = #tpu.dot_dimension_numbers<[1], [0], [0], [1], [0, 0, 1, 1], [], []>} : vector<32x64xf32>, vector<64x32xf32>, vector<32x32xf32> -> vector<32x32xf32>
    %789 = vector.broadcast %782 : vector<1x32xf32> to vector<32x32xf32>
    %790 = arith.addf %788, %789 : vector<32x32xf32>
    %c1_354 = arith.constant 1 : index
    %c0_355 = arith.constant 0 : index
    %c0_356 = arith.constant 0 : index
    %791 = vector.load %arg34[%c1_354, %c0_355, %c0_356] : memref<2x1x32xf32, #tpu.memory_space<vmem>>, vector<1x1x32xf32>
    %792 = vector.shape_cast %791 : vector<1x1x32xf32> to vector<1x32xf32>
    %c1_357 = arith.constant 1 : index
    %c0_358 = arith.constant 0 : index
    %c0_359 = arith.constant 0 : index
    %793 = vector.load %arg35[%c1_357, %c0_358, %c0_359] : memref<2x1x32xf32, #tpu.memory_space<vmem>>, vector<1x1x32xf32>
    %794 = vector.shape_cast %793 : vector<1x1x32xf32> to vector<1x32xf32>
    %795 = arith.addf %774, %790 : vector<32x32xf32>
    %cst_360 = arith.constant dense<0.000000e+00> : vector<32xf32>
    %796 = vector.multi_reduction <add>, %795, %cst_360 [1] : vector<32x32xf32> to vector<32xf32>
    %797 = vector.shape_cast %796 : vector<32xf32> to vector<32x1xf32>
    %cst_361 = arith.constant 3.200000e+01 : f32
    %798 = vector.broadcast %cst_361 : f32 to vector<32x1xf32>
    %799 = arith.divf %797, %798 : vector<32x1xf32>
    %800 = vector.broadcast %799 : vector<32x1xf32> to vector<32x32xf32>
    %801 = arith.subf %795, %800 : vector<32x32xf32>
    %802 = arith.mulf %801, %801 : vector<32x32xf32>
    %cst_362 = arith.constant dense<0.000000e+00> : vector<32xf32>
    %803 = vector.multi_reduction <add>, %802, %cst_362 [1] : vector<32x32xf32> to vector<32xf32>
    %804 = vector.shape_cast %803 : vector<32xf32> to vector<32x1xf32>
    %cst_363 = arith.constant 3.200000e+01 : f32
    %805 = vector.broadcast %cst_363 : f32 to vector<32x1xf32>
    %806 = arith.divf %804, %805 : vector<32x1xf32>
    %cst_364 = arith.constant 9.99999974E-6 : f32
    %807 = vector.broadcast %cst_364 : f32 to vector<32x1xf32>
    %808 = arith.addf %806, %807 : vector<32x1xf32>
    %809 = math.rsqrt %808 : vector<32x1xf32>
    %810 = vector.broadcast %809 : vector<32x1xf32> to vector<32x32xf32>
    %811 = arith.mulf %801, %810 : vector<32x32xf32>
    %812 = vector.broadcast %792 : vector<1x32xf32> to vector<32x32xf32>
    %813 = arith.mulf %811, %812 : vector<32x32xf32>
    %814 = vector.broadcast %794 : vector<1x32xf32> to vector<32x32xf32>
    %815 = arith.addf %813, %814 : vector<32x32xf32>
    %cst_365 = arith.constant dense<0.000000e+00> : vector<32xf32>
    %816 = vector.multi_reduction <add>, %815, %cst_365 [1] : vector<32x32xf32> to vector<32xf32>
    %817 = vector.shape_cast %816 : vector<32xf32> to vector<32x1xf32>
    %cst_366 = arith.constant 3.200000e+01 : f32
    %818 = vector.broadcast %cst_366 : f32 to vector<32x1xf32>
    %819 = arith.divf %817, %818 : vector<32x1xf32>
    %820 = vector.broadcast %819 : vector<32x1xf32> to vector<32x32xf32>
    %821 = arith.subf %815, %820 : vector<32x32xf32>
    %822 = arith.mulf %821, %821 : vector<32x32xf32>
    %cst_367 = arith.constant dense<0.000000e+00> : vector<32xf32>
    %823 = vector.multi_reduction <add>, %822, %cst_367 [1] : vector<32x32xf32> to vector<32xf32>
    %824 = vector.shape_cast %823 : vector<32xf32> to vector<32x1xf32>
    %cst_368 = arith.constant 3.200000e+01 : f32
    %825 = vector.broadcast %cst_368 : f32 to vector<32x1xf32>
    %826 = arith.divf %824, %825 : vector<32x1xf32>
    %cst_369 = arith.constant 9.99999974E-6 : f32
    %827 = vector.broadcast %cst_369 : f32 to vector<32x1xf32>
    %828 = arith.addf %826, %827 : vector<32x1xf32>
    %829 = math.rsqrt %828 : vector<32x1xf32>
    %830 = vector.broadcast %829 : vector<32x1xf32> to vector<32x32xf32>
    %831 = arith.mulf %821, %830 : vector<32x32xf32>
    %832 = vector.broadcast %322 : vector<1x32xf32> to vector<32x32xf32>
    %833 = arith.mulf %831, %832 : vector<32x32xf32>
    %834 = vector.broadcast %323 : vector<1x32xf32> to vector<32x32xf32>
    %835 = arith.addf %833, %834 : vector<32x32xf32>
    %c1_370 = arith.constant 1 : index
    %c0_371 = arith.constant 0 : index
    %c0_372 = arith.constant 0 : index
    %836 = vector.load %arg38[%c1_370, %c0_371, %c0_372] : memref<2x32x32xf32, #tpu.memory_space<vmem>>, vector<1x32x32xf32>
    %837 = vector.shape_cast %836 : vector<1x32x32xf32> to vector<32x32xf32>
    %838 = vector.shape_cast %835 : vector<32x32xf32> to vector<1x32x32xf32>
    tpu.vector_store %arg38[%c1_370, %c0_371, %c0_372], %838 {strides = array<i32>} : memref<2x32x32xf32, #tpu.memory_space<vmem>>, vector<1x32x32xf32>,
    return
  }
}

</mosaic_0001>

<bundles_post_ra>
// kernel: eq.22
= control target key start
LH: loop header
LB: loop body
LE: loop exit
PB: predicated region body
PF: predicated region fallthrough
CT: control target
= control target key end

     0   :  { %vm7_vm0 = vcmask 130048   ;;  %vm13_vm1 = vcmask 261248   ;;  %s39_s0 = inlined_call_operand.vmem [shape: s32[2,16], index: 0, kind: input, shape index: {}]   ;;  %s40_s1 = inlined_call_operand.vmem [shape: s32[32], index: 1, kind: output, shape index: {}]  }
   0x1   :  { %v4_v0 = vld [vmem:[%s39_s0] sm:$0x3]  ;;  %s22_s0 = smov 16  }
   0x2   :  { %5 = vst [vmem:[#allocation1] sm:$0x3] %v4_v0 }
   0x9   :  { %v10_v1 = vld [vmem:[#allocation1 + $0x1] sm:$0x1]   ;;  %v6_v2 = vld [vmem:[#allocation1] sm:$0x1]  }
   0xa   :  { %11 = vrot.lane.b32.xlu0 %v10_v1, %s22_s0  ;;  %8 = vst.msk [vmem:[#allocation0] sm:$0x1] %vm7_vm0, %v6_v2  }
  0x7c   :  { %v12_v3 = vpop.permute.xlu0 %11  }
  0x7d   :  { %14 = vst.msk [vmem:[#allocation0] sm:$0x1] %vm13_vm1, %v12_v3  }
  0x84   :  { %v18_v4 = vld [vmem:[#allocation0] sm:$0x1] }
  0x85   :  { %20 = vst [vmem:[%s40_s1] sm:$0x1] %v18_v4 }

// kernel: transformer_forward.1
= control target key start
LH: loop header
LB: loop body
LE: loop exit
PB: predicated region body
PF: predicated region fallthrough
CT: control target
= control target key end

     0   :  { %s14030_s6 = smov 1   ;;  %s14031_s10 = smov 2   ;;  %s16491_s0 = inlined_call_operand.smem [shape: u32[40], index: -1, kind: input, shape index: {}] }
   0x1   :  { %s14117_s5 = sld [smem:[%s16491_s0]]   ;;  %s14032_s14 = smov 3  }
   0x2   :  { %s14122_s9 = sld [smem:[%s16491_s0 + %s14030_s6]]   ;;  %s14033_s18 = smov 4  }
   0x3   :  { %s14127_s13 = sld [smem:[%s16491_s0 + %s14031_s10]]   ;;  %s14034_s22 = smov 5  }
   0x4   :  { %s14132_s17 = sld [smem:[%s16491_s0 + %s14032_s14]]   ;;  %s14035_s26 = smov 6  }
   0x5   :  { %s14137_s21 = sld [smem:[%s16491_s0 + %s14033_s18]]   ;;  %s14036_s30 = smov 7  }
   0x6   :  { %s14142_s25 = sld [smem:[%s16491_s0 + %s14034_s22]]   ;;  %s14037_s4 = smov 8  }
   0x7   :  { %16514 = sst [smem:[#allocation54_spill]] %s14117_s5  ;;  %s14038_s10 = smov 9  }
   0x8   :  { %16515 = sst [smem:[#allocation55_spill]] %s14122_s9  ;;  %s14039_s15 = smov 10  }
   0x9   :  { %16516 = sst [smem:[#allocation56_spill]] %s14127_s13  ;;  %s14040_s20 = smov 11  }
   0xa   :  { %16517 = sst [smem:[#allocation57_spill]] %s14132_s17  ;;  %s14042_s1 = smov 13  }
   0xb   :  { %16518 = sst [smem:[#allocation58_spill]] %s14137_s21  ;;  %s14043_s7 = smov 14  }
   0xc   :  { %16519 = sst [smem:[#allocation59_spill]] %s14142_s25  ;;  %s14045_s22 = smov 16  }
   0xd   :  { %s14147_s29 = sld [smem:[%s16491_s0 + %s14035_s26]]   ;;  %s14041_s26 = smov 12  }
   0xe   :  { %s14152_s3 = sld [smem:[%s16491_s0 + %s14036_s30]]   ;;  %s14046_s28 = smov 17  }
   0xf   :  { %s14157_s8 = sld [smem:[%s16491_s0 + %s14037_s4]]  }
  0x10   :  { %s14162_s14 = sld [smem:[%s16491_s0 + %s14038_s10]]  }
  0x11   :  { %s14167_s19 = sld [smem:[%s16491_s0 + %s14039_s15]]   ;;  %s14044_s15 = smov 15  }
  0x12   :  { %s14172_s24 = sld [smem:[%s16491_s0 + %s14040_s20]]  }
  0x13   :  { %16520 = sst [smem:[#allocation60_spill]] %s14147_s29 }
  0x14   :  { %16521 = sst [smem:[#allocation61_spill]] %s14152_s3 }
  0x15   :  { %16522 = sst [smem:[#allocation62_spill]] %s14157_s8 }
  0x16   :  { %s14177_s30 = sld [smem:[%s16491_s0 + %s14041_s26]]  }
  0x17   :  { %s14182_s6 = sld [smem:[%s16491_s0 + %s14042_s1]]  }
  0x18   :  { %s14187_s12 = sld [smem:[%s16491_s0 + %s14043_s7]]   ;;  %s14047_s7 = smov 18  }
  0x19   :  { %s14192_s20 = sld [smem:[%s16491_s0 + %s14044_s15]]   ;;  %s14048_s15 = smov 19  }
  0x1a   :  { %s14197_s27 = sld [smem:[%s16491_s0 + %s14045_s22]]   ;;  %s14049_s22 = smov 20  }
  0x1b   :  { %s14202_s4 = sld [smem:[%s16491_s0 + %s14046_s28]]   ;;  %s14050_s28 = smov 21  }
  0x1c   :  { %16523 = sst [smem:[#allocation63_spill]] %s14177_s30 }
  0x1d   :  { %s14207_s21 = sld [smem:[%s16491_s0 + %s14047_s7]]   ;;  %s14051_s7 = smov 22  }
  0x1e   :  { %16524 = sst [smem:[#allocation64_spill]] %s14187_s12 }
  0x1f   :  { %s14212_s25 = sld [smem:[%s16491_s0 + %s14048_s15]]   ;;  %s14052_s15 = smov 23  }
  0x20   :  { %s14217_s13 = sld [smem:[%s16491_s0 + %s14049_s22]]   ;;  %s14053_s22 = smov 24  }
  0x21   :  { %s14222_s12 = sld [smem:[%s16491_s0 + %s14050_s28]]   ;;  %s14054_s28 = smov 25  }
  0x22   :  { %s14232_s30 = sld [smem:[%s16491_s0 + %s14052_s15]]   ;;  %s14056_s15 = smov 27  }
  0x23   :  { %16525 = sst [smem:[#allocation65_spill]] %s14207_s21 }
  0x24   :  { %s14227_s21 = sld [smem:[%s16491_s0 + %s14051_s7]]   ;;  %s14055_s7 = smov 26  }
  0x25   :  { %s14242_s8 = sld [smem:[%s16491_s0 + %s14054_s28]]   ;;  %s14058_s28 = smov 29  }
  0x26   :  { %16526 = sst [smem:[#allocation66_spill]] %s14217_s13 }
  0x27   :  { %16527 = sst [smem:[#allocation67_spill]] %s14222_s12 }
  0x28   :  { %16528 = sst [smem:[#allocation68_spill]] %s14232_s30 }
  0x29   :  { %s14237_s13 = sld [smem:[%s16491_s0 + %s14053_s22]]   ;;  %s14057_s22 = smov 28  }
  0x2a   :  { %s14247_s17 = sld [smem:[%s16491_s0 + %s14055_s7]]   ;;  %s14059_s7 = smov 30  }
  0x2b   :  { %s14252_s3 = sld [smem:[%s16491_s0 + %s14056_s15]]   ;;  %s14060_s15 = smov 31  }
  0x2c   :  { %s14262_s9 = sld [smem:[%s16491_s0 + %s14058_s28]]   ;;  %s14062_s28 = smov 33  }
  0x2d   :  { %s14267_s5 = sld [smem:[%s16491_s0 + %s14059_s7]]   ;;  %s14063_s7 = smov 34  }
  0x2e   :  { %s14272_s29 = sld [smem:[%s16491_s0 + %s14060_s15]]   ;;  %s14064_s15 = smov 35  }
  0x2f   :  { %16529 = sst [smem:[#allocation69_spill]] %s14237_s13 }
  0x30   :  { %16530 = sst [smem:[#allocation70_spill]] %s14247_s17 }
  0x31   :  { %s14257_s13 = sld [smem:[%s16491_s0 + %s14057_s22]]   ;;  %s14061_s22 = smov 32  }
  0x32   :  { %s14282_s17 = sld [smem:[%s16491_s0 + %s14062_s28]]   ;;  %s14066_s28 = smov 37  }
  0x33   :  { %16532 = sst [smem:[#allocation72_spill]] %s14267_s5 }
  0x34   :  { %16533 = sst [smem:[#allocation73_spill]] %s14272_s29 }
  0x35   :  { %s14287_s5 = sld [smem:[%s16491_s0 + %s14063_s7]]   ;;  %s14067_s7 = smov 38  }
  0x36   :  { %s14292_s29 = sld [smem:[%s16491_s0 + %s14064_s15]]   ;;  %s14068_s15 = smov 39  }
  0x37   :  { %16531 = sst [smem:[#allocation71_spill]] %s14257_s13 }
  0x38   :  { %s14277_s13 = sld [smem:[%s16491_s0 + %s14061_s22]]   ;;  %s14065_s22 = smov 36  }
  0x39   :  { %s14302_s30 = sld [smem:[%s16491_s0 + %s14066_s28]]  }
  0x3a   :  { %s14312_s12 = sld [smem:[%s16491_s0 + %s14068_s15]]  }
  0x3b   :  { %16535 = sst [smem:[#allocation75_spill]] %s14287_s5 }
  0x3c   :  { %s14307_s5 = sld [smem:[%s16491_s0 + %s14067_s7]]  }
  0x3e   :  { %16534 = sst [smem:[#allocation74_spill]] %s14277_s13 }
  0x3f   :  { %s14297_s13 = sld [smem:[%s16491_s0 + %s14065_s22]]  }
  0x40   :  { %85 = vsyncpa [#allocation3], 0 }
  0x41   :  { %86 = vsyncpa [#allocation6], 0 }
  0x42   :  { %87 = vsyncpa [#allocation9], 0 }
  0x43   :  { %88 = vsyncpa [#allocation12], 0 }
  0x44   :  { %89 = vsyncpa [#allocation15], 0 }
  0x45   :  { %90 = vsyncpa [#allocation18], 0 }
  0x46   :  { %91 = vsyncpa [#allocation21], 0 }
  0x47   :  { %92 = vsyncpa [#allocation24], 0 }
  0x48   :  { %93 = vsyncpa [#allocation27], 0 }
  0x49   :  { %94 = vsyncpa [#allocation30], 0 }
  0x4a   :  { %95 = vsyncpa [#allocation33], 0 }
  0x4b   :  { %96 = vsyncpa [#allocation36], 0 }
  0x4c   :  { %97 = vsyncpa [#allocation4], 0 }
  0x4d   :  { %98 = vsyncpa [#allocation39], 0  ;;  %s14069_s22 = smov [#allocation5]   ;;  %s14070_s23 = smov [#allocation8]  }
  0x4e   :  { %s134_s0 = sshll.u32 %s14069_s22, 4  ;;  %s160_s26 = sshll.u32 %s14070_s23, 4  ;;  %s135_s0 = int_to_ptr.vmem [resolvable:$true] %s134_s0  ;;  %s14314_s26 = int_to_ptr.vmem [resolvable:$true] %s160_s26 }
  0x4f   :  { %s13474_s28 = scalar_lea.hbm %s14167_s19, 32 }
  0x50   :  { %p13475_p0 = scmp.ne.s32.totalorder %s14167_s19, %s13474_s28  ;;  %p13478_p1 = scmp.lt.u32.totalorder %s13474_s28, %s14167_s19 }
  0x52   :  { %p13480_p2 = pnand %p13478_p1, %p13475_p0 }
  0x54   :  { %13483 = shalt.err (!%p13480_p2)
}
  0x55   :  { %s13484_s1 = scalar_lea.vmem %s135_s0, 32  ;;  %p13489_p4 = scmp.lt.s32.totalorder %s135_s0, %s135_s0 }
  0x56   :  { %p13485_p3 = scmp.ne.s32.totalorder %s135_s0, %s13484_s1  ;;  %p13490_p5 = scmp.lt.s32.totalorder %s13484_s1, %s13484_s1 }
  0x58   :  { %p13491_p6 = por %p13490_p5, %p13489_p4 }
  0x5a   :  { %p13492_p7 = pnand %p13491_p6, %p13485_p3 }
  0x5c   :  { %13495 = shalt.err (!%p13492_p7)
}
  0x5d   :  { %s14071_s2 = smov 16   ;;  %s14072_s7 = smov 1  }
  0x5e   :  { %140 = dma.hbm_to_vmem [thread:$0]  %s14167_s19, 32, %s135_s0, [#allocation6], %s14071_s2, %s14071_s2, %s14072_s7  }
  0x5f   :  { %s13496_s10 = scalar_lea.hbm %s14182_s6, 32 }
  0x60   :  { %p13497_p8 = scmp.ne.s32.totalorder %s14182_s6, %s13496_s10  ;;  %p13500_p9 = scmp.lt.u32.totalorder %s13496_s10, %s14182_s6 }
  0x62   :  { %p13502_p10 = pnand %p13500_p9, %p13497_p8 }
  0x64   :  { %13505 = shalt.err (!%p13502_p10)
}
  0x65   :  { %s13506_s11 = scalar_lea.vmem %s14314_s26, 32  ;;  %p13511_p12 = scmp.lt.s32.totalorder %s14314_s26, %s14314_s26 }
  0x66   :  { %p13507_p11 = scmp.ne.s32.totalorder %s14314_s26, %s13506_s11  ;;  %p13512_p13 = scmp.lt.s32.totalorder %s13506_s11, %s13506_s11 }
  0x68   :  { %p13513_p0 = por %p13512_p13, %p13511_p12 }
  0x6a   :  { %p13514_p1 = pnand %p13513_p0, %p13507_p11 }
  0x6c   :  { %13517 = shalt.err (!%p13514_p1)
}
  0x6d   :  { %166 = dma.hbm_to_vmem [thread:$0]  %s14182_s6, 32, %s14314_s26, [#allocation9], %s14071_s2, %s14071_s2, %s14072_s7  }
  0x6e   :  { %s14073_s19 = smov [#allocation11]   ;;  %s14074_s16 = smov [#allocation14]  }
  0x6f   :  { %s186_s15 = sshll.u32 %s14073_s19, 4  ;;  %s212_s18 = sshll.u32 %s14074_s16, 4  ;;  %s187_s15 = int_to_ptr.vmem [resolvable:$true] %s186_s15  ;;  %s14335_s18 = int_to_ptr.vmem [resolvable:$true] %s212_s18 }
  0x70   :  { %s13518_s22 = scalar_lea.hbm %s14197_s27, 32 }
  0x71   :  { %p13519_p2 = scmp.ne.s32.totalorder %s14197_s27, %s13518_s22  ;;  %p13522_p3 = scmp.lt.u32.totalorder %s13518_s22, %s14197_s27 }
  0x73   :  { %p13524_p4 = pnand %p13522_p3, %p13519_p2 }
  0x75   :  { %13527 = shalt.err (!%p13524_p4)
}
  0x76   :  { %s13528_s0 = scalar_lea.vmem %s187_s15, 32  ;;  %p13533_p6 = scmp.lt.s32.totalorder %s187_s15, %s187_s15 }
  0x77   :  { %p13529_p5 = scmp.ne.s32.totalorder %s187_s15, %s13528_s0  ;;  %p13534_p7 = scmp.lt.s32.totalorder %s13528_s0, %s13528_s0 }
  0x79   :  { %p13535_p8 = por %p13534_p7, %p13533_p6 }
  0x7b   :  { %p13536_p9 = pnand %p13535_p8, %p13529_p5 }
  0x7d   :  { %13539 = shalt.err (!%p13536_p9)
}
  0x7e   :  { %192 = dma.hbm_to_vmem [thread:$0]  %s14197_s27, 32, %s187_s15, [#allocation12], %s14071_s2, %s14071_s2, %s14072_s7  }
  0x7f   :  { %s13540_s6 = scalar_lea.hbm %s14212_s25, 32 }
  0x80   :  { %p13541_p10 = scmp.ne.s32.totalorder %s14212_s25, %s13540_s6  ;;  %p13544_p11 = scmp.lt.u32.totalorder %s13540_s6, %s14212_s25 }
  0x82   :  { %p13546_p12 = pnand %p13544_p11, %p13541_p10 }
  0x84   :  { %13549 = shalt.err (!%p13546_p12)
}
  0x85   :  { %s13550_s23 = scalar_lea.vmem %s14335_s18, 32  ;;  %p13555_p0 = scmp.lt.s32.totalorder %s14335_s18, %s14335_s18 }
  0x86   :  { %p13551_p13 = scmp.ne.s32.totalorder %s14335_s18, %s13550_s23  ;;  %p13556_p1 = scmp.lt.s32.totalorder %s13550_s23, %s13550_s23 }
  0x88   :  { %p13557_p2 = por %p13556_p1, %p13555_p0 }
  0x8a   :  { %p13558_p3 = pnand %p13557_p2, %p13551_p13 }
  0x8c   :  { %13561 = shalt.err (!%p13558_p3)
}
  0x8d   :  { %218 = dma.hbm_to_vmem [thread:$0]  %s14212_s25, 32, %s14335_s18, [#allocation15], %s14071_s2, %s14071_s2, %s14072_s7  }
  0x8e   :  { %s14075_s27 = smov [#allocation17]   ;;  %s14076_s28 = smov [#allocation20]  }
  0x8f   :  { %s238_s26 = sshll.u32 %s14075_s27, 4  ;;  %s264_s1 = sshll.u32 %s14076_s28, 4  ;;  %s239_s26 = int_to_ptr.vmem [resolvable:$true] %s238_s26  ;;  %s14356_s1 = int_to_ptr.vmem [resolvable:$true] %s264_s1 }
  0x90   :  { %s13562_s10 = scalar_lea.hbm %s14227_s21, 32 }
  0x91   :  { %p13563_p4 = scmp.ne.s32.totalorder %s14227_s21, %s13562_s10  ;;  %p13566_p5 = scmp.lt.u32.totalorder %s13562_s10, %s14227_s21 }
  0x93   :  { %p13568_p6 = pnand %p13566_p5, %p13563_p4 }
  0x95   :  { %13571 = shalt.err (!%p13568_p6)
}
  0x96   :  { %s13572_s11 = scalar_lea.vmem %s239_s26, 32  ;;  %p13577_p8 = scmp.lt.s32.totalorder %s239_s26, %s239_s26 }
  0x97   :  { %p13573_p7 = scmp.ne.s32.totalorder %s239_s26, %s13572_s11  ;;  %p13578_p9 = scmp.lt.s32.totalorder %s13572_s11, %s13572_s11 }
  0x99   :  { %p13579_p10 = por %p13578_p9, %p13577_p8 }
  0x9b   :  { %p13580_p11 = pnand %p13579_p10, %p13573_p7 }
  0x9d   :  { %13583 = shalt.err (!%p13580_p11)
}
  0x9e   :  { %244 = dma.hbm_to_vmem [thread:$0]  %s14227_s21, 32, %s239_s26, [#allocation18], %s14071_s2, %s14071_s2, %s14072_s7  }
  0x9f   :  { %s13584_s25 = scalar_lea.hbm %s14242_s8, 32 }
  0xa0   :  { %p13585_p12 = scmp.ne.s32.totalorder %s14242_s8, %s13584_s25  ;;  %p13588_p13 = scmp.lt.u32.totalorder %s13584_s25, %s14242_s8 }
  0xa2   :  { %p13590_p0 = pnand %p13588_p13, %p13585_p12 }
  0xa4   :  { %13593 = shalt.err (!%p13590_p0)
}
  0xa5   :  { %s13594_s19 = scalar_lea.vmem %s14356_s1, 32  ;;  %p13599_p2 = scmp.lt.s32.totalorder %s14356_s1, %s14356_s1 }
  0xa6   :  { %p13595_p1 = scmp.ne.s32.totalorder %s14356_s1, %s13594_s19  ;;  %p13600_p3 = scmp.lt.s32.totalorder %s13594_s19, %s13594_s19 }
  0xa8   :  { %p13601_p4 = por %p13600_p3, %p13599_p2 }
  0xaa   :  { %p13602_p5 = pnand %p13601_p4, %p13595_p1 }
  0xac   :  { %13605 = shalt.err (!%p13602_p5)
}
  0xad   :  { %270 = dma.hbm_to_vmem [thread:$0]  %s14242_s8, 32, %s14356_s1, [#allocation21], %s14071_s2, %s14071_s2, %s14072_s7  }
  0xae   :  { %s14077_s21 = smov [#allocation23]   ;;  %s14078_s16 = smov [#allocation26]  }
  0xaf   :  { %s288_s15 = sshll.u32 %s14077_s21, 4  ;;  %s312_s18 = sshll.u32 %s14078_s16, 4  ;;  %s289_s15 = int_to_ptr.vmem [resolvable:$true] %s288_s15  ;;  %s14377_s18 = int_to_ptr.vmem [resolvable:$true] %s312_s18 }
  0xb0   :  { %s13606_s22 = scalar_lea.hbm %s14252_s3, 32 }
  0xb1   :  { %p13607_p6 = scmp.ne.s32.totalorder %s14252_s3, %s13606_s22  ;;  %p13610_p7 = scmp.lt.u32.totalorder %s13606_s22, %s14252_s3 }
  0xb3   :  { %p13612_p8 = pnand %p13610_p7, %p13607_p6 }
  0xb5   :  { %13615 = shalt.err (!%p13612_p8)
}
  0xb6   :  { %s13616_s0 = scalar_lea.vmem %s289_s15, 32  ;;  %p13621_p10 = scmp.lt.s32.totalorder %s289_s15, %s289_s15 }
  0xb7   :  { %p13617_p9 = scmp.ne.s32.totalorder %s289_s15, %s13616_s0  ;;  %p13622_p11 = scmp.lt.s32.totalorder %s13616_s0, %s13616_s0 }
  0xb9   :  { %p13623_p12 = por %p13622_p11, %p13621_p10 }
  0xbb   :  { %p13624_p13 = pnand %p13623_p12, %p13617_p9 }
  0xbd   :  { %13627 = shalt.err (!%p13624_p13)
}
  0xbe   :  { %294 = dma.hbm_to_vmem [thread:$0]  %s14252_s3, 32, %s289_s15, [#allocation24], %s14071_s2, %s14071_s2, %s14072_s7  }
  0xbf   :  { %s13628_s8 = scalar_lea.hbm %s14262_s9, 32 }
  0xc0   :  { %p13629_p0 = scmp.ne.s32.totalorder %s14262_s9, %s13628_s8  ;;  %p13632_p1 = scmp.lt.u32.totalorder %s13628_s8, %s14262_s9 }
  0xc2   :  { %p13634_p2 = pnand %p13632_p1, %p13629_p0 }
  0xc4   :  { %13637 = shalt.err (!%p13634_p2)
}
  0xc5   :  { %s13638_s6 = scalar_lea.vmem %s14377_s18, 32  ;;  %p13643_p4 = scmp.lt.s32.totalorder %s14377_s18, %s14377_s18 }
  0xc6   :  { %p13639_p3 = scmp.ne.s32.totalorder %s14377_s18, %s13638_s6  ;;  %p13644_p5 = scmp.lt.s32.totalorder %s13638_s6, %s13638_s6 }
  0xc8   :  { %p13645_p6 = por %p13644_p5, %p13643_p4 }
  0xca   :  { %p13646_p7 = pnand %p13645_p6, %p13639_p3 }
  0xcc   :  { %13649 = shalt.err (!%p13646_p7)
}
  0xcd   :  { %318 = dma.hbm_to_vmem [thread:$0]  %s14262_s9, 32, %s14377_s18, [#allocation27], %s14071_s2, %s14071_s2, %s14072_s7  }
  0xce   :  { %s14079_s3 = smov [#allocation29]   ;;  %s14080_s27 = smov [#allocation32]  }
  0xcf   :  { %s340_s23 = sshll.u32 %s14079_s3, 4  ;;  %s364_s26 = sshll.u32 %s14080_s27, 4  ;;  %s341_s23 = int_to_ptr.vmem [resolvable:$true] %s340_s23  ;;  %s14398_s26 = int_to_ptr.vmem [resolvable:$true] %s364_s26 }
  0xd0   :  { %s13650_s28 = scalar_lea.hbm %s14282_s17, 32 }
  0xd1   :  { %p13651_p8 = scmp.ne.s32.totalorder %s14282_s17, %s13650_s28  ;;  %p13654_p9 = scmp.lt.u32.totalorder %s13650_s28, %s14282_s17 }
  0xd3   :  { %p13656_p10 = pnand %p13654_p9, %p13651_p8 }
  0xd5   :  { %13659 = shalt.err (!%p13656_p10)
}
  0xd6   :  { %s13660_s1 = scalar_lea.vmem %s341_s23, 32  ;;  %p13665_p12 = scmp.lt.s32.totalorder %s341_s23, %s341_s23 }
  0xd7   :  { %p13661_p11 = scmp.ne.s32.totalorder %s341_s23, %s13660_s1  ;;  %p13666_p13 = scmp.lt.s32.totalorder %s13660_s1, %s13660_s1 }
  0xd9   :  { %p13667_p0 = por %p13666_p13, %p13665_p12 }
  0xdb   :  { %p13668_p1 = pnand %p13667_p0, %p13661_p11 }
  0xdd   :  { %13671 = shalt.err (!%p13668_p1)
}
  0xde   :  { %346 = dma.hbm_to_vmem [thread:$0]  %s14282_s17, 32, %s341_s23, [#allocation30], %s14071_s2, %s14071_s2, %s14072_s7  }
  0xdf   :  { %s13672_s9 = scalar_lea.hbm %s14292_s29, 32 }
  0xe0   :  { %p13673_p2 = scmp.ne.s32.totalorder %s14292_s29, %s13672_s9  ;;  %p13676_p3 = scmp.lt.u32.totalorder %s13672_s9, %s14292_s29 }
  0xe2   :  { %p13678_p4 = pnand %p13676_p3, %p13673_p2 }
  0xe4   :  { %13681 = shalt.err (!%p13678_p4)
}
  0xe5   :  { %s13682_s10 = scalar_lea.vmem %s14398_s26, 32  ;;  %p13687_p6 = scmp.lt.s32.totalorder %s14398_s26, %s14398_s26 }
  0xe6   :  { %p13683_p5 = scmp.ne.s32.totalorder %s14398_s26, %s13682_s10  ;;  %p13688_p7 = scmp.lt.s32.totalorder %s13682_s10, %s13682_s10 }
  0xe8   :  { %p13689_p8 = por %p13688_p7, %p13687_p6 }
  0xea   :  { %p13690_p9 = pnand %p13689_p8, %p13683_p5 }
  0xec   :  { %13693 = shalt.err (!%p13690_p9)
}
  0xed   :  { %370 = dma.hbm_to_vmem [thread:$0]  %s14292_s29, 32, %s14398_s26, [#allocation33], %s14071_s2, %s14071_s2, %s14072_s7  }
  0xee   :  { %s14081_s17 = smov [#allocation2]   ;;  %s14082_s25 = smov [#allocation7]  }
  0xef   :  { %s122_s11 = sshll.u32 %s14081_s17, 4  ;;  %s146_s19 = sshll.u32 %s14082_s25, 4  ;;  %s123_s11 = int_to_ptr.vmem [resolvable:$true] %s122_s11  ;;  %s14419_s19 = int_to_ptr.vmem [resolvable:$true] %s146_s19 }
  0xf0   :  { %s13694_s21 = scalar_lea.hbm %s14162_s14, 32 }
  0xf1   :  { %p13695_p10 = scmp.ne.s32.totalorder %s14162_s14, %s13694_s21  ;;  %p13698_p11 = scmp.lt.u32.totalorder %s13694_s21, %s14162_s14 }
  0xf3   :  { %p13700_p12 = pnand %p13698_p11, %p13695_p10 }
  0xf5   :  { %13703 = shalt.err (!%p13700_p12)
}
  0xf6   :  { %s13704_s15 = scalar_lea.vmem %s123_s11, 32  ;;  %p13709_p0 = scmp.lt.s32.totalorder %s123_s11, %s123_s11 }
  0xf7   :  { %p13705_p13 = scmp.ne.s32.totalorder %s123_s11, %s13704_s15  ;;  %p13710_p1 = scmp.lt.s32.totalorder %s13704_s15, %s13704_s15 }
  0xf9   :  { %p13711_p2 = por %p13710_p1, %p13709_p0 }
  0xfb   :  { %p13712_p3 = pnand %p13711_p2, %p13705_p13 }
  0xfd   :  { %13715 = shalt.err (!%p13712_p3)
}
  0xfe   :  { %128 = dma.hbm_to_vmem [thread:$0]  %s14162_s14, 32, %s123_s11, [#allocation3], %s14071_s2, %s14071_s2, %s14072_s7  }
  0xff   :  { %s13716_s29 = scalar_lea.hbm %s14172_s24, 32 }
 0x100   :  { %p13717_p4 = scmp.ne.s32.totalorder %s14172_s24, %s13716_s29  ;;  %p13720_p5 = scmp.lt.u32.totalorder %s13716_s29, %s14172_s24 }
 0x102   :  { %p13722_p6 = pnand %p13720_p5, %p13717_p4 }
 0x104   :  { %13725 = shalt.err (!%p13722_p6)
}
 0x105   :  { %s13726_s16 = scalar_lea.vmem %s14419_s19, 32  ;;  %p13731_p8 = scmp.lt.s32.totalorder %s14419_s19, %s14419_s19 }
 0x106   :  { %p13727_p7 = scmp.ne.s32.totalorder %s14419_s19, %s13726_s16  ;;  %p13732_p9 = scmp.lt.s32.totalorder %s13726_s16, %s13726_s16 }
 0x108   :  { %p13733_p10 = por %p13732_p9, %p13731_p8 }
 0x10a   :  { %p13734_p11 = pnand %p13733_p10, %p13727_p7 }
 0x10c   :  { %13737 = shalt.err (!%p13734_p11)
}
 0x10d   :  { %152 = dma.hbm_to_vmem [thread:$0]  %s14172_s24, 32, %s14419_s19, [#allocation6], %s14071_s2, %s14071_s2, %s14072_s7  }
 0x10e   :  { %s14083_s14 = smov [#allocation10]   ;;  %s14084_s22 = smov [#allocation13]  }
 0x10f   :  { %s174_s18 = sshll.u32 %s14083_s14, 4  ;;  %s198_s0 = sshll.u32 %s14084_s22, 4  ;;  %s175_s18 = int_to_ptr.vmem [resolvable:$true] %s174_s18  ;;  %s14440_s0 = int_to_ptr.vmem [resolvable:$true] %s198_s0 }
 0x110   :  { %s13738_s8 = scalar_lea.hbm %s14192_s20, 32 }
 0x111   :  { %p13739_p12 = scmp.ne.s32.totalorder %s14192_s20, %s13738_s8  ;;  %p13742_p13 = scmp.lt.u32.totalorder %s13738_s8, %s14192_s20 }
 0x113   :  { %p13744_p0 = pnand %p13742_p13, %p13739_p12 }
 0x115   :  { %13747 = shalt.err (!%p13744_p0)
}
 0x116   :  { %s13748_s6 = scalar_lea.vmem %s175_s18, 32  ;;  %p13753_p2 = scmp.lt.s32.totalorder %s175_s18, %s175_s18 }
 0x117   :  { %p13749_p1 = scmp.ne.s32.totalorder %s175_s18, %s13748_s6  ;;  %p13754_p3 = scmp.lt.s32.totalorder %s13748_s6, %s13748_s6 }
 0x119   :  { %p13755_p4 = por %p13754_p3, %p13753_p2 }
 0x11b   :  { %p13756_p5 = pnand %p13755_p4, %p13749_p1 }
 0x11d   :  { %13759 = shalt.err (!%p13756_p5)
}
 0x11e   :  { %180 = dma.hbm_to_vmem [thread:$0]  %s14192_s20, 32, %s175_s18, [#allocation9], %s14071_s2, %s14071_s2, %s14072_s7  }
 0x11f   :  { %s13760_s24 = scalar_lea.hbm %s14202_s4, 32 }
 0x120   :  { %p13761_p6 = scmp.ne.s32.totalorder %s14202_s4, %s13760_s24  ;;  %p13764_p7 = scmp.lt.u32.totalorder %s13760_s24, %s14202_s4 }
 0x122   :  { %p13766_p8 = pnand %p13764_p7, %p13761_p6 }
 0x124   :  { %13769 = shalt.err (!%p13766_p8)
}
 0x125   :  { %s13770_s3 = scalar_lea.vmem %s14440_s0, 32  ;;  %p13775_p10 = scmp.lt.s32.totalorder %s14440_s0, %s14440_s0 }
 0x126   :  { %p13771_p9 = scmp.ne.s32.totalorder %s14440_s0, %s13770_s3  ;;  %p13776_p11 = scmp.lt.s32.totalorder %s13770_s3, %s13770_s3 }
 0x128   :  { %p13777_p12 = por %p13776_p11, %p13775_p10 }
 0x12a   :  { %p13778_p13 = pnand %p13777_p12, %p13771_p9 }
 0x12c   :  { %13781 = shalt.err (!%p13778_p13)
}
 0x12d   :  { %s16536_s20 = sld [smem:[#allocation67_spill]]  ;;  %s14085_s23 = smov [#allocation16]  }
 0x12e   :  { %204 = dma.hbm_to_vmem [thread:$0]  %s14202_s4, 32, %s14440_s0, [#allocation12], %s14071_s2, %s14071_s2, %s14072_s7  }
 0x12f   :  { %s226_s27 = sshll.u32 %s14085_s23, 4  ;;  %s14086_s26 = smov [#allocation19]   ;;  %s227_s27 = int_to_ptr.vmem [resolvable:$true] %s226_s27 }
 0x130   :  { %s250_s28 = sshll.u32 %s14086_s26, 4  ;;  %s14461_s28 = int_to_ptr.vmem [resolvable:$true] %s250_s28 }
 0x133   :  { %s13782_s1 = scalar_lea.hbm %s16536_s20, 32 }
 0x134   :  { %p13783_p0 = scmp.ne.s32.totalorder %s16536_s20, %s13782_s1  ;;  %p13786_p1 = scmp.lt.u32.totalorder %s13782_s1, %s16536_s20 }
 0x136   :  { %p13788_p2 = pnand %p13786_p1, %p13783_p0 }
 0x138   :  { %13791 = shalt.err (!%p13788_p2)
}
 0x139   :  { %s13792_s9 = scalar_lea.vmem %s227_s27, 32  ;;  %p13797_p4 = scmp.lt.s32.totalorder %s227_s27, %s227_s27 }
 0x13a   :  { %p13793_p3 = scmp.ne.s32.totalorder %s227_s27, %s13792_s9  ;;  %p13798_p5 = scmp.lt.s32.totalorder %s13792_s9, %s13792_s9 }
 0x13c   :  { %p13799_p6 = por %p13798_p5, %p13797_p4 }
 0x13e   :  { %p13800_p7 = pnand %p13799_p6, %p13793_p3 }
 0x140   :  { %13803 = shalt.err (!%p13800_p7)
}
 0x141   :  { %s16537_s4 = sld [smem:[#allocation68_spill]] }
 0x142   :  { %232 = dma.hbm_to_vmem [thread:$0]  %s16536_s20, 32, %s227_s27, [#allocation15], %s14071_s2, %s14071_s2, %s14072_s7  }
 0x147   :  { %s13804_s10 = scalar_lea.hbm %s16537_s4, 32 }
 0x148   :  { %p13805_p8 = scmp.ne.s32.totalorder %s16537_s4, %s13804_s10  ;;  %p13808_p9 = scmp.lt.u32.totalorder %s13804_s10, %s16537_s4 }
 0x14a   :  { %p13810_p10 = pnand %p13808_p9, %p13805_p8 }
 0x14c   :  { %13813 = shalt.err (!%p13810_p10)
}
 0x14d   :  { %s13814_s17 = scalar_lea.vmem %s14461_s28, 32  ;;  %p13819_p12 = scmp.lt.s32.totalorder %s14461_s28, %s14461_s28 }
 0x14e   :  { %p13815_p11 = scmp.ne.s32.totalorder %s14461_s28, %s13814_s17  ;;  %p13820_p13 = scmp.lt.s32.totalorder %s13814_s17, %s13814_s17 }
 0x150   :  { %p13821_p0 = por %p13820_p13, %p13819_p12 }
 0x152   :  { %p13822_p1 = pnand %p13821_p0, %p13815_p11 }
 0x154   :  { %13825 = shalt.err (!%p13822_p1)
}
 0x155   :  { %s16538_s11 = sld [smem:[#allocation70_spill]]  ;;  %s14087_s25 = smov [#allocation22]  }
 0x156   :  { %256 = dma.hbm_to_vmem [thread:$0]  %s16537_s4, 32, %s14461_s28, [#allocation18], %s14071_s2, %s14071_s2, %s14072_s7  }
 0x157   :  { %s276_s19 = sshll.u32 %s14087_s25, 4  ;;  %s277_s19 = int_to_ptr.vmem [resolvable:$true] %s276_s19 }
 0x15b   :  { %s13826_s21 = scalar_lea.hbm %s16538_s11, 1024 }
 0x15c   :  { %p13827_p2 = scmp.ne.s32.totalorder %s16538_s11, %s13826_s21  ;;  %p13830_p3 = scmp.lt.u32.totalorder %s13826_s21, %s16538_s11 }
 0x15e   :  { %p13832_p4 = pnand %p13830_p3, %p13827_p2 }
 0x160   :  { %13835 = shalt.err (!%p13832_p4)
}
 0x161   :  { %s13836_s15 = scalar_lea.vmem %s277_s19, 1024  ;;  %p13841_p6 = scmp.lt.s32.totalorder %s277_s19, %s277_s19 }
 0x162   :  { %p13837_p5 = scmp.ne.s32.totalorder %s277_s19, %s13836_s15  ;;  %p13842_p7 = scmp.lt.s32.totalorder %s13836_s15, %s13836_s15 }
 0x164   :  { %p13843_p8 = por %p13842_p7, %p13841_p6 }
 0x166   :  { %p13844_p9 = pnand %p13843_p8, %p13837_p5 }
 0x168   :  { %13847 = shalt.err (!%p13844_p9)
}
 0x169   :  { %s14088_s29 = smov 128   ;;  %s16539_s16 = sld [smem:[#allocation71_spill]] }
 0x16a   :  { %s14089_s14 = smov 8   ;;  %s14090_s18 = smov [#allocation25]  }
 0x16b   :  { %282 = dma.hbm_to_vmem [thread:$0]  %s16538_s11, 1024, %s277_s19, [#allocation21], %s14088_s29, %s14088_s29, %s14089_s14  }
 0x16c   :  { %s300_s22 = sshll.u32 %s14090_s18, 4  ;;  %s14091_s0 = smov [#allocation28]   ;;  %s301_s22 = int_to_ptr.vmem [resolvable:$true] %s300_s22 }
 0x16d   :  { %s326_s8 = sshll.u32 %s14091_s0, 4  ;;  %s327_s8 = int_to_ptr.vmem [resolvable:$true] %s326_s8 }
 0x16f   :  { %s13848_s6 = scalar_lea.hbm %s16539_s16, 32 }
 0x170   :  { %p13849_p10 = scmp.ne.s32.totalorder %s16539_s16, %s13848_s6  ;;  %p13852_p11 = scmp.lt.u32.totalorder %s13848_s6, %s16539_s16 }
 0x172   :  { %p13854_p12 = pnand %p13852_p11, %p13849_p10 }
 0x174   :  { %13857 = shalt.err (!%p13854_p12)
}
 0x175   :  { %s13858_s24 = scalar_lea.vmem %s301_s22, 32  ;;  %p13863_p0 = scmp.lt.s32.totalorder %s301_s22, %s301_s22 }
 0x176   :  { %p13859_p13 = scmp.ne.s32.totalorder %s301_s22, %s13858_s24  ;;  %p13864_p1 = scmp.lt.s32.totalorder %s13858_s24, %s13858_s24 }
 0x178   :  { %p13865_p2 = por %p13864_p1, %p13863_p0 }
 0x17a   :  { %p13866_p3 = pnand %p13865_p2, %p13859_p13 }
 0x17c   :  { %13869 = shalt.err (!%p13866_p3)
}
 0x17d   :  { %s16540_s3 = sld [smem:[#allocation73_spill]] }
 0x17e   :  { %306 = dma.hbm_to_vmem [thread:$0]  %s16539_s16, 32, %s301_s22, [#allocation24], %s14071_s2, %s14071_s2, %s14072_s7  }
 0x183   :  { %s13870_s20 = scalar_lea.hbm %s16540_s3, 32 }
 0x184   :  { %p13871_p4 = scmp.ne.s32.totalorder %s16540_s3, %s13870_s20  ;;  %p13874_p5 = scmp.lt.u32.totalorder %s13870_s20, %s16540_s3 }
 0x186   :  { %p13876_p6 = pnand %p13874_p5, %p13871_p4 }
 0x188   :  { %13879 = shalt.err (!%p13876_p6)
}
 0x189   :  { %s13880_s23 = scalar_lea.vmem %s327_s8, 32  ;;  %p13885_p8 = scmp.lt.s32.totalorder %s327_s8, %s327_s8 }
 0x18a   :  { %p13881_p7 = scmp.ne.s32.totalorder %s327_s8, %s13880_s23  ;;  %p13886_p9 = scmp.lt.s32.totalorder %s13880_s23, %s13880_s23 }
 0x18c   :  { %p13887_p10 = por %p13886_p9, %p13885_p8 }
 0x18e   :  { %p13888_p11 = pnand %p13887_p10, %p13881_p7 }
 0x190   :  { %13891 = shalt.err (!%p13888_p11)
}
 0x191   :  { %s16541_s27 = sld [smem:[#allocation75_spill]]  ;;  %s14092_s26 = smov [#allocation31]  }
 0x192   :  { %332 = dma.hbm_to_vmem [thread:$0]  %s16540_s3, 32, %s327_s8, [#allocation27], %s14071_s2, %s14071_s2, %s14072_s7  }
 0x193   :  { %s352_s28 = sshll.u32 %s14092_s26, 4  ;;  %s14093_s1 = smov [#allocation34]   ;;  %s353_s28 = int_to_ptr.vmem [resolvable:$true] %s352_s28 }
 0x194   :  { %s377_s9 = sshll.u32 %s14093_s1, 4  ;;  %s378_s9 = int_to_ptr.vmem [resolvable:$true] %s377_s9 }
 0x197   :  { %s13892_s4 = scalar_lea.hbm %s16541_s27, 32 }
 0x198   :  { %p13893_p12 = scmp.ne.s32.totalorder %s16541_s27, %s13892_s4  ;;  %p13896_p13 = scmp.lt.u32.totalorder %s13892_s4, %s16541_s27 }
 0x19a   :  { %p13898_p0 = pnand %p13896_p13, %p13893_p12 }
 0x19c   :  { %13901 = shalt.err (!%p13898_p0)
}
 0x19d   :  { %s13902_s10 = scalar_lea.vmem %s353_s28, 32  ;;  %p13907_p2 = scmp.lt.s32.totalorder %s353_s28, %s353_s28 }
 0x19e   :  { %p13903_p1 = scmp.ne.s32.totalorder %s353_s28, %s13902_s10  ;;  %p13908_p3 = scmp.lt.s32.totalorder %s13902_s10, %s13902_s10 }
 0x1a0   :  { %p13909_p4 = por %p13908_p3, %p13907_p2 }
 0x1a2   :  { %p13910_p5 = pnand %p13909_p4, %p13903_p1 }
 0x1a4   :  { %13913 = shalt.err (!%p13910_p5)
}
 0x1a5   :  { %358 = dma.hbm_to_vmem [thread:$0]  %s16541_s27, 32, %s353_s28, [#allocation30], %s14071_s2, %s14071_s2, %s14072_s7  }
 0x1a6   :  { %s13914_s17 = scalar_lea.hbm %s14297_s13, 16 }
 0x1a7   :  { %p13915_p6 = scmp.ne.s32.totalorder %s14297_s13, %s13914_s17  ;;  %p13918_p7 = scmp.lt.u32.totalorder %s13914_s17, %s14297_s13 }
 0x1a9   :  { %p13920_p8 = pnand %p13918_p7, %p13915_p6 }
 0x1ab   :  { %13923 = shalt.err (!%p13920_p8)
}
 0x1ac   :  { %s13924_s11 = scalar_lea.vmem %s378_s9, 16  ;;  %s13928_s25 = scalar_lea.vmem %s378_s9, 32 }
 0x1ad   :  { %p13925_p9 = scmp.ne.s32.totalorder %s378_s9, %s13924_s11  ;;  %p13929_p10 = scmp.lt.s32.totalorder %s378_s9, %s378_s9 }
 0x1ae   :  { %p13930_p11 = scmp.lt.s32.totalorder %s13928_s25, %s13924_s11 }
 0x1b0   :  { %p13931_p12 = por %p13930_p11, %p13929_p10 }
 0x1b2   :  { %p13932_p13 = pnand %p13931_p12, %p13925_p9 }
 0x1b4   :  { %13935 = shalt.err (!%p13932_p13)
}
 0x1b5   :  { %380 = dma.hbm_to_vmem [thread:$0]  %s14297_s13, 16, %s378_s9, [#allocation33]  }
 0x1b6   :  { %s14094_s7 = smov [#allocation35]   ;;  %s13936_s21 = scalar_lea.hbm %s14302_s30, 16 }
 0x1b7   :  { %s387_s19 = sshll.u32 %s14094_s7, 4  ;;  %p13937_p0 = scmp.ne.s32.totalorder %s14302_s30, %s13936_s21  ;;  %s388_s19 = int_to_ptr.vmem [resolvable:$true] %s387_s19 }
 0x1b8   :  { %p13940_p1 = scmp.lt.u32.totalorder %s13936_s21, %s14302_s30 }
 0x1ba   :  { %p13942_p2 = pnand %p13940_p1, %p13937_p0 }
 0x1bc   :  { %13945 = shalt.err (!%p13942_p2)
}
 0x1bd   :  { %s13946_s15 = scalar_lea.vmem %s388_s19, 16  ;;  %s13950_s16 = scalar_lea.vmem %s388_s19, 32 }
 0x1be   :  { %p13947_p3 = scmp.ne.s32.totalorder %s388_s19, %s13946_s15  ;;  %p13951_p4 = scmp.lt.s32.totalorder %s388_s19, %s388_s19 }
 0x1bf   :  { %p13952_p5 = scmp.lt.s32.totalorder %s13950_s16, %s13946_s15 }
 0x1c1   :  { %p13953_p6 = por %p13952_p5, %p13951_p4 }
 0x1c3   :  { %p13954_p7 = pnand %p13953_p6, %p13947_p3 }
 0x1c5   :  { %13957 = shalt.err (!%p13954_p7)
}
 0x1c6   :  { %390 = dma.hbm_to_vmem [thread:$0]  %s14302_s30, 16, %s388_s19, [#allocation36]  }
 0x1c7   :  { %14002 = dma.done.wait [#allocation3], 32  }
 0x1c8   :  { %14003 = vsyncadd [#allocation3], 4294967264 }
 0x1c9   :  { %14004 = dma.done.wait [#allocation6], 64  }
 0x1ca   :  { %14005 = vsyncadd [#allocation6], 4294967232 }
 0x1cb   :  { %14006 = dma.done.wait [#allocation9], 64  }
 0x1cc   :  { %14007 = vsyncadd [#allocation9], 4294967232 }
 0x1cd   :  { %14008 = dma.done.wait [#allocation12], 64  }
 0x1ce   :  { %14009 = vsyncadd [#allocation12], 4294967232 }
 0x1cf   :  { %14010 = dma.done.wait [#allocation15], 64  }
 0x1d0   :  { %14011 = vsyncadd [#allocation15], 4294967232 }
 0x1d1   :  { %14012 = dma.done.wait [#allocation18], 64  }
 0x1d2   :  { %14013 = vsyncadd [#allocation18], 4294967232 }
 0x1d3   :  { %14014 = dma.done.wait [#allocation21], 1056  }
 0x1d4   :  { %14015 = vsyncadd [#allocation21], 4294966240 }
 0x1d5   :  { %14016 = dma.done.wait [#allocation24], 64  }
 0x1d6   :  { %14017 = vsyncadd [#allocation24], 4294967232 }
 0x1d7   :  { %14018 = dma.done.wait [#allocation27], 64  }
 0x1d8   :  { %14019 = vsyncadd [#allocation27], 4294967232 }
 0x1d9   :  { %14020 = dma.done.wait [#allocation30], 64  }
 0x1da   :  { %14021 = vsyncadd [#allocation30], 4294967232 }
 0x1db   :  { %14022 = dma.done.wait [#allocation33], 48  }
 0x1dc   :  { %14023 = vsyncadd [#allocation33], 4294967248 }
 0x1dd   :  { %14024 = dma.done.wait [#allocation36], 16  }
 0x1de   :  { %14025 = vsyncadd [#allocation36], 4294967280  ;;  %s16542_s13 = sld [smem:[#allocation60_spill]]  ;;  %s16543_s30 = sld [smem:[#allocation54_spill]]  ;;  %vm501_vm0 = vcmask 261120   ;;  %vm731_vm1 = vcmask 64512  }
 0x1df   :  { %s16544_s18 = sld [smem:[#allocation55_spill]]  ;;  %s16545_s22 = sld [smem:[#allocation61_spill]]  ;;  %vm14564_vm2 = vmpackc.low %vm731_vm1, %vm731_vm1  ;;  %vm1844_vm3 = vcmask 130048   ;;  %vm1849_vm4 = vcmask 195584   ;;  %vm2163_vm5 = vcmask 523264   ;;  %vm14105_vm6 = vmmov 0  }
 0x1e0   :  { %s14095_s0 = smov 96   ;;  %s14096_s8 = smov 64   ;;  %vm4300_vm7 = vcmask 253952  }
 0x1e1   :  { %s16548_s6 = sld [smem:[#allocation57_spill]]  ;;  %s14097_s24 = smov 88  }
 0x1e2   :  { %s14098_s3 = smov 120   ;;  %s14099_s20 = smov 80  }
 0x1e3   :  { %s14100_s23 = smov 112   ;;  %s14101_s27 = smov 72  }
 0x1e4   :  { %v485_v0 = vld [vmem:[%s16542_s13] sm:$0xff]  ;;  %v486_v1 = vld [vmem:[%s16542_s13 + $0x8] sm:$0xff]  ;;  %v487_v2 = vld [vmem:[%s16542_s13 + $0x10] sm:$0xff]  ;;  %s14102_s26 = smov 104   ;;  %s16549_s28 = sld [smem:[#allocation62_spill]] }
 0x1e5   :  { %v11919_v3 = vpack.c.bf16 %v486_v1, %v485_v0  ;;  %v488_v4 = vld [vmem:[%s16542_s13 + $0x18] sm:$0xff]  ;;  %v457_v5 = vld [vmem:[%s16543_s30] sm:$0xff]  ;;  %v14526_v9 = vld [vmem:[%s16543_s30 + $0x8] sm:$0xff]  ;;  %v12646_v30 = vpack.i.bf16 %v486_v1, %v485_v0  ;;  %s14103_s1 = smov 24   ;;  %s16550_s9 = sld [smem:[#allocation63_spill]] }
 0x1e6   :  { %v461_v6 = vld [vmem:[%s16544_s18] sm:$0xff]  ;;  %v11923_v7 = vpack.c.bf16 %v488_v4, %v487_v2  ;;  %v462_v10 = vld [vmem:[%s16544_s18 + $0x8] sm:$0xff]  ;;  %v14530_v11 = vld [vmem:[%s16543_s30 + $0x10] sm:$0xff]  ;;  %v12651_v31 = vpack.i.bf16 %v488_v4, %v487_v2  ;;  %s16551_s4 = sld [smem:[#allocation64_spill]]  ;;  %s16552_s10 = sld [smem:[#allocation66_spill]] }
 0x1e7   :  { %v481_v8 = vadd.f32 %v461_v6, %v457_v5  ;;  %11920 = vmatprep.subr.bf16.mxu1 %v11919_v3  ;;  %v463_v12 = vld [vmem:[%s16544_s18 + $0x10] sm:$0xff]  ;;  %v482_v13 = vadd.f32 %v462_v10, %v14526_v9  ;;  %v460_v15 = vld [vmem:[%s16543_s30 + $0x18] sm:$0xff]  ;;  %v14542_v18 = vld [vmem:[%s16545_s22] ss:$0 sm:$0xff]  ;;  %12647 = vrot.lane.b32.xlu1 %v12646_v30, %s14096_s8  ;;  %s16553_s17 = sld [smem:[#allocation69_spill]]  ;;  %s16554_s11 = sld [smem:[#allocation56_spill]] }
 0x1e8   :  { %11922 = vmatpush3.bf16.msra.mxu1 %v11919_v3  ;;  %v483_v14 = vadd.f32 %v463_v12, %v14530_v11  ;;  %v464_v16 = vld [vmem:[%s16544_s18 + $0x18] sm:$0xff]  ;;  %v14594_v52 = vld [vmem:[%s16548_s6 + $0x8] sm:$0xff]  ;;  %v14597_v53 = vld [vmem:[%s16548_s6] sm:$0xff]  ;;  %s16555_s25 = sld [smem:[#allocation59_spill]]  ;;  %s16556_s7 = sld [smem:[#allocation72_spill]] }
 0x1e9   :  { %10974 = vmatprep.mubr.msk.f32.mxu1 %vm501_vm0, %v481_v8  ;;  %11924 = vmatprep.subr.bf16.mxu1 %v11923_v7  ;;  %v484_v17 = vadd.f32 %v464_v16, %v460_v15  ;;  %v14603_v59 = vld [vmem:[%s16548_s6 + $0x10] sm:$0xff]  ;;  %v14607_v62 = vld [vmem:[%s16548_s6 + $0x18] sm:$0xff]  ;;  %s16557_s19 = sld [smem:[#allocation74_spill]]  ;;  %s16558_s21 = sld [smem:[#allocation65_spill]] }
 0x1ea   :  { %s16559_s15 = sld [smem:[#allocation58_spill]] }
 0x1eb   :  { %12652 = vrot.lane.b32.xlu1 %v12651_v31, %s14096_s8 }
 0x1ec   :  { %11926 = vmatpush3.bf16.msra.mxu1 %v11923_v7 }
 0x1ef   :  { %10975 = vmatmul.mubr.msk.f32.vlgmr.msra.gmra.mrb[0].mxu1 %vm501_vm0, %v482_v13 }
 0x1f0   :  { %10977 = vmatprep.mubr.msk.f32.mxu1 %vm501_vm0, %v483_v14 }
 0x1f3   :  { %10978 = vmatmul.mubr.msk.f32.gmra.mrb[2].mxu1 %vm501_vm0, %v484_v17 }
 0x1f4   :  { %10988 = vmatprep.mubr.msk.f32.mxu1 %vm501_vm0, %v457_v5 }
 0x259   :  { %v12648_v44 = vpop.permute.xlu1 %12647 }
 0x25a   :  { %v12650_v45 = vunpack.i.h.bf16 %v12648_v44  ;;  %v12649_v46 = vunpack.i.l.bf16 %v12648_v44 }
 0x25c   :  { %v11927_v47 = vpack.c.bf16 %v12650_v45, %v12649_v46 }
 0x25d   :  { %v12653_v48 = vpop.permute.xlu1 %12652 }
 0x25e   :  { %v12655_v49 = vunpack.i.h.bf16 %v12653_v48  ;;  %v12654_v50 = vunpack.i.l.bf16 %v12653_v48  ;;  %11928 = vmatprep.subr.bf16.mxu1 %v11927_v47 }
 0x25f   :  { %11930 = vmatpush3.bf16.msra.mxu1 %v11927_v47 }
 0x260   :  { %v11931_v51 = vpack.c.bf16 %v12655_v49, %v12654_v50 }
 0x262   :  { %11932 = vmatprep.subr.bf16.mxu1 %v11931_v51 }
 0x263   :  { %11934 = vmatpush3.bf16.msra.mxu1 %v11931_v51 }
 0x266   :  { %10989 = vmatmul.mubr.msk.f32.vlgmr.msra.gmra.mrb[4].mxu1 %vm501_vm0, %v14526_v9 }
 0x267   :  { %10991 = vmatprep.mubr.msk.f32.mxu1 %vm501_vm0, %v14530_v11 }
 0x26a   :  { %10992 = vmatmul.mubr.msk.f32.gmra.mrb[6].mxu1 %vm501_vm0, %v460_v15 }
 0x2c2   :  { %v10976_v19 = vpop.f32.mrb[0].mxu1 }
 0x2c3   :  { %v586_v20 = vadd.f32 %v10976_v19, %v14542_v18  ;;  %v580_v21 = vpop.f32.mrb[1].mxu1 }
 0x2c4   :  { %v581_v22 = vadd.f32 %v14542_v18, %v580_v21 }
 0x2c5   :  { %v14576_v41 = vmul.f32 0.35355338, %v586_v20 }
 0x2c6   :  { %v14546_v23 = vpack.i.bf16 %v586_v20, %v581_v22  ;;  %v14548_v24 = vmul.f32 0.35355338, %v581_v22  ;;  %v10979_v25 = vpop.f32.mrb[2].mxu1 }
 0x2c7   :  { %v596_v26 = vadd.f32 %v10979_v25, %v14542_v18  ;;  %v590_v27 = vpop.f32.mrb[3].mxu1 }
 0x2c8   :  { %12637 = vrot.lane.b32.xlu0 %v14546_v23, %s14095_s0  ;;  %11002 = vmatprep.mubr.msk.f32.mxu0 %vm731_vm1, %v14548_v24  ;;  %v591_v28 = vadd.f32 %v14542_v18, %v590_v27 }
 0x2c9   :  { %v14584_v43 = vmul.f32 0.35355338, %v596_v26 }
 0x2ca   :  { %v14556_v29 = vpack.i.bf16 %v596_v26, %v591_v28  ;;  %v14578_v42 = vmul.f32 0.35355338, %v591_v28 }
 0x2cc   :  { %12642 = vrot.lane.b32.xlu0 %v14556_v29, %s14095_s0 }
 0x339   :  { %v10990_v4 = vpop.f32.mrb[4].mxu1 }
 0x33a   :  { %v12638_v32 = vpop.permute.xlu0 %12637  ;;  %v696_v5 = vpop.f32.mrb[5].mxu1 }
 0x33b   :  { %v12640_v33 = vunpack.i.h.bf16 %v12638_v32  ;;  %v12639_v34 = vunpack.i.l.bf16 %v12638_v32 }
 0x33d   :  { %v11935_v36 = vpack.c.bf16 %v12640_v33, %v12639_v34  ;;  %v10993_v6 = vpop.f32.mrb[6].mxu1 }
 0x33e   :  { %v12643_v37 = vpop.permute.xlu0 %12642  ;;  %v706_v7 = vpop.f32.mrb[7].mxu1 }
 0x33f   :  { %11937 = vmatprep.subr.msk.bf16.mxu0 %vm14564_vm2, %v11935_v36  ;;  %v12645_v38 = vunpack.i.h.bf16 %v12643_v37  ;;  %v12644_v39 = vunpack.i.l.bf16 %v12643_v37 }
 0x340   :  { %11940 = vmatpush3.bf16.xpose.msk.msra.mxu0 %vm14564_vm2, %v11935_v36 }
 0x341   :  { %v11941_v40 = vpack.c.bf16 %v12645_v38, %v12644_v39 }
 0x343   :  { %11943 = vmatprep.subr.msk.bf16.mxu0 %vm14564_vm2, %v11941_v40 }
 0x348   :  { %11946 = vmatpush3.bf16.xpose.msk.msra.mxu0 %vm14564_vm2, %v11941_v40 }
 0x34f   :  { %11003 = vmatmul.mubr.msk.f32.vlgmr.msra.gmra.mrb[0].mxu0 %vm731_vm1, %v14576_v41 }
 0x350   :  { %11005 = vmatprep.mubr.msk.f32.mxu0 %vm731_vm1, %v14578_v42 }
 0x353   :  { %11006 = vmatmul.mubr.msk.f32.gmra.mrb[2].mxu0 %vm731_vm1, %v14584_v43 }
 0x422   :  { %v11004_v54 = vpop.f32.mrb[0].mxu0 }
 0x423   :  { %v824_v55 = vadd.f32 %v11004_v54, %v14594_v52  ;;  %v818_v56 = vpop.f32.mrb[1].mxu0 }
 0x424   :  { %v819_v57 = vadd.f32 %v818_v56, %v14597_v53 }
 0x425   :  { %v840_v58 = vsel %vm501_vm0, %v824_v55, -inf }
 0x426   :  { %841 = vmax.xlane.f32.xlu1 %v840_v58  ;;  %v11007_v60 = vpop.f32.mrb[2].mxu0  ;;  %v837_v61 = vsel %vm501_vm0, %v819_v57, -inf }
 0x427   :  { %v828_v63 = vpop.f32.mrb[3].mxu0  ;;  %838 = vmax.xlane.f32.xlu0 %v837_v61  ;;  %v834_v1 = vadd.f32 %v11007_v60, %v14607_v62 }
 0x428   :  { %v829_v0 = vadd.f32 %v828_v63, %v14603_v59 }
 0x429   :  { %v846_v3 = vsel %vm501_vm0, %v834_v1, -inf }
 0x42a   :  { %v843_v2 = vsel %vm501_vm0, %v829_v0, -inf }
 0x42b   :  { %844 = vmax.xlane.f32.xlu0 %v843_v2 }
 0x42f   :  { %847 = vmax.xlane.f32.xlu0 %v846_v3 }
 0x437   :  { %615 = vrot.lane.b32.xlu1 %v14542_v18, %s14096_s8 }
 0x4b3   :  { %v842_v8 = vpop.xlane.xlu1 %841 }
 0x4b4   :  { %v850_v9 = vsub.f32 %v824_v55, %v842_v8  ;;  %v839_v10 = vpop.xlane.xlu0 %838 }
 0x4b5   :  { %v849_v11 = vsub.f32 %v819_v57, %v839_v10 }
 0x4b6   :  { %v855_v12 = vmul.f32 1.442695, %v850_v9 }
 0x4b7   :  { %v853_v13 = vmul.f32 1.442695, %v849_v11  ;;  %v616_v14 = vpop.permute.xlu1 %615 }
 0x4b8   :  { %13036 = vpow2.f32 %v855_v12  ;;  %v845_v15 = vpop.xlane.xlu0 %844  ;;  %v697_v16 = vadd.f32 %v696_v5, %v616_v14  ;;  %v702_v17 = vadd.f32 %v10990_v4, %v616_v14  ;;  %v712_v19 = vadd.f32 %v10993_v6, %v616_v14 }
 0x4b9   :  { %13038 = vpow2.f32 %v853_v13  ;;  %v707_v20 = vadd.f32 %v706_v7, %v616_v14  ;;  %v851_v22 = vsub.f32 %v829_v0, %v845_v15 }
 0x4ba   :  { %v11947_v21 = vpack.c.bf16 %v702_v17, %v697_v16  ;;  %v14615_v18 = vpack.i.bf16 %v702_v17, %v697_v16 }
 0x4bb   :  { %v11951_v25 = vpack.c.bf16 %v712_v19, %v707_v20  ;;  %v14617_v26 = vpack.i.bf16 %v712_v19, %v707_v20  ;;  %v857_v30 = vmul.f32 1.442695, %v851_v22 }
 0x4bc   :  { %v848_v27 = vpop.xlane.xlu0 %847  ;;  %11948 = vmatprep.subr.bf16.mxu1 %v11947_v21 }
 0x4bd   :  { %v852_v28 = vsub.f32 %v834_v1, %v848_v27  ;;  %11950 = vmatpush3.bf16.msra.mxu1 %v11947_v21 }
 0x4be   :  { %11952 = vmatprep.subr.bf16.mxu1 %v11951_v25 }
 0x4bf   :  { %v859_v31 = vmul.f32 1.442695, %v852_v28 }
 0x4c1   :  { %13040 = vpow2.f32 %v859_v31  ;;  %11954 = vmatpush3.bf16.msra.mxu1 %v11951_v25 }
 0x4c2   :  { %v13037_v32 = vpop.eup %13036  ;;  %13042 = vpow2.f32 %v857_v30 }
 0x4c3   :  { %v13039_v33 = vpop.eup %13038  ;;  %v864_v34 = vsel %vm501_vm0, %v13037_v32, 0.0 }
 0x4c4   :  { %865 = vadd.xlane.f32.xlu0 %v864_v34  ;;  %v861_v36 = vsel %vm501_vm0, %v13039_v33, 0.0 }
 0x4c5   :  { %862 = vadd.xlane.f32.xlu1 %v861_v36 }
 0x4cb   :  { %v13041_v37 = vpop.eup %13040 }
 0x4cc   :  { %v870_v38 = vsel %vm501_vm0, %v13041_v37, 0.0  ;;  %v13043_v39 = vpop.eup %13042 }
 0x4cd   :  { %871 = vadd.xlane.f32.xlu0 %v870_v38  ;;  %v867_v40 = vsel %vm501_vm0, %v13043_v39, 0.0 }
 0x4d1   :  { %868 = vadd.xlane.f32.xlu0 %v867_v40 }
 0x4d6   :  { %12662 = vrot.lane.b32.xlu1 %v14556_v29, %s14097_s24 }
 0x4da   :  { %978 = vrot.lane.b32.xlu1 %v14548_v24, %s14098_s3 }
 0x4de   :  { %980 = vrot.lane.b32.xlu1 %v14576_v41, %s14098_s3 }
 0x4e2   :  { %982 = vrot.lane.b32.xlu1 %v14578_v42, %s14098_s3 }
 0x4e7   :  { %12657 = vrot.lane.b32.xlu0 %v14546_v23, %s14097_s24 }
 0x4eb   :  { %984 = vrot.lane.b32.xlu0 %v14584_v43, %s14098_s3 }
 0x551   :  { %v866_v44 = vpop.xlane.xlu0 %865 }
 0x552   :  { %13044 = vrcp.f32 %v866_v44  ;;  %v863_v45 = vpop.xlane.xlu1 %862 }
 0x553   :  { %13046 = vrcp.f32 %v863_v45 }
 0x556   :  { %v12663_v54 = vpop.permute.xlu1 %12662 }
 0x557   :  { %v12665_v56 = vunpack.i.h.bf16 %v12663_v54  ;;  %v12664_v57 = vunpack.i.l.bf16 %v12663_v54 }
 0x559   :  { %v11961_v63 = vpack.c.bf16 %v12665_v56, %v12664_v57 }
 0x55a   :  { %v872_v46 = vpop.xlane.xlu0 %871  ;;  %v979_v3 = vpop.permute.xlu1 %978 }
 0x55b   :  { %13048 = vrcp.f32 %v872_v46 }
 0x55c   :  { %v13045_v47 = vpop.eup %13044 }
 0x55d   :  { %v13047_v48 = vpop.eup %13046  ;;  %v878_v51 = vmul.f32 %v13045_v47, %v13037_v32 }
 0x55e   :  { %v869_v49 = vpop.xlane.xlu0 %868  ;;  %v877_v50 = vmul.f32 %v13047_v48, %v13039_v33  ;;  %v981_v5 = vpop.permute.xlu1 %980 }
 0x55f   :  { %13050 = vrcp.f32 %v869_v49 }
 0x560   :  { %11016 = vmatprep.mubr.msk.f32.mxu1 %vm501_vm0, %v877_v50 }
 0x561   :  { %11017 = vmatmul.mubr.msk.f32.vlgmr.msra.gmra.mrb[8].mxu1 %vm501_vm0, %v878_v51 }
 0x562   :  { %v12658_v55 = vpop.permute.xlu0 %12657  ;;  %v983_v6 = vpop.permute.xlu1 %982 }
 0x563   :  { %v12660_v58 = vunpack.i.h.bf16 %v12658_v55  ;;  %v12659_v60 = vunpack.i.l.bf16 %v12658_v55 }
 0x565   :  { %v11955_v61 = vpack.c.bf16 %v12660_v58, %v12659_v60  ;;  %v13049_v0 = vpop.eup %13048 }
 0x566   :  { %v880_v4 = vmul.f32 %v13049_v0, %v13041_v37  ;;  %v985_v7 = vpop.permute.xlu0 %984 }
 0x567   :  { %11957 = vmatprep.subr.msk.bf16.mxu1 %vm14564_vm2, %v11955_v61 }
 0x568   :  { %11960 = vmatpush3.bf16.xpose.msk.msra.mxu1 %vm14564_vm2, %v11955_v61 }
 0x569   :  { %v13051_v1 = vpop.eup %13050  ;;  %11963 = vmatprep.subr.msk.bf16.mxu1 %vm14564_vm2, %v11961_v63 }
 0x56a   :  { %v879_v2 = vmul.f32 %v13051_v1, %v13043_v39 }
 0x56c   :  { %11019 = vmatprep.mubr.msk.f32.mxu1 %vm501_vm0, %v879_v2 }
 0x56d   :  { %11020 = vmatmul.mubr.msk.f32.gmra.mrb[10].mxu1 %vm501_vm0, %v880_v4 }
 0x56e   :  { %11030 = vmatprep.mubr.msk.f32.mxu1 %vm731_vm1, %v979_v3 }
 0x570   :  { %11966 = vmatpush3.bf16.xpose.msk.msra.mxu1 %vm14564_vm2, %v11961_v63 }
 0x577   :  { %11031 = vmatmul.mubr.msk.f32.vlgmr.msra.gmra.mrb[12].mxu1 %vm731_vm1, %v981_v5 }
 0x578   :  { %11033 = vmatprep.mubr.msk.f32.mxu1 %vm731_vm1, %v983_v6 }
 0x57b   :  { %11034 = vmatmul.mubr.msk.f32.gmra.mrb[14].mxu1 %vm731_vm1, %v985_v7 }
 0x634   :  { %v14651_v8 = vpop.f32.mrb[8].mxu1 }
 0x635   :  { %v14653_v9 = vpop.f32.mrb[9].mxu1 }
 0x640   :  { %v14655_v10 = vpop.f32.mrb[10].mxu1 }
 0x641   :  { %v14657_v11 = vpop.f32.mrb[11].mxu1 }
 0x64a   :  { %v11032_v12 = vpop.f32.mrb[12].mxu1 }
 0x64b   :  { %v1082_v13 = vadd.f32 %v11032_v12, %v14594_v52  ;;  %v1076_v14 = vpop.f32.mrb[13].mxu1 }
 0x64c   :  { %v1077_v15 = vadd.f32 %v1076_v14, %v14597_v53 }
 0x64d   :  { %v1098_v16 = vsel %vm501_vm0, %v1082_v13, -inf }
 0x64e   :  { %1099 = vmax.xlane.f32.xlu0 %v1098_v16  ;;  %v11035_v17 = vpop.f32.mrb[14].mxu1  ;;  %v1095_v19 = vsel %vm501_vm0, %v1077_v15, -inf }
 0x64f   :  { %v1092_v20 = vadd.f32 %v11035_v17, %v14607_v62  ;;  %v1086_v21 = vpop.f32.mrb[15].mxu1  ;;  %1096 = vmax.xlane.f32.xlu1 %v1095_v19 }
 0x650   :  { %v1087_v22 = vadd.f32 %v1086_v21, %v14603_v59 }
 0x651   :  { %v1104_v25 = vsel %vm501_vm0, %v1092_v20, -inf }
 0x652   :  { %v1101_v27 = vsel %vm501_vm0, %v1087_v22, -inf }
 0x653   :  { %1102 = vmax.xlane.f32.xlu0 %v1101_v27  ;;  %1105 = vmax.xlane.f32.xlu1 %v1104_v25 }
 0x664   :  { %12672 = vrot.lane.b32.xlu1 %v14617_v26, %s14098_s3 }
 0x669   :  { %12667 = vrot.lane.b32.xlu0 %v14615_v18, %s14098_s3 }
 0x6db   :  { %v1100_v28 = vpop.xlane.xlu0 %1099 }
 0x6dc   :  { %v1108_v30 = vsub.f32 %v1082_v13, %v1100_v28  ;;  %v1097_v31 = vpop.xlane.xlu1 %1096 }
 0x6dd   :  { %v1107_v32 = vsub.f32 %v1077_v15, %v1097_v31 }
 0x6de   :  { %v1113_v33 = vmul.f32 1.442695, %v1108_v30 }
 0x6df   :  { %v1111_v34 = vmul.f32 1.442695, %v1107_v32 }
 0x6e0   :  { %13052 = vpow2.f32 %v1113_v33  ;;  %v1103_v36 = vpop.xlane.xlu0 %1102  ;;  %v1106_v37 = vpop.xlane.xlu1 %1105 }
 0x6e1   :  { %13054 = vpow2.f32 %v1111_v34  ;;  %v1109_v38 = vsub.f32 %v1087_v22, %v1103_v36  ;;  %v1110_v60 = vsub.f32 %v1092_v20, %v1106_v37 }
 0x6e3   :  { %v1115_v39 = vmul.f32 1.442695, %v1109_v38  ;;  %v1117_v61 = vmul.f32 1.442695, %v1110_v60 }
 0x6e4   :  { %v12668_v40 = vpop.permute.xlu0 %12667  ;;  %v12673_v44 = vpop.permute.xlu1 %12672 }
 0x6e5   :  { %13056 = vpow2.f32 %v1115_v39  ;;  %v12670_v45 = vunpack.i.h.bf16 %v12668_v40  ;;  %v12669_v46 = vunpack.i.l.bf16 %v12668_v40  ;;  %v12675_v47 = vunpack.i.h.bf16 %v12673_v44 }
 0x6e6   :  { %v12674_v48 = vunpack.i.l.bf16 %v12673_v44  ;;  %13058 = vpow2.f32 %v1117_v61 }
 0x6e7   :  { %v11967_v49 = vpack.c.bf16 %v12670_v45, %v12669_v46 }
 0x6e8   :  { %v11971_v50 = vpack.c.bf16 %v12675_v47, %v12674_v48 }
 0x6e9   :  { %11968 = vmatprep.subr.bf16.mxu0 %v11967_v49 }
 0x6ea   :  { %v13053_v51 = vpop.eup %13052  ;;  %11970 = vmatpush3.bf16.msra.mxu0 %v11967_v49 }
 0x6eb   :  { %v13055_v54 = vpop.eup %13054  ;;  %11972 = vmatprep.subr.bf16.mxu0 %v11971_v50  ;;  %v1122_v55 = vsel %vm501_vm0, %v13053_v51, 0.0 }
 0x6ec   :  { %1123 = vadd.xlane.f32.xlu1 %v1122_v55  ;;  %v1119_v56 = vsel %vm501_vm0, %v13055_v54, 0.0 }
 0x6ed   :  { %1120 = vadd.xlane.f32.xlu0 %v1119_v56 }
 0x6ee   :  { %11974 = vmatpush3.bf16.msra.mxu0 %v11971_v50 }
 0x6ef   :  { %v13057_v57 = vpop.eup %13056 }
 0x6f0   :  { %v1125_v58 = vsel %vm501_vm0, %v13057_v57, 0.0  ;;  %v13059_v63 = vpop.eup %13058 }
 0x6f1   :  { %1126 = vadd.xlane.f32.xlu0 %v1125_v58  ;;  %v1128_v0 = vsel %vm501_vm0, %v13059_v63, 0.0 }
 0x6fd   :  { %12677 = vrot.lane.b32.xlu1 %v14546_v23, %s14099_s20 }
 0x707   :  { %12682 = vrot.lane.b32.xlu0 %v14556_v29, %s14099_s20 }
 0x70b   :  { %1254 = vrot.lane.b32.xlu0 %v14576_v41, %s14100_s23 }
 0x70f   :  { %1258 = vrot.lane.b32.xlu0 %v14584_v43, %s14100_s23 }
 0x721   :  { %1129 = vadd.xlane.f32.xlu1 %v1128_v0 }
 0x732   :  { %1252 = vrot.lane.b32.xlu1 %v14548_v24, %s14100_s23 }
 0x736   :  { %1256 = vrot.lane.b32.xlu1 %v14578_v42, %s14100_s23 }
 0x779   :  { %v1124_v1 = vpop.xlane.xlu1 %1123 }
 0x77a   :  { %13060 = vrcp.f32 %v1124_v1  ;;  %v1121_v2 = vpop.xlane.xlu0 %1120 }
 0x77b   :  { %13062 = vrcp.f32 %v1121_v2 }
 0x77d   :  { %v12678_v3 = vpop.permute.xlu1 %12677 }
 0x77e   :  { %v12680_v4 = vunpack.i.h.bf16 %v12678_v3  ;;  %v12679_v5 = vunpack.i.l.bf16 %v12678_v3  ;;  %v1127_v6 = vpop.xlane.xlu0 %1126 }
 0x77f   :  { %13064 = vrcp.f32 %v1127_v6 }
 0x780   :  { %v11975_v7 = vpack.c.bf16 %v12680_v4, %v12679_v5 }
 0x782   :  { %v12683_v12 = vpop.permute.xlu0 %12682  ;;  %11977 = vmatprep.subr.msk.bf16.mxu0 %vm14564_vm2, %v11975_v7 }
 0x783   :  { %v12685_v15 = vunpack.i.h.bf16 %v12683_v12  ;;  %v12684_v16 = vunpack.i.l.bf16 %v12683_v12 }
 0x784   :  { %v13061_v13 = vpop.eup %13060 }
 0x785   :  { %v13063_v14 = vpop.eup %13062  ;;  %v1136_v19 = vmul.f32 %v13061_v13, %v13053_v51  ;;  %v11981_v21 = vpack.c.bf16 %v12685_v15, %v12684_v16 }
 0x786   :  { %v1135_v17 = vmul.f32 %v13063_v14, %v13055_v54  ;;  %v1255_v31 = vpop.permute.xlu0 %1254 }
 0x788   :  { %11044 = vmatprep.mubr.msk.f32.mxu0 %vm501_vm0, %v1135_v17 }
 0x789   :  { %v13065_v20 = vpop.eup %13064  ;;  %11045 = vmatmul.mubr.msk.f32.vlgmr.msra.gmra.mrb[4].mxu0 %vm501_vm0, %v1136_v19 }
 0x78a   :  { %11980 = vmatpush3.bf16.xpose.msk.msra.mxu0 %vm14564_vm2, %v11975_v7  ;;  %v1137_v22 = vmul.f32 %v13065_v20, %v13057_v57  ;;  %v1259_v33 = vpop.permute.xlu0 %1258 }
 0x78b   :  { %11983 = vmatprep.subr.msk.bf16.mxu0 %vm14564_vm2, %v11981_v21 }
 0x78c   :  { %11047 = vmatprep.mubr.msk.f32.mxu0 %vm501_vm0, %v1137_v22 }
 0x792   :  { %11986 = vmatpush3.bf16.xpose.msk.msra.mxu0 %vm14564_vm2, %v11981_v21 }
 0x7ae   :  { %v1130_v25 = vpop.xlane.xlu1 %1129 }
 0x7af   :  { %13066 = vrcp.f32 %v1130_v25 }
 0x7b2   :  { %v1253_v28 = vpop.permute.xlu1 %1252 }
 0x7b6   :  { %v1257_v32 = vpop.permute.xlu1 %1256 }
 0x7b9   :  { %v13067_v27 = vpop.eup %13066 }
 0x7ba   :  { %v1138_v30 = vmul.f32 %v13067_v27, %v13059_v63 }
 0x7bc   :  { %11048 = vmatmul.mubr.msk.f32.gmra.mrb[6].mxu0 %vm501_vm0, %v1138_v30 }
 0x7bd   :  { %11058 = vmatprep.mubr.msk.f32.mxu0 %vm731_vm1, %v1253_v28 }
 0x7c0   :  { %11059 = vmatmul.mubr.msk.f32.vlgmr.msra.gmra.mrb[8].mxu0 %vm731_vm1, %v1255_v31 }
 0x7c1   :  { %11061 = vmatprep.mubr.msk.f32.mxu0 %vm731_vm1, %v1257_v32 }
 0x7c4   :  { %11062 = vmatmul.mubr.msk.f32.gmra.mrb[10].mxu0 %vm731_vm1, %v1259_v33 }
 0x85c   :  { %v14703_v34 = vpop.f32.mrb[4].mxu0 }
 0x85d   :  { %v14705_v36 = vpop.f32.mrb[5].mxu0 }
 0x88f   :  { %v14707_v37 = vpop.f32.mrb[6].mxu0 }
 0x890   :  { %v14709_v38 = vpop.f32.mrb[7].mxu0 }
 0x893   :  { %v11060_v39 = vpop.f32.mrb[8].mxu0 }
 0x894   :  { %v1356_v40 = vadd.f32 %v11060_v39, %v14594_v52  ;;  %v1350_v44 = vpop.f32.mrb[9].mxu0 }
 0x895   :  { %v1351_v45 = vadd.f32 %v1350_v44, %v14597_v53 }
 0x896   :  { %v1372_v46 = vsel %vm501_vm0, %v1356_v40, -inf }
 0x897   :  { %1373 = vmax.xlane.f32.xlu0 %v1372_v46  ;;  %v11063_v47 = vpop.f32.mrb[10].mxu0  ;;  %v1369_v48 = vsel %vm501_vm0, %v1351_v45, -inf }
 0x898   :  { %v1366_v49 = vadd.f32 %v11063_v47, %v14607_v62  ;;  %v1360_v50 = vpop.f32.mrb[11].mxu0  ;;  %1370 = vmax.xlane.f32.xlu1 %v1369_v48 }
 0x899   :  { %v1361_v51 = vadd.f32 %v1360_v50, %v14603_v59 }
 0x89a   :  { %v1378_v54 = vsel %vm501_vm0, %v1366_v49, -inf }
 0x89b   :  { %v1375_v55 = vsel %vm501_vm0, %v1361_v51, -inf }
 0x89c   :  { %1376 = vmax.xlane.f32.xlu0 %v1375_v55  ;;  %1379 = vmax.xlane.f32.xlu1 %v1378_v54 }
 0x8ad   :  { %12692 = vrot.lane.b32.xlu1 %v14617_v26, %s14100_s23 }
 0x8b2   :  { %12687 = vrot.lane.b32.xlu0 %v14615_v18, %s14100_s23 }
 0x924   :  { %v1374_v56 = vpop.xlane.xlu0 %1373 }
 0x925   :  { %v1382_v57 = vsub.f32 %v1356_v40, %v1374_v56  ;;  %v1371_v58 = vpop.xlane.xlu1 %1370 }
 0x926   :  { %v1381_v60 = vsub.f32 %v1351_v45, %v1371_v58 }
 0x927   :  { %v1387_v61 = vmul.f32 1.442695, %v1382_v57 }
 0x928   :  { %v1385_v63 = vmul.f32 1.442695, %v1381_v60 }
 0x929   :  { %13068 = vpow2.f32 %v1387_v61  ;;  %v1377_v0 = vpop.xlane.xlu0 %1376  ;;  %v1380_v1 = vpop.xlane.xlu1 %1379 }
 0x92a   :  { %13070 = vpow2.f32 %v1385_v63  ;;  %v1383_v2 = vsub.f32 %v1361_v51, %v1377_v0  ;;  %v1384_v25 = vsub.f32 %v1366_v49, %v1380_v1 }
 0x92c   :  { %v1389_v3 = vmul.f32 1.442695, %v1383_v2  ;;  %v1391_v27 = vmul.f32 1.442695, %v1384_v25 }
 0x92d   :  { %v12688_v4 = vpop.permute.xlu0 %12687  ;;  %v12693_v5 = vpop.permute.xlu1 %12692 }
 0x92e   :  { %13072 = vpow2.f32 %v1389_v3  ;;  %v12690_v6 = vunpack.i.h.bf16 %v12688_v4  ;;  %v12689_v7 = vunpack.i.l.bf16 %v12688_v4  ;;  %v12695_v12 = vunpack.i.h.bf16 %v12693_v5 }
 0x92f   :  { %v12694_v13 = vunpack.i.l.bf16 %v12693_v5  ;;  %13074 = vpow2.f32 %v1391_v27 }
 0x930   :  { %v11987_v14 = vpack.c.bf16 %v12690_v6, %v12689_v7 }
 0x931   :  { %v11991_v15 = vpack.c.bf16 %v12695_v12, %v12694_v13 }
 0x932   :  { %11988 = vmatprep.subr.bf16.mxu1 %v11987_v14 }
 0x933   :  { %v13069_v16 = vpop.eup %13068  ;;  %11990 = vmatpush3.bf16.msra.mxu1 %v11987_v14 }
 0x934   :  { %v13071_v17 = vpop.eup %13070  ;;  %11992 = vmatprep.subr.bf16.mxu1 %v11991_v15  ;;  %v1396_v19 = vsel %vm501_vm0, %v13069_v16, 0.0 }
 0x935   :  { %1397 = vadd.xlane.f32.xlu1 %v1396_v19  ;;  %v1393_v20 = vsel %vm501_vm0, %v13071_v17, 0.0 }
 0x936   :  { %1394 = vadd.xlane.f32.xlu0 %v1393_v20 }
 0x937   :  { %11994 = vmatpush3.bf16.msra.mxu1 %v11991_v15 }
 0x938   :  { %v13073_v21 = vpop.eup %13072 }
 0x939   :  { %v1399_v22 = vsel %vm501_vm0, %v13073_v21, 0.0  ;;  %v13075_v28 = vpop.eup %13074 }
 0x93a   :  { %1400 = vadd.xlane.f32.xlu0 %v1399_v22  ;;  %v1402_v30 = vsel %vm501_vm0, %v13075_v28, 0.0 }
 0x946   :  { %12697 = vrot.lane.b32.xlu1 %v14546_v23, %s14101_s27 }
 0x950   :  { %12702 = vrot.lane.b32.xlu0 %v14556_v29, %s14101_s27 }
 0x954   :  { %1524 = vrot.lane.b32.xlu0 %v14576_v41, %s14102_s26 }
 0x958   :  { %1528 = vrot.lane.b32.xlu0 %v14584_v43, %s14102_s26 }
 0x96a   :  { %1403 = vadd.xlane.f32.xlu1 %v1402_v30 }
 0x97b   :  { %1522 = vrot.lane.b32.xlu1 %v14548_v24, %s14102_s26 }
 0x97f   :  { %1526 = vrot.lane.b32.xlu1 %v14578_v42, %s14102_s26 }
 0x9c2   :  { %v1398_v23 = vpop.xlane.xlu1 %1397 }
 0x9c3   :  { %13076 = vrcp.f32 %v1398_v23  ;;  %v1395_v29 = vpop.xlane.xlu0 %1394 }
 0x9c4   :  { %13078 = vrcp.f32 %v1395_v29 }
 0x9c6   :  { %v12698_v41 = vpop.permute.xlu1 %12697 }
 0x9c7   :  { %v12700_v31 = vunpack.i.h.bf16 %v12698_v41  ;;  %v12699_v32 = vunpack.i.l.bf16 %v12698_v41  ;;  %v1401_v33 = vpop.xlane.xlu0 %1400 }
 0x9c8   :  { %13080 = vrcp.f32 %v1401_v33 }
 0x9c9   :  { %v11995_v43 = vpack.c.bf16 %v12700_v31, %v12699_v32 }
 0x9cb   :  { %v12703_v39 = vpop.permute.xlu0 %12702  ;;  %11997 = vmatprep.subr.msk.bf16.mxu1 %vm14564_vm2, %v11995_v43 }
 0x9cc   :  { %v12705_v24 = vunpack.i.h.bf16 %v12703_v39  ;;  %v12704_v45 = vunpack.i.l.bf16 %v12703_v39 }
 0x9cd   :  { %v13077_v40 = vpop.eup %13076 }
 0x9ce   :  { %v13079_v44 = vpop.eup %13078  ;;  %v1410_v42 = vmul.f32 %v13077_v40, %v13069_v16  ;;  %v12001_v48 = vpack.c.bf16 %v12705_v24, %v12704_v45 }
 0x9cf   :  { %v1409_v46 = vmul.f32 %v13079_v44, %v13071_v17  ;;  %v1525_v56 = vpop.permute.xlu0 %1524 }
 0x9d1   :  { %11072 = vmatprep.mubr.msk.f32.mxu1 %vm501_vm0, %v1409_v46 }
 0x9d2   :  { %v13081_v47 = vpop.eup %13080  ;;  %11073 = vmatmul.mubr.msk.f32.vlgmr.msra.gmra.mrb[16].mxu1 %vm501_vm0, %v1410_v42 }
 0x9d3   :  { %12000 = vmatpush3.bf16.xpose.msk.msra.mxu1 %vm14564_vm2, %v11995_v43  ;;  %v1411_v49 = vmul.f32 %v13081_v47, %v13073_v21  ;;  %v1529_v58 = vpop.permute.xlu0 %1528 }
 0x9d4   :  { %12003 = vmatprep.subr.msk.bf16.mxu1 %vm14564_vm2, %v12001_v48 }
 0x9d5   :  { %11075 = vmatprep.mubr.msk.f32.mxu1 %vm501_vm0, %v1411_v49 }
 0x9db   :  { %12006 = vmatpush3.bf16.xpose.msk.msra.mxu1 %vm14564_vm2, %v12001_v48 }
 0x9f7   :  { %v1404_v50 = vpop.xlane.xlu1 %1403 }
 0x9f8   :  { %13082 = vrcp.f32 %v1404_v50 }
 0x9fb   :  { %v1523_v54 = vpop.permute.xlu1 %1522 }
 0x9ff   :  { %v1527_v57 = vpop.permute.xlu1 %1526 }
 0xa02   :  { %v13083_v51 = vpop.eup %13082 }
 0xa03   :  { %v1412_v55 = vmul.f32 %v13083_v51, %v13075_v28 }
 0xa05   :  { %11076 = vmatmul.mubr.msk.f32.gmra.mrb[18].mxu1 %vm501_vm0, %v1412_v55 }
 0xa06   :  { %11086 = vmatprep.mubr.msk.f32.mxu1 %vm731_vm1, %v1523_v54 }
 0xa09   :  { %11087 = vmatmul.mubr.msk.f32.vlgmr.msra.gmra.mrb[20].mxu1 %vm731_vm1, %v1525_v56  ;;  %v490_v56 = vld [vmem:[%s16549_s28] sm:$0xff] }
 0xa0a   :  { %11089 = vmatprep.mubr.msk.f32.mxu1 %vm731_vm1, %v1527_v57  ;;  %v491_v57 = vld [vmem:[%s16549_s28 + $0x8] sm:$0xff] }
 0xa0d   :  { %11090 = vmatmul.mubr.msk.f32.gmra.mrb[22].mxu1 %vm731_vm1, %v1529_v58  ;;  %v492_v58 = vld [vmem:[%s16549_s28 + $0x10] sm:$0xff] }
 0xaa5   :  { %v11074_v60 = vpop.f32.mrb[16].mxu1 }
 0xaa6   :  { %v1503_v61 = vpop.f32.mrb[17].mxu1 }
 0xad8   :  { %v14755_v63 = vpop.f32.mrb[18].mxu1 }
 0xad9   :  { %v14757_v0 = vpop.f32.mrb[19].mxu1 }
 0xadc   :  { %v11088_v1 = vpop.f32.mrb[20].mxu1 }
 0xadd   :  { %v1626_v2 = vadd.f32 %v11088_v1, %v14594_v52  ;;  %v1620_v3 = vpop.f32.mrb[21].mxu1 }
 0xade   :  { %v1621_v4 = vadd.f32 %v1620_v3, %v14597_v53 }
 0xadf   :  { %v1642_v5 = vsel %vm501_vm0, %v1626_v2, -inf }
 0xae0   :  { %1643 = vmax.xlane.f32.xlu0 %v1642_v5  ;;  %v11091_v6 = vpop.f32.mrb[22].mxu1  ;;  %v1639_v7 = vsel %vm501_vm0, %v1621_v4, -inf }
 0xae1   :  { %v1636_v12 = vadd.f32 %v11091_v6, %v14607_v62  ;;  %v1630_v13 = vpop.f32.mrb[23].mxu1  ;;  %1640 = vmax.xlane.f32.xlu1 %v1639_v7 }
 0xae2   :  { %v1631_v14 = vadd.f32 %v1630_v13, %v14603_v59 }
 0xae3   :  { %v1648_v15 = vsel %vm501_vm0, %v1636_v12, -inf }
 0xae4   :  { %v1645_v16 = vsel %vm501_vm0, %v1631_v14, -inf }
 0xae5   :  { %1646 = vmax.xlane.f32.xlu0 %v1645_v16  ;;  %1649 = vmax.xlane.f32.xlu1 %v1648_v15 }
 0xb6d   :  { %v1644_v52 = vpop.xlane.xlu0 %1643 }
 0xb6e   :  { %v1652_v53 = vsub.f32 %v1626_v2, %v1644_v52  ;;  %v1641_v17 = vpop.xlane.xlu1 %1640 }
 0xb6f   :  { %v1651_v19 = vsub.f32 %v1621_v4, %v1641_v17 }
 0xb70   :  { %v1657_v20 = vmul.f32 1.442695, %v1652_v53 }
 0xb71   :  { %v1655_v21 = vmul.f32 1.442695, %v1651_v19 }
 0xb72   :  { %13084 = vpow2.f32 %v1657_v20  ;;  %v1647_v22 = vpop.xlane.xlu0 %1646  ;;  %v1650_v25 = vpop.xlane.xlu1 %1649 }
 0xb73   :  { %13086 = vpow2.f32 %v1655_v21  ;;  %v1653_v62 = vsub.f32 %v1631_v14, %v1647_v22  ;;  %v1654_v27 = vsub.f32 %v1636_v12, %v1650_v25 }
 0xb75   :  { %v1659_v28 = vmul.f32 1.442695, %v1653_v62  ;;  %v1661_v59 = vmul.f32 1.442695, %v1654_v27 }
 0xb77   :  { %13088 = vpow2.f32 %v1659_v28 }
 0xb78   :  { %13090 = vpow2.f32 %v1661_v59 }
 0xb7c   :  { %v13085_v30 = vpop.eup %13084 }
 0xb7d   :  { %v13087_v23 = vpop.eup %13086  ;;  %v1666_v29 = vsel %vm501_vm0, %v13085_v30, 0.0 }
 0xb7e   :  { %1667 = vadd.xlane.f32.xlu1 %v1666_v29  ;;  %v1663_v41 = vsel %vm501_vm0, %v13087_v23, 0.0 }
 0xb7f   :  { %1664 = vadd.xlane.f32.xlu0 %v1663_v41 }
 0xb81   :  { %v13089_v31 = vpop.eup %13088 }
 0xb82   :  { %v13091_v32 = vpop.eup %13090  ;;  %v1669_v33 = vsel %vm501_vm0, %v13089_v31, 0.0 }
 0xb83   :  { %1670 = vadd.xlane.f32.xlu0 %v1669_v33  ;;  %v1672_v43 = vsel %vm501_vm0, %v13091_v32, 0.0  ;;  %v13447_v33 = vld [vmem:[%s16543_s30] sm:$0xff] }
 0xb84   :  { %1673 = vadd.xlane.f32.xlu1 %v1672_v43 }
 0xb95   :  { %12712 = vrot.lane.b32.xlu1 %v14617_v26, %s14102_s26 }
 0xb99   :  { %1796 = vrot.lane.b32.xlu1 %v14705_v36, %s14089_s14  ;;  %12707 = vrot.lane.b32.xlu0 %v14615_v18, %s14102_s26 }
 0xb9d   :  { %1812 = vrot.lane.b32.xlu1 %v1503_v61, %s14071_s2  ;;  %1798 = vrot.lane.b32.xlu0 %v14703_v34, %s14089_s14  ;;  %v493_v61 = vld [vmem:[%s16549_s28 + $0x18] sm:$0xff] }
 0xb9e   :  { %v12019_v1 = vpack.c.bf16 %v493_v61, %v492_v58 }
 0xba1   :  { %1800 = vrot.lane.b32.xlu1 %v14709_v38, %s14089_s14  ;;  %1814 = vrot.lane.b32.xlu0 %v11074_v60, %s14071_s2  ;;  %v12015_v60 = vpack.c.bf16 %v491_v57, %v490_v56 }
 0xba5   :  { %1802 = vrot.lane.b32.xlu0 %v14707_v37, %s14089_s14 }
 0xc0b   :  { %v1668_v26 = vpop.xlane.xlu1 %1667 }
 0xc0c   :  { %v1665_v39 = vpop.xlane.xlu0 %1664 }
 0xc0d   :  { %13092 = vrcp.f32 %v1665_v39 }
 0xc0e   :  { %13094 = vrcp.f32 %v1668_v26 }
 0xc10   :  { %v1671_v36 = vpop.xlane.xlu0 %1670 }
 0xc11   :  { %v1674_v40 = vpop.xlane.xlu1 %1673  ;;  %13096 = vrcp.f32 %v1671_v36 }
 0xc12   :  { %13098 = vrcp.f32 %v1674_v40 }
 0xc14   :  { %v12708_v18 = vpop.permute.xlu0 %12707 }
 0xc15   :  { %v12710_v44 = vunpack.i.h.bf16 %v12708_v18  ;;  %v12709_v24 = vunpack.i.l.bf16 %v12708_v18  ;;  %v12713_v45 = vpop.permute.xlu1 %12712 }
 0xc16   :  { %v12715_v34 = vunpack.i.h.bf16 %v12713_v45  ;;  %v12714_v46 = vunpack.i.l.bf16 %v12713_v45 }
 0xc17   :  { %v13093_v38 = vpop.eup %13092  ;;  %v12007_v42 = vpack.c.bf16 %v12710_v44, %v12709_v24  ;;  %v13448_v24 = vld [vmem:[%s16543_s30 + $0x18] sm:$0xff] }
 0xc18   :  { %v1679_v47 = vmul.f32 %v13093_v38, %v13087_v23  ;;  %v12011_v37 = vpack.c.bf16 %v12715_v34, %v12714_v46  ;;  %v13095_v48 = vpop.eup %13094  ;;  %v1799_v6 = vpop.permute.xlu0 %1798  ;;  %v10057_v23 = vld [vmem:[#allocation2] ss:$0 sm:$0xff]  ;;  %v13449_v34 = vld [vmem:[%s16543_s30 + $0x10] sm:$0xff] }
 0xc19   :  { %12008 = vmatprep.subr.bf16.mxu0 %v12007_v42  ;;  %v1680_v50 = vmul.f32 %v13095_v48, %v13085_v30  ;;  %v1797_v7 = vpop.permute.xlu1 %1796  ;;  %v1841_v52 = vsel %vm731_vm1, %v14651_v8, %v1799_v6 }
 0xc1a   :  { %12010 = vmatpush3.bf16.msra.mxu0 %v12007_v42  ;;  %11100 = vmatprep.mubr.msk.f32.mxu0 %vm501_vm0, %v1679_v47  ;;  %v1840_v16 = vsel %vm731_vm1, %v14653_v9, %v1797_v7 }
 0xc1b   :  { %12012 = vmatprep.subr.bf16.mxu0 %v12011_v37  ;;  %v13097_v49 = vpop.eup %13096 }
 0xc1c   :  { %v13099_v51 = vpop.eup %13098  ;;  %v1681_v54 = vmul.f32 %v13097_v49, %v13089_v31  ;;  %v1815_v12 = vpop.permute.xlu0 %1814  ;;  %v13446_v31 = vld [vmem:[%s16543_s30 + $0x8] sm:$0xff] }
 0xc1d   :  { %v1682_v55 = vmul.f32 %v13099_v51, %v13091_v32  ;;  %v1813_v13 = vpop.permute.xlu1 %1812  ;;  %v1846_v17 = vsel %vm1844_vm3, %v1841_v52, %v1815_v12  ;;  %v2036_v12 = vld [vmem:[%s16550_s9] sm:$0xff] }
 0xc1e   :  { %12014 = vmatpush3.bf16.msra.mxu0 %v12011_v37  ;;  %v2041_v52 = vld [vmem:[%s16551_s4] sm:$0xff] }
 0xc1f   :  { %12016 = vmatprep.subr.bf16.mxu0 %v12015_v60 }
 0xc20   :  { %v1803_v14 = vpop.permute.xlu0 %1802 }
 0xc21   :  { %11101 = vmatmul.mubr.msk.f32.vlgmr.msra.gmra.mrb[12].mxu0 %vm501_vm0, %v1680_v50  ;;  %v1801_v15 = vpop.permute.xlu1 %1800  ;;  %v1843_v25 = vsel %vm731_vm1, %v14655_v10, %v1803_v14 }
 0xc22   :  { %11103 = vmatprep.mubr.msk.f32.mxu0 %vm501_vm0, %v1681_v54  ;;  %12018 = vmatpush3.bf16.msra.mxu0 %v12015_v60  ;;  %v1842_v9 = vsel %vm731_vm1, %v14657_v11, %v1801_v15  ;;  %v2038_v15 = vld [vmem:[%s16550_s9 + $0x10] sm:$0xff] }
 0xc23   :  { %12020 = vmatprep.subr.bf16.mxu0 %v12019_v1 }
 0xc25   :  { %11104 = vmatmul.mubr.msk.f32.gmra.mrb[14].mxu0 %vm501_vm0, %v1682_v55 }
 0xc26   :  { %12022 = vmatpush3.bf16.msra.mxu0 %v12019_v1 }
 0xcf4   :  { %v11102_v2 = vpop.f32.mrb[12].mxu0 }
 0xcf5   :  { %1830 = vrot.lane.b32.xlu0 %v11102_v2, %s14103_s1  ;;  %v1773_v3 = vpop.f32.mrb[13].mxu0 }
 0xcf6   :  { %1828 = vrot.lane.b32.xlu1 %v1773_v3, %s14103_s1 }
 0xcf8   :  { %v11105_v4 = vpop.f32.mrb[14].mxu0 }
 0xcf9   :  { %1818 = vrot.lane.b32.xlu0 %v14755_v63, %s14071_s2  ;;  %v1783_v5 = vpop.f32.mrb[15].mxu0 }
 0xcfa   :  { %1816 = vrot.lane.b32.xlu1 %v14757_v0, %s14071_s2  ;;  %v1845_v0 = vsel %vm1844_vm3, %v1840_v16, %v1813_v13  ;;  %v2037_v13 = vld [vmem:[%s16550_s9 + $0x8] sm:$0xff]  ;;  %v2039_v16 = vld [vmem:[%s16550_s9 + $0x18] sm:$0xff] }
 0xcfb   :  { %v12023_v14 = vpack.c.bf16 %v2037_v13, %v2036_v12 }
 0xcfd   :  { %1834 = vrot.lane.b32.xlu0 %v11105_v4, %s14103_s1  ;;  %12024 = vmatprep.subr.bf16.mxu1 %v12023_v14 }
 0xcfe   :  { %1832 = vrot.lane.b32.xlu1 %v1783_v5, %s14103_s1  ;;  %12026 = vmatpush3.bf16.msra.mxu1 %v12023_v14 }
 0xd67   :  { %v1831_v63 = vpop.permute.xlu0 %1830 }
 0xd68   :  { %v1829_v53 = vpop.permute.xlu1 %1828  ;;  %v1851_v20 = vsel %vm1849_vm4, %v1846_v17, %v1831_v63  ;;  %v12027_v63 = vpack.c.bf16 %v2039_v16, %v2038_v15 }
 0xd69   :  { %v1850_v19 = vsel %vm1849_vm4, %v1845_v0, %v1829_v53  ;;  %v2042_v0 = vld [vmem:[%s16551_s4 + $0x8] sm:$0xff]  ;;  %v2043_v53 = vld [vmem:[%s16551_s4 + $0x10] sm:$0xff] }
 0xd6a   :  { %11114 = vmatprep.mubr.msk.f32.mxu0 %vm501_vm0, %v1850_v19  ;;  %12028 = vmatprep.subr.bf16.mxu1 %v12027_v63  ;;  %v12031_v17 = vpack.c.bf16 %v2042_v0, %v2041_v52  ;;  %v2044_v19 = vld [vmem:[%s16551_s4 + $0x18] sm:$0xff] }
 0xd6b   :  { %v1819_v21 = vpop.permute.xlu0 %1818  ;;  %11115 = vmatmul.mubr.msk.f32.vlgmr.msra.gmra.mrb[16].mxu0 %vm501_vm0, %v1851_v20  ;;  %12030 = vmatpush3.bf16.msra.mxu1 %v12027_v63  ;;  %v12035_v20 = vpack.c.bf16 %v2044_v19, %v2043_v53 }
 0xd6c   :  { %v1817_v22 = vpop.permute.xlu1 %1816  ;;  %v1848_v28 = vsel %vm1844_vm3, %v1843_v25, %v1819_v21  ;;  %v2045_v21 = vld [vmem:[%s16551_s4 + $0x20] sm:$0xff]  ;;  %12032 = vmatprep.subr.bf16.mxu0 %v12031_v17 }
 0xd6d   :  { %v1847_v62 = vsel %vm1844_vm3, %v1842_v9, %v1817_v22  ;;  %v2046_v22 = vld [vmem:[%s16551_s4 + $0x28] sm:$0xff]  ;;  %12034 = vmatpush3.bf16.msra.mxu0 %v12031_v17 }
 0xd6e   :  { %12036 = vmatprep.subr.bf16.mxu0 %v12035_v20  ;;  %v12039_v9 = vpack.c.bf16 %v2046_v22, %v2045_v21 }
 0xd6f   :  { %v1835_v8 = vpop.permute.xlu0 %1834 }
 0xd70   :  { %v1833_v27 = vpop.permute.xlu1 %1832  ;;  %v1853_v30 = vsel %vm1849_vm4, %v1848_v28, %v1835_v8 }
 0xd71   :  { %v1852_v59 = vsel %vm1849_vm4, %v1847_v62, %v1833_v27  ;;  %12038 = vmatpush3.bf16.msra.mxu0 %v12035_v20 }
 0xd72   :  { %11117 = vmatprep.mubr.msk.f32.mxu0 %vm501_vm0, %v1852_v59  ;;  %12040 = vmatprep.subr.bf16.mxu0 %v12039_v9 }
 0xd73   :  { %11118 = vmatmul.mubr.msk.f32.gmra.mrb[18].mxu0 %vm501_vm0, %v1853_v30 }
 0xd75   :  { %12042 = vmatpush3.bf16.msra.mxu0 %v12039_v9 }
 0xe3e   :  { %v11116_v11 = vpop.f32.mrb[16].mxu0 }
 0xe3f   :  { %v1944_v29 = vadd.f32 %v11116_v11, %v10057_v23  ;;  %v1938_v41 = vpop.f32.mrb[17].mxu0 }
 0xe40   :  { %v1939_v10 = vadd.f32 %v10057_v23, %v1938_v41 }
 0xe41   :  { %v1960_v32 = vadd.f32 %v13446_v31, %v1944_v29 }
 0xe42   :  { %v1959_v43 = vadd.f32 %v13447_v33, %v1939_v10 }
 0xe43   :  { %v1966_v26 = vsel %vm501_vm0, %v1960_v32, 0.0 }
 0xe44   :  { %1967 = vadd.xlane.f32.xlu0 %v1966_v26  ;;  %v1963_v39 = vsel %vm501_vm0, %v1959_v43, 0.0 }
 0xe45   :  { %1964 = vadd.xlane.f32.xlu1 %v1963_v39  ;;  %v10063_v39 = vld [vmem:[#allocation7] ss:$0 sm:$0xff] }
 0xe46   :  { %v11119_v36 = vpop.f32.mrb[18].mxu0 }
 0xe47   :  { %v1954_v40 = vadd.f32 %v11119_v36, %v10057_v23  ;;  %v1948_v18 = vpop.f32.mrb[19].mxu0 }
 0xe48   :  { %v1949_v44 = vadd.f32 %v10057_v23, %v1948_v18 }
 0xe49   :  { %v1962_v45 = vadd.f32 %v13448_v24, %v1954_v40 }
 0xe4a   :  { %v1961_v46 = vadd.f32 %v13449_v34, %v1949_v44 }
 0xe4b   :  { %v1972_v38 = vsel %vm501_vm0, %v1962_v45, 0.0 }
 0xe4c   :  { %1973 = vadd.xlane.f32.xlu1 %v1972_v38  ;;  %v1969_v42 = vsel %vm501_vm0, %v1961_v46, 0.0 }
 0xe4d   :  { %1970 = vadd.xlane.f32.xlu0 %v1969_v42 }
 0xed1   :  { %v1968_v47 = vpop.xlane.xlu0 %1967 }
 0xed2   :  { %v1977_v37 = vmul.f32 0.03125, %v1968_v47  ;;  %v1965_v48 = vpop.xlane.xlu1 %1964 }
 0xed3   :  { %v1976_v49 = vmul.f32 0.03125, %v1965_v48  ;;  %v2047_v48 = vld [vmem:[%s16551_s4 + $0x30] sm:$0xff] }
 0xed4   :  { %v14829_v50 = vsub.f32 %v1960_v32, %v1977_v37  ;;  %v10062_v32 = vld [vmem:[#allocation5] ss:$0 sm:$0xff] }
 0xed5   :  { %v14831_v51 = vsub.f32 %v1959_v43, %v1976_v49  ;;  %v2048_v49 = vld [vmem:[%s16551_s4 + $0x38] sm:$0xff] }
 0xed6   :  { %v1985_v54 = vmul.f32 %v14829_v50, %v14829_v50 }
 0xed7   :  { %v1984_v55 = vmul.f32 %v14831_v51, %v14831_v51 }
 0xed8   :  { %v1991_v56 = vsel %vm501_vm0, %v1985_v54, 0.0 }
 0xed9   :  { %1992 = vadd.xlane.f32.xlu1 %v1991_v56  ;;  %v1974_v57 = vpop.xlane.xlu1 %1973  ;;  %v1988_v58 = vsel %vm501_vm0, %v1984_v55, 0.0 }
 0xeda   :  { %v1979_v60 = vmul.f32 0.03125, %v1974_v57  ;;  %v1971_v61 = vpop.xlane.xlu0 %1970  ;;  %1989 = vadd.xlane.f32.xlu0 %v1988_v58 }
 0xedb   :  { %v1978_v1 = vmul.f32 0.03125, %v1971_v61 }
 0xedc   :  { %v14839_v2 = vsub.f32 %v1962_v45, %v1979_v60 }
 0xedd   :  { %v14841_v3 = vsub.f32 %v1961_v46, %v1978_v1 }
 0xede   :  { %v1987_v4 = vmul.f32 %v14839_v2, %v14839_v2 }
 0xedf   :  { %v1986_v5 = vmul.f32 %v14841_v3, %v14841_v3 }
 0xee0   :  { %v1997_v6 = vsel %vm501_vm0, %v1987_v4, 0.0 }
 0xee1   :  { %1998 = vadd.xlane.f32.xlu1 %v1997_v6  ;;  %v1994_v7 = vsel %vm501_vm0, %v1986_v5, 0.0  ;;  %v10069_v6 = vld [vmem:[#allocation10] ss:$0 sm:$0xff] }
 0xee2   :  { %1995 = vadd.xlane.f32.xlu0 %v1994_v7 }
 0xf66   :  { %v1993_v8 = vpop.xlane.xlu1 %1992 }
 0xf67   :  { %v2001_v25 = vmul.f32 0.03125, %v1993_v8  ;;  %v1990_v62 = vpop.xlane.xlu0 %1989 }
 0xf68   :  { %v2000_v27 = vmul.f32 0.03125, %v1990_v62 }
 0xf69   :  { %v2005_v28 = vadd.f32 1e-05, %v2001_v25 }
 0xf6a   :  { %v2004_v59 = vadd.f32 1e-05, %v2000_v27 }
 0xf6b   :  { %13100 = vrsqrt.f32 %v2005_v28 }
 0xf6c   :  { %13102 = vrsqrt.f32 %v2004_v59 }
 0xf6e   :  { %v1999_v30 = vpop.xlane.xlu1 %1998 }
 0xf6f   :  { %v2003_v23 = vmul.f32 0.03125, %v1999_v30  ;;  %v1996_v11 = vpop.xlane.xlu0 %1995 }
 0xf70   :  { %v2002_v29 = vmul.f32 0.03125, %v1996_v11 }
 0xf71   :  { %v2007_v41 = vadd.f32 1e-05, %v2003_v23 }
 0xf72   :  { %v2006_v10 = vadd.f32 1e-05, %v2002_v29 }
 0xf73   :  { %13104 = vrsqrt.f32 %v2007_v41 }
 0xf74   :  { %13106 = vrsqrt.f32 %v2006_v10 }
 0xf75   :  { %v13101_v31 = vpop.eup %13100 }
 0xf76   :  { %v13103_v33 = vpop.eup %13102  ;;  %v2013_v43 = vmul.f32 %v13101_v31, %v14829_v50  ;;  %v12043_v50 = vpack.c.bf16 %v2048_v49, %v2047_v48 }
 0xf77   :  { %v2012_v26 = vmul.f32 %v13103_v33, %v14831_v51  ;;  %v10064_v51 = vld [vmem:[#allocation8] ss:$0 sm:$0xff] }
 0xf78   :  { %v2023_v36 = vmul.f32 %v10062_v32, %v2013_v43  ;;  %12044 = vmatprep.subr.bf16.mxu0 %v12043_v50 }
 0xf79   :  { %v2022_v40 = vmul.f32 %v10062_v32, %v2012_v26  ;;  %12046 = vmatpush3.bf16.msra.mxu0 %v12043_v50 }
 0xf7a   :  { %v2033_v44 = vadd.f32 %v10063_v39, %v2023_v36 }
 0xf7b   :  { %v2032_v18 = vadd.f32 %v10063_v39, %v2022_v40 }
 0xf7d   :  { %v13105_v24 = vpop.eup %13104  ;;  %11128 = vmatprep.mubr.msk.f32.mxu1 %vm501_vm0, %v2032_v18 }
 0xf7e   :  { %v13107_v45 = vpop.eup %13106  ;;  %11129 = vmatmul.mubr.msk.f32.vlgmr.msra.gmra.mrb[24].mxu1 %vm501_vm0, %v2033_v44  ;;  %v2015_v34 = vmul.f32 %v13105_v24, %v14839_v2 }
 0xf7f   :  { %v2014_v46 = vmul.f32 %v13107_v45, %v14841_v3  ;;  %v14890_v45 = vld [vmem:[%s16542_s13 + $0x30] sm:$0xff] }
 0xf80   :  { %v2025_v38 = vmul.f32 %v10062_v32, %v2015_v34  ;;  %v14893_v34 = vld [vmem:[%s16542_s13 + $0x38] sm:$0xff] }
 0xf81   :  { %v2024_v42 = vmul.f32 %v10062_v32, %v2014_v46  ;;  %v12051_v46 = vpack.c.bf16 %v14893_v34, %v14890_v45 }
 0xf82   :  { %v2035_v37 = vadd.f32 %v10063_v39, %v2025_v38 }
 0xf83   :  { %v2034_v47 = vadd.f32 %v10063_v39, %v2024_v42 }
 0xf85   :  { %11131 = vmatprep.mubr.msk.f32.mxu1 %vm501_vm0, %v2034_v47 }
 0xf86   :  { %11132 = vmatmul.mubr.msk.f32.gmra.mrb[26].mxu1 %vm501_vm0, %v2035_v37 }
0x1051   :  { %v11130_v54 = vpop.f32.mrb[24].mxu1 }
0x1052   :  { %v2140_v55 = vadd.f32 %v11130_v54, %v10064_v51  ;;  %v2134_v56 = vpop.f32.mrb[25].mxu1 }
0x1053   :  { %v2135_v57 = vadd.f32 %v10064_v51, %v2134_v56 }
0x1054   :  { %v2154_v60 = vmax.f32 %v2140_v55, 0.0 }
0x1055   :  { %v2153_v58 = vmax.f32 %v2135_v57, 0.0 }
0x1057   :  { %11150 = vmatprep.mubr.msk.f32.mxu0 %vm2163_vm5, %v2153_v58 }
0x1058   :  { %11151 = vmatmul.mubr.msk.f32.vlgmr.msra.gmra.mrb[20].mxu0 %vm2163_vm5, %v2154_v60  ;;  %v10074_v60 = vld [vmem:[#allocation11] ss:$0 sm:$0xff] }
0x1059   :  { %v11133_v61 = vpop.f32.mrb[26].mxu1 }
0x105a   :  { %v2150_v1 = vadd.f32 %v11133_v61, %v10064_v51  ;;  %v2144_v2 = vpop.f32.mrb[27].mxu1 }
0x105b   :  { %v2145_v3 = vadd.f32 %v10064_v51, %v2144_v2 }
0x105c   :  { %v2156_v5 = vmax.f32 %v2150_v1, 0.0 }
0x105d   :  { %v2155_v4 = vmax.f32 %v2145_v3, 0.0  ;;  %v10075_v3 = vld [vmem:[#allocation13] ss:$0 sm:$0xff] }
0x105f   :  { %11153 = vmatprep.mubr.msk.f32.mxu0 %vm2163_vm5, %v2155_v4 }
0x1060   :  { %11154 = vmatmul.mubr.msk.f32.gmra.mrb[22].mxu0 %vm2163_vm5, %v2156_v5 }
0x112b   :  { %v11152_v7 = vpop.f32.mrb[20].mxu0 }
0x112c   :  { %v2248_v12 = vadd.f32 %v11152_v7, %v10069_v6  ;;  %v2242_v13 = vpop.f32.mrb[21].mxu0 }
0x112d   :  { %v2243_v14 = vadd.f32 %v10069_v6, %v2242_v13  ;;  %v13450_v13 = vld [vmem:[%s16544_s18] sm:$0xff] }
0x112e   :  { %v2264_v15 = vadd.f32 %v2248_v12, %v2033_v44  ;;  %v14885_v44 = vld [vmem:[%s16542_s13 + $0x28] sm:$0xff] }
0x112f   :  { %v2263_v16 = vadd.f32 %v2243_v14, %v2032_v18  ;;  %v14882_v18 = vld [vmem:[%s16542_s13 + $0x20] sm:$0xff] }
0x1130   :  { %v2270_v63 = vsel %vm501_vm0, %v2264_v15, 0.0  ;;  %v12047_v24 = vpack.c.bf16 %v14885_v44, %v14882_v18 }
0x1131   :  { %2271 = vadd.xlane.f32.xlu1 %v2270_v63  ;;  %v2267_v52 = vsel %vm501_vm0, %v2263_v16, 0.0  ;;  %v13451_v63 = vld [vmem:[%s16544_s18 + $0x8] sm:$0xff] }
0x1132   :  { %2268 = vadd.xlane.f32.xlu0 %v2267_v52  ;;  %12048 = vmatprep.subr.bf16.mxu1 %v12047_v24 }
0x1133   :  { %v11155_v0 = vpop.f32.mrb[22].mxu0  ;;  %12050 = vmatpush3.bf16.msra.mxu1 %v12047_v24 }
0x1134   :  { %v2258_v53 = vadd.f32 %v11155_v0, %v10069_v6  ;;  %v2252_v17 = vpop.f32.mrb[23].mxu0  ;;  %12052 = vmatprep.subr.bf16.mxu1 %v12051_v46 }
0x1135   :  { %v2253_v19 = vadd.f32 %v10069_v6, %v2252_v17 }
0x1136   :  { %v2266_v20 = vadd.f32 %v2258_v53, %v2035_v37 }
0x1137   :  { %v2265_v21 = vadd.f32 %v2253_v19, %v2034_v47  ;;  %12054 = vmatpush3.bf16.msra.mxu1 %v12051_v46 }
0x1138   :  { %v2276_v22 = vsel %vm501_vm0, %v2266_v20, 0.0 }
0x1139   :  { %2277 = vadd.xlane.f32.xlu1 %v2276_v22  ;;  %v2273_v9 = vsel %vm501_vm0, %v2265_v21, 0.0 }
0x113a   :  { %2274 = vadd.xlane.f32.xlu0 %v2273_v9  ;;  %v13453_v9 = vld [vmem:[%s16544_s18 + $0x18] sm:$0xff] }
0x11be   :  { %v2272_v8 = vpop.xlane.xlu1 %2271 }
0x11bf   :  { %v2280_v25 = vmul.f32 0.03125, %v2272_v8  ;;  %v2269_v62 = vpop.xlane.xlu0 %2268 }
0x11c0   :  { %v2279_v27 = vmul.f32 0.03125, %v2269_v62 }
0x11c1   :  { %v2284_v28 = vsub.f32 %v2264_v15, %v2280_v25  ;;  %v14920_v25 = vld [vmem:[%s16545_s22 + $0x1] ss:$0 sm:$0xff] }
0x11c2   :  { %v2283_v59 = vsub.f32 %v2263_v16, %v2279_v27 }
0x11c3   :  { %v2288_v30 = vmul.f32 %v2284_v28, %v2284_v28 }
0x11c4   :  { %v2287_v23 = vmul.f32 %v2283_v59, %v2283_v59 }
0x11c5   :  { %v2294_v11 = vsel %vm501_vm0, %v2288_v30, 0.0 }
0x11c6   :  { %2295 = vadd.xlane.f32.xlu1 %v2294_v11  ;;  %v2278_v29 = vpop.xlane.xlu1 %2277  ;;  %v2291_v41 = vsel %vm501_vm0, %v2287_v23, 0.0  ;;  %v12731_v11 = vpack.i.bf16 %v14893_v34, %v14890_v45 }
0x11c7   :  { %v2282_v10 = vmul.f32 0.03125, %v2278_v29  ;;  %2292 = vadd.xlane.f32.xlu0 %v2291_v41  ;;  %v2275_v31 = vpop.xlane.xlu0 %2274 }
0x11c8   :  { %v2281_v32 = vmul.f32 0.03125, %v2275_v31 }
0x11c9   :  { %v2286_v33 = vsub.f32 %v2266_v20, %v2282_v10 }
0x11ca   :  { %v2285_v43 = vsub.f32 %v2265_v21, %v2281_v32  ;;  %v13452_v21 = vld [vmem:[%s16544_s18 + $0x10] sm:$0xff] }
0x11cb   :  { %v2290_v26 = vmul.f32 %v2286_v33, %v2286_v33 }
0x11cc   :  { %v2289_v39 = vmul.f32 %v2285_v43, %v2285_v43 }
0x11cd   :  { %v2300_v36 = vsel %vm501_vm0, %v2290_v26, 0.0 }
0x11ce   :  { %2301 = vadd.xlane.f32.xlu1 %v2300_v36  ;;  %v2297_v40 = vsel %vm501_vm0, %v2289_v39, 0.0 }
0x11cf   :  { %2298 = vadd.xlane.f32.xlu0 %v2297_v40 }
0x1253   :  { %v2296_v38 = vpop.xlane.xlu1 %2295 }
0x1254   :  { %v2304_v42 = vmul.f32 0.03125, %v2296_v38  ;;  %v2293_v47 = vpop.xlane.xlu0 %2292 }
0x1255   :  { %v2303_v37 = vmul.f32 0.03125, %v2293_v47 }
0x1256   :  { %v2308_v48 = vadd.f32 1e-05, %v2304_v42 }
0x1257   :  { %v2307_v49 = vadd.f32 1e-05, %v2303_v37 }
0x1258   :  { %13108 = vrsqrt.f32 %v2308_v48 }
0x1259   :  { %13110 = vrsqrt.f32 %v2307_v49 }
0x125b   :  { %v2302_v50 = vpop.xlane.xlu1 %2301 }
0x125c   :  { %v2306_v51 = vmul.f32 0.03125, %v2302_v50  ;;  %v2299_v54 = vpop.xlane.xlu0 %2298 }
0x125d   :  { %v2305_v55 = vmul.f32 0.03125, %v2299_v54 }
0x125e   :  { %v2310_v56 = vadd.f32 1e-05, %v2306_v51 }
0x125f   :  { %v2309_v57 = vadd.f32 1e-05, %v2305_v55  ;;  %v14971_v55 = vld [vmem:[%s16548_s6 + $0x8] sm:$0xff] }
0x1260   :  { %13112 = vrsqrt.f32 %v2310_v56 }
0x1261   :  { %13114 = vrsqrt.f32 %v2309_v57 }
0x1262   :  { %v13109_v58 = vpop.eup %13108 }
0x1263   :  { %v13111_v61 = vpop.eup %13110  ;;  %v2316_v1 = vmul.f32 %v13109_v58, %v2284_v28  ;;  %v14975_v58 = vld [vmem:[%s16548_s6] sm:$0xff] }
0x1264   :  { %v2315_v2 = vmul.f32 %v13111_v61, %v2283_v59 }
0x1265   :  { %v2326_v4 = vmul.f32 %v10074_v60, %v2316_v1 }
0x1266   :  { %v2325_v5 = vmul.f32 %v10074_v60, %v2315_v2 }
0x1267   :  { %v14897_v6 = vadd.f32 %v10075_v3, %v2326_v4  ;;  %v14981_v4 = vld [vmem:[%s16548_s6 + $0x18] sm:$0xff] }
0x1268   :  { %v14899_v7 = vadd.f32 %v10075_v3, %v2325_v5 }
0x1269   :  { %v2340_v52 = vadd.f32 %v13451_v63, %v14897_v6 }
0x126a   :  { %v13113_v12 = vpop.eup %13112  ;;  %v2339_v14 = vadd.f32 %v13450_v13, %v14899_v7 }
0x126b   :  { %v13115_v15 = vpop.eup %13114  ;;  %v2318_v16 = vmul.f32 %v13113_v12, %v2286_v33  ;;  %v12726_v33 = vpack.i.bf16 %v14885_v44, %v14882_v18 }
0x126c   :  { %v2317_v0 = vmul.f32 %v13115_v15, %v2285_v43  ;;  %11164 = vmatprep.mubr.msk.f32.mxu1 %vm501_vm0, %v2339_v14  ;;  %v14985_v14 = vld [vmem:[%s16548_s6 + $0x10] sm:$0xff] }
0x126d   :  { %11165 = vmatmul.mubr.msk.f32.vlgmr.msra.gmra.mrb[28].mxu1 %vm501_vm0, %v2340_v52  ;;  %v2328_v53 = vmul.f32 %v10074_v60, %v2318_v16 }
0x126e   :  { %v2327_v17 = vmul.f32 %v10074_v60, %v2317_v0 }
0x126f   :  { %v14907_v19 = vadd.f32 %v10075_v3, %v2328_v53 }
0x1270   :  { %v14909_v20 = vadd.f32 %v10075_v3, %v2327_v17 }
0x1271   :  { %v2342_v8 = vadd.f32 %v13453_v9, %v14907_v19 }
0x1272   :  { %v2341_v22 = vadd.f32 %v13452_v21, %v14909_v20 }
0x1274   :  { %11167 = vmatprep.mubr.msk.f32.mxu1 %vm501_vm0, %v2341_v22 }
0x1275   :  { %11168 = vmatmul.mubr.msk.f32.gmra.mrb[30].mxu1 %vm501_vm0, %v2342_v8 }
0x1276   :  { %11178 = vmatprep.mubr.msk.f32.mxu1 %vm501_vm0, %v14899_v7 }
0x1340   :  { %v11166_v62 = vpop.f32.mrb[28].mxu1 }
0x1341   :  { %v2447_v27 = vadd.f32 %v11166_v62, %v14920_v25  ;;  %v2441_v28 = vpop.f32.mrb[29].mxu1 }
0x1342   :  { %v2442_v59 = vadd.f32 %v14920_v25, %v2441_v28 }
0x1343   :  { %v14952_v49 = vmul.f32 0.35355338, %v2447_v27 }
0x1344   :  { %v14924_v30 = vpack.i.bf16 %v2447_v27, %v2442_v59  ;;  %v14926_v23 = vmul.f32 0.35355338, %v2442_v59 }
0x1346   :  { %12717 = vrot.lane.b32.xlu0 %v14924_v30, %s14095_s0  ;;  %11192 = vmatprep.mubr.msk.f32.mxu0 %vm731_vm1, %v14926_v23 }
0x1348   :  { %v11169_v29 = vpop.f32.mrb[30].mxu1 }
0x1349   :  { %v2457_v41 = vadd.f32 %v11169_v29, %v14920_v25  ;;  %v2451_v10 = vpop.f32.mrb[31].mxu1 }
0x134a   :  { %v2452_v31 = vadd.f32 %v14920_v25, %v2451_v10  ;;  %12732 = vrot.lane.b32.xlu0 %v12731_v11, %s14096_s8 }
0x134b   :  { %v14960_v51 = vmul.f32 0.35355338, %v2457_v41 }
0x134c   :  { %v14937_v32 = vpack.i.bf16 %v2457_v41, %v2452_v31  ;;  %v14954_v50 = vmul.f32 0.35355338, %v2452_v31 }
0x134e   :  { %12722 = vrot.lane.b32.xlu1 %v14937_v32, %s14095_s0 }
0x1352   :  { %12727 = vrot.lane.b32.xlu1 %v12726_v33, %s14096_s8 }
0x13b8   :  { %v12718_v43 = vpop.permute.xlu0 %12717 }
0x13b9   :  { %v12720_v26 = vunpack.i.h.bf16 %v12718_v43  ;;  %v12719_v39 = vunpack.i.l.bf16 %v12718_v43 }
0x13bb   :  { %v12063_v36 = vpack.c.bf16 %v12720_v26, %v12719_v39 }
0x13bc   :  { %v12733_v24 = vpop.permute.xlu0 %12732 }
0x13bd   :  { %12065 = vmatprep.subr.msk.bf16.mxu0 %vm14564_vm2, %v12063_v36  ;;  %v12735_v38 = vunpack.i.h.bf16 %v12733_v24  ;;  %v12734_v42 = vunpack.i.l.bf16 %v12733_v24 }
0x13be   :  { %12068 = vmatpush3.bf16.xpose.msk.msra.mxu0 %vm14564_vm2, %v12063_v36 }
0x13bf   :  { %v12059_v48 = vpack.c.bf16 %v12735_v38, %v12734_v42 }
0x13c0   :  { %v12723_v40 = vpop.permute.xlu1 %12722 }
0x13c1   :  { %v12725_v45 = vunpack.i.h.bf16 %v12723_v40  ;;  %v12724_v34 = vunpack.i.l.bf16 %v12723_v40 }
0x13c3   :  { %v12069_v46 = vpack.c.bf16 %v12725_v45, %v12724_v34 }
0x13c4   :  { %v12728_v18 = vpop.permute.xlu1 %12727 }
0x13c5   :  { %v12730_v44 = vunpack.i.h.bf16 %v12728_v18  ;;  %v12729_v47 = vunpack.i.l.bf16 %v12728_v18  ;;  %12071 = vmatprep.subr.msk.bf16.mxu0 %vm14564_vm2, %v12069_v46 }
0x13c6   :  { %12074 = vmatpush3.bf16.xpose.msk.msra.mxu0 %vm14564_vm2, %v12069_v46 }
0x13c7   :  { %v12055_v37 = vpack.c.bf16 %v12730_v44, %v12729_v47 }
0x13c9   :  { %12056 = vmatprep.subr.bf16.mxu1 %v12055_v37 }
0x13ca   :  { %12058 = vmatpush3.bf16.msra.mxu1 %v12055_v37 }
0x13cb   :  { %12060 = vmatprep.subr.bf16.mxu1 %v12059_v48 }
0x13cd   :  { %11193 = vmatmul.mubr.msk.f32.vlgmr.msra.gmra.mrb[24].mxu0 %vm731_vm1, %v14952_v49 }
0x13ce   :  { %12062 = vmatpush3.bf16.msra.mxu1 %v12059_v48  ;;  %11195 = vmatprep.mubr.msk.f32.mxu0 %vm731_vm1, %v14954_v50 }
0x13d1   :  { %11179 = vmatmul.mubr.msk.f32.vlgmr.msra.gmra.mrb[32].mxu1 %vm501_vm0, %v14897_v6  ;;  %11196 = vmatmul.mubr.msk.f32.gmra.mrb[26].mxu0 %vm731_vm1, %v14960_v51 }
0x13d2   :  { %11181 = vmatprep.mubr.msk.f32.mxu1 %vm501_vm0, %v14909_v20 }
0x13d5   :  { %11182 = vmatmul.mubr.msk.f32.gmra.mrb[34].mxu1 %vm501_vm0, %v14907_v19 }
0x14a0   :  { %v11194_v54 = vpop.f32.mrb[24].mxu0 }
0x14a1   :  { %v2684_v56 = vadd.f32 %v14971_v55, %v11194_v54  ;;  %v2678_v57 = vpop.f32.mrb[25].mxu0 }
0x14a2   :  { %v2679_v60 = vadd.f32 %v14975_v58, %v2678_v57 }
0x14a3   :  { %v2700_v61 = vsel %vm501_vm0, %v2684_v56, -inf }
0x14a4   :  { %v11180_v1 = vpop.f32.mrb[32].mxu1  ;;  %2701 = vmax.xlane.f32.xlu0 %v2700_v61  ;;  %v11197_v2 = vpop.f32.mrb[26].mxu0  ;;  %v2697_v3 = vsel %vm501_vm0, %v2679_v60, -inf }
0x14a5   :  { %v2694_v5 = vadd.f32 %v14981_v4, %v11197_v2  ;;  %v2557_v12 = vpop.f32.mrb[33].mxu1  ;;  %2698 = vmax.xlane.f32.xlu1 %v2697_v3  ;;  %v2688_v13 = vpop.f32.mrb[27].mxu0 }
0x14a6   :  { %v2689_v15 = vadd.f32 %v14985_v14, %v2688_v13 }
0x14a7   :  { %v2706_v16 = vsel %vm501_vm0, %v2694_v5, -inf }
0x14a8   :  { %v11183_v63 = vpop.f32.mrb[34].mxu1  ;;  %v2703_v52 = vsel %vm501_vm0, %v2689_v15, -inf }
0x14a9   :  { %v2567_v0 = vpop.f32.mrb[35].mxu1  ;;  %2707 = vmax.xlane.f32.xlu1 %v2706_v16  ;;  %2704 = vmax.xlane.f32.xlu0 %v2703_v52 }
0x1531   :  { %v2702_v53 = vpop.xlane.xlu0 %2701 }
0x1532   :  { %v2710_v17 = vsub.f32 %v2684_v56, %v2702_v53  ;;  %v2699_v21 = vpop.xlane.xlu1 %2698 }
0x1533   :  { %v2709_v22 = vsub.f32 %v2679_v60, %v2699_v21 }
0x1534   :  { %v2715_v9 = vmul.f32 1.442695, %v2710_v17 }
0x1535   :  { %v2713_v8 = vmul.f32 1.442695, %v2709_v22 }
0x1536   :  { %13116 = vpow2.f32 %v2715_v9  ;;  %v2708_v11 = vpop.xlane.xlu1 %2707  ;;  %v2705_v41 = vpop.xlane.xlu0 %2704 }
0x1537   :  { %13118 = vpow2.f32 %v2713_v8  ;;  %v2712_v29 = vsub.f32 %v2694_v5, %v2708_v11  ;;  %v2711_v31 = vsub.f32 %v2689_v15, %v2705_v41 }
0x1539   :  { %v2719_v10 = vmul.f32 1.442695, %v2712_v29  ;;  %v2717_v33 = vmul.f32 1.442695, %v2711_v31 }
0x153b   :  { %13120 = vpow2.f32 %v2719_v10 }
0x153c   :  { %13122 = vpow2.f32 %v2717_v33 }
0x1540   :  { %v13117_v62 = vpop.eup %13116 }
0x1541   :  { %v13119_v27 = vpop.eup %13118  ;;  %v2724_v28 = vsel %vm501_vm0, %v13117_v62, 0.0 }
0x1542   :  { %2725 = vadd.xlane.f32.xlu1 %v2724_v28  ;;  %v2721_v59 = vsel %vm501_vm0, %v13119_v27, 0.0 }
0x1543   :  { %2722 = vadd.xlane.f32.xlu0 %v2721_v59 }
0x1545   :  { %v13121_v43 = vpop.eup %13120 }
0x1546   :  { %v13123_v26 = vpop.eup %13122 }
0x1547   :  { %v2727_v39 = vsel %vm501_vm0, %v13123_v26, 0.0 }
0x1553   :  { %12737 = vrot.lane.b32.xlu1 %v14924_v30, %s14097_s24 }
0x1559   :  { %2476 = vrot.lane.b32.xlu0 %v14920_v25, %s14096_s8  ;;  %v2730_v25 = vsel %vm501_vm0, %v13121_v43, 0.0 }
0x155d   :  { %12742 = vrot.lane.b32.xlu0 %v14937_v32, %s14097_s24 }
0x1561   :  { %2838 = vrot.lane.b32.xlu0 %v14926_v23, %s14098_s3 }
0x1565   :  { %2842 = vrot.lane.b32.xlu0 %v14954_v50, %s14098_s3 }
0x1577   :  { %2731 = vadd.xlane.f32.xlu1 %v2730_v25 }
0x157b   :  { %2728 = vadd.xlane.f32.xlu1 %v2727_v39 }
0x158c   :  { %2840 = vrot.lane.b32.xlu1 %v14952_v49, %s14098_s3 }
0x1590   :  { %2844 = vrot.lane.b32.xlu1 %v14960_v51, %s14098_s3 }
0x15cf   :  { %v2726_v36 = vpop.xlane.xlu1 %2725 }
0x15d0   :  { %v2723_v40 = vpop.xlane.xlu0 %2722 }
0x15d1   :  { %13124 = vrcp.f32 %v2723_v40 }
0x15d2   :  { %13126 = vrcp.f32 %v2726_v36 }
0x15d3   :  { %v12738_v42 = vpop.permute.xlu1 %12737 }
0x15d4   :  { %v2477_v24 = vpop.permute.xlu0 %2476  ;;  %v12740_v48 = vunpack.i.h.bf16 %v12738_v42  ;;  %v12739_v54 = vunpack.i.l.bf16 %v12738_v42 }
0x15d5   :  { %v2558_v45 = vadd.f32 %v2557_v12, %v2477_v24  ;;  %v2563_v34 = vadd.f32 %v11180_v1, %v2477_v24  ;;  %v2568_v46 = vadd.f32 %v2567_v0, %v2477_v24  ;;  %v2573_v38 = vadd.f32 %v11183_v63, %v2477_v24 }
0x15d6   :  { %v12083_v61 = vpack.c.bf16 %v12740_v48, %v12739_v54 }
0x15d7   :  { %v12075_v18 = vpack.c.bf16 %v2563_v34, %v2558_v45  ;;  %v12079_v44 = vpack.c.bf16 %v2573_v38, %v2568_v46  ;;  %v15008_v47 = vpack.i.bf16 %v2563_v34, %v2558_v45  ;;  %v15010_v37 = vpack.i.bf16 %v2573_v38, %v2568_v46 }
0x15d8   :  { %v12743_v2 = vpop.permute.xlu0 %12742 }
0x15d9   :  { %12076 = vmatprep.subr.bf16.mxu1 %v12075_v18  ;;  %v12745_v3 = vunpack.i.h.bf16 %v12743_v2  ;;  %v12744_v5 = vunpack.i.l.bf16 %v12743_v2 }
0x15da   :  { %12078 = vmatpush3.bf16.msra.mxu1 %v12075_v18 }
0x15db   :  { %v13125_v56 = vpop.eup %13124  ;;  %12080 = vmatprep.subr.bf16.mxu1 %v12079_v44  ;;  %v12089_v12 = vpack.c.bf16 %v12745_v3, %v12744_v5 }
0x15dc   :  { %v13127_v57 = vpop.eup %13126  ;;  %v2737_v60 = vmul.f32 %v13125_v56, %v13119_v27  ;;  %v2839_v0 = vpop.permute.xlu0 %2838 }
0x15dd   :  { %v2738_v1 = vmul.f32 %v13127_v57, %v13117_v62 }
0x15de   :  { %12082 = vmatpush3.bf16.msra.mxu1 %v12079_v44  ;;  %11206 = vmatprep.mubr.msk.f32.mxu1 %vm501_vm0, %v2737_v60 }
0x15df   :  { %12085 = vmatprep.subr.msk.bf16.mxu1 %vm14564_vm2, %v12083_v61 }
0x15e0   :  { %v2843_v21 = vpop.permute.xlu0 %2842 }
0x15e1   :  { %11207 = vmatmul.mubr.msk.f32.vlgmr.msra.gmra.mrb[36].mxu1 %vm501_vm0, %v2738_v1 }
0x15e7   :  { %12088 = vmatpush3.bf16.xpose.msk.msra.mxu1 %vm14564_vm2, %v12083_v61 }
0x15e8   :  { %12091 = vmatprep.subr.msk.bf16.mxu1 %vm14564_vm2, %v12089_v12 }
0x15ef   :  { %12094 = vmatpush3.bf16.xpose.msk.msra.mxu1 %vm14564_vm2, %v12089_v12 }
0x1604   :  { %v2732_v13 = vpop.xlane.xlu1 %2731 }
0x1605   :  { %13128 = vrcp.f32 %v2732_v13 }
0x1608   :  { %v2729_v15 = vpop.xlane.xlu1 %2728 }
0x1609   :  { %13130 = vrcp.f32 %v2729_v15 }
0x160c   :  { %v2841_v17 = vpop.permute.xlu1 %2840 }
0x160f   :  { %v13129_v16 = vpop.eup %13128 }
0x1610   :  { %v2740_v53 = vmul.f32 %v13129_v16, %v13121_v43  ;;  %v2845_v22 = vpop.permute.xlu1 %2844 }
0x1613   :  { %v13131_v63 = vpop.eup %13130 }
0x1614   :  { %v2739_v52 = vmul.f32 %v13131_v63, %v13123_v26 }
0x1616   :  { %11209 = vmatprep.mubr.msk.f32.mxu1 %vm501_vm0, %v2739_v52 }
0x1617   :  { %11210 = vmatmul.mubr.msk.f32.gmra.mrb[38].mxu1 %vm501_vm0, %v2740_v53 }
0x1618   :  { %11220 = vmatprep.mubr.msk.f32.mxu1 %vm731_vm1, %v2839_v0 }
0x161b   :  { %11221 = vmatmul.mubr.msk.f32.vlgmr.msra.gmra.mrb[40].mxu1 %vm731_vm1, %v2841_v17 }
0x161c   :  { %11223 = vmatprep.mubr.msk.f32.mxu1 %vm731_vm1, %v2843_v21 }
0x161f   :  { %11224 = vmatmul.mubr.msk.f32.gmra.mrb[42].mxu1 %vm731_vm1, %v2845_v22 }
0x16b4   :  { %v15028_v9 = vpop.f32.mrb[36].mxu1 }
0x16b5   :  { %v15030_v8 = vpop.f32.mrb[37].mxu1 }
0x16ea   :  { %v15032_v62 = vpop.f32.mrb[38].mxu1 }
0x16eb   :  { %v15034_v27 = vpop.f32.mrb[39].mxu1 }
0x16ee   :  { %v11222_v28 = vpop.f32.mrb[40].mxu1 }
0x16ef   :  { %v2942_v59 = vadd.f32 %v14971_v55, %v11222_v28  ;;  %v2936_v11 = vpop.f32.mrb[41].mxu1 }
0x16f0   :  { %v2937_v29 = vadd.f32 %v14975_v58, %v2936_v11 }
0x16f1   :  { %v2958_v41 = vsel %vm501_vm0, %v2942_v59, -inf }
0x16f2   :  { %2959 = vmax.xlane.f32.xlu1 %v2958_v41  ;;  %v11225_v10 = vpop.f32.mrb[42].mxu1  ;;  %v2955_v31 = vsel %vm501_vm0, %v2937_v29, -inf }
0x16f3   :  { %v2946_v33 = vpop.f32.mrb[43].mxu1  ;;  %2956 = vmax.xlane.f32.xlu0 %v2955_v31  ;;  %v2952_v25 = vadd.f32 %v14981_v4, %v11225_v10 }
0x16f4   :  { %v2947_v43 = vadd.f32 %v14985_v14, %v2946_v33 }
0x16f5   :  { %v2964_v39 = vsel %vm501_vm0, %v2952_v25, -inf }
0x16f6   :  { %v2961_v26 = vsel %vm501_vm0, %v2947_v43, -inf }
0x16f7   :  { %2962 = vmax.xlane.f32.xlu0 %v2961_v26 }
0x16fb   :  { %2965 = vmax.xlane.f32.xlu0 %v2964_v39 }
0x1703   :  { %12747 = vrot.lane.b32.xlu1 %v15008_v47, %s14098_s3 }
0x1707   :  { %12757 = vrot.lane.b32.xlu1 %v14924_v30, %s14099_s20 }
0x177f   :  { %v2960_v36 = vpop.xlane.xlu1 %2959 }
0x1780   :  { %v2968_v40 = vsub.f32 %v2942_v59, %v2960_v36  ;;  %v2957_v24 = vpop.xlane.xlu0 %2956 }
0x1781   :  { %v2967_v45 = vsub.f32 %v2937_v29, %v2957_v24 }
0x1782   :  { %v2973_v34 = vmul.f32 1.442695, %v2968_v40 }
0x1783   :  { %v2971_v46 = vmul.f32 1.442695, %v2967_v45  ;;  %v12748_v38 = vpop.permute.xlu1 %12747 }
0x1784   :  { %13132 = vpow2.f32 %v2973_v34  ;;  %v12750_v42 = vunpack.i.h.bf16 %v12748_v38  ;;  %v12749_v18 = vunpack.i.l.bf16 %v12748_v38  ;;  %v2963_v60 = vpop.xlane.xlu0 %2962 }
0x1785   :  { %13134 = vpow2.f32 %v2971_v46  ;;  %v2969_v2 = vsub.f32 %v2947_v43, %v2963_v60 }
0x1786   :  { %v12095_v44 = vpack.c.bf16 %v12750_v42, %v12749_v18 }
0x1787   :  { %v2975_v5 = vmul.f32 1.442695, %v2969_v2  ;;  %v12758_v63 = vpop.permute.xlu1 %12757 }
0x1788   :  { %12096 = vmatprep.subr.bf16.mxu0 %v12095_v44  ;;  %v2966_v61 = vpop.xlane.xlu0 %2965  ;;  %v12760_v17 = vunpack.i.h.bf16 %v12758_v63  ;;  %v12759_v21 = vunpack.i.l.bf16 %v12758_v63 }
0x1789   :  { %12098 = vmatpush3.bf16.msra.mxu0 %v12095_v44  ;;  %v2970_v1 = vsub.f32 %v2952_v25, %v2966_v61 }
0x178a   :  { %v12103_v11 = vpack.c.bf16 %v12760_v17, %v12759_v21 }
0x178b   :  { %v2977_v3 = vmul.f32 1.442695, %v2970_v1 }
0x178d   :  { %13136 = vpow2.f32 %v2977_v3 }
0x178e   :  { %v13133_v48 = vpop.eup %13132  ;;  %13138 = vpow2.f32 %v2975_v5 }
0x178f   :  { %v13135_v54 = vpop.eup %13134  ;;  %v2982_v56 = vsel %vm501_vm0, %v13133_v48, 0.0 }
0x1790   :  { %2983 = vadd.xlane.f32.xlu0 %v2982_v56  ;;  %v2979_v57 = vsel %vm501_vm0, %v13135_v54, 0.0 }
0x1791   :  { %2980 = vadd.xlane.f32.xlu1 %v2979_v57 }
0x1797   :  { %v13137_v12 = vpop.eup %13136 }
0x1798   :  { %v13139_v13 = vpop.eup %13138  ;;  %v2988_v15 = vsel %vm501_vm0, %v13137_v12, 0.0 }
0x1799   :  { %v2985_v16 = vsel %vm501_vm0, %v13139_v13, 0.0 }
0x17a2   :  { %12762 = vrot.lane.b32.xlu1 %v14937_v32, %s14099_s20 }
0x17a6   :  { %12752 = vrot.lane.b32.xlu0 %v15010_v37, %s14098_s3 }
0x17c5   :  { %2989 = vadd.xlane.f32.xlu0 %v2988_v15 }
0x17c6   :  { %2986 = vadd.xlane.f32.xlu1 %v2985_v16 }
0x17d7   :  { %3114 = vrot.lane.b32.xlu1 %v14952_v49, %s14100_s23 }
0x17db   :  { %3118 = vrot.lane.b32.xlu1 %v14960_v51, %s14100_s23  ;;  %3112 = vrot.lane.b32.xlu0 %v14926_v23, %s14100_s23 }
0x17df   :  { %3116 = vrot.lane.b32.xlu0 %v14954_v50, %s14100_s23 }
0x181d   :  { %v2984_v52 = vpop.xlane.xlu0 %2983 }
0x181e   :  { %13140 = vrcp.f32 %v2984_v52  ;;  %v2981_v0 = vpop.xlane.xlu1 %2980 }
0x181f   :  { %13142 = vrcp.f32 %v2981_v0 }
0x1821   :  { %v12753_v53 = vpop.permute.xlu0 %12752 }
0x1822   :  { %v12755_v22 = vunpack.i.h.bf16 %v12753_v53  ;;  %v12754_v28 = vunpack.i.l.bf16 %v12753_v53  ;;  %v12763_v41 = vpop.permute.xlu1 %12762 }
0x1823   :  { %v12765_v43 = vunpack.i.h.bf16 %v12763_v41  ;;  %v12764_v25 = vunpack.i.l.bf16 %v12763_v41 }
0x1824   :  { %v12099_v59 = vpack.c.bf16 %v12755_v22, %v12754_v28 }
0x1825   :  { %v12109_v26 = vpack.c.bf16 %v12765_v43, %v12764_v25 }
0x1826   :  { %12100 = vmatprep.subr.bf16.mxu0 %v12099_v59 }
0x1827   :  { %12102 = vmatpush3.bf16.msra.mxu0 %v12099_v59 }
0x1828   :  { %v13141_v29 = vpop.eup %13140  ;;  %12105 = vmatprep.subr.msk.bf16.mxu0 %vm14564_vm2, %v12103_v11 }
0x1829   :  { %v13143_v10 = vpop.eup %13142  ;;  %v2996_v33 = vmul.f32 %v13141_v29, %v13133_v48 }
0x182a   :  { %v2995_v31 = vmul.f32 %v13143_v10, %v13135_v54 }
0x182c   :  { %11234 = vmatprep.mubr.msk.f32.mxu0 %vm501_vm0, %v2995_v31 }
0x182d   :  { %11235 = vmatmul.mubr.msk.f32.vlgmr.msra.gmra.mrb[28].mxu0 %vm501_vm0, %v2996_v33 }
0x1830   :  { %12108 = vmatpush3.bf16.xpose.msk.msra.mxu0 %vm14564_vm2, %v12103_v11 }
0x1831   :  { %12111 = vmatprep.subr.msk.bf16.mxu0 %vm14564_vm2, %v12109_v26 }
0x1838   :  { %12114 = vmatpush3.bf16.xpose.msk.msra.mxu0 %vm14564_vm2, %v12109_v26 }
0x1852   :  { %v2990_v39 = vpop.xlane.xlu0 %2989 }
0x1853   :  { %13144 = vrcp.f32 %v2990_v39  ;;  %v2987_v36 = vpop.xlane.xlu1 %2986 }
0x1854   :  { %13146 = vrcp.f32 %v2987_v36 }
0x1856   :  { %v3113_v34 = vpop.permute.xlu0 %3112 }
0x1857   :  { %v3115_v38 = vpop.permute.xlu1 %3114 }
0x185a   :  { %v3117_v42 = vpop.permute.xlu0 %3116 }
0x185b   :  { %v3119_v18 = vpop.permute.xlu1 %3118 }
0x185d   :  { %v13145_v40 = vpop.eup %13144 }
0x185e   :  { %v13147_v24 = vpop.eup %13146  ;;  %v2998_v46 = vmul.f32 %v13145_v40, %v13137_v12 }
0x185f   :  { %v2997_v45 = vmul.f32 %v13147_v24, %v13139_v13 }
0x1861   :  { %11237 = vmatprep.mubr.msk.f32.mxu0 %vm501_vm0, %v2997_v45 }
0x1862   :  { %11238 = vmatmul.mubr.msk.f32.gmra.mrb[30].mxu0 %vm501_vm0, %v2998_v46 }
0x1863   :  { %11248 = vmatprep.mubr.msk.f32.mxu0 %vm731_vm1, %v3113_v34 }
0x1866   :  { %11249 = vmatmul.mubr.msk.f32.vlgmr.msra.gmra.mrb[32].mxu0 %vm731_vm1, %v3115_v38 }
0x1867   :  { %11251 = vmatprep.mubr.msk.f32.mxu0 %vm731_vm1, %v3117_v42 }
0x186a   :  { %11252 = vmatmul.mubr.msk.f32.gmra.mrb[34].mxu0 %vm731_vm1, %v3119_v18 }
0x1900   :  { %v15080_v44 = vpop.f32.mrb[28].mxu0 }
0x1901   :  { %v15082_v48 = vpop.f32.mrb[29].mxu0 }
0x1935   :  { %v15084_v54 = vpop.f32.mrb[30].mxu0 }
0x1936   :  { %v15086_v56 = vpop.f32.mrb[31].mxu0 }
0x1939   :  { %v11250_v57 = vpop.f32.mrb[32].mxu0 }
0x193a   :  { %v3216_v60 = vadd.f32 %v14971_v55, %v11250_v57  ;;  %v3210_v61 = vpop.f32.mrb[33].mxu0 }
0x193b   :  { %v3211_v1 = vadd.f32 %v14975_v58, %v3210_v61 }
0x193c   :  { %v3232_v2 = vsel %vm501_vm0, %v3216_v60, -inf }
0x193d   :  { %3233 = vmax.xlane.f32.xlu1 %v3232_v2  ;;  %v11253_v3 = vpop.f32.mrb[34].mxu0  ;;  %v3229_v5 = vsel %vm501_vm0, %v3211_v1, -inf }
0x193e   :  { %v3220_v12 = vpop.f32.mrb[35].mxu0  ;;  %3230 = vmax.xlane.f32.xlu0 %v3229_v5  ;;  %v3226_v15 = vadd.f32 %v14981_v4, %v11253_v3 }
0x193f   :  { %v3221_v13 = vadd.f32 %v14985_v14, %v3220_v12 }
0x1940   :  { %v3238_v63 = vsel %vm501_vm0, %v3226_v15, -inf }
0x1941   :  { %v3235_v16 = vsel %vm501_vm0, %v3221_v13, -inf }
0x1942   :  { %3236 = vmax.xlane.f32.xlu0 %v3235_v16 }
0x1946   :  { %3239 = vmax.xlane.f32.xlu0 %v3238_v63 }
0x194e   :  { %12767 = vrot.lane.b32.xlu1 %v15008_v47, %s14100_s23 }
0x1952   :  { %12777 = vrot.lane.b32.xlu1 %v14924_v30, %s14101_s27 }
0x19ca   :  { %v3234_v52 = vpop.xlane.xlu1 %3233 }
0x19cb   :  { %v3242_v0 = vsub.f32 %v3216_v60, %v3234_v52  ;;  %v3231_v53 = vpop.xlane.xlu0 %3230 }
0x19cc   :  { %v3241_v17 = vsub.f32 %v3211_v1, %v3231_v53 }
0x19cd   :  { %v3247_v21 = vmul.f32 1.442695, %v3242_v0 }
0x19ce   :  { %v3245_v22 = vmul.f32 1.442695, %v3241_v17  ;;  %v12768_v28 = vpop.permute.xlu1 %12767 }
0x19cf   :  { %13148 = vpow2.f32 %v3247_v21  ;;  %v12770_v59 = vunpack.i.h.bf16 %v12768_v28  ;;  %v12769_v11 = vunpack.i.l.bf16 %v12768_v28  ;;  %v3237_v33 = vpop.xlane.xlu0 %3236 }
0x19d0   :  { %13150 = vpow2.f32 %v3245_v22  ;;  %v3243_v26 = vsub.f32 %v3221_v13, %v3237_v33 }
0x19d1   :  { %v12115_v29 = vpack.c.bf16 %v12770_v59, %v12769_v11 }
0x19d2   :  { %v3249_v36 = vmul.f32 1.442695, %v3243_v26 }
0x19d3   :  { %12116 = vmatprep.subr.bf16.mxu1 %v12115_v29  ;;  %v3240_v43 = vpop.xlane.xlu0 %3239 }
0x19d4   :  { %12118 = vmatpush3.bf16.msra.mxu1 %v12115_v29  ;;  %v3244_v25 = vsub.f32 %v3226_v15, %v3240_v43 }
0x19d6   :  { %v3251_v39 = vmul.f32 1.442695, %v3244_v25 }
0x19d8   :  { %13152 = vpow2.f32 %v3251_v39 }
0x19d9   :  { %v13149_v41 = vpop.eup %13148  ;;  %13154 = vpow2.f32 %v3249_v36 }
0x19da   :  { %v13151_v10 = vpop.eup %13150  ;;  %v3256_v31 = vsel %vm501_vm0, %v13149_v41, 0.0 }
0x19db   :  { %3257 = vadd.xlane.f32.xlu0 %v3256_v31  ;;  %v3253_v30 = vsel %vm501_vm0, %v13151_v10, 0.0 }
0x19dc   :  { %3254 = vadd.xlane.f32.xlu1 %v3253_v30 }
0x19e2   :  { %v13153_v40 = vpop.eup %13152 }
0x19e3   :  { %v13155_v24 = vpop.eup %13154  ;;  %v3262_v45 = vsel %vm501_vm0, %v13153_v40, 0.0 }
0x19e4   :  { %v3259_v34 = vsel %vm501_vm0, %v13155_v24, 0.0 }
0x19ed   :  { %12782 = vrot.lane.b32.xlu1 %v14937_v32, %s14101_s27  ;;  %v12778_v32 = vpop.permute.xlu1 %12777 }
0x19ee   :  { %v12780_v18 = vunpack.i.h.bf16 %v12778_v32  ;;  %v12779_v57 = vunpack.i.l.bf16 %v12778_v32 }
0x19f0   :  { %v12123_v1 = vpack.c.bf16 %v12780_v18, %v12779_v57 }
0x19f1   :  { %12772 = vrot.lane.b32.xlu0 %v15010_v37, %s14100_s23 }
0x1a10   :  { %3263 = vadd.xlane.f32.xlu0 %v3262_v45 }
0x1a11   :  { %3260 = vadd.xlane.f32.xlu1 %v3259_v34 }
0x1a22   :  { %3384 = vrot.lane.b32.xlu1 %v14952_v49, %s14102_s26 }
0x1a26   :  { %3388 = vrot.lane.b32.xlu1 %v14960_v51, %s14102_s26  ;;  %3382 = vrot.lane.b32.xlu0 %v14926_v23, %s14102_s26 }
0x1a2a   :  { %3386 = vrot.lane.b32.xlu0 %v14954_v50, %s14102_s26 }
0x1a68   :  { %v3258_v46 = vpop.xlane.xlu0 %3257 }
0x1a69   :  { %13156 = vrcp.f32 %v3258_v46  ;;  %v3255_v38 = vpop.xlane.xlu1 %3254 }
0x1a6a   :  { %13158 = vrcp.f32 %v3255_v38 }
0x1a6c   :  { %v12773_v42 = vpop.permute.xlu0 %12772 }
0x1a6d   :  { %v12775_v60 = vunpack.i.h.bf16 %v12773_v42  ;;  %v12774_v61 = vunpack.i.l.bf16 %v12773_v42  ;;  %v12783_v2 = vpop.permute.xlu1 %12782 }
0x1a6e   :  { %v12785_v5 = vunpack.i.h.bf16 %v12783_v2  ;;  %v12784_v12 = vunpack.i.l.bf16 %v12783_v2 }
0x1a6f   :  { %v12119_v49 = vpack.c.bf16 %v12775_v60, %v12774_v61 }
0x1a70   :  { %v12129_v13 = vpack.c.bf16 %v12785_v5, %v12784_v12 }
0x1a71   :  { %12120 = vmatprep.subr.bf16.mxu1 %v12119_v49 }
0x1a72   :  { %12122 = vmatpush3.bf16.msra.mxu1 %v12119_v49 }
0x1a73   :  { %v13157_v51 = vpop.eup %13156  ;;  %12125 = vmatprep.subr.msk.bf16.mxu1 %vm14564_vm2, %v12123_v1 }
0x1a74   :  { %v13159_v23 = vpop.eup %13158  ;;  %v3270_v3 = vmul.f32 %v13157_v51, %v13149_v41 }
0x1a75   :  { %v3269_v50 = vmul.f32 %v13159_v23, %v13151_v10 }
0x1a77   :  { %11262 = vmatprep.mubr.msk.f32.mxu1 %vm501_vm0, %v3269_v50 }
0x1a78   :  { %11263 = vmatmul.mubr.msk.f32.vlgmr.msra.gmra.mrb[44].mxu1 %vm501_vm0, %v3270_v3 }
0x1a7b   :  { %12128 = vmatpush3.bf16.xpose.msk.msra.mxu1 %vm14564_vm2, %v12123_v1 }
0x1a7c   :  { %12131 = vmatprep.subr.msk.bf16.mxu1 %vm14564_vm2, %v12129_v13 }
0x1a83   :  { %12134 = vmatpush3.bf16.xpose.msk.msra.mxu1 %vm14564_vm2, %v12129_v13 }
0x1a9d   :  { %v3264_v15 = vpop.xlane.xlu0 %3263 }
0x1a9e   :  { %13160 = vrcp.f32 %v3264_v15  ;;  %v3261_v16 = vpop.xlane.xlu1 %3260 }
0x1a9f   :  { %13162 = vrcp.f32 %v3261_v16 }
0x1aa1   :  { %v3383_v53 = vpop.permute.xlu0 %3382 }
0x1aa2   :  { %v3385_v21 = vpop.permute.xlu1 %3384 }
0x1aa5   :  { %v3387_v22 = vpop.permute.xlu0 %3386 }
0x1aa6   :  { %v3389_v28 = vpop.permute.xlu1 %3388 }
0x1aa8   :  { %v13161_v63 = vpop.eup %13160 }
0x1aa9   :  { %v13163_v52 = vpop.eup %13162  ;;  %v3272_v17 = vmul.f32 %v13161_v63, %v13153_v40 }
0x1aaa   :  { %v3271_v0 = vmul.f32 %v13163_v52, %v13155_v24 }
0x1aac   :  { %11265 = vmatprep.mubr.msk.f32.mxu1 %vm501_vm0, %v3271_v0 }
0x1aad   :  { %11266 = vmatmul.mubr.msk.f32.gmra.mrb[46].mxu1 %vm501_vm0, %v3272_v17 }
0x1aae   :  { %11276 = vmatprep.mubr.msk.f32.mxu1 %vm731_vm1, %v3383_v53 }
0x1ab1   :  { %11277 = vmatmul.mubr.msk.f32.vlgmr.msra.gmra.mrb[48].mxu1 %vm731_vm1, %v3385_v21 }
0x1ab2   :  { %11279 = vmatprep.mubr.msk.f32.mxu1 %vm731_vm1, %v3387_v22 }
0x1ab5   :  { %11280 = vmatmul.mubr.msk.f32.gmra.mrb[50].mxu1 %vm731_vm1, %v3389_v28 }
0x1b4b   :  { %v11264_v59 = vpop.f32.mrb[44].mxu1 }
0x1b4c   :  { %v3363_v11 = vpop.f32.mrb[45].mxu1 }
0x1b80   :  { %v15132_v29 = vpop.f32.mrb[46].mxu1 }
0x1b81   :  { %v15134_v41 = vpop.f32.mrb[47].mxu1 }
0x1b84   :  { %v11278_v10 = vpop.f32.mrb[48].mxu1 }
0x1b85   :  { %v3486_v31 = vadd.f32 %v14971_v55, %v11278_v10  ;;  %v3480_v30 = vpop.f32.mrb[49].mxu1  ;;  %v10082_v10 = vld [vmem:[%s16549_s28 + $0x28] sm:$0xff] }
0x1b86   :  { %v3481_v33 = vadd.f32 %v14975_v58, %v3480_v30 }
0x1b87   :  { %v3502_v43 = vsel %vm501_vm0, %v3486_v31, -inf }
0x1b88   :  { %3503 = vmax.xlane.f32.xlu1 %v3502_v43  ;;  %v11281_v25 = vpop.f32.mrb[50].mxu1  ;;  %v3499_v26 = vsel %vm501_vm0, %v3481_v33, -inf }
0x1b89   :  { %v3490_v39 = vpop.f32.mrb[51].mxu1  ;;  %3500 = vmax.xlane.f32.xlu0 %v3499_v26  ;;  %v3496_v40 = vadd.f32 %v14981_v4, %v11281_v25 }
0x1b8a   :  { %v3491_v36 = vadd.f32 %v14985_v14, %v3490_v39 }
0x1b8b   :  { %v3508_v55 = vsel %vm501_vm0, %v3496_v40, -inf }
0x1b8c   :  { %v3505_v24 = vsel %vm501_vm0, %v3491_v36, -inf }
0x1b8d   :  { %3506 = vmax.xlane.f32.xlu0 %v3505_v24 }
0x1b91   :  { %3509 = vmax.xlane.f32.xlu0 %v3508_v55 }
0x1c15   :  { %v3504_v45 = vpop.xlane.xlu1 %3503 }
0x1c16   :  { %v3512_v58 = vsub.f32 %v3486_v31, %v3504_v45  ;;  %v3501_v34 = vpop.xlane.xlu0 %3500  ;;  %v10083_v31 = vld [vmem:[%s16549_s28 + $0x30] sm:$0xff] }
0x1c17   :  { %v3511_v32 = vsub.f32 %v3481_v33, %v3501_v34  ;;  %v10084_v33 = vld [vmem:[%s16549_s28 + $0x38] sm:$0xff] }
0x1c18   :  { %v3517_v46 = vmul.f32 1.442695, %v3512_v58  ;;  %v12147_v43 = vpack.c.bf16 %v10084_v33, %v10083_v31 }
0x1c19   :  { %v3515_v38 = vmul.f32 1.442695, %v3511_v32 }
0x1c1a   :  { %13164 = vpow2.f32 %v3517_v46  ;;  %v3507_v42 = vpop.xlane.xlu0 %3506 }
0x1c1b   :  { %13166 = vpow2.f32 %v3515_v38  ;;  %v3513_v18 = vsub.f32 %v3491_v36, %v3507_v42 }
0x1c1d   :  { %v3519_v57 = vmul.f32 1.442695, %v3513_v18 }
0x1c1e   :  { %v3510_v14 = vpop.xlane.xlu0 %3509 }
0x1c1f   :  { %13168 = vpow2.f32 %v3519_v57  ;;  %v3514_v4 = vsub.f32 %v3496_v40, %v3510_v14 }
0x1c21   :  { %v3521_v60 = vmul.f32 1.442695, %v3514_v4 }
0x1c23   :  { %13170 = vpow2.f32 %v3521_v60 }
0x1c24   :  { %v13165_v61 = vpop.eup %13164 }
0x1c25   :  { %v13167_v49 = vpop.eup %13166  ;;  %v3526_v1 = vsel %vm501_vm0, %v13165_v61, 0.0 }
0x1c26   :  { %3527 = vadd.xlane.f32.xlu0 %v3526_v1  ;;  %v3523_v51 = vsel %vm501_vm0, %v13167_v49, 0.0 }
0x1c27   :  { %3524 = vadd.xlane.f32.xlu1 %v3523_v51 }
0x1c29   :  { %v13169_v2 = vpop.eup %13168 }
0x1c2a   :  { %v3529_v23 = vsel %vm501_vm0, %v13169_v2, 0.0 }
0x1c2b   :  { %3530 = vadd.xlane.f32.xlu1 %v3529_v23  ;;  %v10142_v23 = vld [vmem:[#allocation2 + $0x1] ss:$0 sm:$0xff] }
0x1c2d   :  { %v13171_v50 = vpop.eup %13170 }
0x1c2e   :  { %v3532_v3 = vsel %vm501_vm0, %v13171_v50, 0.0 }
0x1c2f   :  { %3533 = vadd.xlane.f32.xlu0 %v3532_v3 }
0x1c3c   :  { %12787 = vrot.lane.b32.xlu1 %v15008_v47, %s14102_s26 }
0x1c40   :  { %3656 = vrot.lane.b32.xlu1 %v15082_v48, %s14089_s14 }
0x1c44   :  { %3658 = vrot.lane.b32.xlu1 %v15080_v44, %s14089_s14 }
0x1c45   :  { %12792 = vrot.lane.b32.xlu0 %v15010_v37, %s14102_s26 }
0x1c48   :  { %3674 = vrot.lane.b32.xlu1 %v11264_v59, %s14071_s2 }
0x1c49   :  { %3672 = vrot.lane.b32.xlu0 %v3363_v11, %s14071_s2  ;;  %v10081_v11 = vld [vmem:[%s16549_s28 + $0x20] sm:$0xff] }
0x1c4a   :  { %v12143_v30 = vpack.c.bf16 %v10082_v10, %v10081_v11 }
0x1c4c   :  { %3662 = vrot.lane.b32.xlu1 %v15084_v54, %s14089_s14 }
0x1c4d   :  { %3660 = vrot.lane.b32.xlu0 %v15086_v56, %s14089_s14 }
0x1cb3   :  { %v3528_v5 = vpop.xlane.xlu0 %3527 }
0x1cb4   :  { %v3525_v47 = vpop.xlane.xlu1 %3524 }
0x1cb5   :  { %13172 = vrcp.f32 %v3525_v47 }
0x1cb6   :  { %13174 = vrcp.f32 %v3528_v5 }
0x1cb8   :  { %v3531_v48 = vpop.xlane.xlu1 %3530 }
0x1cb9   :  { %13176 = vrcp.f32 %v3531_v48 }
0x1cbc   :  { %v12788_v44 = vpop.permute.xlu1 %12787  ;;  %v3534_v12 = vpop.xlane.xlu0 %3533 }
0x1cbd   :  { %v12790_v13 = vunpack.i.h.bf16 %v12788_v44  ;;  %v12789_v37 = vunpack.i.l.bf16 %v12788_v44  ;;  %13178 = vrcp.f32 %v3534_v12 }
0x1cbf   :  { %v13173_v15 = vpop.eup %13172  ;;  %v12135_v16 = vpack.c.bf16 %v12790_v13, %v12789_v37 }
0x1cc0   :  { %v12793_v63 = vpop.permute.xlu0 %12792  ;;  %v3539_v52 = vmul.f32 %v13173_v15, %v13167_v49  ;;  %v13175_v53 = vpop.eup %13174 }
0x1cc1   :  { %v12795_v0 = vunpack.i.h.bf16 %v12793_v63  ;;  %v12794_v54 = vunpack.i.l.bf16 %v12793_v63  ;;  %12136 = vmatprep.subr.bf16.mxu0 %v12135_v16  ;;  %v3540_v21 = vmul.f32 %v13175_v53, %v13165_v61  ;;  %v3657_v40 = vpop.permute.xlu1 %3656 }
0x1cc2   :  { %12138 = vmatpush3.bf16.msra.mxu0 %v12135_v16  ;;  %11290 = vmatprep.mubr.msk.f32.mxu0 %vm501_vm0, %v3539_v52  ;;  %v3700_v32 = vsel %vm731_vm1, %v15030_v8, %v3657_v40  ;;  %v10150_v40 = vld [vmem:[%s16550_s9 + $0x28] sm:$0xff] }
0x1cc3   :  { %v12139_v56 = vpack.c.bf16 %v12795_v0, %v12794_v54  ;;  %v13177_v17 = vpop.eup %13176 }
0x1cc4   :  { %v3541_v28 = vmul.f32 %v13177_v17, %v13169_v2  ;;  %v3673_v45 = vpop.permute.xlu0 %3672 }
0x1cc5   :  { %12140 = vmatprep.subr.bf16.mxu0 %v12139_v56  ;;  %v3659_v24 = vpop.permute.xlu1 %3658  ;;  %v3704_v38 = vsel %vm1844_vm3, %v3700_v32, %v3673_v45  ;;  %v10152_v45 = vld [vmem:[%s16550_s9 + $0x38] sm:$0xff]  ;;  %v10153_v32 = vld [vmem:[%s16551_s4 + $0x40] sm:$0xff] }
0x1cc6   :  { %12142 = vmatpush3.bf16.msra.mxu0 %v12139_v56 }
0x1cc7   :  { %v13179_v22 = vpop.eup %13178  ;;  %12144 = vmatprep.subr.bf16.mxu0 %v12143_v30 }
0x1cc8   :  { %v3542_v59 = vmul.f32 %v13179_v22, %v13171_v50  ;;  %v3661_v34 = vpop.permute.xlu0 %3660 }
0x1cc9   :  { %11291 = vmatmul.mubr.msk.f32.vlgmr.msra.gmra.mrb[36].mxu0 %vm501_vm0, %v3540_v21  ;;  %v3675_v55 = vpop.permute.xlu1 %3674  ;;  %v3702_v8 = vsel %vm731_vm1, %v15034_v27, %v3661_v34  ;;  %v14104_v34 = vmov 0.0|0.0  }
0x1cca   :  { %11293 = vmatprep.mubr.msk.f32.mxu0 %vm501_vm0, %v3541_v28  ;;  %12146 = vmatpush3.bf16.msra.mxu0 %v12143_v30 }
0x1ccb   :  { %12148 = vmatprep.subr.bf16.mxu0 %v12147_v43 }
0x1ccd   :  { %11294 = vmatmul.mubr.msk.f32.gmra.mrb[38].mxu0 %vm501_vm0, %v3542_v59  ;;  %v3663_v58 = vpop.permute.xlu1 %3662 }
0x1cce   :  { %12150 = vmatpush3.bf16.msra.mxu0 %v12147_v43 }
0x1d9c   :  { %v11292_v25 = vpop.f32.mrb[36].mxu0 }
0x1d9d   :  { %3690 = vrot.lane.b32.xlu1 %v11292_v25, %s14103_s1  ;;  %v3633_v26 = vpop.f32.mrb[37].mxu0 }
0x1d9e   :  { %3688 = vrot.lane.b32.xlu0 %v3633_v26, %s14103_s1 }
0x1da0   :  { %v11295_v39 = vpop.f32.mrb[38].mxu0 }
0x1da1   :  { %3678 = vrot.lane.b32.xlu1 %v15132_v29, %s14071_s2  ;;  %v3643_v36 = vpop.f32.mrb[39].mxu0  ;;  %v3701_v29 = vsel %vm731_vm1, %v15028_v9, %v3659_v24  ;;  %v3703_v9 = vsel %vm731_vm1, %v15032_v62, %v3663_v58 }
0x1da2   :  { %3676 = vrot.lane.b32.xlu0 %v15134_v41, %s14071_s2  ;;  %v3705_v42 = vsel %vm1844_vm3, %v3701_v29, %v3675_v55  ;;  %v10151_v55 = vld [vmem:[%s16550_s9 + $0x30] sm:$0xff] }
0x1da3   :  { %v12155_v58 = vpack.c.bf16 %v10152_v45, %v10151_v55  ;;  %v10155_v29 = vld [vmem:[%s16551_s4 + $0x50] sm:$0xff] }
0x1da5   :  { %3694 = vrot.lane.b32.xlu1 %v11295_v39, %s14103_s1  ;;  %v10173_v39 = vld [vmem:[#allocation14] ss:$0 sm:$0xff] }
0x1da6   :  { %3692 = vrot.lane.b32.xlu0 %v3643_v36, %s14103_s1  ;;  %v10149_v36 = vld [vmem:[%s16550_s9 + $0x20] sm:$0xff] }
0x1da7   :  { %v12151_v24 = vpack.c.bf16 %v10150_v40, %v10149_v36 }
0x1da9   :  { %12152 = vmatprep.subr.bf16.mxu1 %v12151_v24 }
0x1daa   :  { %12154 = vmatpush3.bf16.msra.mxu1 %v12151_v24 }
0x1dab   :  { %12156 = vmatprep.subr.bf16.mxu1 %v12155_v58 }
0x1dae   :  { %12158 = vmatpush3.bf16.msra.mxu1 %v12155_v58  ;;  %v4218_v58 = vld [vmem:[#allocation16] sm:$0x1] }
0x1daf   :  { %12175 = vmatprep.subr.bf16.mxu1 %v14104_v34 }
0x1e0f   :  { %v3691_v46 = vpop.permute.xlu1 %3690 }
0x1e10   :  { %v3689_v41 = vpop.permute.xlu0 %3688  ;;  %v3709_v57 = vsel %vm1849_vm4, %v3705_v42, %v3691_v46  ;;  %v10154_v46 = vld [vmem:[%s16551_s4 + $0x48] sm:$0xff] }
0x1e11   :  { %v3708_v18 = vsel %vm1849_vm4, %v3704_v38, %v3689_v41  ;;  %v12159_v38 = vpack.c.bf16 %v10154_v46, %v10153_v32  ;;  %v10156_v41 = vld [vmem:[%s16551_s4 + $0x58] sm:$0xff] }
0x1e12   :  { %11304 = vmatprep.mubr.msk.f32.mxu0 %vm501_vm0, %v3708_v18  ;;  %v12163_v42 = vpack.c.bf16 %v10156_v41, %v10155_v29  ;;  %v10157_v18 = vld [vmem:[%s16551_s4 + $0x60] sm:$0xff] }
0x1e13   :  { %v3679_v14 = vpop.permute.xlu1 %3678  ;;  %11305 = vmatmul.mubr.msk.f32.vlgmr.msra.gmra.mrb[40].mxu0 %vm501_vm0, %v3709_v57  ;;  %v10158_v57 = vld [vmem:[%s16551_s4 + $0x68] sm:$0xff]  ;;  %12160 = vmatprep.subr.bf16.mxu0 %v12159_v38 }
0x1e14   :  { %v3677_v4 = vpop.permute.xlu0 %3676  ;;  %v3707_v1 = vsel %vm1844_vm3, %v3703_v9, %v3679_v14  ;;  %12162 = vmatpush3.bf16.msra.mxu0 %v12159_v38  ;;  %v12167_v14 = vpack.c.bf16 %v10158_v57, %v10157_v18 }
0x1e15   :  { %v3706_v61 = vsel %vm1844_vm3, %v3702_v8, %v3677_v4  ;;  %12164 = vmatprep.subr.bf16.mxu0 %v12163_v42 }
0x1e17   :  { %v3695_v60 = vpop.permute.xlu1 %3694 }
0x1e18   :  { %v3693_v49 = vpop.permute.xlu0 %3692  ;;  %v3711_v2 = vsel %vm1849_vm4, %v3707_v1, %v3695_v60  ;;  %12166 = vmatpush3.bf16.msra.mxu0 %v12163_v42  ;;  %v10166_v42 = vld [vmem:[#allocation10 + $0x1] ss:$0 sm:$0xff] }
0x1e19   :  { %v3710_v51 = vsel %vm1849_vm4, %v3706_v61, %v3693_v49  ;;  %12168 = vmatprep.subr.bf16.mxu0 %v12167_v14 }
0x1e1a   :  { %11307 = vmatprep.mubr.msk.f32.mxu0 %vm501_vm0, %v3710_v51 }
0x1e1b   :  { %11308 = vmatmul.mubr.msk.f32.gmra.mrb[42].mxu0 %vm501_vm0, %v3711_v2 }
0x1e1c   :  { %12170 = vmatpush3.bf16.msra.mxu0 %v12167_v14 }
0x1ee6   :  { %v11306_v50 = vpop.f32.mrb[40].mxu0 }
0x1ee7   :  { %v3802_v27 = vadd.f32 %v11306_v50, %v10142_v23  ;;  %v3796_v3 = vpop.f32.mrb[41].mxu0 }
0x1ee8   :  { %v3797_v47 = vadd.f32 %v10142_v23, %v3796_v3  ;;  %v10147_v3 = vld [vmem:[#allocation5 + $0x1] ss:$0 sm:$0xff] }
0x1ee9   :  { %v3820_v62 = vadd.f32 %v3802_v27, %v14897_v6 }
0x1eea   :  { %v3819_v5 = vadd.f32 %v3797_v47, %v14899_v7 }
0x1eeb   :  { %v3826_v48 = vsel %vm501_vm0, %v3820_v62, 0.0 }
0x1eec   :  { %3827 = vadd.xlane.f32.xlu1 %v3826_v48  ;;  %v3823_v44 = vsel %vm501_vm0, %v3819_v5, 0.0 }
0x1eed   :  { %3824 = vadd.xlane.f32.xlu0 %v3823_v44  ;;  %v10148_v44 = vld [vmem:[#allocation7 + $0x1] ss:$0 sm:$0xff] }
0x1eee   :  { %v11309_v12 = vpop.f32.mrb[42].mxu0 }
0x1eef   :  { %v3806_v13 = vpop.f32.mrb[43].mxu0  ;;  %v3812_v37 = vadd.f32 %v11309_v12, %v10142_v23 }
0x1ef0   :  { %v3807_v15 = vadd.f32 %v10142_v23, %v3806_v13  ;;  %v4214_v13 = vld [vmem:[%s16552_s10] sm:$0xff] }
0x1ef1   :  { %v3822_v63 = vadd.f32 %v3812_v37, %v14907_v19  ;;  %v4215_v37 = vld [vmem:[%s16552_s10 + $0x8] sm:$0xff] }
0x1ef2   :  { %v3821_v16 = vadd.f32 %v3807_v15, %v14909_v20 }
0x1ef3   :  { %v3832_v6 = vsel %vm501_vm0, %v3822_v63, 0.0 }
0x1ef4   :  { %v3829_v52 = vsel %vm501_vm0, %v3821_v16, 0.0 }
0x1ef5   :  { %3830 = vadd.xlane.f32.xlu0 %v3829_v52 }
0x1ef9   :  { %3833 = vadd.xlane.f32.xlu0 %v3832_v6  ;;  %v4216_v6 = vld [vmem:[%s16552_s10 + $0x10] sm:$0xff] }
0x1f79   :  { %v3828_v7 = vpop.xlane.xlu1 %3827 }
0x1f7a   :  { %v3836_v0 = vmul.f32 0.03125, %v3828_v7  ;;  %v3825_v54 = vpop.xlane.xlu0 %3824  ;;  %v4217_v7 = vld [vmem:[%s16552_s10 + $0x18] sm:$0xff] }
0x1f7b   :  { %v3835_v56 = vmul.f32 0.03125, %v3825_v54 }
0x1f7c   :  { %v15206_v53 = vsub.f32 %v3820_v62, %v3836_v0 }
0x1f7d   :  { %v15208_v17 = vsub.f32 %v3819_v5, %v3835_v56  ;;  %v12179_v56 = vpack.c.bf16 %v4217_v7, %v4216_v6 }
0x1f7e   :  { %v3844_v21 = vmul.f32 %v15206_v53, %v15206_v53 }
0x1f7f   :  { %v3843_v19 = vmul.f32 %v15208_v17, %v15208_v17 }
0x1f80   :  { %v3850_v20 = vsel %vm501_vm0, %v3844_v21, 0.0 }
0x1f81   :  { %3851 = vadd.xlane.f32.xlu0 %v3850_v20  ;;  %v3847_v22 = vsel %vm501_vm0, %v3843_v19, 0.0 }
0x1f82   :  { %3848 = vadd.xlane.f32.xlu1 %v3847_v22  ;;  %v3831_v28 = vpop.xlane.xlu0 %3830 }
0x1f83   :  { %v3837_v59 = vmul.f32 0.03125, %v3831_v28 }
0x1f85   :  { %v15216_v11 = vsub.f32 %v3821_v16, %v3837_v59  ;;  %v14106_v59 = vmov 0.0  }
0x1f86   :  { %v3834_v10 = vpop.xlane.xlu0 %3833 }
0x1f87   :  { %v3838_v31 = vmul.f32 0.03125, %v3834_v10  ;;  %v3845_v30 = vmul.f32 %v15216_v11, %v15216_v11  ;;  %v10160_v10 = vld [vmem:[%s16551_s4 + $0x78] sm:$0xff] }
0x1f89   :  { %v15220_v33 = vsub.f32 %v3822_v63, %v3838_v31  ;;  %v3853_v43 = vsel %vm501_vm0, %v3845_v30, 0.0  ;;  %v12176_v63 = vpack.c.bf16 %v4215_v37, %v4214_v13  ;;  %v10161_v30 = vld [vmem:[#allocation8 + $0x1] ss:$0 sm:$0xff]  ;;  %v4325_v13 = vld [vmem:[%s16553_s17 + $0x8] sm:$0xff] }
0x1f8a   :  { %3854 = vadd.xlane.f32.xlu1 %v3853_v43 }
0x1f8b   :  { %v3846_v25 = vmul.f32 %v15220_v33, %v15220_v33 }
0x1f8d   :  { %v3856_v26 = vsel %vm501_vm0, %v3846_v25, 0.0 }
0x1f8e   :  { %3857 = vadd.xlane.f32.xlu0 %v3856_v26 }
0x1f9b   :  { %4224 = vrot.lane.b32.xlu1 %v10173_v39, %s14096_s8 }
0x200e   :  { %v3852_v4 = vpop.xlane.xlu0 %3851 }
0x200f   :  { %v3860_v8 = vmul.f32 0.03125, %v3852_v4  ;;  %v3849_v60 = vpop.xlane.xlu1 %3848 }
0x2010   :  { %v3859_v9 = vmul.f32 0.03125, %v3849_v60 }
0x2011   :  { %v3864_v61 = vadd.f32 1e-05, %v3860_v8 }
0x2012   :  { %v3863_v49 = vadd.f32 1e-05, %v3859_v9 }
0x2013   :  { %13180 = vrsqrt.f32 %v3864_v61 }
0x2014   :  { %13182 = vrsqrt.f32 %v3863_v49 }
0x2017   :  { %v3855_v1 = vpop.xlane.xlu1 %3854 }
0x2018   :  { %v3861_v51 = vmul.f32 0.03125, %v3855_v1 }
0x201a   :  { %v3865_v2 = vadd.f32 1e-05, %v3861_v51 }
0x201b   :  { %v3858_v23 = vpop.xlane.xlu0 %3857  ;;  %v4225_v28 = vpop.permute.xlu1 %4224 }
0x201c   :  { %13184 = vrsqrt.f32 %v3865_v2  ;;  %v3862_v50 = vmul.f32 0.03125, %v3858_v23 }
0x201d   :  { %v13181_v27 = vpop.eup %13180 }
0x201e   :  { %v13183_v47 = vpop.eup %13182  ;;  %v3872_v62 = vmul.f32 %v13181_v27, %v15206_v53  ;;  %v3866_v5 = vadd.f32 1e-05, %v3862_v50 }
0x201f   :  { %v3871_v48 = vmul.f32 %v13183_v47, %v15208_v17 }
0x2020   :  { %13186 = vrsqrt.f32 %v3866_v5  ;;  %v3882_v12 = vmul.f32 %v10147_v3, %v3872_v62 }
0x2021   :  { %v3881_v15 = vmul.f32 %v10147_v3, %v3871_v48 }
0x2022   :  { %v3892_v52 = vadd.f32 %v10148_v44, %v3882_v12  ;;  %v4324_v12 = vld [vmem:[%s16553_s17] sm:$0xff] }
0x2023   :  { %v3891_v16 = vadd.f32 %v10148_v44, %v3881_v15  ;;  %v12181_v37 = vpack.c.bf16 %v4325_v13, %v4324_v12  ;;  %v4326_v15 = vld [vmem:[%s16553_s17 + $0x10] sm:$0xff] }
0x2025   :  { %11318 = vmatprep.mubr.msk.f32.mxu1 %vm501_vm0, %v3891_v16 }
0x2026   :  { %v13185_v0 = vpop.eup %13184  ;;  %11319 = vmatmul.mubr.msk.f32.vlgmr.msra.gmra.mrb[52].mxu1 %vm501_vm0, %v3892_v52 }
0x2027   :  { %v3873_v54 = vmul.f32 %v13185_v0, %v15216_v11  ;;  %12177 = vmatpush3.bf16.msra.mxu1 %v12176_v63  ;;  %v10159_v11 = vld [vmem:[%s16551_s4 + $0x70] sm:$0xff] }
0x2028   :  { %12178 = vmatprep.subr.bf16.mxu1 %v14104_v34  ;;  %v12171_v31 = vpack.c.bf16 %v10160_v10, %v10159_v11 }
0x2029   :  { %v3883_v53 = vmul.f32 %v10147_v3, %v3873_v54 }
0x202a   :  { %v13187_v17 = vpop.eup %13186  ;;  %12172 = vmatprep.subr.bf16.mxu0 %v12171_v31 }
0x202b   :  { %v3893_v21 = vadd.f32 %v10148_v44, %v3883_v53  ;;  %v3874_v19 = vmul.f32 %v13187_v17, %v15220_v33  ;;  %12180 = vmatpush3.bf16.msra.mxu1 %v12179_v56  ;;  %12174 = vmatpush3.bf16.msra.mxu0 %v12171_v31 }
0x202c   :  { %12182 = vmatprep.subr.bf16.mxu1 %v12181_v37 }
0x202d   :  { %11321 = vmatprep.mubr.msk.f32.mxu1 %vm501_vm0, %v3893_v21  ;;  %v3884_v20 = vmul.f32 %v10147_v3, %v3874_v19 }
0x202f   :  { %v3894_v22 = vadd.f32 %v10148_v44, %v3884_v20 }
0x2031   :  { %11322 = vmatmul.mubr.msk.f32.gmra.mrb[54].mxu1 %vm501_vm0, %v3894_v22 }
0x2032   :  { %11354 = vmatprep.mubr.msk.f32.mxu1 %vm14105_vm6, %v14106_v59 }
0x2035   :  { %11355 = vmatmul.mubr.msk.f32.vlgmr.msra.gmra.mrb[56].mxu1 %vm501_vm0, %v4225_v28 }
0x2036   :  { %12184 = vmatpush3.bf16.msra.mxu1 %v12181_v37 }
0x20f9   :  { %v11320_v33 = vpop.f32.mrb[52].mxu1 }
0x20fa   :  { %v4003_v43 = vadd.f32 %v11320_v33, %v10161_v30  ;;  %v3997_v25 = vpop.f32.mrb[53].mxu1 }
0x20fb   :  { %v3998_v26 = vadd.f32 %v10161_v30, %v3997_v25 }
0x20fc   :  { %v4017_v36 = vmax.f32 %v4003_v43, 0.0 }
0x20fd   :  { %v4016_v39 = vmax.f32 %v3998_v26, 0.0 }
0x20ff   :  { %11340 = vmatprep.mubr.msk.f32.mxu0 %vm2163_vm5, %v4016_v39 }
0x2100   :  { %11341 = vmatmul.mubr.msk.f32.vlgmr.msra.gmra.mrb[44].mxu0 %vm2163_vm5, %v4017_v36 }
0x2104   :  { %v11323_v40 = vpop.f32.mrb[54].mxu1 }
0x2105   :  { %v4013_v24 = vadd.f32 %v11323_v40, %v10161_v30  ;;  %v4007_v55 = vpop.f32.mrb[55].mxu1 }
0x2106   :  { %v4008_v45 = vadd.f32 %v10161_v30, %v4007_v55 }
0x2107   :  { %v4019_v46 = vmax.f32 %v4013_v24, 0.0  ;;  %v4316_v24 = vlaneseq }
0x2108   :  { %v4018_v34 = vmax.f32 %v4008_v45, 0.0  ;;  %v4294_v32 = vpop.f32.mrb[56].mxu1 }
0x2109   :  { %v4295_v29 = vadd.f32 %v4294_v32, %v4218_v58  ;;  %v11356_v38 = vpop.f32.mrb[57].mxu1  ;;  %v4317_v55 = vshrl.u32 %v4316_v24, 7  ;;  %v4298_v58 = vld [vmem:[#allocation17] sm:$0x1]  ;;  %v4299_v32 = vld [vmem:[#allocation19] sm:$0x1] }
0x210a   :  { %11343 = vmatprep.mubr.msk.f32.mxu0 %vm2163_vm5, %v4018_v34 }
0x210b   :  { %11344 = vmatmul.mubr.msk.f32.gmra.mrb[46].mxu0 %vm2163_vm5, %v4019_v46  ;;  %v4301_v41 = vsel %vm4300_vm7, %v4295_v29, 0.0  ;;  %v4318_v46 = vsub.s32 0, %v4317_v55 }
0x210c   :  { %4302 = vadd.xlane.f32.xlu1 %v4301_v41  ;;  %v465_v41 = vld [vmem:[%s16554_s11] sm:$0xff] }
0x2199   :  { %v4303_v61 = vpop.xlane.xlu1 %4302 }
0x219a   :  { %v4304_v2 = vmul.f32 0.03125, %v4303_v61  ;;  %v15302_v61 = vld [vmem:[#allocation20] ss:$0 sm:$0xff] }
0x219c   :  { %v4305_v3 = vsub.f32 %v4295_v29, %v4304_v2 }
0x219e   :  { %v4306_v48 = vmul.f32 %v4305_v3, %v4305_v3 }
0x21a0   :  { %v4307_v44 = vsel %vm4300_vm7, %v4306_v48, 0.0 }
0x21d3   :  { %v11342_v18 = vpop.f32.mrb[44].mxu0 }
0x21d4   :  { %v4104_v57 = vpop.f32.mrb[45].mxu0  ;;  %v4110_v14 = vadd.f32 %v11342_v18, %v10166_v42 }
0x21d5   :  { %v4105_v4 = vadd.f32 %v10166_v42, %v4104_v57  ;;  %v467_v57 = vld [vmem:[%s16554_s11 + $0x10] sm:$0xff] }
0x21d6   :  { %v4128_v60 = vadd.f32 %v4110_v14, %v3892_v52  ;;  %v12796_v52 = vpack.i.bf16 %v4325_v13, %v4324_v12 }
0x21d7   :  { %v4127_v8 = vadd.f32 %v4105_v4, %v3891_v16  ;;  %v4327_v16 = vld [vmem:[%s16553_s17 + $0x18] sm:$0xff] }
0x21d8   :  { %v4134_v49 = vsel %vm501_vm0, %v4128_v60, 0.0  ;;  %v12185_v63 = vpack.c.bf16 %v4327_v16, %v4326_v15  ;;  %v12801_v6 = vpack.i.bf16 %v4327_v16, %v4326_v15 }
0x21d9   :  { %v4131_v9 = vsel %vm501_vm0, %v4127_v8, 0.0 }
0x21da   :  { %4132 = vadd.xlane.f32.xlu0 %v4131_v9  ;;  %12186 = vmatprep.subr.bf16.mxu1 %v12185_v63 }
0x21db   :  { %12188 = vmatpush3.bf16.msra.mxu1 %v12185_v63  ;;  %12802 = vrot.lane.b32.xlu1 %v12801_v6, %s14095_s0  ;;  %v10172_v63 = vld [vmem:[#allocation13 + $0x1] ss:$0 sm:$0xff] }
0x21de   :  { %4135 = vadd.xlane.f32.xlu0 %v4134_v49  ;;  %v11345_v1 = vpop.f32.mrb[46].mxu0 }
0x21df   :  { %v4114_v51 = vpop.f32.mrb[47].mxu0  ;;  %v4120_v23 = vadd.f32 %v11345_v1, %v10166_v42 }
0x21e0   :  { %v4115_v50 = vadd.f32 %v10166_v42, %v4114_v51  ;;  %v466_v42 = vld [vmem:[%s16554_s11 + $0x8] sm:$0xff] }
0x21e1   :  { %v4130_v47 = vadd.f32 %v4120_v23, %v3894_v22 }
0x21e2   :  { %v4129_v27 = vadd.f32 %v4115_v50, %v3893_v21 }
0x21e3   :  { %v4140_v5 = vsel %vm501_vm0, %v4130_v47, 0.0 }
0x21e4   :  { %v4137_v62 = vsel %vm501_vm0, %v4129_v27, 0.0 }
0x21e5   :  { %4138 = vadd.xlane.f32.xlu0 %v4137_v62 }
0x21e9   :  { %4141 = vadd.xlane.f32.xlu0 %v4140_v5 }
0x21ed   :  { %4308 = vadd.xlane.f32.xlu0 %v4307_v44  ;;  %v10171_v44 = vld [vmem:[#allocation11 + $0x1] ss:$0 sm:$0xff] }
0x224d   :  { %v12803_v48 = vpop.permute.xlu1 %12802 }
0x224e   :  { %v12805_v15 = vunpack.i.h.bf16 %v12803_v48  ;;  %v12804_v16 = vunpack.i.l.bf16 %v12803_v48 }
0x2267   :  { %v4133_v7 = vpop.xlane.xlu0 %4132 }
0x2268   :  { %v4143_v0 = vmul.f32 0.03125, %v4133_v7 }
0x226a   :  { %v15267_v53 = vsub.f32 %v4127_v8, %v4143_v0 }
0x226b   :  { %v4136_v54 = vpop.xlane.xlu0 %4135 }
0x226c   :  { %v4144_v56 = vmul.f32 0.03125, %v4136_v54  ;;  %v4151_v22 = vmul.f32 %v15267_v53, %v15267_v53 }
0x226e   :  { %v15269_v17 = vsub.f32 %v4128_v60, %v4144_v56  ;;  %v4155_v11 = vsel %vm501_vm0, %v4151_v22, 0.0  ;;  %v468_v60 = vld [vmem:[%s16554_s11 + $0x18] sm:$0xff] }
0x2270   :  { %v4152_v21 = vmul.f32 %v15269_v17, %v15269_v17 }
0x2272   :  { %v4139_v19 = vpop.xlane.xlu0 %4138  ;;  %v4158_v20 = vsel %vm501_vm0, %v4152_v21, 0.0 }
0x2273   :  { %4159 = vadd.xlane.f32.xlu0 %v4158_v20  ;;  %v4145_v28 = vmul.f32 0.03125, %v4139_v19 }
0x2275   :  { %v15277_v31 = vsub.f32 %v4129_v27, %v4145_v28 }
0x2276   :  { %v4142_v59 = vpop.xlane.xlu0 %4141 }
0x2277   :  { %v4146_v10 = vmul.f32 0.03125, %v4142_v59  ;;  %4156 = vadd.xlane.f32.xlu0 %v4155_v11  ;;  %v4153_v36 = vmul.f32 %v15277_v31, %v15277_v31 }
0x2279   :  { %v15279_v30 = vsub.f32 %v4130_v47, %v4146_v10  ;;  %v4161_v40 = vsel %vm501_vm0, %v4153_v36, 0.0  ;;  %v13459_v36 = vld [vmem:[%s16544_s18 + $0x8] sm:$0xff] }
0x227a   :  { %v4309_v33 = vpop.xlane.xlu0 %4308 }
0x227b   :  { %v4310_v43 = vmul.f32 0.03125, %v4309_v33  ;;  %v4154_v25 = vmul.f32 %v15279_v30, %v15279_v30 }
0x227d   :  { %v4311_v26 = vadd.f32 1e-05, %v4310_v43  ;;  %v4164_v39 = vsel %vm501_vm0, %v4154_v25, 0.0 }
0x227e   :  { %4165 = vadd.xlane.f32.xlu0 %v4164_v39 }
0x227f   :  { %13188 = vrsqrt.f32 %v4311_v26 }
0x2282   :  { %4162 = vadd.xlane.f32.xlu0 %v4161_v40 }
0x2289   :  { %v13189_v45 = vpop.eup %13188 }
0x228a   :  { %v4313_v34 = vmul.f32 %v13189_v45, %v4305_v3 }
0x228c   :  { %v4314_v29 = vmul.f32 %v4313_v34, %v4298_v58 }
0x228e   :  { %v4315_v38 = vadd.f32 %v4314_v29, %v4299_v32 }
0x2290   :  { %v15289_v18 = vrot.slane %v4315_v38, %v4318_v46 }
0x2292   :  { %v4320_v14 = vadd.f32 %v15289_v18, %v465_v41  ;;  %v4321_v4 = vadd.f32 %v15289_v18, %v466_v42  ;;  %v4322_v8 = vadd.f32 %v15289_v18, %v467_v57  ;;  %v4323_v9 = vadd.f32 %v15289_v18, %v468_v60  ;;  %v13461_v41 = vld [vmem:[%s16544_s18 + $0x18] sm:$0xff] }
0x2294   :  { %11365 = vmatprep.mubr.msk.f32.mxu1 %vm501_vm0, %v4320_v14 }
0x2295   :  { %11366 = vmatmul.mubr.msk.f32.vlgmr.msra.gmra.mrb[58].mxu1 %vm501_vm0, %v4321_v4 }
0x2296   :  { %11368 = vmatprep.mubr.msk.f32.mxu1 %vm501_vm0, %v4322_v8 }
0x2298   :  { %12797 = vrot.lane.b32.xlu0 %v12796_v52, %s14095_s0 }
0x2299   :  { %11369 = vmatmul.mubr.msk.f32.gmra.mrb[60].mxu1 %vm501_vm0, %v4323_v9 }
0x229c   :  { %4453 = vrot.lane.b32.xlu0 %v15302_v61, %s14095_s0 }
0x22a0   :  { %12807 = vrot.lane.b32.xlu0 %v12796_v52, %s14096_s8 }
0x22a4   :  { %12812 = vrot.lane.b32.xlu0 %v12801_v6, %s14096_s8 }
0x2300   :  { %v4160_v49 = vpop.xlane.xlu0 %4159 }
0x2301   :  { %v4168_v1 = vmul.f32 0.03125, %v4160_v49 }
0x2303   :  { %v4172_v51 = vadd.f32 1e-05, %v4168_v1 }
0x2304   :  { %v4157_v2 = vpop.xlane.xlu0 %4156 }
0x2305   :  { %13190 = vrsqrt.f32 %v4172_v51  ;;  %v4167_v23 = vmul.f32 0.03125, %v4157_v2 }
0x2307   :  { %v4171_v50 = vadd.f32 1e-05, %v4167_v23 }
0x2309   :  { %13192 = vrsqrt.f32 %v4171_v50 }
0x230b   :  { %v4166_v27 = vpop.xlane.xlu0 %4165 }
0x230c   :  { %v4170_v3 = vmul.f32 0.03125, %v4166_v27 }
0x230e   :  { %v4174_v47 = vadd.f32 1e-05, %v4170_v3 }
0x230f   :  { %v13191_v62 = vpop.eup %13190  ;;  %v4163_v5 = vpop.xlane.xlu0 %4162 }
0x2310   :  { %v4180_v12 = vmul.f32 %v13191_v62, %v15269_v17  ;;  %13194 = vrsqrt.f32 %v4174_v47  ;;  %v4169_v13 = vmul.f32 0.03125, %v4163_v5  ;;  %v12193_v17 = vpack.c.bf16 %v12805_v15, %v12804_v16 }
0x2312   :  { %v4173_v37 = vadd.f32 1e-05, %v4169_v13  ;;  %v4190_v52 = vmul.f32 %v10171_v44, %v4180_v12 }
0x2313   :  { %v13193_v6 = vpop.eup %13192  ;;  %v12798_v7 = vpop.permute.xlu0 %12797 }
0x2314   :  { %13196 = vrsqrt.f32 %v4173_v37  ;;  %v12800_v0 = vunpack.i.h.bf16 %v12798_v7  ;;  %v12799_v54 = vunpack.i.l.bf16 %v12798_v7  ;;  %v4179_v56 = vmul.f32 %v13193_v6, %v15267_v53  ;;  %v13458_v53 = vld [vmem:[%s16544_s18] sm:$0xff] }
0x2315   :  { %v15310_v21 = vadd.f32 %v10172_v63, %v4190_v52 }
0x2316   :  { %v12189_v19 = vpack.c.bf16 %v12800_v0, %v12799_v54  ;;  %v4189_v20 = vmul.f32 %v10171_v44, %v4179_v56  ;;  %v15407_v0 = vld [vmem:[%s16555_s25 + $0x8] sm:$0xff]  ;;  %v15410_v54 = vld [vmem:[%s16555_s25] sm:$0xff] }
0x2317   :  { %v15312_v22 = vpop.permute.xlu0 %4453  ;;  %4204 = vst.msk [vmem:[#allocation38 + $0x8] sm:$0xff] %vm501_vm0, %v15310_v21  ;;  %v15331_v40 = vadd.f32 %v13459_v36, %v15310_v21 }
0x2318   :  { %12190 = vmatprep.subr.bf16.mxu0 %v12189_v19  ;;  %v15316_v28 = vadd.f32 %v10172_v63, %v4189_v20 }
0x2319   :  { %12192 = vmatpush3.bf16.msra.mxu0 %v12189_v19 }
0x231a   :  { %v13195_v59 = vpop.eup %13194  ;;  %11393 = vmatprep.mubr.msk.f32.mxu1 %vm501_vm0, %v15316_v28  ;;  %4203 = vst.msk [vmem:[#allocation38] sm:$0xff] %vm501_vm0, %v15316_v28  ;;  %12194 = vmatprep.subr.bf16.mxu0 %v12193_v17  ;;  %v15324_v11 = vadd.f32 %v13458_v53, %v15316_v28  ;;  %v15419_v53 = vld [vmem:[%s16555_s25 + $0x10] sm:$0xff] }
0x231b   :  { %v4182_v10 = vmul.f32 %v13195_v59, %v15279_v30  ;;  %v12808_v33 = vpop.permute.xlu0 %12807 }
0x231c   :  { %v12810_v43 = vunpack.i.h.bf16 %v12808_v33  ;;  %v12809_v25 = vunpack.i.l.bf16 %v12808_v33  ;;  %11379 = vmatprep.mubr.msk.f32.mxu0 %vm501_vm0, %v15324_v11 }
0x231d   :  { %12196 = vmatpush3.bf16.msra.mxu0 %v12193_v17  ;;  %v4192_v26 = vmul.f32 %v10171_v44, %v4182_v10 }
0x231e   :  { %v13197_v39 = vpop.eup %13196  ;;  %v12197_v24 = vpack.c.bf16 %v12810_v43, %v12809_v25 }
0x231f   :  { %v4181_v55 = vmul.f32 %v13197_v39, %v15277_v31  ;;  %v12813_v45 = vpop.permute.xlu0 %12812  ;;  %v15334_v30 = vadd.f32 %v10172_v63, %v4192_v26  ;;  %v13460_v31 = vld [vmem:[%s16544_s18 + $0x10] sm:$0xff] }
0x2320   :  { %v12815_v58 = vunpack.i.h.bf16 %v12813_v45  ;;  %v12814_v34 = vunpack.i.l.bf16 %v12813_v45  ;;  %11380 = vmatmul.mubr.msk.f32.vlgmr.msra.gmra.mrb[48].mxu0 %vm501_vm0, %v15331_v40  ;;  %12198 = vmatprep.subr.bf16.mxu1 %v12197_v24 }
0x2321   :  { %12200 = vmatpush3.bf16.msra.mxu1 %v12197_v24  ;;  %v4191_v32 = vmul.f32 %v10171_v44, %v4181_v55  ;;  %4206 = vst.msk [vmem:[#allocation38 + $0x18] sm:$0xff] %vm501_vm0, %v15334_v30  ;;  %v15350_v42 = vadd.f32 %v13461_v41, %v15334_v30 }
0x2322   :  { %v12201_v46 = vpack.c.bf16 %v12815_v58, %v12814_v34 }
0x2323   :  { %v15340_v29 = vadd.f32 %v10172_v63, %v4191_v32 }
0x2324   :  { %12202 = vmatprep.subr.bf16.mxu1 %v12201_v46 }
0x2325   :  { %12204 = vmatpush3.bf16.msra.mxu1 %v12201_v46  ;;  %v15344_v38 = vadd.f32 %v13460_v31, %v15340_v29  ;;  %4205 = vst.msk [vmem:[#allocation38 + $0x10] sm:$0xff] %vm501_vm0, %v15340_v29 }
0x2327   :  { %11382 = vmatprep.mubr.msk.f32.mxu0 %vm501_vm0, %v15344_v38 }
0x2328   :  { %11383 = vmatmul.mubr.msk.f32.gmra.mrb[50].mxu0 %vm501_vm0, %v15350_v42  ;;  %11394 = vmatmul.mubr.msk.f32.vlgmr.msra.gmra.mrb[62].mxu1 %vm501_vm0, %v15310_v21 }
0x2329   :  { %11396 = vmatprep.mubr.msk.f32.mxu1 %vm501_vm0, %v15340_v29 }
0x232c   :  { %11397 = vmatmul.mubr.msk.f32.gmra.mrb[64].mxu1 %vm501_vm0, %v15334_v30 }
0x2368   :  { %v11367_v57 = vpop.f32.mrb[58].mxu1 }
0x2369   :  { %v4418_v14 = vpop.f32.mrb[59].mxu1  ;;  %v4424_v15 = vadd.f32 %v11367_v57, %v15302_v61 }
0x236a   :  { %v4419_v4 = vadd.f32 %v15302_v61, %v4418_v14 }
0x236b   :  { %v15393_v63 = vmul.f32 0.35355338, %v4424_v15 }
0x236c   :  { %v15363_v8 = vmul.f32 0.35355338, %v4419_v4  ;;  %v11370_v60 = vpop.f32.mrb[60].mxu1 }
0x236d   :  { %v4428_v9 = vpop.f32.mrb[61].mxu1  ;;  %v4434_v52 = vadd.f32 %v11370_v60, %v15302_v61 }
0x236e   :  { %11407 = vmatprep.mubr.msk.f32.mxu0 %vm731_vm1, %v15363_v8  ;;  %v4429_v16 = vadd.f32 %v15302_v61, %v4428_v9 }
0x236f   :  { %v15402_v7 = vmul.f32 0.35355338, %v4434_v52 }
0x2370   :  { %v15396_v6 = vmul.f32 0.35355338, %v4429_v16 }
0x23f3   :  { %v11381_v49 = vpop.f32.mrb[48].mxu0 }
0x23f4   :  { %v4540_v1 = vadd.f32 %v11381_v49, %v15312_v22  ;;  %v4534_v51 = vpop.f32.mrb[49].mxu0 }
0x23f5   :  { %v4535_v2 = vadd.f32 %v4534_v51, %v15312_v22 }
0x23f7   :  { %v12205_v23 = vpack.c.bf16 %v4540_v1, %v4535_v2  ;;  %v15369_v50 = vpack.i.bf16 %v4540_v1, %v4535_v2 }
0x23f9   :  { %12207 = vmatprep.subr.msk.bf16.mxu0 %vm14564_vm2, %v12205_v23 }
0x23fa   :  { %12210 = vmatpush3.bf16.xpose.msk.msra.mxu0 %vm14564_vm2, %v12205_v23 }
0x23fb   :  { %v11384_v27 = vpop.f32.mrb[50].mxu0  ;;  %v15375_v3 = vpop.f32.mrb[62].mxu1 }
0x23fc   :  { %v4550_v47 = vadd.f32 %v11384_v27, %v15312_v22  ;;  %v4544_v62 = vpop.f32.mrb[51].mxu0  ;;  %v15378_v5 = vpop.f32.mrb[63].mxu1 }
0x23fd   :  { %v4545_v48 = vadd.f32 %v4544_v62, %v15312_v22  ;;  %v15415_v22 = vld [vmem:[%s16555_s25 + $0x18] sm:$0xff] }
0x23ff   :  { %v15381_v44 = vpop.f32.mrb[64].mxu1  ;;  %v12211_v12 = vpack.c.bf16 %v4550_v47, %v4545_v48  ;;  %v15383_v13 = vpack.i.bf16 %v4550_v47, %v4545_v48 }
0x2400   :  { %v15385_v37 = vpop.f32.mrb[65].mxu1 }
0x2401   :  { %12213 = vmatprep.subr.msk.bf16.mxu0 %vm14564_vm2, %v12211_v12 }
0x2402   :  { %12216 = vmatpush3.bf16.xpose.msk.msra.mxu0 %vm14564_vm2, %v12211_v12 }
0x2409   :  { %11408 = vmatmul.mubr.msk.f32.vlgmr.msra.gmra.mrb[52].mxu0 %vm731_vm1, %v15393_v63 }
0x240a   :  { %11410 = vmatprep.mubr.msk.f32.mxu0 %vm731_vm1, %v15396_v6 }
0x240d   :  { %11411 = vmatmul.mubr.msk.f32.gmra.mrb[54].mxu0 %vm731_vm1, %v15402_v7 }
0x24dc   :  { %v11409_v56 = vpop.f32.mrb[52].mxu0 }
0x24dd   :  { %v4765_v19 = vadd.f32 %v11409_v56, %v15407_v0  ;;  %v4759_v20 = vpop.f32.mrb[53].mxu0 }
0x24de   :  { %v4760_v17 = vadd.f32 %v4759_v20, %v15410_v54 }
0x24df   :  { %v4781_v59 = vsel %vm501_vm0, %v4765_v19, -inf }
0x24e0   :  { %4782 = vmax.xlane.f32.xlu0 %v4781_v59  ;;  %v11412_v10 = vpop.f32.mrb[54].mxu0  ;;  %v4778_v33 = vsel %vm501_vm0, %v4760_v17, -inf }
0x24e1   :  { %v4775_v43 = vadd.f32 %v11412_v10, %v15415_v22  ;;  %v4769_v25 = vpop.f32.mrb[55].mxu0  ;;  %4779 = vmax.xlane.f32.xlu1 %v4778_v33 }
0x24e2   :  { %v4770_v26 = vadd.f32 %v4769_v25, %v15419_v53 }
0x24e3   :  { %v4787_v39 = vsel %vm501_vm0, %v4775_v43, -inf }
0x24e4   :  { %v4784_v36 = vsel %vm501_vm0, %v4770_v26, -inf }
0x24e5   :  { %4785 = vmax.xlane.f32.xlu0 %v4784_v36  ;;  %4788 = vmax.xlane.f32.xlu1 %v4787_v39 }
0x256d   :  { %v4783_v24 = vpop.xlane.xlu0 %4782 }
0x256e   :  { %v4791_v55 = vsub.f32 %v4765_v19, %v4783_v24  ;;  %v4780_v45 = vpop.xlane.xlu1 %4779 }
0x256f   :  { %v4790_v58 = vsub.f32 %v4760_v17, %v4780_v45 }
0x2570   :  { %v4796_v34 = vmul.f32 1.442695, %v4791_v55 }
0x2571   :  { %v4794_v32 = vmul.f32 1.442695, %v4790_v58 }
0x2572   :  { %13198 = vpow2.f32 %v4796_v34  ;;  %v4789_v14 = vpop.xlane.xlu1 %4788  ;;  %v4786_v60 = vpop.xlane.xlu0 %4785 }
0x2573   :  { %13200 = vpow2.f32 %v4794_v32  ;;  %v4793_v4 = vsub.f32 %v4775_v43, %v4789_v14  ;;  %v4792_v9 = vsub.f32 %v4770_v26, %v4786_v60 }
0x2575   :  { %v4800_v49 = vmul.f32 1.442695, %v4793_v4  ;;  %v4798_v1 = vmul.f32 1.442695, %v4792_v9 }
0x2577   :  { %13202 = vpow2.f32 %v4800_v49 }
0x2578   :  { %13204 = vpow2.f32 %v4798_v1 }
0x257c   :  { %v13199_v46 = vpop.eup %13198 }
0x257d   :  { %v13201_v31 = vpop.eup %13200  ;;  %v4805_v41 = vsel %vm501_vm0, %v13199_v46, 0.0 }
0x257e   :  { %4806 = vadd.xlane.f32.xlu1 %v4805_v41  ;;  %v4802_v57 = vsel %vm501_vm0, %v13201_v31, 0.0 }
0x257f   :  { %4803 = vadd.xlane.f32.xlu0 %v4802_v57 }
0x2581   :  { %v13203_v51 = vpop.eup %13202 }
0x2582   :  { %v13205_v2 = vpop.eup %13204 }
0x2583   :  { %v4808_v23 = vsel %vm501_vm0, %v13205_v2, 0.0 }
0x258f   :  { %12817 = vrot.lane.b32.xlu1 %v15369_v50, %s14098_s3 }
0x2595   :  { %4565 = vrot.lane.b32.xlu0 %v15302_v61, %s14096_s8  ;;  %v4811_v61 = vsel %vm501_vm0, %v13203_v51, 0.0 }
0x2599   :  { %12822 = vrot.lane.b32.xlu0 %v15383_v13, %s14098_s3 }
0x259d   :  { %4919 = vrot.lane.b32.xlu0 %v15363_v8, %s14098_s3 }
0x25a1   :  { %4923 = vrot.lane.b32.xlu0 %v15396_v6, %s14098_s3 }
0x25b3   :  { %4812 = vadd.xlane.f32.xlu1 %v4811_v61 }
0x25b7   :  { %4809 = vadd.xlane.f32.xlu1 %v4808_v23 }
0x25c8   :  { %4921 = vrot.lane.b32.xlu1 %v15393_v63, %s14098_s3 }
0x25cc   :  { %4925 = vrot.lane.b32.xlu1 %v15402_v7, %s14098_s3 }
0x260b   :  { %v4807_v27 = vpop.xlane.xlu1 %4806 }
0x260c   :  { %v4804_v47 = vpop.xlane.xlu0 %4803 }
0x260d   :  { %13206 = vrcp.f32 %v4804_v47 }
0x260e   :  { %13208 = vrcp.f32 %v4807_v27 }
0x260f   :  { %v12818_v52 = vpop.permute.xlu1 %12817 }
0x2610   :  { %v4566_v62 = vpop.permute.xlu0 %4565  ;;  %v12820_v59 = vunpack.i.h.bf16 %v12818_v52  ;;  %v12819_v10 = vunpack.i.l.bf16 %v12818_v52 }
0x2611   :  { %v4647_v48 = vadd.f32 %v15378_v5, %v4566_v62  ;;  %v4652_v12 = vadd.f32 %v15375_v3, %v4566_v62  ;;  %v4657_v15 = vadd.f32 %v15385_v37, %v4566_v62  ;;  %v4662_v16 = vadd.f32 %v15381_v44, %v4566_v62 }
0x2612   :  { %v12225_v3 = vpack.c.bf16 %v12820_v59, %v12819_v10 }
0x2613   :  { %v12217_v56 = vpack.c.bf16 %v4652_v12, %v4647_v48  ;;  %v12221_v19 = vpack.c.bf16 %v4662_v16, %v4657_v15  ;;  %v15448_v20 = vpack.i.bf16 %v4652_v12, %v4647_v48  ;;  %v15450_v17 = vpack.i.bf16 %v4662_v16, %v4657_v15 }
0x2614   :  { %v12823_v37 = vpop.permute.xlu0 %12822 }
0x2615   :  { %12218 = vmatprep.subr.bf16.mxu1 %v12217_v56  ;;  %v12825_v25 = vunpack.i.h.bf16 %v12823_v37  ;;  %v12824_v26 = vunpack.i.l.bf16 %v12823_v37 }
0x2616   :  { %12220 = vmatpush3.bf16.msra.mxu1 %v12217_v56 }
0x2617   :  { %v13207_v33 = vpop.eup %13206  ;;  %12222 = vmatprep.subr.bf16.mxu1 %v12221_v19  ;;  %v12231_v39 = vpack.c.bf16 %v12825_v25, %v12824_v26 }
0x2618   :  { %v13209_v5 = vpop.eup %13208  ;;  %v4818_v43 = vmul.f32 %v13207_v33, %v13201_v31  ;;  %v4920_v34 = vpop.permute.xlu0 %4919 }
0x2619   :  { %v4819_v44 = vmul.f32 %v13209_v5, %v13199_v46 }
0x261a   :  { %12224 = vmatpush3.bf16.msra.mxu1 %v12221_v19  ;;  %11421 = vmatprep.mubr.msk.f32.mxu1 %vm501_vm0, %v4818_v43 }
0x261b   :  { %12227 = vmatprep.subr.msk.bf16.mxu1 %vm14564_vm2, %v12225_v3 }
0x261c   :  { %v4924_v31 = vpop.permute.xlu0 %4923 }
0x261d   :  { %11422 = vmatmul.mubr.msk.f32.vlgmr.msra.gmra.mrb[66].mxu1 %vm501_vm0, %v4819_v44 }
0x2623   :  { %12230 = vmatpush3.bf16.xpose.msk.msra.mxu1 %vm14564_vm2, %v12225_v3 }
0x2624   :  { %12233 = vmatprep.subr.msk.bf16.mxu1 %vm14564_vm2, %v12231_v39 }
0x262b   :  { %12236 = vmatpush3.bf16.xpose.msk.msra.mxu1 %vm14564_vm2, %v12231_v39 }
0x2640   :  { %v4813_v36 = vpop.xlane.xlu1 %4812 }
0x2641   :  { %13210 = vrcp.f32 %v4813_v36 }
0x2644   :  { %v4810_v24 = vpop.xlane.xlu1 %4809 }
0x2645   :  { %13212 = vrcp.f32 %v4810_v24 }
0x2648   :  { %v4922_v46 = vpop.permute.xlu1 %4921 }
0x264b   :  { %v13211_v55 = vpop.eup %13210 }
0x264c   :  { %v4821_v32 = vmul.f32 %v13211_v55, %v13203_v51  ;;  %v4926_v41 = vpop.permute.xlu1 %4925 }
0x264f   :  { %v13213_v45 = vpop.eup %13212 }
0x2650   :  { %v4820_v58 = vmul.f32 %v13213_v45, %v13205_v2 }
0x2652   :  { %11424 = vmatprep.mubr.msk.f32.mxu1 %vm501_vm0, %v4820_v58 }
0x2653   :  { %11425 = vmatmul.mubr.msk.f32.gmra.mrb[68].mxu1 %vm501_vm0, %v4821_v32 }
0x2654   :  { %11435 = vmatprep.mubr.msk.f32.mxu1 %vm731_vm1, %v4920_v34 }
0x2657   :  { %11436 = vmatmul.mubr.msk.f32.vlgmr.msra.gmra.mrb[70].mxu1 %vm731_vm1, %v4922_v46 }
0x2658   :  { %11438 = vmatprep.mubr.msk.f32.mxu1 %vm731_vm1, %v4924_v31 }
0x265b   :  { %11439 = vmatmul.mubr.msk.f32.gmra.mrb[72].mxu1 %vm731_vm1, %v4926_v41 }
0x26f0   :  { %v15468_v57 = vpop.f32.mrb[66].mxu1 }
0x26f1   :  { %v15470_v14 = vpop.f32.mrb[67].mxu1 }
0x2726   :  { %v15472_v4 = vpop.f32.mrb[68].mxu1 }
0x2727   :  { %v15474_v60 = vpop.f32.mrb[69].mxu1 }
0x272a   :  { %v11437_v9 = vpop.f32.mrb[70].mxu1 }
0x272b   :  { %v5023_v49 = vadd.f32 %v11437_v9, %v15407_v0  ;;  %v5017_v1 = vpop.f32.mrb[71].mxu1 }
0x272c   :  { %v5018_v51 = vadd.f32 %v5017_v1, %v15410_v54 }
0x272d   :  { %v5039_v61 = vsel %vm501_vm0, %v5023_v49, -inf }
0x272e   :  { %5040 = vmax.xlane.f32.xlu1 %v5039_v61  ;;  %v11440_v2 = vpop.f32.mrb[72].mxu1  ;;  %v5036_v23 = vsel %vm501_vm0, %v5018_v51, -inf }
0x272f   :  { %v5027_v27 = vpop.f32.mrb[73].mxu1  ;;  %5037 = vmax.xlane.f32.xlu0 %v5036_v23  ;;  %v5033_v62 = vadd.f32 %v11440_v2, %v15415_v22 }
0x2730   :  { %v5028_v47 = vadd.f32 %v5027_v27, %v15419_v53 }
0x2731   :  { %v5045_v12 = vsel %vm501_vm0, %v5033_v62, -inf }
0x2732   :  { %v5042_v48 = vsel %vm501_vm0, %v5028_v47, -inf }
0x2733   :  { %5043 = vmax.xlane.f32.xlu0 %v5042_v48 }
0x2737   :  { %5046 = vmax.xlane.f32.xlu0 %v5045_v12 }
0x273f   :  { %12827 = vrot.lane.b32.xlu1 %v15448_v20, %s14098_s3 }
0x2743   :  { %12837 = vrot.lane.b32.xlu1 %v15369_v50, %s14100_s23 }
0x27bb   :  { %v5041_v15 = vpop.xlane.xlu1 %5040 }
0x27bc   :  { %v5049_v16 = vsub.f32 %v5023_v49, %v5041_v15  ;;  %v5038_v52 = vpop.xlane.xlu0 %5037 }
0x27bd   :  { %v5048_v56 = vsub.f32 %v5018_v51, %v5038_v52 }
0x27be   :  { %v5054_v19 = vmul.f32 1.442695, %v5049_v16 }
0x27bf   :  { %v5052_v59 = vmul.f32 1.442695, %v5048_v56  ;;  %v12828_v10 = vpop.permute.xlu1 %12827 }
0x27c0   :  { %13214 = vpow2.f32 %v5054_v19  ;;  %v12830_v33 = vunpack.i.h.bf16 %v12828_v10  ;;  %v12829_v5 = vunpack.i.l.bf16 %v12828_v10  ;;  %v5044_v26 = vpop.xlane.xlu0 %5043 }
0x27c1   :  { %13216 = vpow2.f32 %v5052_v59  ;;  %v5050_v24 = vsub.f32 %v5028_v47, %v5044_v26 }
0x27c2   :  { %v12237_v43 = vpack.c.bf16 %v12830_v33, %v12829_v5 }
0x27c3   :  { %v5056_v45 = vmul.f32 1.442695, %v5050_v24  ;;  %v12838_v31 = vpop.permute.xlu1 %12837 }
0x27c4   :  { %12238 = vmatprep.subr.bf16.mxu0 %v12237_v43  ;;  %v5047_v39 = vpop.xlane.xlu0 %5046  ;;  %v12840_v1 = vunpack.i.h.bf16 %v12838_v31  ;;  %v12839_v51 = vunpack.i.l.bf16 %v12838_v31 }
0x27c5   :  { %12240 = vmatpush3.bf16.msra.mxu0 %v12237_v43  ;;  %v5051_v36 = vsub.f32 %v5033_v62, %v5047_v39 }
0x27c6   :  { %v12245_v27 = vpack.c.bf16 %v12840_v1, %v12839_v51 }
0x27c7   :  { %v5058_v55 = vmul.f32 1.442695, %v5051_v36 }
0x27c9   :  { %13218 = vpow2.f32 %v5058_v55 }
0x27ca   :  { %v13215_v3 = vpop.eup %13214  ;;  %13220 = vpow2.f32 %v5056_v45 }
0x27cb   :  { %v13217_v44 = vpop.eup %13216  ;;  %v5063_v37 = vsel %vm501_vm0, %v13215_v3, 0.0 }
0x27cc   :  { %5064 = vadd.xlane.f32.xlu0 %v5063_v37  ;;  %v5060_v25 = vsel %vm501_vm0, %v13217_v44, 0.0 }
0x27cd   :  { %5061 = vadd.xlane.f32.xlu1 %v5060_v25 }
0x27d3   :  { %v13219_v58 = vpop.eup %13218 }
0x27d4   :  { %v13221_v34 = vpop.eup %13220  ;;  %v5069_v32 = vsel %vm501_vm0, %v13219_v58, 0.0 }
0x27d5   :  { %v5066_v46 = vsel %vm501_vm0, %v13221_v34, 0.0 }
0x27de   :  { %12842 = vrot.lane.b32.xlu1 %v15383_v13, %s14100_s23 }
0x27e2   :  { %12832 = vrot.lane.b32.xlu0 %v15450_v17, %s14098_s3 }
0x2801   :  { %5070 = vadd.xlane.f32.xlu0 %v5069_v32 }
0x2802   :  { %5067 = vadd.xlane.f32.xlu1 %v5066_v46 }
0x2813   :  { %5195 = vrot.lane.b32.xlu1 %v15393_v63, %s14100_s23 }
0x2817   :  { %5199 = vrot.lane.b32.xlu1 %v15402_v7, %s14100_s23  ;;  %5193 = vrot.lane.b32.xlu0 %v15363_v8, %s14100_s23 }
0x281b   :  { %5197 = vrot.lane.b32.xlu0 %v15396_v6, %s14100_s23 }
0x2859   :  { %v5065_v41 = vpop.xlane.xlu0 %5064 }
0x285a   :  { %13222 = vrcp.f32 %v5065_v41  ;;  %v5062_v9 = vpop.xlane.xlu1 %5061 }
0x285b   :  { %13224 = vrcp.f32 %v5062_v9 }
0x285d   :  { %v12833_v49 = vpop.permute.xlu0 %12832 }
0x285e   :  { %v12835_v61 = vunpack.i.h.bf16 %v12833_v49  ;;  %v12834_v2 = vunpack.i.l.bf16 %v12833_v49  ;;  %v12843_v62 = vpop.permute.xlu1 %12842 }
0x285f   :  { %v12845_v16 = vunpack.i.h.bf16 %v12843_v62  ;;  %v12844_v52 = vunpack.i.l.bf16 %v12843_v62 }
0x2860   :  { %v12241_v23 = vpack.c.bf16 %v12835_v61, %v12834_v2 }
0x2861   :  { %v12251_v56 = vpack.c.bf16 %v12845_v16, %v12844_v52 }
0x2862   :  { %12242 = vmatprep.subr.bf16.mxu0 %v12241_v23 }
0x2863   :  { %12244 = vmatpush3.bf16.msra.mxu0 %v12241_v23 }
0x2864   :  { %v13223_v47 = vpop.eup %13222  ;;  %12247 = vmatprep.subr.msk.bf16.mxu0 %vm14564_vm2, %v12245_v27 }
0x2865   :  { %v13225_v48 = vpop.eup %13224  ;;  %v5077_v15 = vmul.f32 %v13223_v47, %v13215_v3 }
0x2866   :  { %v5076_v12 = vmul.f32 %v13225_v48, %v13217_v44 }
0x2868   :  { %11449 = vmatprep.mubr.msk.f32.mxu0 %vm501_vm0, %v5076_v12 }
0x2869   :  { %11450 = vmatmul.mubr.msk.f32.vlgmr.msra.gmra.mrb[56].mxu0 %vm501_vm0, %v5077_v15 }
0x286c   :  { %12250 = vmatpush3.bf16.xpose.msk.msra.mxu0 %vm14564_vm2, %v12245_v27 }
0x286d   :  { %12253 = vmatprep.subr.msk.bf16.mxu0 %vm14564_vm2, %v12251_v56 }
0x2874   :  { %12256 = vmatpush3.bf16.xpose.msk.msra.mxu0 %vm14564_vm2, %v12251_v56 }
0x288e   :  { %v5071_v19 = vpop.xlane.xlu0 %5070 }
0x288f   :  { %13226 = vrcp.f32 %v5071_v19  ;;  %v5068_v59 = vpop.xlane.xlu1 %5067 }
0x2890   :  { %13228 = vrcp.f32 %v5068_v59 }
0x2892   :  { %v5194_v43 = vpop.permute.xlu0 %5193 }
0x2893   :  { %v5196_v44 = vpop.permute.xlu1 %5195 }
0x2896   :  { %v5198_v37 = vpop.permute.xlu0 %5197 }
0x2897   :  { %v5200_v25 = vpop.permute.xlu1 %5199 }
0x2899   :  { %v13227_v10 = vpop.eup %13226 }
0x289a   :  { %v13229_v33 = vpop.eup %13228  ;;  %v5079_v3 = vmul.f32 %v13227_v10, %v13219_v58 }
0x289b   :  { %v5078_v5 = vmul.f32 %v13229_v33, %v13221_v34 }
0x289d   :  { %11452 = vmatprep.mubr.msk.f32.mxu0 %vm501_vm0, %v5078_v5 }
0x289e   :  { %11453 = vmatmul.mubr.msk.f32.gmra.mrb[58].mxu0 %vm501_vm0, %v5079_v3 }
0x289f   :  { %11463 = vmatprep.mubr.msk.f32.mxu0 %vm731_vm1, %v5194_v43 }
0x28a2   :  { %11464 = vmatmul.mubr.msk.f32.vlgmr.msra.gmra.mrb[60].mxu0 %vm731_vm1, %v5196_v44 }
0x28a3   :  { %11466 = vmatprep.mubr.msk.f32.mxu0 %vm731_vm1, %v5198_v37 }
0x28a6   :  { %11467 = vmatmul.mubr.msk.f32.gmra.mrb[62].mxu0 %vm731_vm1, %v5200_v25 }
0x293c   :  { %v15520_v26 = vpop.f32.mrb[56].mxu0 }
0x293d   :  { %v15522_v39 = vpop.f32.mrb[57].mxu0 }
0x2971   :  { %v15524_v36 = vpop.f32.mrb[58].mxu0 }
0x2972   :  { %v15526_v24 = vpop.f32.mrb[59].mxu0 }
0x2975   :  { %v11465_v55 = vpop.f32.mrb[60].mxu0 }
0x2976   :  { %v5297_v45 = vadd.f32 %v11465_v55, %v15407_v0  ;;  %v5291_v58 = vpop.f32.mrb[61].mxu0 }
0x2977   :  { %v5292_v34 = vadd.f32 %v5291_v58, %v15410_v54 }
0x2978   :  { %v5313_v32 = vsel %vm501_vm0, %v5297_v45, -inf }
0x2979   :  { %5314 = vmax.xlane.f32.xlu1 %v5313_v32  ;;  %v11468_v46 = vpop.f32.mrb[62].mxu0  ;;  %v5310_v31 = vsel %vm501_vm0, %v5292_v34, -inf }
0x297a   :  { %v5301_v41 = vpop.f32.mrb[63].mxu0  ;;  %5311 = vmax.xlane.f32.xlu0 %v5310_v31  ;;  %v5307_v49 = vadd.f32 %v11468_v46, %v15415_v22 }
0x297b   :  { %v5302_v9 = vadd.f32 %v5301_v41, %v15419_v53 }
0x297c   :  { %v5319_v51 = vsel %vm501_vm0, %v5307_v49, -inf }
0x297d   :  { %v5316_v1 = vsel %vm501_vm0, %v5302_v9, -inf }
0x297e   :  { %5317 = vmax.xlane.f32.xlu0 %v5316_v1 }
0x2982   :  { %5320 = vmax.xlane.f32.xlu0 %v5319_v51 }
0x298a   :  { %12847 = vrot.lane.b32.xlu1 %v15448_v20, %s14100_s23 }
0x298e   :  { %12857 = vrot.lane.b32.xlu1 %v15369_v50, %s14102_s26 }
0x2a06   :  { %v5315_v61 = vpop.xlane.xlu1 %5314 }
0x2a07   :  { %v5323_v2 = vsub.f32 %v5297_v45, %v5315_v61  ;;  %v5312_v23 = vpop.xlane.xlu0 %5311 }
0x2a08   :  { %v5322_v27 = vsub.f32 %v5292_v34, %v5312_v23 }
0x2a09   :  { %v5328_v47 = vmul.f32 1.442695, %v5323_v2 }
0x2a0a   :  { %v5326_v62 = vmul.f32 1.442695, %v5322_v27  ;;  %v12848_v48 = vpop.permute.xlu1 %12847 }
0x2a0b   :  { %13230 = vpow2.f32 %v5328_v47  ;;  %v12850_v12 = vunpack.i.h.bf16 %v12848_v48  ;;  %v12849_v15 = vunpack.i.l.bf16 %v12848_v48  ;;  %v5318_v59 = vpop.xlane.xlu0 %5317 }
0x2a0c   :  { %13232 = vpow2.f32 %v5326_v62  ;;  %v5324_v5 = vsub.f32 %v5302_v9, %v5318_v59 }
0x2a0d   :  { %v12257_v16 = vpack.c.bf16 %v12850_v12, %v12849_v15 }
0x2a0e   :  { %v5330_v3 = vmul.f32 1.442695, %v5324_v5 }
0x2a0f   :  { %12258 = vmatprep.subr.bf16.mxu1 %v12257_v16  ;;  %v5321_v10 = vpop.xlane.xlu0 %5320 }
0x2a10   :  { %12260 = vmatpush3.bf16.msra.mxu1 %v12257_v16  ;;  %v5325_v33 = vsub.f32 %v5307_v49, %v5321_v10 }
0x2a12   :  { %v5332_v43 = vmul.f32 1.442695, %v5325_v33 }
0x2a14   :  { %13234 = vpow2.f32 %v5332_v43 }
0x2a15   :  { %v13231_v52 = vpop.eup %13230  ;;  %13236 = vpow2.f32 %v5330_v3 }
0x2a16   :  { %v13233_v56 = vpop.eup %13232  ;;  %v5337_v19 = vsel %vm501_vm0, %v13231_v52, 0.0 }
0x2a17   :  { %5338 = vadd.xlane.f32.xlu0 %v5337_v19  ;;  %v5334_v50 = vsel %vm501_vm0, %v13233_v56, 0.0 }
0x2a18   :  { %5335 = vadd.xlane.f32.xlu1 %v5334_v50 }
0x2a1e   :  { %v13235_v44 = vpop.eup %13234 }
0x2a1f   :  { %v13237_v37 = vpop.eup %13236  ;;  %v5343_v25 = vsel %vm501_vm0, %v13235_v44, 0.0 }
0x2a20   :  { %v5340_v55 = vsel %vm501_vm0, %v13237_v37, 0.0 }
0x2a29   :  { %12862 = vrot.lane.b32.xlu1 %v15383_v13, %s14102_s26  ;;  %v12858_v13 = vpop.permute.xlu1 %12857 }
0x2a2a   :  { %v12860_v32 = vunpack.i.h.bf16 %v12858_v13  ;;  %v12859_v46 = vunpack.i.l.bf16 %v12858_v13 }
0x2a2c   :  { %v12265_v9 = vpack.c.bf16 %v12860_v32, %v12859_v46 }
0x2a2d   :  { %12852 = vrot.lane.b32.xlu0 %v15450_v17, %s14100_s23 }
0x2a4c   :  { %5344 = vadd.xlane.f32.xlu0 %v5343_v25 }
0x2a4d   :  { %5341 = vadd.xlane.f32.xlu1 %v5340_v55 }
0x2a5e   :  { %5465 = vrot.lane.b32.xlu1 %v15393_v63, %s14102_s26 }
0x2a62   :  { %5469 = vrot.lane.b32.xlu1 %v15402_v7, %s14102_s26  ;;  %5463 = vrot.lane.b32.xlu0 %v15363_v8, %s14102_s26 }
0x2a66   :  { %5467 = vrot.lane.b32.xlu0 %v15396_v6, %s14102_s26 }
0x2aa4   :  { %v5339_v45 = vpop.xlane.xlu0 %5338 }
0x2aa5   :  { %13238 = vrcp.f32 %v5339_v45  ;;  %v5336_v58 = vpop.xlane.xlu1 %5335 }
0x2aa6   :  { %13240 = vrcp.f32 %v5336_v58 }
0x2aa8   :  { %v12853_v34 = vpop.permute.xlu0 %12852 }
0x2aa9   :  { %v12855_v31 = vunpack.i.h.bf16 %v12853_v34  ;;  %v12854_v41 = vunpack.i.l.bf16 %v12853_v34  ;;  %v12863_v49 = vpop.permute.xlu1 %12862 }
0x2aaa   :  { %v12865_v51 = vunpack.i.h.bf16 %v12863_v49  ;;  %v12864_v61 = vunpack.i.l.bf16 %v12863_v49 }
0x2aab   :  { %v12261_v63 = vpack.c.bf16 %v12855_v31, %v12854_v41 }
0x2aac   :  { %v12271_v2 = vpack.c.bf16 %v12865_v51, %v12864_v61 }
0x2aad   :  { %12262 = vmatprep.subr.bf16.mxu1 %v12261_v63 }
0x2aae   :  { %12264 = vmatpush3.bf16.msra.mxu1 %v12261_v63 }
0x2aaf   :  { %v13239_v7 = vpop.eup %13238  ;;  %12267 = vmatprep.subr.msk.bf16.mxu1 %vm14564_vm2, %v12265_v9 }
0x2ab0   :  { %v13241_v8 = vpop.eup %13240  ;;  %v5351_v1 = vmul.f32 %v13239_v7, %v13231_v52 }
0x2ab1   :  { %v5350_v6 = vmul.f32 %v13241_v8, %v13233_v56 }
0x2ab3   :  { %11477 = vmatprep.mubr.msk.f32.mxu1 %vm501_vm0, %v5350_v6 }
0x2ab4   :  { %11478 = vmatmul.mubr.msk.f32.vlgmr.msra.gmra.mrb[74].mxu1 %vm501_vm0, %v5351_v1 }
0x2ab7   :  { %12270 = vmatpush3.bf16.xpose.msk.msra.mxu1 %vm14564_vm2, %v12265_v9 }
0x2ab8   :  { %12273 = vmatprep.subr.msk.bf16.mxu1 %vm14564_vm2, %v12271_v2 }
0x2abf   :  { %12276 = vmatpush3.bf16.xpose.msk.msra.mxu1 %vm14564_vm2, %v12271_v2 }
0x2ad9   :  { %v5345_v23 = vpop.xlane.xlu0 %5344 }
0x2ada   :  { %13242 = vrcp.f32 %v5345_v23  ;;  %v5342_v27 = vpop.xlane.xlu1 %5341 }
0x2adb   :  { %13244 = vrcp.f32 %v5342_v27 }
0x2add   :  { %v5464_v12 = vpop.permute.xlu0 %5463 }
0x2ade   :  { %v5466_v16 = vpop.permute.xlu1 %5465 }
0x2ae1   :  { %v5468_v52 = vpop.permute.xlu0 %5467 }
0x2ae2   :  { %v5470_v56 = vpop.permute.xlu1 %5469 }
0x2ae4   :  { %v13243_v47 = vpop.eup %13242 }
0x2ae5   :  { %v13245_v62 = vpop.eup %13244  ;;  %v5353_v15 = vmul.f32 %v13243_v47, %v13235_v44 }
0x2ae6   :  { %v5352_v48 = vmul.f32 %v13245_v62, %v13237_v37 }
0x2ae8   :  { %11480 = vmatprep.mubr.msk.f32.mxu1 %vm501_vm0, %v5352_v48 }
0x2ae9   :  { %11481 = vmatmul.mubr.msk.f32.gmra.mrb[76].mxu1 %vm501_vm0, %v5353_v15 }
0x2aea   :  { %11491 = vmatprep.mubr.msk.f32.mxu1 %vm731_vm1, %v5464_v12 }
0x2aed   :  { %11492 = vmatmul.mubr.msk.f32.vlgmr.msra.gmra.mrb[78].mxu1 %vm731_vm1, %v5466_v16 }
0x2aee   :  { %11494 = vmatprep.mubr.msk.f32.mxu1 %vm731_vm1, %v5468_v52 }
0x2af1   :  { %11495 = vmatmul.mubr.msk.f32.gmra.mrb[80].mxu1 %vm731_vm1, %v5470_v56 }
0x2b87   :  { %v11479_v19 = vpop.f32.mrb[74].mxu1 }
0x2b88   :  { %v5444_v50 = vpop.f32.mrb[75].mxu1 }
0x2bbc   :  { %v15572_v59 = vpop.f32.mrb[76].mxu1 }
0x2bbd   :  { %v15574_v10 = vpop.f32.mrb[77].mxu1 }
0x2bc0   :  { %v11493_v33 = vpop.f32.mrb[78].mxu1 }
0x2bc1   :  { %v5567_v5 = vadd.f32 %v11493_v33, %v15407_v0  ;;  %v5561_v43 = vpop.f32.mrb[79].mxu1 }
0x2bc2   :  { %v5562_v3 = vadd.f32 %v5561_v43, %v15410_v54 }
0x2bc3   :  { %v5583_v44 = vsel %vm501_vm0, %v5567_v5, -inf }
0x2bc4   :  { %5584 = vmax.xlane.f32.xlu1 %v5583_v44  ;;  %v11496_v37 = vpop.f32.mrb[80].mxu1  ;;  %v5580_v25 = vsel %vm501_vm0, %v5562_v3, -inf  ;;  %v4329_v44 = vld [vmem:[#allocation22] sm:$0xff] }
0x2bc5   :  { %v5571_v55 = vpop.f32.mrb[81].mxu1  ;;  %5581 = vmax.xlane.f32.xlu0 %v5580_v25  ;;  %v5577_v45 = vadd.f32 %v11496_v37, %v15415_v22  ;;  %v4330_v37 = vld [vmem:[#allocation22 + $0x8] sm:$0xff]  ;;  %v4331_v25 = vld [vmem:[#allocation22 + $0x10] sm:$0xff] }
0x2bc6   :  { %v5572_v13 = vadd.f32 %v5571_v55, %v15419_v53  ;;  %v12285_v55 = vpack.c.bf16 %v4330_v37, %v4329_v44 }
0x2bc7   :  { %v5589_v0 = vsel %vm501_vm0, %v5577_v45, -inf }
0x2bc8   :  { %v5586_v58 = vsel %vm501_vm0, %v5572_v13, -inf }
0x2bc9   :  { %5587 = vmax.xlane.f32.xlu0 %v5586_v58 }
0x2bcd   :  { %5590 = vmax.xlane.f32.xlu0 %v5589_v0 }
0x2c51   :  { %v5585_v34 = vpop.xlane.xlu1 %5584 }
0x2c52   :  { %v5593_v54 = vsub.f32 %v5567_v5, %v5585_v34  ;;  %v5582_v32 = vpop.xlane.xlu0 %5581 }
0x2c53   :  { %v5592_v46 = vsub.f32 %v5562_v3, %v5582_v32 }
0x2c54   :  { %v5598_v31 = vmul.f32 1.442695, %v5593_v54 }
0x2c55   :  { %v5596_v41 = vmul.f32 1.442695, %v5592_v46 }
0x2c56   :  { %13246 = vpow2.f32 %v5598_v31  ;;  %v5588_v63 = vpop.xlane.xlu0 %5587 }
0x2c57   :  { %13248 = vpow2.f32 %v5596_v41  ;;  %v5594_v9 = vsub.f32 %v5572_v13, %v5588_v63  ;;  %v4332_v13 = vld [vmem:[#allocation22 + $0x18] sm:$0xff] }
0x2c59   :  { %v5600_v7 = vmul.f32 1.442695, %v5594_v9 }
0x2c5a   :  { %v5591_v53 = vpop.xlane.xlu0 %5590 }
0x2c5b   :  { %13250 = vpow2.f32 %v5600_v7  ;;  %v5595_v22 = vsub.f32 %v5577_v45, %v5591_v53  ;;  %v12289_v45 = vpack.c.bf16 %v4332_v13, %v4331_v25 }
0x2c5d   :  { %v5602_v49 = vmul.f32 1.442695, %v5595_v22 }
0x2c5f   :  { %13252 = vpow2.f32 %v5602_v49 }
0x2c60   :  { %v13247_v8 = vpop.eup %13246 }
0x2c61   :  { %v13249_v6 = vpop.eup %13248  ;;  %v5607_v1 = vsel %vm501_vm0, %v13247_v8, 0.0 }
0x2c62   :  { %5608 = vadd.xlane.f32.xlu0 %v5607_v1  ;;  %v5604_v51 = vsel %vm501_vm0, %v13249_v6, 0.0 }
0x2c63   :  { %5605 = vadd.xlane.f32.xlu1 %v5604_v51 }
0x2c65   :  { %v13251_v61 = vpop.eup %13250 }
0x2c66   :  { %v5610_v2 = vsel %vm501_vm0, %v13251_v61, 0.0 }
0x2c67   :  { %5611 = vadd.xlane.f32.xlu1 %v5610_v2 }
0x2c69   :  { %v13253_v23 = vpop.eup %13252 }
0x2c6a   :  { %v5613_v27 = vsel %vm501_vm0, %v13253_v23, 0.0 }
0x2c6b   :  { %5614 = vadd.xlane.f32.xlu0 %v5613_v27 }
0x2c78   :  { %12867 = vrot.lane.b32.xlu1 %v15448_v20, %s14102_s26 }
0x2c7c   :  { %5737 = vrot.lane.b32.xlu1 %v15522_v39, %s14089_s14 }
0x2c80   :  { %5739 = vrot.lane.b32.xlu1 %v15520_v26, %s14089_s14 }
0x2c81   :  { %12872 = vrot.lane.b32.xlu0 %v15450_v17, %s14102_s26 }
0x2c84   :  { %5755 = vrot.lane.b32.xlu1 %v11479_v19, %s14071_s2 }
0x2c85   :  { %5753 = vrot.lane.b32.xlu0 %v5444_v50, %s14071_s2 }
0x2c88   :  { %5743 = vrot.lane.b32.xlu1 %v15524_v36, %s14089_s14 }
0x2c89   :  { %5741 = vrot.lane.b32.xlu0 %v15526_v24, %s14089_s14 }
0x2cef   :  { %v5609_v47 = vpop.xlane.xlu0 %5608 }
0x2cf0   :  { %v5606_v20 = vpop.xlane.xlu1 %5605 }
0x2cf1   :  { %13254 = vrcp.f32 %v5606_v20 }
0x2cf2   :  { %13256 = vrcp.f32 %v5609_v47 }
0x2cf4   :  { %v5612_v39 = vpop.xlane.xlu1 %5611 }
0x2cf5   :  { %13258 = vrcp.f32 %v5612_v39  ;;  %v10236_v39 = vld [vmem:[#allocation23] ss:$0 sm:$0xff] }
0x2cf8   :  { %v12868_v26 = vpop.permute.xlu1 %12867  ;;  %v5615_v62 = vpop.xlane.xlu0 %5614 }
0x2cf9   :  { %v12870_v48 = vunpack.i.h.bf16 %v12868_v26  ;;  %v12869_v17 = vunpack.i.l.bf16 %v12868_v26  ;;  %13260 = vrcp.f32 %v5615_v62 }
0x2cfb   :  { %v13255_v12 = vpop.eup %13254  ;;  %v12277_v15 = vpack.c.bf16 %v12870_v48, %v12869_v17 }
0x2cfc   :  { %v12873_v16 = vpop.permute.xlu0 %12872  ;;  %v5620_v52 = vmul.f32 %v13255_v12, %v13249_v6  ;;  %v13257_v19 = vpop.eup %13256 }
0x2cfd   :  { %v12875_v56 = vunpack.i.h.bf16 %v12873_v16  ;;  %v12874_v36 = vunpack.i.l.bf16 %v12873_v16  ;;  %12278 = vmatprep.subr.bf16.mxu0 %v12277_v15  ;;  %v5621_v33 = vmul.f32 %v13257_v19, %v13247_v8  ;;  %v5738_v32 = vpop.permute.xlu1 %5737 }
0x2cfe   :  { %12280 = vmatpush3.bf16.msra.mxu0 %v12277_v15  ;;  %11505 = vmatprep.mubr.msk.f32.mxu0 %vm501_vm0, %v5620_v52  ;;  %v5781_v7 = vsel %vm731_vm1, %v15470_v14, %v5738_v32 }
0x2cff   :  { %v12281_v24 = vpack.c.bf16 %v12875_v56, %v12874_v36  ;;  %v13259_v50 = vpop.eup %13258 }
0x2d00   :  { %v5622_v43 = vmul.f32 %v13259_v50, %v13251_v61  ;;  %v5754_v41 = vpop.permute.xlu0 %5753 }
0x2d01   :  { %12282 = vmatprep.subr.bf16.mxu0 %v12281_v24  ;;  %v5740_v46 = vpop.permute.xlu1 %5739  ;;  %v5785_v22 = vsel %vm1844_vm3, %v5781_v7, %v5754_v41  ;;  %v5974_v7 = vld [vmem:[%s16556_s7] sm:$0xff] }
0x2d02   :  { %12284 = vmatpush3.bf16.msra.mxu0 %v12281_v24 }
0x2d03   :  { %v13261_v5 = vpop.eup %13260  ;;  %12286 = vmatprep.subr.bf16.mxu0 %v12285_v55 }
0x2d04   :  { %v5623_v3 = vmul.f32 %v13261_v5, %v13253_v23  ;;  %v5742_v9 = vpop.permute.xlu0 %5741 }
0x2d05   :  { %11506 = vmatmul.mubr.msk.f32.vlgmr.msra.gmra.mrb[64].mxu0 %vm501_vm0, %v5621_v33  ;;  %v5756_v31 = vpop.permute.xlu1 %5755  ;;  %v5783_v14 = vsel %vm731_vm1, %v15474_v60, %v5742_v9 }
0x2d06   :  { %11508 = vmatprep.mubr.msk.f32.mxu0 %vm501_vm0, %v5622_v43  ;;  %12288 = vmatpush3.bf16.msra.mxu0 %v12285_v55 }
0x2d07   :  { %12290 = vmatprep.subr.bf16.mxu0 %v12289_v45 }
0x2d09   :  { %11509 = vmatmul.mubr.msk.f32.gmra.mrb[66].mxu0 %vm501_vm0, %v5623_v3  ;;  %v5744_v63 = vpop.permute.xlu1 %5743 }
0x2d0a   :  { %12292 = vmatpush3.bf16.msra.mxu0 %v12289_v45 }
0x2dd8   :  { %v11507_v58 = vpop.f32.mrb[64].mxu0 }
0x2dd9   :  { %5771 = vrot.lane.b32.xlu1 %v11507_v58, %s14103_s1  ;;  %v5714_v0 = vpop.f32.mrb[65].mxu0 }
0x2dda   :  { %5769 = vrot.lane.b32.xlu0 %v5714_v0, %s14103_s1 }
0x2ddc   :  { %v11510_v34 = vpop.f32.mrb[66].mxu0 }
0x2ddd   :  { %5759 = vrot.lane.b32.xlu1 %v15572_v59, %s14071_s2  ;;  %v5724_v54 = vpop.f32.mrb[67].mxu0  ;;  %v5782_v59 = vsel %vm731_vm1, %v15468_v57, %v5740_v46  ;;  %v5784_v57 = vsel %vm731_vm1, %v15472_v4, %v5744_v63 }
0x2dde   :  { %5757 = vrot.lane.b32.xlu0 %v15574_v10, %s14071_s2  ;;  %v5786_v49 = vsel %vm1844_vm3, %v5782_v59, %v5756_v31 }
0x2de1   :  { %5775 = vrot.lane.b32.xlu1 %v11510_v34, %s14103_s1 }
0x2de2   :  { %5773 = vrot.lane.b32.xlu0 %v5724_v54, %s14103_s1 }
0x2e4b   :  { %v5772_v53 = vpop.permute.xlu1 %5771 }
0x2e4c   :  { %v5770_v10 = vpop.permute.xlu0 %5769  ;;  %v5790_v6 = vsel %vm1849_vm4, %v5786_v49, %v5772_v53  ;;  %v5975_v53 = vld [vmem:[%s16556_s7 + $0x8] sm:$0xff] }
0x2e4d   :  { %v5789_v8 = vsel %vm1849_vm4, %v5785_v22, %v5770_v10  ;;  %v12293_v59 = vpack.c.bf16 %v5975_v53, %v5974_v7  ;;  %v5976_v22 = vld [vmem:[%s16556_s7 + $0x10] sm:$0xff]  ;;  %v5977_v10 = vld [vmem:[%s16556_s7 + $0x18] sm:$0xff] }
0x2e4e   :  { %11519 = vmatprep.mubr.msk.f32.mxu0 %vm501_vm0, %v5789_v8  ;;  %v12297_v49 = vpack.c.bf16 %v5977_v10, %v5976_v22  ;;  %v5979_v8 = vld [vmem:[%s16557_s19] sm:$0xff] }
0x2e4f   :  { %v5760_v1 = vpop.permute.xlu1 %5759  ;;  %11520 = vmatmul.mubr.msk.f32.vlgmr.msra.gmra.mrb[68].mxu0 %vm501_vm0, %v5790_v6  ;;  %12294 = vmatprep.subr.bf16.mxu1 %v12293_v59  ;;  %v5980_v6 = vld [vmem:[%s16557_s19 + $0x8] sm:$0xff] }
0x2e50   :  { %v5758_v51 = vpop.permute.xlu0 %5757  ;;  %v5788_v27 = vsel %vm1844_vm3, %v5784_v57, %v5760_v1  ;;  %12296 = vmatpush3.bf16.msra.mxu1 %v12293_v59  ;;  %v5981_v1 = vld [vmem:[%s16557_s19 + $0x10] sm:$0xff]  ;;  %v5983_v57 = vld [vmem:[%s16557_s19 + $0x20] sm:$0xff] }
0x2e51   :  { %v5787_v2 = vsel %vm1844_vm3, %v5783_v14, %v5758_v51  ;;  %12298 = vmatprep.subr.bf16.mxu1 %v12297_v49  ;;  %v12301_v51 = vpack.c.bf16 %v5980_v6, %v5979_v8  ;;  %v5982_v14 = vld [vmem:[%s16557_s19 + $0x18] sm:$0xff]  ;;  %v10248_v8 = vld [vmem:[#allocation29] ss:$0 sm:$0xff] }
0x2e53   :  { %v5776_v61 = vpop.permute.xlu1 %5775  ;;  %12302 = vmatprep.subr.bf16.mxu0 %v12301_v51 }
0x2e54   :  { %v5774_v23 = vpop.permute.xlu0 %5773  ;;  %v5792_v47 = vsel %vm1849_vm4, %v5788_v27, %v5776_v61  ;;  %12300 = vmatpush3.bf16.msra.mxu1 %v12297_v49  ;;  %v12305_v61 = vpack.c.bf16 %v5982_v14, %v5981_v1  ;;  %12304 = vmatpush3.bf16.msra.mxu0 %v12301_v51 }
0x2e55   :  { %v5791_v20 = vsel %vm1849_vm4, %v5787_v2, %v5774_v23  ;;  %v5984_v2 = vld [vmem:[%s16557_s19 + $0x28] sm:$0xff] }
0x2e56   :  { %11522 = vmatprep.mubr.msk.f32.mxu0 %vm501_vm0, %v5791_v20  ;;  %12306 = vmatprep.subr.bf16.mxu0 %v12305_v61  ;;  %v12309_v23 = vpack.c.bf16 %v5984_v2, %v5983_v57 }
0x2e57   :  { %11523 = vmatmul.mubr.msk.f32.gmra.mrb[70].mxu0 %vm501_vm0, %v5792_v47 }
0x2e58   :  { %12308 = vmatpush3.bf16.msra.mxu0 %v12305_v61 }
0x2e59   :  { %12310 = vmatprep.subr.bf16.mxu0 %v12309_v23 }
0x2e5c   :  { %12312 = vmatpush3.bf16.msra.mxu0 %v12309_v23 }
0x2f22   :  { %v11521_v26 = vpop.f32.mrb[68].mxu0 }
0x2f23   :  { %v5883_v60 = vadd.f32 %v11521_v26, %v10236_v39  ;;  %v5877_v62 = vpop.f32.mrb[69].mxu0 }
0x2f24   :  { %v5878_v48 = vadd.f32 %v10236_v39, %v5877_v62 }
0x2f25   :  { %v5899_v4 = vadd.f32 %v5883_v60, %v15289_v18 }
0x2f26   :  { %v5898_v17 = vadd.f32 %v5878_v48, %v15289_v18 }
0x2f27   :  { %v5905_v12 = vsel %vm501_vm0, %v5899_v4, 0.0 }
0x2f28   :  { %5906 = vadd.xlane.f32.xlu1 %v5905_v12  ;;  %v5902_v15 = vsel %vm501_vm0, %v5898_v17, 0.0 }
0x2f29   :  { %5903 = vadd.xlane.f32.xlu0 %v5902_v15 }
0x2f2a   :  { %v11524_v16 = vpop.f32.mrb[70].mxu0 }
0x2f2b   :  { %v5887_v52 = vpop.f32.mrb[71].mxu0  ;;  %v5893_v56 = vadd.f32 %v11524_v16, %v10236_v39  ;;  %v10241_v16 = vld [vmem:[#allocation25] ss:$0 sm:$0xff] }
0x2f2c   :  { %v5888_v36 = vadd.f32 %v10236_v39, %v5887_v52 }
0x2f2d   :  { %v5901_v19 = vadd.f32 %v5893_v56, %v15289_v18 }
0x2f2e   :  { %v5900_v24 = vadd.f32 %v5888_v36, %v15289_v18 }
0x2f2f   :  { %v5911_v33 = vsel %vm501_vm0, %v5901_v19, 0.0 }
0x2f30   :  { %v5908_v50 = vsel %vm501_vm0, %v5900_v24, 0.0 }
0x2f31   :  { %5909 = vadd.xlane.f32.xlu0 %v5908_v50 }
0x2f35   :  { %5912 = vadd.xlane.f32.xlu0 %v5911_v33 }
0x2fb5   :  { %v5907_v5 = vpop.xlane.xlu1 %5906 }
0x2fb6   :  { %v5915_v43 = vmul.f32 0.03125, %v5907_v5  ;;  %v5904_v3 = vpop.xlane.xlu0 %5903 }
0x2fb7   :  { %v5914_v44 = vmul.f32 0.03125, %v5904_v3 }
0x2fb8   :  { %v5919_v37 = vsub.f32 %v5899_v4, %v5915_v43 }
0x2fb9   :  { %v15642_v25 = vsub.f32 %v5898_v17, %v5914_v44 }
0x2fba   :  { %v5923_v55 = vmul.f32 %v5919_v37, %v5919_v37 }
0x2fbb   :  { %v5922_v13 = vmul.f32 %v15642_v25, %v15642_v25 }
0x2fbc   :  { %v5929_v45 = vsel %vm501_vm0, %v5923_v55, 0.0 }
0x2fbd   :  { %5930 = vadd.xlane.f32.xlu0 %v5929_v45  ;;  %v5926_v18 = vsel %vm501_vm0, %v5922_v13, 0.0 }
0x2fbe   :  { %5927 = vadd.xlane.f32.xlu1 %v5926_v18  ;;  %v5910_v58 = vpop.xlane.xlu0 %5909 }
0x2fbf   :  { %v5916_v0 = vmul.f32 0.03125, %v5910_v58  ;;  %v5985_v58 = vld [vmem:[%s16557_s19 + $0x30] sm:$0xff] }
0x2fc1   :  { %v15648_v34 = vsub.f32 %v5900_v24, %v5916_v0  ;;  %v5986_v0 = vld [vmem:[%s16557_s19 + $0x38] sm:$0xff] }
0x2fc2   :  { %v5913_v54 = vpop.xlane.xlu0 %5912 }
0x2fc3   :  { %v5917_v32 = vmul.f32 0.03125, %v5913_v54  ;;  %v5924_v46 = vmul.f32 %v15648_v34, %v15648_v34  ;;  %v12313_v54 = vpack.c.bf16 %v5986_v0, %v5985_v58  ;;  %v15698_v0 = vld [vmem:[%s16558_s21 + $0x30] sm:$0xff] }
0x2fc5   :  { %v15652_v31 = vsub.f32 %v5901_v19, %v5917_v32  ;;  %v5932_v41 = vsel %vm501_vm0, %v5924_v46, 0.0  ;;  %v10242_v19 = vld [vmem:[#allocation26] ss:$0 sm:$0xff]  ;;  %12314 = vmatprep.subr.bf16.mxu0 %v12313_v54  ;;  %v10243_v32 = vld [vmem:[#allocation28] ss:$0 sm:$0xff] }
0x2fc6   :  { %5933 = vadd.xlane.f32.xlu1 %v5932_v41  ;;  %12316 = vmatpush3.bf16.msra.mxu0 %v12313_v54  ;;  %v15701_v54 = vld [vmem:[%s16558_s21 + $0x38] sm:$0xff] }
0x2fc7   :  { %v5925_v63 = vmul.f32 %v15652_v31, %v15652_v31 }
0x2fc9   :  { %v5935_v9 = vsel %vm501_vm0, %v5925_v63, 0.0 }
0x2fca   :  { %5936 = vadd.xlane.f32.xlu0 %v5935_v9 }
0x304a   :  { %v5931_v27 = vpop.xlane.xlu0 %5930 }
0x304b   :  { %v5939_v20 = vmul.f32 0.03125, %v5931_v27  ;;  %v5928_v47 = vpop.xlane.xlu1 %5927 }
0x304c   :  { %v5938_v39 = vmul.f32 0.03125, %v5928_v47 }
0x304d   :  { %v5943_v26 = vadd.f32 1e-05, %v5939_v20 }
0x304e   :  { %v5942_v60 = vadd.f32 1e-05, %v5938_v39 }
0x304f   :  { %13262 = vrsqrt.f32 %v5943_v26 }
0x3050   :  { %13264 = vrsqrt.f32 %v5942_v60 }
0x3053   :  { %v5934_v62 = vpop.xlane.xlu1 %5933 }
0x3054   :  { %v5940_v48 = vmul.f32 0.03125, %v5934_v62 }
0x3056   :  { %v5944_v4 = vadd.f32 1e-05, %v5940_v48 }
0x3057   :  { %v5937_v17 = vpop.xlane.xlu0 %5936 }
0x3058   :  { %13266 = vrsqrt.f32 %v5944_v4  ;;  %v5941_v12 = vmul.f32 0.03125, %v5937_v17 }
0x3059   :  { %v13263_v15 = vpop.eup %13262 }
0x305a   :  { %v13265_v52 = vpop.eup %13264  ;;  %v5951_v56 = vmul.f32 %v13263_v15, %v5919_v37  ;;  %v5945_v36 = vadd.f32 1e-05, %v5941_v12 }
0x305b   :  { %v5950_v24 = vmul.f32 %v13265_v52, %v15642_v25 }
0x305c   :  { %13268 = vrsqrt.f32 %v5945_v36  ;;  %v5961_v50 = vmul.f32 %v10241_v16, %v5951_v56 }
0x305d   :  { %v5960_v33 = vmul.f32 %v10241_v16, %v5950_v24 }
0x305e   :  { %v5971_v43 = vadd.f32 %v10242_v19, %v5961_v50 }
0x305f   :  { %v5970_v5 = vadd.f32 %v10242_v19, %v5960_v33 }
0x3061   :  { %11533 = vmatprep.mubr.msk.f32.mxu1 %vm501_vm0, %v5970_v5 }
0x3062   :  { %v13267_v3 = vpop.eup %13266  ;;  %11534 = vmatmul.mubr.msk.f32.vlgmr.msra.gmra.mrb[82].mxu1 %vm501_vm0, %v5971_v43 }
0x3063   :  { %v5952_v44 = vmul.f32 %v13267_v3, %v15648_v34 }
0x3065   :  { %v5962_v55 = vmul.f32 %v10241_v16, %v5952_v44 }
0x3066   :  { %v13269_v37 = vpop.eup %13268 }
0x3067   :  { %v5972_v13 = vadd.f32 %v10242_v19, %v5962_v55  ;;  %v5953_v25 = vmul.f32 %v13269_v37, %v15652_v31 }
0x3069   :  { %11536 = vmatprep.mubr.msk.f32.mxu1 %vm501_vm0, %v5972_v13  ;;  %v5963_v45 = vmul.f32 %v10241_v16, %v5953_v25 }
0x306b   :  { %v5973_v18 = vadd.f32 %v10242_v19, %v5963_v45  ;;  %v15690_v45 = vld [vmem:[%s16558_s21 + $0x20] sm:$0xff] }
0x306d   :  { %11537 = vmatmul.mubr.msk.f32.gmra.mrb[84].mxu1 %vm501_vm0, %v5973_v18 }
0x3135   :  { %v11535_v46 = vpop.f32.mrb[82].mxu1 }
0x3136   :  { %v6078_v41 = vadd.f32 %v11535_v46, %v10243_v32  ;;  %v6072_v34 = vpop.f32.mrb[83].mxu1 }
0x3137   :  { %v6073_v63 = vadd.f32 %v10243_v32, %v6072_v34 }
0x3138   :  { %v6092_v7 = vmax.f32 %v6078_v41, 0.0  ;;  %v12891_v41 = vpack.i.bf16 %v15701_v54, %v15698_v0 }
0x3139   :  { %v6091_v9 = vmax.f32 %v6073_v63, 0.0 }
0x313b   :  { %11555 = vmatprep.mubr.msk.f32.mxu0 %vm2163_vm5, %v6091_v9 }
0x313c   :  { %11556 = vmatmul.mubr.msk.f32.vlgmr.msra.gmra.mrb[72].mxu0 %vm2163_vm5, %v6092_v7 }
0x3140   :  { %v11538_v31 = vpop.f32.mrb[84].mxu1 }
0x3141   :  { %v6088_v53 = vadd.f32 %v11538_v31, %v10243_v32  ;;  %v6082_v59 = vpop.f32.mrb[85].mxu1 }
0x3142   :  { %v6083_v22 = vadd.f32 %v10243_v32, %v6082_v59  ;;  %v12321_v32 = vpack.c.bf16 %v15701_v54, %v15698_v0 }
0x3143   :  { %v6094_v49 = vmax.f32 %v6088_v53, 0.0 }
0x3144   :  { %v6093_v10 = vmax.f32 %v6083_v22, 0.0 }
0x3146   :  { %11558 = vmatprep.mubr.msk.f32.mxu0 %vm2163_vm5, %v6093_v10 }
0x3147   :  { %11559 = vmatmul.mubr.msk.f32.gmra.mrb[74].mxu0 %vm2163_vm5, %v6094_v49 }
0x320f   :  { %v11557_v6 = vpop.f32.mrb[72].mxu0 }
0x3210   :  { %v6185_v1 = vadd.f32 %v11557_v6, %v10248_v8  ;;  %v6179_v51 = vpop.f32.mrb[73].mxu0 }
0x3211   :  { %v6180_v14 = vadd.f32 %v10248_v8, %v6179_v51 }
0x3212   :  { %v6201_v61 = vadd.f32 %v6185_v1, %v5971_v43  ;;  %v10253_v1 = vld [vmem:[#allocation31] ss:$0 sm:$0xff] }
0x3213   :  { %v6200_v57 = vadd.f32 %v6180_v14, %v5970_v5 }
0x3214   :  { %v6207_v2 = vsel %vm501_vm0, %v6201_v61, 0.0 }
0x3215   :  { %6208 = vadd.xlane.f32.xlu0 %v6207_v2  ;;  %v6204_v23 = vsel %vm501_vm0, %v6200_v57, 0.0 }
0x3216   :  { %6205 = vadd.xlane.f32.xlu1 %v6204_v23 }
0x321a   :  { %v11560_v27 = vpop.f32.mrb[74].mxu0 }
0x321b   :  { %v6195_v20 = vadd.f32 %v11560_v27, %v10248_v8  ;;  %v6189_v47 = vpop.f32.mrb[75].mxu0 }
0x321c   :  { %v6190_v39 = vadd.f32 %v10248_v8, %v6189_v47 }
0x321d   :  { %v6203_v26 = vadd.f32 %v6195_v20, %v5973_v18  ;;  %v15693_v18 = vld [vmem:[%s16558_s21 + $0x28] sm:$0xff] }
0x321e   :  { %v6202_v60 = vadd.f32 %v6190_v39, %v5972_v13  ;;  %v12317_v58 = vpack.c.bf16 %v15693_v18, %v15690_v45  ;;  %v12886_v46 = vpack.i.bf16 %v15693_v18, %v15690_v45  ;;  %v13462_v39 = vld [vmem:[%s16554_s11] sm:$0xff] }
0x321f   :  { %v6213_v62 = vsel %vm501_vm0, %v6203_v26, 0.0 }
0x3220   :  { %6214 = vadd.xlane.f32.xlu0 %v6213_v62  ;;  %v6210_v48 = vsel %vm501_vm0, %v6202_v60, 0.0  ;;  %12318 = vmatprep.subr.bf16.mxu1 %v12317_v58 }
0x3221   :  { %6211 = vadd.xlane.f32.xlu1 %v6210_v48  ;;  %12320 = vmatpush3.bf16.msra.mxu1 %v12317_v58 }
0x3222   :  { %12322 = vmatprep.subr.bf16.mxu1 %v12321_v32 }
0x3225   :  { %12324 = vmatpush3.bf16.msra.mxu1 %v12321_v32 }
0x32a2   :  { %v6209_v4 = vpop.xlane.xlu0 %6208 }
0x32a3   :  { %v6217_v17 = vmul.f32 0.03125, %v6209_v4  ;;  %v6206_v12 = vpop.xlane.xlu1 %6205 }
0x32a4   :  { %v6216_v15 = vmul.f32 0.03125, %v6206_v12 }
0x32a5   :  { %v6221_v16 = vsub.f32 %v6201_v61, %v6217_v17 }
0x32a6   :  { %v6220_v52 = vsub.f32 %v6200_v57, %v6216_v15  ;;  %v10254_v57 = vld [vmem:[#allocation32] ss:$0 sm:$0xff] }
0x32a7   :  { %v6225_v56 = vmul.f32 %v6221_v16, %v6221_v16 }
0x32a8   :  { %v6224_v36 = vmul.f32 %v6220_v52, %v6220_v52 }
0x32a9   :  { %v6231_v24 = vsel %vm501_vm0, %v6225_v56, 0.0 }
0x32aa   :  { %6232 = vadd.xlane.f32.xlu0 %v6231_v24  ;;  %v6228_v19 = vsel %vm501_vm0, %v6224_v36, 0.0  ;;  %v13464_v36 = vld [vmem:[%s16554_s11 + $0x10] sm:$0xff] }
0x32ab   :  { %6229 = vadd.xlane.f32.xlu1 %v6228_v19  ;;  %v13465_v19 = vld [vmem:[%s16554_s11 + $0x18] sm:$0xff] }
0x32ad   :  { %v6215_v50 = vpop.xlane.xlu0 %6214 }
0x32ae   :  { %v6219_v33 = vmul.f32 0.03125, %v6215_v50  ;;  %v6212_v5 = vpop.xlane.xlu1 %6211 }
0x32af   :  { %v6218_v43 = vmul.f32 0.03125, %v6212_v5 }
0x32b0   :  { %v6223_v3 = vsub.f32 %v6203_v26, %v6219_v33  ;;  %v15731_v33 = vld [vmem:[#allocation14 + $0x1] ss:$0 sm:$0xff] }
0x32b1   :  { %v6222_v44 = vsub.f32 %v6202_v60, %v6218_v43  ;;  %v13463_v60 = vld [vmem:[%s16554_s11 + $0x8] sm:$0xff] }
0x32b2   :  { %v6227_v55 = vmul.f32 %v6223_v3, %v6223_v3 }
0x32b3   :  { %v6226_v37 = vmul.f32 %v6222_v44, %v6222_v44 }
0x32b4   :  { %v6237_v13 = vsel %vm501_vm0, %v6227_v55, 0.0 }
0x32b5   :  { %6238 = vadd.xlane.f32.xlu0 %v6237_v13  ;;  %v6234_v25 = vsel %vm501_vm0, %v6226_v37, 0.0 }
0x32b6   :  { %6235 = vadd.xlane.f32.xlu1 %v6234_v25 }
0x3337   :  { %v6233_v34 = vpop.xlane.xlu0 %6232 }
0x3338   :  { %v6241_v63 = vmul.f32 0.03125, %v6233_v34  ;;  %v6230_v9 = vpop.xlane.xlu1 %6229 }
0x3339   :  { %v6240_v7 = vmul.f32 0.03125, %v6230_v9 }
0x333a   :  { %v6245_v31 = vadd.f32 1e-05, %v6241_v63 }
0x333b   :  { %v6244_v53 = vadd.f32 1e-05, %v6240_v7 }
0x333c   :  { %13270 = vrsqrt.f32 %v6245_v31 }
0x333d   :  { %13272 = vrsqrt.f32 %v6244_v53 }
0x3342   :  { %v6239_v59 = vpop.xlane.xlu0 %6238 }
0x3343   :  { %v6243_v22 = vmul.f32 0.03125, %v6239_v59  ;;  %v6236_v10 = vpop.xlane.xlu1 %6235 }
0x3344   :  { %v6242_v49 = vmul.f32 0.03125, %v6236_v10 }
0x3345   :  { %v6247_v8 = vadd.f32 1e-05, %v6243_v22 }
0x3346   :  { %v13271_v6 = vpop.eup %13270  ;;  %v6246_v51 = vadd.f32 1e-05, %v6242_v49 }
0x3347   :  { %v13273_v14 = vpop.eup %13272  ;;  %v6253_v61 = vmul.f32 %v13271_v6, %v6221_v16  ;;  %13274 = vrsqrt.f32 %v6247_v8 }
0x3348   :  { %v6252_v2 = vmul.f32 %v13273_v14, %v6220_v52  ;;  %13276 = vrsqrt.f32 %v6246_v51 }
0x3349   :  { %v6263_v23 = vmul.f32 %v10253_v1, %v6253_v61 }
0x334a   :  { %v6262_v27 = vmul.f32 %v10253_v1, %v6252_v2 }
0x334b   :  { %v15709_v20 = vadd.f32 %v10254_v57, %v6263_v23  ;;  %v15778_v23 = vld [vmem:[%s16559_s15 + $0x8] sm:$0xff] }
0x334c   :  { %v15711_v47 = vadd.f32 %v10254_v57, %v6262_v27  ;;  %v15781_v27 = vld [vmem:[%s16559_s15] sm:$0xff] }
0x334d   :  { %v6353_v62 = vadd.f32 %v13463_v60, %v15709_v20 }
0x334e   :  { %v6352_v26 = vadd.f32 %v13462_v39, %v15711_v47 }
0x3350   :  { %11569 = vmatprep.mubr.msk.f32.mxu1 %vm501_vm0, %v6352_v26 }
0x3351   :  { %v13275_v48 = vpop.eup %13274  ;;  %11570 = vmatmul.mubr.msk.f32.vlgmr.msra.gmra.mrb[86].mxu1 %vm501_vm0, %v6353_v62 }
0x3352   :  { %v13277_v4 = vpop.eup %13276  ;;  %v6255_v17 = vmul.f32 %v13275_v48, %v6223_v3 }
0x3353   :  { %v6254_v12 = vmul.f32 %v13277_v4, %v6222_v44  ;;  %v15787_v4 = vld [vmem:[%s16559_s15 + $0x10] sm:$0xff] }
0x3354   :  { %v6265_v15 = vmul.f32 %v10253_v1, %v6255_v17 }
0x3355   :  { %v6264_v16 = vmul.f32 %v10253_v1, %v6254_v12 }
0x3356   :  { %v15719_v52 = vadd.f32 %v10254_v57, %v6265_v15  ;;  %v15791_v15 = vld [vmem:[%s16559_s15 + $0x18] sm:$0xff] }
0x3357   :  { %v15721_v56 = vadd.f32 %v10254_v57, %v6264_v16 }
0x3358   :  { %v6355_v50 = vadd.f32 %v13465_v19, %v15719_v52 }
0x3359   :  { %v6354_v24 = vadd.f32 %v13464_v36, %v15721_v56 }
0x335b   :  { %11572 = vmatprep.mubr.msk.f32.mxu1 %vm501_vm0, %v6354_v24 }
0x335c   :  { %11573 = vmatmul.mubr.msk.f32.gmra.mrb[88].mxu1 %vm501_vm0, %v6355_v50 }
0x335d   :  { %11583 = vmatprep.mubr.msk.f32.mxu1 %vm501_vm0, %v15711_v47 }
0x3424   :  { %v11571_v5 = vpop.f32.mrb[86].mxu1 }
0x3425   :  { %v6460_v43 = vadd.f32 %v11571_v5, %v15731_v33  ;;  %v6454_v3 = vpop.f32.mrb[87].mxu1 }
0x3426   :  { %v6455_v44 = vadd.f32 %v15731_v33, %v6454_v3 }
0x3427   :  { %v15765_v6 = vmul.f32 0.35355338, %v6460_v43 }
0x3428   :  { %v15735_v55 = vpack.i.bf16 %v6460_v43, %v6455_v44  ;;  %v15737_v37 = vmul.f32 0.35355338, %v6455_v44 }
0x342a   :  { %12877 = vrot.lane.b32.xlu1 %v15735_v55, %s14095_s0  ;;  %11597 = vmatprep.mubr.msk.f32.mxu0 %vm731_vm1, %v15737_v37 }
0x342e   :  { %12887 = vrot.lane.b32.xlu1 %v12886_v46, %s14096_s8 }
0x342f   :  { %v11574_v13 = vpop.f32.mrb[88].mxu1 }
0x3430   :  { %v6470_v25 = vadd.f32 %v11574_v13, %v15731_v33  ;;  %v6464_v45 = vpop.f32.mrb[89].mxu1 }
0x3431   :  { %v6465_v18 = vadd.f32 %v15731_v33, %v6464_v45 }
0x3432   :  { %12892 = vrot.lane.b32.xlu1 %v12891_v41, %s14096_s8  ;;  %v15773_v51 = vmul.f32 0.35355338, %v6470_v25 }
0x3433   :  { %v15747_v58 = vpack.i.bf16 %v6470_v25, %v6465_v18  ;;  %v15767_v1 = vmul.f32 0.35355338, %v6465_v18 }
0x3435   :  { %12882 = vrot.lane.b32.xlu0 %v15747_v58, %s14095_s0 }
0x349c   :  { %v12878_v0 = vpop.permute.xlu1 %12877 }
0x349d   :  { %v12880_v54 = vunpack.i.h.bf16 %v12878_v0  ;;  %v12879_v32 = vunpack.i.l.bf16 %v12878_v0 }
0x349f   :  { %v12333_v34 = vpack.c.bf16 %v12880_v54, %v12879_v32 }
0x34a0   :  { %v12888_v63 = vpop.permute.xlu1 %12887 }
0x34a1   :  { %v12890_v9 = vunpack.i.h.bf16 %v12888_v63  ;;  %v12889_v46 = vunpack.i.l.bf16 %v12888_v63  ;;  %12335 = vmatprep.subr.msk.bf16.mxu0 %vm14564_vm2, %v12333_v34 }
0x34a2   :  { %12338 = vmatpush3.bf16.xpose.msk.msra.mxu0 %vm14564_vm2, %v12333_v34 }
0x34a3   :  { %v12325_v7 = vpack.c.bf16 %v12890_v9, %v12889_v46 }
0x34a4   :  { %v12893_v41 = vpop.permute.xlu1 %12892 }
0x34a5   :  { %v12895_v31 = vunpack.i.h.bf16 %v12893_v41  ;;  %v12894_v53 = vunpack.i.l.bf16 %v12893_v41  ;;  %12326 = vmatprep.subr.bf16.mxu1 %v12325_v7 }
0x34a6   :  { %12328 = vmatpush3.bf16.msra.mxu1 %v12325_v7 }
0x34a7   :  { %v12883_v59 = vpop.permute.xlu0 %12882  ;;  %v12329_v22 = vpack.c.bf16 %v12895_v31, %v12894_v53 }
0x34a8   :  { %v12885_v10 = vunpack.i.h.bf16 %v12883_v59  ;;  %v12884_v49 = vunpack.i.l.bf16 %v12883_v59 }
0x34a9   :  { %12330 = vmatprep.subr.bf16.mxu1 %v12329_v22 }
0x34aa   :  { %v12339_v8 = vpack.c.bf16 %v12885_v10, %v12884_v49  ;;  %12332 = vmatpush3.bf16.msra.mxu1 %v12329_v22 }
0x34ac   :  { %12341 = vmatprep.subr.msk.bf16.mxu0 %vm14564_vm2, %v12339_v8 }
0x34ad   :  { %11584 = vmatmul.mubr.msk.f32.vlgmr.msra.gmra.mrb[90].mxu1 %vm501_vm0, %v15709_v20  ;;  %12344 = vmatpush3.bf16.xpose.msk.msra.mxu0 %vm14564_vm2, %v12339_v8 }
0x34ae   :  { %11586 = vmatprep.mubr.msk.f32.mxu1 %vm501_vm0, %v15721_v56 }
0x34b1   :  { %11587 = vmatmul.mubr.msk.f32.gmra.mrb[92].mxu1 %vm501_vm0, %v15719_v52 }
0x34b4   :  { %11598 = vmatmul.mubr.msk.f32.vlgmr.msra.gmra.mrb[76].mxu0 %vm731_vm1, %v15765_v6 }
0x34b5   :  { %11600 = vmatprep.mubr.msk.f32.mxu0 %vm731_vm1, %v15767_v1 }
0x34b8   :  { %11601 = vmatmul.mubr.msk.f32.gmra.mrb[78].mxu0 %vm731_vm1, %v15773_v51 }
0x3580   :  { %v11585_v14 = vpop.f32.mrb[90].mxu1 }
0x3581   :  { %v6570_v61 = vpop.f32.mrb[91].mxu1 }
0x3584   :  { %v11588_v57 = vpop.f32.mrb[92].mxu1 }
0x3585   :  { %v6580_v2 = vpop.f32.mrb[93].mxu1 }
0x3587   :  { %v11599_v39 = vpop.f32.mrb[76].mxu0 }
0x3588   :  { %v6697_v26 = vadd.f32 %v11599_v39, %v15778_v23  ;;  %v6691_v60 = vpop.f32.mrb[77].mxu0 }
0x3589   :  { %v6692_v62 = vadd.f32 %v6691_v60, %v15781_v27 }
0x358a   :  { %v6713_v48 = vsel %vm501_vm0, %v6697_v26, -inf }
0x358b   :  { %6714 = vmax.xlane.f32.xlu1 %v6713_v48  ;;  %v11602_v17 = vpop.f32.mrb[78].mxu0  ;;  %v6710_v12 = vsel %vm501_vm0, %v6692_v62, -inf }
0x358c   :  { %6711 = vmax.xlane.f32.xlu0 %v6710_v12  ;;  %v6701_v16 = vpop.f32.mrb[79].mxu0  ;;  %v6707_v24 = vadd.f32 %v11602_v17, %v15791_v15 }
0x358d   :  { %v6702_v36 = vadd.f32 %v6701_v16, %v15787_v4 }
0x358e   :  { %v6719_v50 = vsel %vm501_vm0, %v6707_v24, -inf }
0x358f   :  { %v6716_v19 = vsel %vm501_vm0, %v6702_v36, -inf }
0x3590   :  { %6717 = vmax.xlane.f32.xlu0 %v6716_v19 }
0x3594   :  { %6720 = vmax.xlane.f32.xlu0 %v6719_v50 }
0x359c   :  { %6489 = vrot.lane.b32.xlu1 %v15731_v33, %s14096_s8 }
0x3618   :  { %v6715_v5 = vpop.xlane.xlu1 %6714 }
0x3619   :  { %v6723_v43 = vsub.f32 %v6697_v26, %v6715_v5  ;;  %v6712_v3 = vpop.xlane.xlu0 %6711 }
0x361a   :  { %v6722_v44 = vsub.f32 %v6692_v62, %v6712_v3 }
0x361b   :  { %v6728_v13 = vmul.f32 1.442695, %v6723_v43 }
0x361c   :  { %v6726_v25 = vmul.f32 1.442695, %v6722_v44  ;;  %v6490_v45 = vpop.permute.xlu1 %6489 }
0x361d   :  { %13278 = vpow2.f32 %v6728_v13  ;;  %v6571_v18 = vadd.f32 %v6570_v61, %v6490_v45  ;;  %v6576_v0 = vadd.f32 %v11585_v14, %v6490_v45  ;;  %v6581_v54 = vadd.f32 %v6580_v2, %v6490_v45  ;;  %v6718_v32 = vpop.xlane.xlu0 %6717 }
0x361e   :  { %13280 = vpow2.f32 %v6726_v25  ;;  %v6586_v34 = vadd.f32 %v11588_v57, %v6490_v45  ;;  %v6724_v46 = vsub.f32 %v6702_v36, %v6718_v32 }
0x361f   :  { %v12345_v63 = vpack.c.bf16 %v6576_v0, %v6571_v18  ;;  %v15799_v9 = vpack.i.bf16 %v6576_v0, %v6571_v18 }
0x3620   :  { %v12349_v7 = vpack.c.bf16 %v6586_v34, %v6581_v54  ;;  %v15801_v33 = vpack.i.bf16 %v6586_v34, %v6581_v54  ;;  %v6730_v53 = vmul.f32 1.442695, %v6724_v46 }
0x3621   :  { %12346 = vmatprep.subr.bf16.mxu1 %v12345_v63  ;;  %v6721_v41 = vpop.xlane.xlu0 %6720 }
0x3622   :  { %v6725_v31 = vsub.f32 %v6707_v24, %v6721_v41  ;;  %12348 = vmatpush3.bf16.msra.mxu1 %v12345_v63 }
0x3623   :  { %12350 = vmatprep.subr.bf16.mxu1 %v12349_v7 }
0x3624   :  { %v6732_v59 = vmul.f32 1.442695, %v6725_v31 }
0x3626   :  { %13282 = vpow2.f32 %v6732_v59  ;;  %12352 = vmatpush3.bf16.msra.mxu1 %v12349_v7 }
0x3627   :  { %v13279_v22 = vpop.eup %13278  ;;  %13284 = vpow2.f32 %v6730_v53 }
0x3628   :  { %v13281_v10 = vpop.eup %13280  ;;  %v6737_v49 = vsel %vm501_vm0, %v13279_v22, 0.0 }
0x3629   :  { %6738 = vadd.xlane.f32.xlu0 %v6737_v49  ;;  %v6734_v8 = vsel %vm501_vm0, %v13281_v10, 0.0 }
0x362a   :  { %6735 = vadd.xlane.f32.xlu1 %v6734_v8 }
0x3630   :  { %v13283_v14 = vpop.eup %13282 }
0x3631   :  { %v6743_v61 = vsel %vm501_vm0, %v13283_v14, 0.0  ;;  %v13285_v57 = vpop.eup %13284 }
0x3632   :  { %6744 = vadd.xlane.f32.xlu0 %v6743_v61  ;;  %v6740_v2 = vsel %vm501_vm0, %v13285_v57, 0.0 }
0x3636   :  { %6741 = vadd.xlane.f32.xlu0 %v6740_v2 }
0x363b   :  { %12902 = vrot.lane.b32.xlu1 %v15747_v58, %s14097_s24 }
0x363f   :  { %6851 = vrot.lane.b32.xlu1 %v15737_v37, %s14098_s3 }
0x3643   :  { %6853 = vrot.lane.b32.xlu1 %v15765_v6, %s14098_s3 }
0x3647   :  { %6855 = vrot.lane.b32.xlu1 %v15767_v1, %s14098_s3 }
0x364c   :  { %12897 = vrot.lane.b32.xlu0 %v15735_v55, %s14097_s24 }
0x3650   :  { %6857 = vrot.lane.b32.xlu0 %v15773_v51, %s14098_s3 }
0x36b6   :  { %v6739_v39 = vpop.xlane.xlu0 %6738 }
0x36b7   :  { %13286 = vrcp.f32 %v6739_v39  ;;  %v6736_v26 = vpop.xlane.xlu1 %6735 }
0x36b8   :  { %13288 = vrcp.f32 %v6736_v26 }
0x36bb   :  { %v12903_v36 = vpop.permute.xlu1 %12902 }
0x36bc   :  { %v12905_v19 = vunpack.i.h.bf16 %v12903_v36  ;;  %v12904_v50 = vunpack.i.l.bf16 %v12903_v36 }
0x36be   :  { %v12359_v44 = vpack.c.bf16 %v12905_v19, %v12904_v50 }
0x36bf   :  { %v6745_v60 = vpop.xlane.xlu0 %6744  ;;  %v6852_v18 = vpop.permute.xlu1 %6851 }
0x36c0   :  { %13290 = vrcp.f32 %v6745_v60 }
0x36c1   :  { %v13287_v62 = vpop.eup %13286 }
0x36c2   :  { %v13289_v48 = vpop.eup %13288  ;;  %v6751_v16 = vmul.f32 %v13287_v62, %v13279_v22 }
0x36c3   :  { %v6742_v17 = vpop.xlane.xlu0 %6741  ;;  %v6750_v12 = vmul.f32 %v13289_v48, %v13281_v10  ;;  %v6854_v54 = vpop.permute.xlu1 %6853 }
0x36c4   :  { %13292 = vrcp.f32 %v6742_v17 }
0x36c5   :  { %11611 = vmatprep.mubr.msk.f32.mxu1 %vm501_vm0, %v6750_v12 }
0x36c6   :  { %11612 = vmatmul.mubr.msk.f32.vlgmr.msra.gmra.mrb[94].mxu1 %vm501_vm0, %v6751_v16 }
0x36c7   :  { %v12898_v24 = vpop.permute.xlu0 %12897  ;;  %v6856_v32 = vpop.permute.xlu1 %6855 }
0x36c8   :  { %v12900_v5 = vunpack.i.h.bf16 %v12898_v24  ;;  %v12899_v43 = vunpack.i.l.bf16 %v12898_v24 }
0x36ca   :  { %v12353_v3 = vpack.c.bf16 %v12900_v5, %v12899_v43  ;;  %v13291_v13 = vpop.eup %13290 }
0x36cb   :  { %v6753_v0 = vmul.f32 %v13291_v13, %v13283_v14  ;;  %v6858_v34 = vpop.permute.xlu0 %6857 }
0x36cc   :  { %12355 = vmatprep.subr.msk.bf16.mxu1 %vm14564_vm2, %v12353_v3 }
0x36cd   :  { %12358 = vmatpush3.bf16.xpose.msk.msra.mxu1 %vm14564_vm2, %v12353_v3 }
0x36ce   :  { %v13293_v25 = vpop.eup %13292  ;;  %12361 = vmatprep.subr.msk.bf16.mxu1 %vm14564_vm2, %v12359_v44 }
0x36cf   :  { %v6752_v45 = vmul.f32 %v13293_v25, %v13285_v57 }
0x36d1   :  { %11614 = vmatprep.mubr.msk.f32.mxu1 %vm501_vm0, %v6752_v45 }
0x36d2   :  { %11615 = vmatmul.mubr.msk.f32.gmra.mrb[96].mxu1 %vm501_vm0, %v6753_v0 }
0x36d3   :  { %11625 = vmatprep.mubr.msk.f32.mxu1 %vm731_vm1, %v6852_v18 }
0x36d5   :  { %12364 = vmatpush3.bf16.xpose.msk.msra.mxu1 %vm14564_vm2, %v12359_v44 }
0x36dc   :  { %11626 = vmatmul.mubr.msk.f32.vlgmr.msra.gmra.mrb[98].mxu1 %vm731_vm1, %v6854_v54 }
0x36dd   :  { %11628 = vmatprep.mubr.msk.f32.mxu1 %vm731_vm1, %v6856_v32 }
0x36e0   :  { %11629 = vmatmul.mubr.msk.f32.gmra.mrb[100].mxu1 %vm731_vm1, %v6858_v34 }
0x3799   :  { %v15835_v63 = vpop.f32.mrb[94].mxu1 }
0x379a   :  { %v15837_v46 = vpop.f32.mrb[95].mxu1 }
0x37a5   :  { %v15839_v7 = vpop.f32.mrb[96].mxu1 }
0x37a6   :  { %v15841_v41 = vpop.f32.mrb[97].mxu1 }
0x37af   :  { %v11627_v31 = vpop.f32.mrb[98].mxu1 }
0x37b0   :  { %v6955_v53 = vadd.f32 %v11627_v31, %v15778_v23  ;;  %v6949_v59 = vpop.f32.mrb[99].mxu1 }
0x37b1   :  { %v6950_v22 = vadd.f32 %v6949_v59, %v15781_v27 }
0x37b2   :  { %v6971_v10 = vsel %vm501_vm0, %v6955_v53, -inf }
0x37b3   :  { %6972 = vmax.xlane.f32.xlu0 %v6971_v10  ;;  %v11630_v49 = vpop.f32.mrb[100].mxu1  ;;  %v6968_v8 = vsel %vm501_vm0, %v6950_v22, -inf }
0x37b4   :  { %v6965_v14 = vadd.f32 %v11630_v49, %v15791_v15  ;;  %v6959_v61 = vpop.f32.mrb[101].mxu1  ;;  %6969 = vmax.xlane.f32.xlu1 %v6968_v8 }
0x37b5   :  { %v6960_v57 = vadd.f32 %v6959_v61, %v15787_v4 }
0x37b6   :  { %v6977_v2 = vsel %vm501_vm0, %v6965_v14, -inf }
0x37b7   :  { %v6974_v39 = vsel %vm501_vm0, %v6960_v57, -inf }
0x37b8   :  { %6975 = vmax.xlane.f32.xlu0 %v6974_v39  ;;  %6978 = vmax.xlane.f32.xlu1 %v6977_v2 }
0x37c9   :  { %12912 = vrot.lane.b32.xlu1 %v15801_v33, %s14098_s3 }
0x37ce   :  { %12907 = vrot.lane.b32.xlu0 %v15799_v9, %s14098_s3 }
0x3840   :  { %v6973_v26 = vpop.xlane.xlu0 %6972 }
0x3841   :  { %v6981_v60 = vsub.f32 %v6955_v53, %v6973_v26  ;;  %v6970_v62 = vpop.xlane.xlu1 %6969 }
0x3842   :  { %v6980_v48 = vsub.f32 %v6950_v22, %v6970_v62 }
0x3843   :  { %v6986_v17 = vmul.f32 1.442695, %v6981_v60 }
0x3844   :  { %v6984_v12 = vmul.f32 1.442695, %v6980_v48 }
0x3845   :  { %13294 = vpow2.f32 %v6986_v17  ;;  %v6976_v16 = vpop.xlane.xlu0 %6975  ;;  %v6979_v36 = vpop.xlane.xlu1 %6978 }
0x3846   :  { %13296 = vpow2.f32 %v6984_v12  ;;  %v6982_v24 = vsub.f32 %v6960_v57, %v6976_v16  ;;  %v6983_v53 = vsub.f32 %v6965_v14, %v6979_v36 }
0x3848   :  { %v6988_v19 = vmul.f32 1.442695, %v6982_v24  ;;  %v6990_v59 = vmul.f32 1.442695, %v6983_v53 }
0x3849   :  { %v12908_v50 = vpop.permute.xlu0 %12907  ;;  %v12913_v5 = vpop.permute.xlu1 %12912 }
0x384a   :  { %13298 = vpow2.f32 %v6988_v19  ;;  %v12910_v43 = vunpack.i.h.bf16 %v12908_v50  ;;  %v12909_v3 = vunpack.i.l.bf16 %v12908_v50  ;;  %v12915_v44 = vunpack.i.h.bf16 %v12913_v5 }
0x384b   :  { %v12914_v13 = vunpack.i.l.bf16 %v12913_v5  ;;  %13300 = vpow2.f32 %v6990_v59 }
0x384c   :  { %v12365_v25 = vpack.c.bf16 %v12910_v43, %v12909_v3 }
0x384d   :  { %v12369_v45 = vpack.c.bf16 %v12915_v44, %v12914_v13 }
0x384e   :  { %12366 = vmatprep.subr.bf16.mxu0 %v12365_v25 }
0x384f   :  { %v13295_v18 = vpop.eup %13294  ;;  %12368 = vmatpush3.bf16.msra.mxu0 %v12365_v25 }
0x3850   :  { %v13297_v0 = vpop.eup %13296  ;;  %12370 = vmatprep.subr.bf16.mxu0 %v12369_v45  ;;  %v6995_v54 = vsel %vm501_vm0, %v13295_v18, 0.0 }
0x3851   :  { %6996 = vadd.xlane.f32.xlu1 %v6995_v54  ;;  %v6992_v32 = vsel %vm501_vm0, %v13297_v0, 0.0 }
0x3852   :  { %6993 = vadd.xlane.f32.xlu0 %v6992_v32 }
0x3853   :  { %12372 = vmatpush3.bf16.msra.mxu0 %v12369_v45 }
0x3854   :  { %v13299_v34 = vpop.eup %13298 }
0x3855   :  { %v6998_v31 = vsel %vm501_vm0, %v13299_v34, 0.0  ;;  %v13301_v22 = vpop.eup %13300 }
0x3856   :  { %6999 = vadd.xlane.f32.xlu0 %v6998_v31  ;;  %v7001_v10 = vsel %vm501_vm0, %v13301_v22, 0.0 }
0x3862   :  { %12917 = vrot.lane.b32.xlu1 %v15735_v55, %s14099_s20 }
0x386c   :  { %12922 = vrot.lane.b32.xlu0 %v15747_v58, %s14099_s20 }
0x3870   :  { %7127 = vrot.lane.b32.xlu0 %v15765_v6, %s14100_s23 }
0x3874   :  { %7131 = vrot.lane.b32.xlu0 %v15773_v51, %s14100_s23 }
0x3886   :  { %7002 = vadd.xlane.f32.xlu1 %v7001_v10 }
0x3897   :  { %7125 = vrot.lane.b32.xlu1 %v15737_v37, %s14100_s23 }
0x389b   :  { %7129 = vrot.lane.b32.xlu1 %v15767_v1, %s14100_s23 }
0x38de   :  { %v6997_v49 = vpop.xlane.xlu1 %6996 }
0x38df   :  { %13302 = vrcp.f32 %v6997_v49  ;;  %v6994_v8 = vpop.xlane.xlu0 %6993 }
0x38e0   :  { %13304 = vrcp.f32 %v6994_v8 }
0x38e2   :  { %v12918_v14 = vpop.permute.xlu1 %12917 }
0x38e3   :  { %v12920_v61 = vunpack.i.h.bf16 %v12918_v14  ;;  %v12919_v57 = vunpack.i.l.bf16 %v12918_v14  ;;  %v7000_v2 = vpop.xlane.xlu0 %6999 }
0x38e4   :  { %13306 = vrcp.f32 %v7000_v2 }
0x38e5   :  { %v12373_v39 = vpack.c.bf16 %v12920_v61, %v12919_v57 }
0x38e7   :  { %v12923_v26 = vpop.permute.xlu0 %12922  ;;  %12375 = vmatprep.subr.msk.bf16.mxu0 %vm14564_vm2, %v12373_v39 }
0x38e8   :  { %v12925_v48 = vunpack.i.h.bf16 %v12923_v26  ;;  %v12924_v17 = vunpack.i.l.bf16 %v12923_v26 }
0x38e9   :  { %v13303_v60 = vpop.eup %13302 }
0x38ea   :  { %v13305_v62 = vpop.eup %13304  ;;  %v7009_v16 = vmul.f32 %v13303_v60, %v13295_v18  ;;  %v12379_v24 = vpack.c.bf16 %v12925_v48, %v12924_v17 }
0x38eb   :  { %v7008_v12 = vmul.f32 %v13305_v62, %v13297_v0  ;;  %v7128_v44 = vpop.permute.xlu0 %7127 }
0x38ed   :  { %11639 = vmatprep.mubr.msk.f32.mxu0 %vm501_vm0, %v7008_v12 }
0x38ee   :  { %v13307_v36 = vpop.eup %13306  ;;  %11640 = vmatmul.mubr.msk.f32.vlgmr.msra.gmra.mrb[80].mxu0 %vm501_vm0, %v7009_v16 }
0x38ef   :  { %12378 = vmatpush3.bf16.xpose.msk.msra.mxu0 %vm14564_vm2, %v12373_v39  ;;  %v7010_v19 = vmul.f32 %v13307_v36, %v13299_v34  ;;  %v7132_v25 = vpop.permute.xlu0 %7131 }
0x38f0   :  { %12381 = vmatprep.subr.msk.bf16.mxu0 %vm14564_vm2, %v12379_v24 }
0x38f1   :  { %11642 = vmatprep.mubr.msk.f32.mxu0 %vm501_vm0, %v7010_v19 }
0x38f7   :  { %12384 = vmatpush3.bf16.xpose.msk.msra.mxu0 %vm14564_vm2, %v12379_v24 }
0x3913   :  { %v7003_v50 = vpop.xlane.xlu1 %7002 }
0x3914   :  { %13308 = vrcp.f32 %v7003_v50 }
0x3917   :  { %v7126_v43 = vpop.permute.xlu1 %7125 }
0x391b   :  { %v7130_v13 = vpop.permute.xlu1 %7129 }
0x391e   :  { %v13309_v5 = vpop.eup %13308 }
0x391f   :  { %v7011_v3 = vmul.f32 %v13309_v5, %v13301_v22 }
0x3921   :  { %11643 = vmatmul.mubr.msk.f32.gmra.mrb[82].mxu0 %vm501_vm0, %v7011_v3 }
0x3922   :  { %11653 = vmatprep.mubr.msk.f32.mxu0 %vm731_vm1, %v7126_v43 }
0x3925   :  { %11654 = vmatmul.mubr.msk.f32.vlgmr.msra.gmra.mrb[84].mxu0 %vm731_vm1, %v7128_v44 }
0x3926   :  { %11656 = vmatprep.mubr.msk.f32.mxu0 %vm731_vm1, %v7130_v13 }
0x3929   :  { %11657 = vmatmul.mubr.msk.f32.gmra.mrb[86].mxu0 %vm731_vm1, %v7132_v25 }
0x39c1   :  { %v15887_v45 = vpop.f32.mrb[80].mxu0 }
0x39c2   :  { %v15889_v18 = vpop.f32.mrb[81].mxu0 }
0x39f4   :  { %v15891_v0 = vpop.f32.mrb[82].mxu0 }
0x39f5   :  { %v15893_v54 = vpop.f32.mrb[83].mxu0 }
0x39f8   :  { %v11655_v32 = vpop.f32.mrb[84].mxu0 }
0x39f9   :  { %v7229_v34 = vadd.f32 %v11655_v32, %v15778_v23  ;;  %v7223_v31 = vpop.f32.mrb[85].mxu0 }
0x39fa   :  { %v7224_v53 = vadd.f32 %v7223_v31, %v15781_v27 }
0x39fb   :  { %v7245_v59 = vsel %vm501_vm0, %v7229_v34, -inf }
0x39fc   :  { %7246 = vmax.xlane.f32.xlu0 %v7245_v59  ;;  %v11658_v22 = vpop.f32.mrb[86].mxu0  ;;  %v7242_v10 = vsel %vm501_vm0, %v7224_v53, -inf }
0x39fd   :  { %v7239_v49 = vadd.f32 %v11658_v22, %v15791_v15  ;;  %v7233_v8 = vpop.f32.mrb[87].mxu0  ;;  %7243 = vmax.xlane.f32.xlu1 %v7242_v10 }
0x39fe   :  { %v7234_v14 = vadd.f32 %v7233_v8, %v15787_v4 }
0x39ff   :  { %v7251_v61 = vsel %vm501_vm0, %v7239_v49, -inf }
0x3a00   :  { %v7248_v57 = vsel %vm501_vm0, %v7234_v14, -inf }
0x3a01   :  { %7249 = vmax.xlane.f32.xlu0 %v7248_v57  ;;  %7252 = vmax.xlane.f32.xlu1 %v7251_v61 }
0x3a12   :  { %12932 = vrot.lane.b32.xlu1 %v15801_v33, %s14100_s23 }
0x3a17   :  { %12927 = vrot.lane.b32.xlu0 %v15799_v9, %s14100_s23 }
0x3a89   :  { %v7247_v2 = vpop.xlane.xlu0 %7246 }
0x3a8a   :  { %v7255_v39 = vsub.f32 %v7229_v34, %v7247_v2  ;;  %v7244_v26 = vpop.xlane.xlu1 %7243 }
0x3a8b   :  { %v7254_v60 = vsub.f32 %v7224_v53, %v7244_v26 }
0x3a8c   :  { %v7260_v62 = vmul.f32 1.442695, %v7255_v39 }
0x3a8d   :  { %v7258_v48 = vmul.f32 1.442695, %v7254_v60 }
0x3a8e   :  { %13310 = vpow2.f32 %v7260_v62  ;;  %v7250_v17 = vpop.xlane.xlu0 %7249  ;;  %v7253_v12 = vpop.xlane.xlu1 %7252 }
0x3a8f   :  { %13312 = vpow2.f32 %v7258_v48  ;;  %v7256_v16 = vsub.f32 %v7234_v14, %v7250_v17  ;;  %v7257_v22 = vsub.f32 %v7239_v49, %v7253_v12 }
0x3a91   :  { %v7262_v36 = vmul.f32 1.442695, %v7256_v16  ;;  %v7264_v10 = vmul.f32 1.442695, %v7257_v22 }
0x3a92   :  { %v12928_v24 = vpop.permute.xlu0 %12927  ;;  %v12933_v19 = vpop.permute.xlu1 %12932 }
0x3a93   :  { %13314 = vpow2.f32 %v7262_v36  ;;  %v12930_v50 = vunpack.i.h.bf16 %v12928_v24  ;;  %v12929_v5 = vunpack.i.l.bf16 %v12928_v24  ;;  %v12935_v43 = vunpack.i.h.bf16 %v12933_v19 }
0x3a94   :  { %v12934_v3 = vunpack.i.l.bf16 %v12933_v19  ;;  %13316 = vpow2.f32 %v7264_v10 }
0x3a95   :  { %v12385_v44 = vpack.c.bf16 %v12930_v50, %v12929_v5 }
0x3a96   :  { %v12389_v13 = vpack.c.bf16 %v12935_v43, %v12934_v3 }
0x3a97   :  { %12386 = vmatprep.subr.bf16.mxu1 %v12385_v44 }
0x3a98   :  { %v13311_v25 = vpop.eup %13310  ;;  %12388 = vmatpush3.bf16.msra.mxu1 %v12385_v44 }
0x3a99   :  { %v13313_v32 = vpop.eup %13312  ;;  %12390 = vmatprep.subr.bf16.mxu1 %v12389_v13  ;;  %v7269_v34 = vsel %vm501_vm0, %v13311_v25, 0.0 }
0x3a9a   :  { %7270 = vadd.xlane.f32.xlu1 %v7269_v34  ;;  %v7266_v31 = vsel %vm501_vm0, %v13313_v32, 0.0 }
0x3a9b   :  { %7267 = vadd.xlane.f32.xlu0 %v7266_v31 }
0x3a9c   :  { %12392 = vmatpush3.bf16.msra.mxu1 %v12389_v13 }
0x3a9d   :  { %v13315_v53 = vpop.eup %13314 }
0x3a9e   :  { %v7272_v59 = vsel %vm501_vm0, %v13315_v53, 0.0  ;;  %v13317_v8 = vpop.eup %13316 }
0x3a9f   :  { %7273 = vadd.xlane.f32.xlu0 %v7272_v59  ;;  %v7275_v14 = vsel %vm501_vm0, %v13317_v8, 0.0 }
0x3aab   :  { %12937 = vrot.lane.b32.xlu1 %v15735_v55, %s14101_s27 }
0x3ab5   :  { %12942 = vrot.lane.b32.xlu0 %v15747_v58, %s14101_s27 }
0x3ab9   :  { %7397 = vrot.lane.b32.xlu0 %v15765_v6, %s14102_s26 }
0x3abd   :  { %7401 = vrot.lane.b32.xlu0 %v15773_v51, %s14102_s26 }
0x3acf   :  { %7276 = vadd.xlane.f32.xlu1 %v7275_v14 }
0x3ae0   :  { %7395 = vrot.lane.b32.xlu1 %v15737_v37, %s14102_s26 }
0x3ae4   :  { %7399 = vrot.lane.b32.xlu1 %v15767_v1, %s14102_s26 }
0x3b27   :  { %v7271_v55 = vpop.xlane.xlu1 %7270 }
0x3b28   :  { %13318 = vrcp.f32 %v7271_v55  ;;  %v7268_v58 = vpop.xlane.xlu0 %7267 }
0x3b29   :  { %13320 = vrcp.f32 %v7268_v58 }
0x3b2b   :  { %v12938_v6 = vpop.permute.xlu1 %12937 }
0x3b2c   :  { %v12940_v49 = vunpack.i.h.bf16 %v12938_v6  ;;  %v12939_v61 = vunpack.i.l.bf16 %v12938_v6  ;;  %v7274_v57 = vpop.xlane.xlu0 %7273 }
0x3b2d   :  { %13322 = vrcp.f32 %v7274_v57 }
0x3b2e   :  { %v12393_v51 = vpack.c.bf16 %v12940_v49, %v12939_v61 }
0x3b30   :  { %v12943_v2 = vpop.permute.xlu0 %12942  ;;  %12395 = vmatprep.subr.msk.bf16.mxu1 %vm14564_vm2, %v12393_v51 }
0x3b31   :  { %v12945_v37 = vunpack.i.h.bf16 %v12943_v2  ;;  %v12944_v60 = vunpack.i.l.bf16 %v12943_v2 }
0x3b32   :  { %v13319_v39 = vpop.eup %13318 }
0x3b33   :  { %v13321_v26 = vpop.eup %13320  ;;  %v7283_v1 = vmul.f32 %v13319_v39, %v13311_v25  ;;  %v12399_v17 = vpack.c.bf16 %v12945_v37, %v12944_v60 }
0x3b34   :  { %v7282_v62 = vmul.f32 %v13321_v26, %v13313_v32  ;;  %v7398_v50 = vpop.permute.xlu0 %7397 }
0x3b36   :  { %11667 = vmatprep.mubr.msk.f32.mxu1 %vm501_vm0, %v7282_v62 }
0x3b37   :  { %v13323_v48 = vpop.eup %13322  ;;  %11668 = vmatmul.mubr.msk.f32.vlgmr.msra.gmra.mrb[102].mxu1 %vm501_vm0, %v7283_v1 }
0x3b38   :  { %12398 = vmatpush3.bf16.xpose.msk.msra.mxu1 %vm14564_vm2, %v12393_v51  ;;  %v7284_v12 = vmul.f32 %v13323_v48, %v13315_v53  ;;  %v7402_v43 = vpop.permute.xlu0 %7401 }
0x3b39   :  { %12401 = vmatprep.subr.msk.bf16.mxu1 %vm14564_vm2, %v12399_v17 }
0x3b3a   :  { %11670 = vmatprep.mubr.msk.f32.mxu1 %vm501_vm0, %v7284_v12 }
0x3b40   :  { %12404 = vmatpush3.bf16.xpose.msk.msra.mxu1 %vm14564_vm2, %v12399_v17 }
0x3b5c   :  { %v7277_v16 = vpop.xlane.xlu1 %7276 }
0x3b5d   :  { %13324 = vrcp.f32 %v7277_v16 }
0x3b60   :  { %v7396_v24 = vpop.permute.xlu1 %7395 }
0x3b64   :  { %v7400_v5 = vpop.permute.xlu1 %7399 }
0x3b67   :  { %v13325_v36 = vpop.eup %13324 }
0x3b68   :  { %v7285_v19 = vmul.f32 %v13325_v36, %v13317_v8 }
0x3b6a   :  { %11671 = vmatmul.mubr.msk.f32.gmra.mrb[104].mxu1 %vm501_vm0, %v7285_v19 }
0x3b6b   :  { %11681 = vmatprep.mubr.msk.f32.mxu1 %vm731_vm1, %v7396_v24 }
0x3b6e   :  { %11682 = vmatmul.mubr.msk.f32.vlgmr.msra.gmra.mrb[106].mxu1 %vm731_vm1, %v7398_v50 }
0x3b6f   :  { %11684 = vmatprep.mubr.msk.f32.mxu1 %vm731_vm1, %v7400_v5 }
0x3b72   :  { %11685 = vmatmul.mubr.msk.f32.gmra.mrb[108].mxu1 %vm731_vm1, %v7402_v43 }
0x3c0a   :  { %v11669_v3 = vpop.f32.mrb[102].mxu1 }
0x3c0b   :  { %v7376_v44 = vpop.f32.mrb[103].mxu1 }
0x3c3d   :  { %v15939_v13 = vpop.f32.mrb[104].mxu1 }
0x3c3e   :  { %v15941_v25 = vpop.f32.mrb[105].mxu1 }
0x3c41   :  { %v11683_v32 = vpop.f32.mrb[106].mxu1 }
0x3c42   :  { %v7499_v34 = vadd.f32 %v11683_v32, %v15778_v23  ;;  %v7493_v31 = vpop.f32.mrb[107].mxu1 }
0x3c43   :  { %v7494_v53 = vadd.f32 %v7493_v31, %v15781_v27 }
0x3c44   :  { %v7515_v59 = vsel %vm501_vm0, %v7499_v34, -inf }
0x3c45   :  { %7516 = vmax.xlane.f32.xlu0 %v7515_v59  ;;  %v11686_v22 = vpop.f32.mrb[108].mxu1  ;;  %v7512_v10 = vsel %vm501_vm0, %v7494_v53, -inf }
0x3c46   :  { %v7509_v8 = vadd.f32 %v11686_v22, %v15791_v15  ;;  %v7503_v14 = vpop.f32.mrb[109].mxu1  ;;  %7513 = vmax.xlane.f32.xlu1 %v7512_v10 }
0x3c47   :  { %v7504_v55 = vadd.f32 %v7503_v14, %v15787_v4 }
0x3c48   :  { %v7521_v58 = vsel %vm501_vm0, %v7509_v8, -inf }
0x3c49   :  { %v7518_v6 = vsel %vm501_vm0, %v7504_v55, -inf }
0x3c4a   :  { %7519 = vmax.xlane.f32.xlu0 %v7518_v6  ;;  %7522 = vmax.xlane.f32.xlu1 %v7521_v58  ;;  %v10262_v58 = vld [vmem:[%s16552_s10 + $0x28] sm:$0xff]  ;;  %v10263_v6 = vld [vmem:[%s16552_s10 + $0x30] sm:$0xff] }
0x3cd2   :  { %v7517_v23 = vpop.xlane.xlu0 %7516 }
0x3cd3   :  { %v7525_v27 = vsub.f32 %v7499_v34, %v7517_v23  ;;  %v7514_v49 = vpop.xlane.xlu1 %7513 }
0x3cd4   :  { %v7524_v61 = vsub.f32 %v7494_v53, %v7514_v49 }
0x3cd5   :  { %v7530_v57 = vmul.f32 1.442695, %v7525_v27  ;;  %v10264_v27 = vld [vmem:[%s16552_s10 + $0x38] sm:$0xff] }
0x3cd6   :  { %v7528_v51 = vmul.f32 1.442695, %v7524_v61  ;;  %v12417_v49 = vpack.c.bf16 %v10264_v27, %v10263_v6 }
0x3cd7   :  { %13326 = vpow2.f32 %v7530_v57  ;;  %v7520_v2 = vpop.xlane.xlu0 %7519  ;;  %v7523_v39 = vpop.xlane.xlu1 %7522 }
0x3cd8   :  { %13328 = vpow2.f32 %v7528_v51  ;;  %v7526_v15 = vsub.f32 %v7504_v55, %v7520_v2  ;;  %v7527_v26 = vsub.f32 %v7509_v8, %v7523_v39  ;;  %v10261_v55 = vld [vmem:[%s16552_s10 + $0x20] sm:$0xff] }
0x3cd9   :  { %v12413_v23 = vpack.c.bf16 %v10262_v58, %v10261_v55 }
0x3cda   :  { %v7532_v37 = vmul.f32 1.442695, %v7526_v15  ;;  %v7534_v4 = vmul.f32 1.442695, %v7527_v26 }
0x3cdc   :  { %13330 = vpow2.f32 %v7532_v37 }
0x3cdd   :  { %13332 = vpow2.f32 %v7534_v4 }
0x3ce1   :  { %v13327_v60 = vpop.eup %13326 }
0x3ce2   :  { %v13329_v62 = vpop.eup %13328  ;;  %v7539_v1 = vsel %vm501_vm0, %v13327_v60, 0.0 }
0x3ce3   :  { %7540 = vadd.xlane.f32.xlu1 %v7539_v1  ;;  %v7536_v48 = vsel %vm501_vm0, %v13329_v62, 0.0 }
0x3ce4   :  { %7537 = vadd.xlane.f32.xlu0 %v7536_v48 }
0x3ce6   :  { %v13331_v17 = vpop.eup %13330 }
0x3ce7   :  { %v13333_v12 = vpop.eup %13332  ;;  %v7542_v16 = vsel %vm501_vm0, %v13331_v17, 0.0 }
0x3ce8   :  { %7543 = vadd.xlane.f32.xlu0 %v7542_v16  ;;  %v7545_v36 = vsel %vm501_vm0, %v13333_v12, 0.0 }
0x3ce9   :  { %7546 = vadd.xlane.f32.xlu1 %v7545_v36 }
0x3cfa   :  { %12952 = vrot.lane.b32.xlu1 %v15801_v33, %s14102_s26 }
0x3cfe   :  { %7669 = vrot.lane.b32.xlu1 %v15889_v18, %s14089_s14  ;;  %12947 = vrot.lane.b32.xlu0 %v15799_v9, %s14102_s26 }
0x3d02   :  { %7685 = vrot.lane.b32.xlu1 %v7376_v44, %s14071_s2  ;;  %7671 = vrot.lane.b32.xlu0 %v15887_v45, %s14089_s14 }
0x3d06   :  { %7687 = vrot.lane.b32.xlu0 %v11669_v3, %s14071_s2 }
0x3d70   :  { %v7541_v24 = vpop.xlane.xlu1 %7540 }
0x3d71   :  { %v7538_v19 = vpop.xlane.xlu0 %7537 }
0x3d72   :  { %13334 = vrcp.f32 %v7538_v19 }
0x3d73   :  { %13336 = vrcp.f32 %v7541_v24 }
0x3d75   :  { %v7544_v50 = vpop.xlane.xlu0 %7543 }
0x3d76   :  { %v7547_v5 = vpop.xlane.xlu1 %7546  ;;  %13338 = vrcp.f32 %v7544_v50 }
0x3d77   :  { %13340 = vrcp.f32 %v7547_v5 }
0x3d79   :  { %v12948_v33 = vpop.permute.xlu0 %12947 }
0x3d7a   :  { %v12950_v43 = vunpack.i.h.bf16 %v12948_v33  ;;  %v12949_v18 = vunpack.i.l.bf16 %v12948_v33  ;;  %v12953_v32 = vpop.permute.xlu1 %12952 }
0x3d7b   :  { %v12955_v9 = vunpack.i.h.bf16 %v12953_v32  ;;  %v12954_v34 = vunpack.i.l.bf16 %v12953_v32 }
0x3d7c   :  { %v13335_v44 = vpop.eup %13334  ;;  %v12405_v31 = vpack.c.bf16 %v12950_v43, %v12949_v18 }
0x3d7d   :  { %v7552_v53 = vmul.f32 %v13335_v44, %v13329_v62  ;;  %v12409_v45 = vpack.c.bf16 %v12955_v9, %v12954_v34  ;;  %v13337_v3 = vpop.eup %13336  ;;  %v7672_v39 = vpop.permute.xlu0 %7671 }
0x3d7e   :  { %12406 = vmatprep.subr.bf16.mxu0 %v12405_v31  ;;  %v7553_v22 = vmul.f32 %v13337_v3, %v13327_v60  ;;  %v7670_v15 = vpop.permute.xlu1 %7669 }
0x3d7f   :  { %12408 = vmatpush3.bf16.msra.mxu0 %v12405_v31  ;;  %11695 = vmatprep.mubr.msk.f32.mxu0 %vm501_vm0, %v7552_v53 }
0x3d80   :  { %12410 = vmatprep.subr.bf16.mxu0 %v12409_v45  ;;  %v13339_v59 = vpop.eup %13338 }
0x3d81   :  { %v13341_v10 = vpop.eup %13340  ;;  %v7554_v8 = vmul.f32 %v13339_v59, %v13331_v17  ;;  %v7688_v26 = vpop.permute.xlu0 %7687 }
0x3d82   :  { %v7555_v14 = vmul.f32 %v13341_v10, %v13333_v12  ;;  %v7686_v37 = vpop.permute.xlu1 %7685 }
0x3d83   :  { %12412 = vmatpush3.bf16.msra.mxu0 %v12409_v45 }
0x3d84   :  { %12414 = vmatprep.subr.bf16.mxu0 %v12413_v23 }
0x3d86   :  { %11696 = vmatmul.mubr.msk.f32.vlgmr.msra.gmra.mrb[88].mxu0 %vm501_vm0, %v7553_v22 }
0x3d87   :  { %11698 = vmatprep.mubr.msk.f32.mxu0 %vm501_vm0, %v7554_v8  ;;  %12416 = vmatpush3.bf16.msra.mxu0 %v12413_v23 }
0x3d88   :  { %12418 = vmatprep.subr.bf16.mxu0 %v12417_v49 }
0x3d8a   :  { %11699 = vmatmul.mubr.msk.f32.gmra.mrb[90].mxu0 %vm501_vm0, %v7555_v14 }
0x3d8b   :  { %12420 = vmatpush3.bf16.msra.mxu0 %v12417_v49 }
0x3e59   :  { %v11697_v61 = vpop.f32.mrb[88].mxu0 }
0x3e5a   :  { %7703 = vrot.lane.b32.xlu0 %v11697_v61, %s14103_s1  ;;  %v7646_v57 = vpop.f32.mrb[89].mxu0 }
0x3e5b   :  { %7701 = vrot.lane.b32.xlu1 %v7646_v57, %s14103_s1 }
0x3e5d   :  { %v11700_v51 = vpop.f32.mrb[90].mxu0 }
0x3e5e   :  { %7675 = vrot.lane.b32.xlu0 %v15891_v0, %s14089_s14  ;;  %v7656_v2 = vpop.f32.mrb[91].mxu0  ;;  %v7713_v0 = vsel %vm731_vm1, %v15837_v46, %v7670_v15 }
0x3e5f   :  { %7673 = vrot.lane.b32.xlu1 %v15893_v54, %s14089_s14  ;;  %v7714_v54 = vsel %vm731_vm1, %v15835_v63, %v7672_v39 }
0x3e62   :  { %7691 = vrot.lane.b32.xlu0 %v15939_v13, %s14071_s2  ;;  %v7717_v13 = vsel %vm1844_vm3, %v7713_v0, %v7686_v37 }
0x3e63   :  { %7689 = vrot.lane.b32.xlu1 %v15941_v25, %s14071_s2  ;;  %v7718_v25 = vsel %vm1844_vm3, %v7714_v54, %v7688_v26 }
0x3e66   :  { %7707 = vrot.lane.b32.xlu0 %v11700_v51, %s14103_s1 }
0x3e67   :  { %7705 = vrot.lane.b32.xlu1 %v7656_v2, %s14103_s1 }
0x3ecc   :  { %v7704_v4 = vpop.permute.xlu0 %7703 }
0x3ecd   :  { %v7702_v60 = vpop.permute.xlu1 %7701  ;;  %v7722_v1 = vsel %vm1849_vm4, %v7718_v25, %v7704_v4  ;;  %v10331_v25 = vld [vmem:[%s16553_s17 + $0x30] sm:$0xff] }
0x3ece   :  { %v7721_v62 = vsel %vm1849_vm4, %v7717_v13, %v7702_v60 }
0x3ecf   :  { %11709 = vmatprep.mubr.msk.f32.mxu0 %vm501_vm0, %v7721_v62  ;;  %v10332_v62 = vld [vmem:[%s16553_s17 + $0x38] sm:$0xff] }
0x3ed0   :  { %v7676_v48 = vpop.permute.xlu0 %7675  ;;  %11710 = vmatmul.mubr.msk.f32.vlgmr.msra.gmra.mrb[92].mxu0 %vm501_vm0, %v7722_v1  ;;  %v12961_v1 = vpack.i.bf16 %v10332_v62, %v10331_v25 }
0x3ed1   :  { %v7674_v17 = vpop.permute.xlu1 %7673  ;;  %v7716_v36 = vsel %vm731_vm1, %v15839_v7, %v7676_v48  ;;  %v10329_v48 = vld [vmem:[%s16553_s17 + $0x20] sm:$0xff] }
0x3ed2   :  { %v7715_v63 = vsel %vm731_vm1, %v15841_v41, %v7674_v17  ;;  %v10322_v41 = vld [vmem:[#allocation16 + $0x1] ss:$0 sm:$0xff]  ;;  %v10330_v17 = vld [vmem:[%s16553_s17 + $0x28] sm:$0xff] }
0x3ed4   :  { %v7692_v46 = vpop.permute.xlu0 %7691 }
0x3ed5   :  { %v7690_v12 = vpop.permute.xlu1 %7689  ;;  %v7720_v50 = vsel %vm1844_vm3, %v7716_v36, %v7692_v46  ;;  %v16032_v46 = vld [vmem:[#allocation20 + $0x1] ss:$0 sm:$0xff] }
0x3ed6   :  { %v7719_v24 = vsel %vm1844_vm3, %v7715_v63, %v7690_v12  ;;  %v12956_v12 = vpack.i.bf16 %v10330_v17, %v10329_v48  ;;  %v12421_v63 = vpack.c.bf16 %v10330_v17, %v10329_v48 }
0x3ed8   :  { %v7708_v16 = vpop.permute.xlu0 %7707  ;;  %12422 = vmatprep.subr.bf16.mxu1 %v12421_v63 }
0x3ed9   :  { %v7706_v19 = vpop.permute.xlu1 %7705  ;;  %v7724_v33 = vsel %vm1849_vm4, %v7720_v50, %v7708_v16  ;;  %v12425_v16 = vpack.c.bf16 %v10332_v62, %v10331_v25  ;;  %12424 = vmatpush3.bf16.msra.mxu1 %v12421_v63 }
0x3eda   :  { %v7723_v5 = vsel %vm1849_vm4, %v7719_v24, %v7706_v19 }
0x3edb   :  { %11712 = vmatprep.mubr.msk.f32.mxu0 %vm501_vm0, %v7723_v5  ;;  %12426 = vmatprep.subr.bf16.mxu1 %v12425_v16 }
0x3edc   :  { %11713 = vmatmul.mubr.msk.f32.gmra.mrb[94].mxu0 %vm501_vm0, %v7724_v33 }
0x3edd   :  { %11737 = vmatprep.mubr.msk.f32.mxu0 %vm501_vm0, %v15324_v11  ;;  %12428 = vmatpush3.bf16.msra.mxu1 %v12425_v16 }
0x3fa3   :  { %v11711_v43 = vpop.f32.mrb[92].mxu0 }
0x3fa4   :  { %v7815_v18 = vadd.f32 %v11711_v43, %v10322_v41  ;;  %v7809_v7 = vpop.f32.mrb[93].mxu0 }
0x3fa5   :  { %v7810_v32 = vadd.f32 %v10322_v41, %v7809_v7 }
0x3fa6   :  { %v7833_v9 = vadd.f32 %v7815_v18, %v15709_v20 }
0x3fa7   :  { %v7832_v34 = vadd.f32 %v7810_v32, %v15711_v47 }
0x3fa8   :  { %v7839_v44 = vsel %vm501_vm0, %v7833_v9, 0.0 }
0x3fa9   :  { %7840 = vadd.xlane.f32.xlu0 %v7839_v44  ;;  %v7836_v31 = vsel %vm501_vm0, %v7832_v34, 0.0 }
0x3faa   :  { %7837 = vadd.xlane.f32.xlu1 %v7836_v31 }
0x3faf   :  { %v11714_v53 = vpop.f32.mrb[94].mxu0 }
0x3fb0   :  { %v7825_v45 = vadd.f32 %v11714_v53, %v10322_v41  ;;  %v7819_v3 = vpop.f32.mrb[95].mxu0 }
0x3fb1   :  { %v7820_v59 = vadd.f32 %v10322_v41, %v7819_v3 }
0x3fb2   :  { %v7835_v11 = vadd.f32 %v7825_v45, %v15719_v52 }
0x3fb3   :  { %v7834_v22 = vadd.f32 %v7820_v59, %v15721_v56 }
0x3fb4   :  { %v7845_v10 = vsel %vm501_vm0, %v7835_v11, 0.0 }
0x3fb5   :  { %7846 = vadd.xlane.f32.xlu1 %v7845_v10  ;;  %v7842_v8 = vsel %vm501_vm0, %v7834_v22, 0.0 }
0x3fb6   :  { %7843 = vadd.xlane.f32.xlu0 %v7842_v8 }
0x4036   :  { %v7841_v14 = vpop.xlane.xlu0 %7840 }
0x4037   :  { %v7849_v55 = vmul.f32 0.03125, %v7841_v14  ;;  %v7838_v58 = vpop.xlane.xlu1 %7837 }
0x4038   :  { %v7848_v6 = vmul.f32 0.03125, %v7838_v58 }
0x4039   :  { %v7853_v23 = vsub.f32 %v7833_v9, %v7849_v55 }
0x403a   :  { %v7852_v27 = vsub.f32 %v7832_v34, %v7848_v6  ;;  %v10327_v34 = vld [vmem:[#allocation17 + $0x1] ss:$0 sm:$0xff] }
0x403b   :  { %v7857_v49 = vmul.f32 %v7853_v23, %v7853_v23 }
0x403c   :  { %v7856_v61 = vmul.f32 %v7852_v27, %v7852_v27 }
0x403d   :  { %v7863_v57 = vsel %vm501_vm0, %v7857_v49, 0.0 }
0x403e   :  { %7864 = vadd.xlane.f32.xlu1 %v7863_v57  ;;  %v7860_v51 = vsel %vm501_vm0, %v7856_v61, 0.0 }
0x403f   :  { %7861 = vadd.xlane.f32.xlu0 %v7860_v51 }
0x4042   :  { %v7847_v2 = vpop.xlane.xlu1 %7846 }
0x4043   :  { %v7851_v39 = vmul.f32 0.03125, %v7847_v2  ;;  %v7844_v15 = vpop.xlane.xlu0 %7843 }
0x4044   :  { %v7850_v26 = vmul.f32 0.03125, %v7844_v15 }
0x4045   :  { %v16017_v37 = vsub.f32 %v7835_v11, %v7851_v39 }
0x4046   :  { %v16019_v0 = vsub.f32 %v7834_v22, %v7850_v26  ;;  %v10328_v22 = vld [vmem:[#allocation19 + $0x1] ss:$0 sm:$0xff]  ;;  %v13467_v26 = vld [vmem:[%s16554_s11 + $0x8] sm:$0xff] }
0x4047   :  { %v7859_v4 = vmul.f32 %v16017_v37, %v16017_v37 }
0x4048   :  { %v7858_v54 = vmul.f32 %v16019_v0, %v16019_v0 }
0x4049   :  { %v7869_v13 = vsel %vm501_vm0, %v7859_v4, 0.0 }
0x404a   :  { %7870 = vadd.xlane.f32.xlu1 %v7869_v13  ;;  %v7866_v60 = vsel %vm501_vm0, %v7858_v54, 0.0 }
0x404b   :  { %7867 = vadd.xlane.f32.xlu0 %v7866_v60 }
0x405b   :  { %12962 = vrot.lane.b32.xlu1 %v12961_v1, %s14095_s0 }
0x405f   :  { %8045 = vrot.lane.b32.xlu1 %v16032_v46, %s14095_s0 }
0x4061   :  { %12957 = vrot.lane.b32.xlu0 %v12956_v12, %s14095_s0 }
0x4063   :  { %12972 = vrot.lane.b32.xlu1 %v12961_v1, %s14096_s8 }
0x4065   :  { %12967 = vrot.lane.b32.xlu0 %v12956_v12, %s14096_s8 }
0x40cb   :  { %v7865_v36 = vpop.xlane.xlu1 %7864 }
0x40cc   :  { %v7873_v24 = vmul.f32 0.03125, %v7865_v36  ;;  %v7862_v19 = vpop.xlane.xlu0 %7861 }
0x40cd   :  { %v7872_v50 = vmul.f32 0.03125, %v7862_v19  ;;  %v13469_v19 = vld [vmem:[%s16554_s11 + $0x18] sm:$0xff] }
0x40ce   :  { %v7877_v5 = vadd.f32 1e-05, %v7873_v24 }
0x40cf   :  { %v7876_v33 = vadd.f32 1e-05, %v7872_v50 }
0x40d0   :  { %13342 = vrsqrt.f32 %v7877_v5 }
0x40d1   :  { %13344 = vrsqrt.f32 %v7876_v33 }
0x40d7   :  { %v7871_v41 = vpop.xlane.xlu1 %7870 }
0x40d8   :  { %v7875_v43 = vmul.f32 0.03125, %v7871_v41  ;;  %v7868_v18 = vpop.xlane.xlu0 %7867 }
0x40d9   :  { %v7874_v7 = vmul.f32 0.03125, %v7868_v18 }
0x40da   :  { %v13343_v32 = vpop.eup %13342  ;;  %v7879_v9 = vadd.f32 1e-05, %v7875_v43 }
0x40db   :  { %v13345_v44 = vpop.eup %13344  ;;  %v7885_v31 = vmul.f32 %v13343_v32, %v7853_v23  ;;  %v7878_v53 = vadd.f32 1e-05, %v7874_v7  ;;  %v12963_v45 = vpop.permute.xlu1 %12962 }
0x40dc   :  { %13346 = vrsqrt.f32 %v7879_v9  ;;  %v12958_v3 = vpop.permute.xlu0 %12957  ;;  %v12965_v59 = vunpack.i.h.bf16 %v12963_v45  ;;  %v12964_v11 = vunpack.i.l.bf16 %v12963_v45  ;;  %v7884_v10 = vmul.f32 %v13345_v44, %v7852_v27  ;;  %v13466_v27 = vld [vmem:[%s16554_s11] sm:$0xff] }
0x40dd   :  { %13348 = vrsqrt.f32 %v7878_v53  ;;  %v12960_v8 = vunpack.i.h.bf16 %v12958_v3  ;;  %v12959_v14 = vunpack.i.l.bf16 %v12958_v3  ;;  %v7895_v55 = vmul.f32 %v10327_v34, %v7885_v31 }
0x40de   :  { %v7894_v58 = vmul.f32 %v10327_v34, %v7884_v10  ;;  %v12433_v61 = vpack.c.bf16 %v12965_v59, %v12964_v11 }
0x40df   :  { %v12429_v6 = vpack.c.bf16 %v12960_v8, %v12959_v14  ;;  %v16039_v49 = vadd.f32 %v10328_v22, %v7895_v55  ;;  %v8046_v23 = vpop.permute.xlu1 %8045 }
0x40e0   :  { %v16041_v57 = vadd.f32 %v10328_v22, %v7894_v58  ;;  %v12968_v51 = vpop.permute.xlu0 %12967 }
0x40e1   :  { %12430 = vmatprep.subr.bf16.mxu0 %v12429_v6  ;;  %v12970_v2 = vunpack.i.h.bf16 %v12968_v51  ;;  %v12969_v39 = vunpack.i.l.bf16 %v12968_v51  ;;  %v7909_v4 = vadd.f32 %v13467_v26, %v16039_v49  ;;  %v16112_v51 = vld [vmem:[%s16555_s25] sm:$0xff] }
0x40e2   :  { %12432 = vmatpush3.bf16.msra.mxu0 %v12429_v6  ;;  %v7908_v15 = vadd.f32 %v13466_v27, %v16041_v57  ;;  %v16108_v6 = vld [vmem:[%s16555_s25 + $0x8] sm:$0xff] }
0x40e3   :  { %12434 = vmatprep.subr.bf16.mxu0 %v12433_v61  ;;  %v12973_v54 = vpop.permute.xlu1 %12972  ;;  %v12437_v13 = vpack.c.bf16 %v12970_v2, %v12969_v39 }
0x40e4   :  { %11723 = vmatprep.mubr.msk.f32.mxu1 %vm501_vm0, %v7908_v15  ;;  %v12975_v60 = vunpack.i.h.bf16 %v12973_v54  ;;  %v12974_v25 = vunpack.i.l.bf16 %v12973_v54 }
0x40e5   :  { %11724 = vmatmul.mubr.msk.f32.vlgmr.msra.gmra.mrb[110].mxu1 %vm501_vm0, %v7909_v4  ;;  %12438 = vmatprep.subr.bf16.mxu1 %v12437_v13  ;;  %v16118_v4 = vld [vmem:[%s16555_s25 + $0x10] sm:$0xff] }
0x40e6   :  { %v13347_v62 = vpop.eup %13346  ;;  %12436 = vmatpush3.bf16.msra.mxu0 %v12433_v61  ;;  %12440 = vmatpush3.bf16.msra.mxu1 %v12437_v13  ;;  %v12441_v1 = vpack.c.bf16 %v12975_v60, %v12974_v25  ;;  %v16122_v13 = vld [vmem:[%s16555_s25 + $0x18] sm:$0xff] }
0x40e7   :  { %v13349_v48 = vpop.eup %13348  ;;  %v7887_v17 = vmul.f32 %v13347_v62, %v16017_v37  ;;  %v13468_v37 = vld [vmem:[%s16554_s11 + $0x10] sm:$0xff] }
0x40e8   :  { %v7886_v12 = vmul.f32 %v13349_v48, %v16019_v0  ;;  %12442 = vmatprep.subr.bf16.mxu1 %v12441_v1 }
0x40e9   :  { %11738 = vmatmul.mubr.msk.f32.vlgmr.msra.gmra.mrb[96].mxu0 %vm501_vm0, %v15331_v40  ;;  %v7897_v63 = vmul.f32 %v10327_v34, %v7887_v17 }
0x40ea   :  { %11740 = vmatprep.mubr.msk.f32.mxu0 %vm501_vm0, %v15344_v38  ;;  %v7896_v16 = vmul.f32 %v10327_v34, %v7886_v12  ;;  %12444 = vmatpush3.bf16.msra.mxu1 %v12441_v1 }
0x40eb   :  { %v16055_v36 = vadd.f32 %v10328_v22, %v7897_v63 }
0x40ec   :  { %v16057_v24 = vadd.f32 %v10328_v22, %v7896_v16 }
0x40ed   :  { %11741 = vmatmul.mubr.msk.f32.gmra.mrb[98].mxu0 %vm501_vm0, %v15350_v42  ;;  %v7911_v50 = vadd.f32 %v13469_v19, %v16055_v36 }
0x40ee   :  { %v7910_v0 = vadd.f32 %v13468_v37, %v16057_v24 }
0x40f0   :  { %11726 = vmatprep.mubr.msk.f32.mxu1 %vm501_vm0, %v7910_v0 }
0x40f1   :  { %11727 = vmatmul.mubr.msk.f32.gmra.mrb[112].mxu1 %vm501_vm0, %v7911_v50 }
0x40f2   :  { %11751 = vmatprep.mubr.msk.f32.mxu1 %vm501_vm0, %v15316_v28 }
0x40f5   :  { %11752 = vmatmul.mubr.msk.f32.vlgmr.msra.gmra.mrb[114].mxu1 %vm501_vm0, %v15310_v21 }
0x40f6   :  { %11754 = vmatprep.mubr.msk.f32.mxu1 %vm501_vm0, %v15340_v29 }
0x40f9   :  { %11755 = vmatmul.mubr.msk.f32.gmra.mrb[116].mxu1 %vm501_vm0, %v15334_v30 }
0x41b8   :  { %v11725_v40 = vpop.f32.mrb[110].mxu1 }
0x41b9   :  { %v8010_v38 = vpop.f32.mrb[111].mxu1  ;;  %v8016_v3 = vadd.f32 %v11725_v40, %v16032_v46 }
0x41ba   :  { %v8011_v42 = vadd.f32 %v16032_v46, %v8010_v38 }
0x41bb   :  { %v16094_v10 = vmul.f32 0.35355338, %v8016_v3 }
0x41bc   :  { %v16076_v5 = vmul.f32 0.35355338, %v8011_v42  ;;  %v11739_v33 = vpop.f32.mrb[96].mxu0 }
0x41bd   :  { %v8120_v41 = vadd.f32 %v11739_v33, %v8046_v23  ;;  %v8114_v43 = vpop.f32.mrb[97].mxu0 }
0x41be   :  { %v8115_v18 = vadd.f32 %v8114_v43, %v8046_v23  ;;  %11765 = vmatprep.mubr.msk.f32.mxu0 %vm731_vm1, %v16076_v5 }
0x41c0   :  { %v11742_v21 = vpop.f32.mrb[98].mxu0  ;;  %v12445_v28 = vpack.c.bf16 %v8120_v41, %v8115_v18  ;;  %v16080_v7 = vpack.i.bf16 %v8120_v41, %v8115_v18 }
0x41c1   :  { %v8130_v29 = vadd.f32 %v11742_v21, %v8046_v23  ;;  %v8124_v32 = vpop.f32.mrb[99].mxu0 }
0x41c2   :  { %v8125_v30 = vadd.f32 %v8124_v32, %v8046_v23  ;;  %12447 = vmatprep.subr.msk.bf16.mxu0 %vm14564_vm2, %v12445_v28 }
0x41c3   :  { %12450 = vmatpush3.bf16.xpose.msk.msra.mxu0 %vm14564_vm2, %v12445_v28 }
0x41c4   :  { %v11728_v9 = vpop.f32.mrb[112].mxu1  ;;  %v12451_v34 = vpack.c.bf16 %v8130_v29, %v8125_v30  ;;  %v16086_v44 = vpack.i.bf16 %v8130_v29, %v8125_v30 }
0x41c5   :  { %v8020_v31 = vpop.f32.mrb[113].mxu1  ;;  %v8026_v8 = vadd.f32 %v11728_v9, %v16032_v46 }
0x41c6   :  { %12453 = vmatprep.subr.msk.bf16.mxu0 %vm14564_vm2, %v12451_v34  ;;  %v8021_v11 = vadd.f32 %v16032_v46, %v8020_v31 }
0x41c7   :  { %v16103_v55 = vmul.f32 0.35355338, %v8026_v8 }
0x41c8   :  { %v11753_v53 = vpop.f32.mrb[114].mxu1  ;;  %v16097_v14 = vmul.f32 0.35355338, %v8021_v11 }
0x41c9   :  { %v8214_v45 = vpop.f32.mrb[115].mxu1 }
0x41cb   :  { %12456 = vmatpush3.bf16.xpose.msk.msra.mxu0 %vm14564_vm2, %v12451_v34 }
0x41cc   :  { %v11756_v59 = vpop.f32.mrb[116].mxu1 }
0x41cd   :  { %v8224_v22 = vpop.f32.mrb[117].mxu1 }
0x41d2   :  { %11766 = vmatmul.mubr.msk.f32.vlgmr.msra.gmra.mrb[100].mxu0 %vm731_vm1, %v16094_v10 }
0x41d3   :  { %11768 = vmatprep.mubr.msk.f32.mxu0 %vm731_vm1, %v16097_v14 }
0x41d6   :  { %11769 = vmatmul.mubr.msk.f32.gmra.mrb[102].mxu0 %vm731_vm1, %v16103_v55 }
0x42a5   :  { %v11767_v58 = vpop.f32.mrb[100].mxu0 }
0x42a6   :  { %v8333_v61 = vadd.f32 %v16108_v6, %v11767_v58  ;;  %v8327_v23 = vpop.f32.mrb[101].mxu0 }
0x42a7   :  { %v8328_v2 = vadd.f32 %v16112_v51, %v8327_v23 }
0x42a8   :  { %v8349_v39 = vsel %vm501_vm0, %v8333_v61, -inf }
0x42a9   :  { %8350 = vmax.xlane.f32.xlu1 %v8349_v39  ;;  %v11770_v27 = vpop.f32.mrb[102].mxu0  ;;  %v8346_v15 = vsel %vm501_vm0, %v8328_v2, -inf }
0x42aa   :  { %v8337_v26 = vpop.f32.mrb[103].mxu0  ;;  %8347 = vmax.xlane.f32.xlu0 %v8346_v15  ;;  %v8343_v60 = vadd.f32 %v16122_v13, %v11770_v27 }
0x42ab   :  { %v8338_v54 = vadd.f32 %v16118_v4, %v8337_v26 }
0x42ac   :  { %v8355_v62 = vsel %vm501_vm0, %v8343_v60, -inf }
0x42ad   :  { %v8352_v25 = vsel %vm501_vm0, %v8338_v54, -inf }
0x42ae   :  { %8353 = vmax.xlane.f32.xlu0 %v8352_v25 }
0x42b2   :  { %8356 = vmax.xlane.f32.xlu0 %v8355_v62 }
0x42ba   :  { %8145 = vrot.lane.b32.xlu1 %v16032_v46, %s14096_s8 }
0x4336   :  { %v8351_v1 = vpop.xlane.xlu1 %8350 }
0x4337   :  { %v8359_v48 = vsub.f32 %v8333_v61, %v8351_v1  ;;  %v8348_v17 = vpop.xlane.xlu0 %8347 }
0x4338   :  { %v8358_v12 = vsub.f32 %v8328_v2, %v8348_v17 }
0x4339   :  { %v8364_v63 = vmul.f32 1.442695, %v8359_v48 }
0x433a   :  { %v8362_v16 = vmul.f32 1.442695, %v8358_v12  ;;  %v8146_v37 = vpop.permute.xlu1 %8145 }
0x433b   :  { %13350 = vpow2.f32 %v8364_v63  ;;  %v8215_v0 = vadd.f32 %v8214_v45, %v8146_v37  ;;  %v8220_v19 = vadd.f32 %v11753_v53, %v8146_v37  ;;  %v8225_v50 = vadd.f32 %v8224_v22, %v8146_v37  ;;  %v8354_v40 = vpop.xlane.xlu0 %8353 }
0x433c   :  { %13352 = vpow2.f32 %v8362_v16  ;;  %v8230_v38 = vadd.f32 %v11756_v59, %v8146_v37  ;;  %v8360_v41 = vsub.f32 %v8338_v54, %v8354_v40 }
0x433d   :  { %v12457_v42 = vpack.c.bf16 %v8220_v19, %v8215_v0  ;;  %v16129_v33 = vpack.i.bf16 %v8220_v19, %v8215_v0 }
0x433e   :  { %v12461_v43 = vpack.c.bf16 %v8230_v38, %v8225_v50  ;;  %v16131_v46 = vpack.i.bf16 %v8230_v38, %v8225_v50  ;;  %v8366_v28 = vmul.f32 1.442695, %v8360_v41 }
0x433f   :  { %12458 = vmatprep.subr.bf16.mxu1 %v12457_v42  ;;  %v8357_v18 = vpop.xlane.xlu0 %8356 }
0x4340   :  { %v8361_v21 = vsub.f32 %v8343_v60, %v8357_v18  ;;  %12460 = vmatpush3.bf16.msra.mxu1 %v12457_v42 }
0x4341   :  { %12462 = vmatprep.subr.bf16.mxu1 %v12461_v43 }
0x4342   :  { %v8368_v29 = vmul.f32 1.442695, %v8361_v21 }
0x4344   :  { %13354 = vpow2.f32 %v8368_v29  ;;  %12464 = vmatpush3.bf16.msra.mxu1 %v12461_v43 }
0x4345   :  { %v13351_v32 = vpop.eup %13350  ;;  %13356 = vpow2.f32 %v8366_v28 }
0x4346   :  { %v13353_v30 = vpop.eup %13352  ;;  %v8373_v9 = vsel %vm501_vm0, %v13351_v32, 0.0 }
0x4347   :  { %8374 = vadd.xlane.f32.xlu0 %v8373_v9  ;;  %v8370_v34 = vsel %vm501_vm0, %v13353_v30, 0.0 }
0x4348   :  { %8371 = vadd.xlane.f32.xlu1 %v8370_v34 }
0x434e   :  { %v13355_v31 = vpop.eup %13354 }
0x434f   :  { %v8379_v53 = vsel %vm501_vm0, %v13355_v31, 0.0  ;;  %v13357_v45 = vpop.eup %13356 }
0x4350   :  { %8380 = vadd.xlane.f32.xlu0 %v8379_v53  ;;  %v8376_v3 = vsel %vm501_vm0, %v13357_v45, 0.0 }
0x4354   :  { %8377 = vadd.xlane.f32.xlu0 %v8376_v3 }
0x4359   :  { %12982 = vrot.lane.b32.xlu1 %v16086_v44, %s14098_s3 }
0x435d   :  { %8487 = vrot.lane.b32.xlu1 %v16076_v5, %s14098_s3 }
0x4361   :  { %8489 = vrot.lane.b32.xlu1 %v16094_v10, %s14098_s3 }
0x4365   :  { %8491 = vrot.lane.b32.xlu1 %v16097_v14, %s14098_s3 }
0x436a   :  { %12977 = vrot.lane.b32.xlu0 %v16080_v7, %s14098_s3 }
0x436e   :  { %8493 = vrot.lane.b32.xlu0 %v16103_v55, %s14098_s3 }
0x43d4   :  { %v8375_v59 = vpop.xlane.xlu0 %8374 }
0x43d5   :  { %13358 = vrcp.f32 %v8375_v59  ;;  %v8372_v11 = vpop.xlane.xlu1 %8371 }
0x43d6   :  { %13360 = vrcp.f32 %v8372_v11 }
0x43d9   :  { %v12983_v39 = vpop.permute.xlu1 %12982 }
0x43da   :  { %v12985_v15 = vunpack.i.h.bf16 %v12983_v39  ;;  %v12984_v26 = vunpack.i.l.bf16 %v12983_v39 }
0x43dc   :  { %v12471_v62 = vpack.c.bf16 %v12985_v15, %v12984_v26 }
0x43dd   :  { %v8381_v22 = vpop.xlane.xlu0 %8380  ;;  %v8488_v12 = vpop.permute.xlu1 %8487 }
0x43de   :  { %13362 = vrcp.f32 %v8381_v22 }
0x43df   :  { %v13359_v8 = vpop.eup %13358 }
0x43e0   :  { %v13361_v58 = vpop.eup %13360  ;;  %v8387_v2 = vmul.f32 %v13359_v8, %v13351_v32 }
0x43e1   :  { %v8378_v61 = vpop.xlane.xlu0 %8377  ;;  %v8386_v23 = vmul.f32 %v13361_v58, %v13353_v30  ;;  %v8490_v16 = vpop.permute.xlu1 %8489 }
0x43e2   :  { %13364 = vrcp.f32 %v8378_v61 }
0x43e3   :  { %11779 = vmatprep.mubr.msk.f32.mxu1 %vm501_vm0, %v8386_v23 }
0x43e4   :  { %11780 = vmatmul.mubr.msk.f32.vlgmr.msra.gmra.mrb[118].mxu1 %vm501_vm0, %v8387_v2 }
0x43e5   :  { %v12978_v27 = vpop.permute.xlu0 %12977  ;;  %v8492_v37 = vpop.permute.xlu1 %8491 }
0x43e6   :  { %v12980_v54 = vunpack.i.h.bf16 %v12978_v27  ;;  %v12979_v60 = vunpack.i.l.bf16 %v12978_v27 }
0x43e8   :  { %v12465_v25 = vpack.c.bf16 %v12980_v54, %v12979_v60  ;;  %v13363_v1 = vpop.eup %13362 }
0x43e9   :  { %v8389_v63 = vmul.f32 %v13363_v1, %v13355_v31  ;;  %v8494_v0 = vpop.permute.xlu0 %8493 }
0x43ea   :  { %12467 = vmatprep.subr.msk.bf16.mxu1 %vm14564_vm2, %v12465_v25 }
0x43eb   :  { %12470 = vmatpush3.bf16.xpose.msk.msra.mxu1 %vm14564_vm2, %v12465_v25 }
0x43ec   :  { %v13365_v48 = vpop.eup %13364  ;;  %12473 = vmatprep.subr.msk.bf16.mxu1 %vm14564_vm2, %v12471_v62 }
0x43ed   :  { %v8388_v17 = vmul.f32 %v13365_v48, %v13357_v45 }
0x43ef   :  { %11782 = vmatprep.mubr.msk.f32.mxu1 %vm501_vm0, %v8388_v17 }
0x43f0   :  { %11783 = vmatmul.mubr.msk.f32.gmra.mrb[120].mxu1 %vm501_vm0, %v8389_v63 }
0x43f1   :  { %11793 = vmatprep.mubr.msk.f32.mxu1 %vm731_vm1, %v8488_v12 }
0x43f3   :  { %12476 = vmatpush3.bf16.xpose.msk.msra.mxu1 %vm14564_vm2, %v12471_v62 }
0x43fa   :  { %11794 = vmatmul.mubr.msk.f32.vlgmr.msra.gmra.mrb[122].mxu1 %vm731_vm1, %v8490_v16 }
0x43fb   :  { %11796 = vmatprep.mubr.msk.f32.mxu1 %vm731_vm1, %v8492_v37 }
0x43fe   :  { %11797 = vmatmul.mubr.msk.f32.gmra.mrb[124].mxu1 %vm731_vm1, %v8494_v0 }
0x44b7   :  { %v16165_v19 = vpop.f32.mrb[118].mxu1 }
0x44b8   :  { %v16167_v50 = vpop.f32.mrb[119].mxu1 }
0x44c3   :  { %v16169_v40 = vpop.f32.mrb[120].mxu1 }
0x44c4   :  { %v16171_v38 = vpop.f32.mrb[121].mxu1 }
0x44cd   :  { %v11795_v42 = vpop.f32.mrb[122].mxu1 }
0x44ce   :  { %v8591_v41 = vadd.f32 %v16108_v6, %v11795_v42  ;;  %v8585_v43 = vpop.f32.mrb[123].mxu1 }
0x44cf   :  { %v8586_v18 = vadd.f32 %v16112_v51, %v8585_v43 }
0x44d0   :  { %v8607_v21 = vsel %vm501_vm0, %v8591_v41, -inf }
0x44d1   :  { %8608 = vmax.xlane.f32.xlu0 %v8607_v21  ;;  %v11798_v28 = vpop.f32.mrb[124].mxu1  ;;  %v8604_v29 = vsel %vm501_vm0, %v8586_v18, -inf }
0x44d2   :  { %v8601_v32 = vadd.f32 %v16122_v13, %v11798_v28  ;;  %v8595_v30 = vpop.f32.mrb[125].mxu1  ;;  %8605 = vmax.xlane.f32.xlu1 %v8604_v29 }
0x44d3   :  { %v8596_v9 = vadd.f32 %v16118_v4, %v8595_v30 }
0x44d4   :  { %v8613_v34 = vsel %vm501_vm0, %v8601_v32, -inf }
0x44d5   :  { %v8610_v31 = vsel %vm501_vm0, %v8596_v9, -inf }
0x44d6   :  { %8611 = vmax.xlane.f32.xlu0 %v8610_v31  ;;  %8614 = vmax.xlane.f32.xlu1 %v8613_v34 }
0x44e7   :  { %12992 = vrot.lane.b32.xlu1 %v16131_v46, %s14098_s3 }
0x44ec   :  { %12987 = vrot.lane.b32.xlu0 %v16129_v33, %s14098_s3 }
0x455e   :  { %v8609_v53 = vpop.xlane.xlu0 %8608 }
0x455f   :  { %v8617_v45 = vsub.f32 %v8591_v41, %v8609_v53  ;;  %v8606_v3 = vpop.xlane.xlu1 %8605 }
0x4560   :  { %v8616_v59 = vsub.f32 %v8586_v18, %v8606_v3 }
0x4561   :  { %v8622_v11 = vmul.f32 1.442695, %v8617_v45 }
0x4562   :  { %v8620_v22 = vmul.f32 1.442695, %v8616_v59 }
0x4563   :  { %13366 = vpow2.f32 %v8622_v11  ;;  %v8612_v8 = vpop.xlane.xlu0 %8611  ;;  %v8615_v58 = vpop.xlane.xlu1 %8614 }
0x4564   :  { %13368 = vpow2.f32 %v8620_v22  ;;  %v8618_v61 = vsub.f32 %v8596_v9, %v8612_v8  ;;  %v8619_v16 = vsub.f32 %v8601_v32, %v8615_v58 }
0x4566   :  { %v8624_v23 = vmul.f32 1.442695, %v8618_v61  ;;  %v8626_v37 = vmul.f32 1.442695, %v8619_v16 }
0x4567   :  { %v12988_v2 = vpop.permute.xlu0 %12987  ;;  %v12993_v39 = vpop.permute.xlu1 %12992 }
0x4568   :  { %13370 = vpow2.f32 %v8624_v23  ;;  %v12990_v27 = vunpack.i.h.bf16 %v12988_v2  ;;  %v12989_v15 = vunpack.i.l.bf16 %v12988_v2  ;;  %v12995_v26 = vunpack.i.h.bf16 %v12993_v39 }
0x4569   :  { %v12994_v54 = vunpack.i.l.bf16 %v12993_v39  ;;  %13372 = vpow2.f32 %v8626_v37 }
0x456a   :  { %v12477_v60 = vpack.c.bf16 %v12990_v27, %v12989_v15 }
0x456b   :  { %v12481_v25 = vpack.c.bf16 %v12995_v26, %v12994_v54 }
0x456c   :  { %12478 = vmatprep.subr.bf16.mxu0 %v12477_v60 }
0x456d   :  { %v13367_v62 = vpop.eup %13366  ;;  %12480 = vmatpush3.bf16.msra.mxu0 %v12477_v60 }
0x456e   :  { %v13369_v1 = vpop.eup %13368  ;;  %12482 = vmatprep.subr.bf16.mxu0 %v12481_v25  ;;  %v8631_v48 = vsel %vm501_vm0, %v13367_v62, 0.0 }
0x456f   :  { %8632 = vadd.xlane.f32.xlu1 %v8631_v48  ;;  %v8628_v17 = vsel %vm501_vm0, %v13369_v1, 0.0 }
0x4570   :  { %8629 = vadd.xlane.f32.xlu0 %v8628_v17 }
0x4571   :  { %12484 = vmatpush3.bf16.msra.mxu0 %v12481_v25 }
0x4572   :  { %v13371_v12 = vpop.eup %13370 }
0x4573   :  { %v8634_v63 = vsel %vm501_vm0, %v13371_v12, 0.0  ;;  %v13373_v0 = vpop.eup %13372 }
0x4574   :  { %8635 = vadd.xlane.f32.xlu0 %v8634_v63  ;;  %v8637_v42 = vsel %vm501_vm0, %v13373_v0, 0.0 }
0x4580   :  { %12997 = vrot.lane.b32.xlu1 %v16080_v7, %s14100_s23 }
0x458a   :  { %13002 = vrot.lane.b32.xlu0 %v16086_v44, %s14100_s23 }
0x458e   :  { %8763 = vrot.lane.b32.xlu0 %v16094_v10, %s14100_s23 }
0x4592   :  { %8767 = vrot.lane.b32.xlu0 %v16103_v55, %s14100_s23 }
0x45a4   :  { %8638 = vadd.xlane.f32.xlu1 %v8637_v42 }
0x45b5   :  { %8761 = vrot.lane.b32.xlu1 %v16076_v5, %s14100_s23 }
0x45b9   :  { %8765 = vrot.lane.b32.xlu1 %v16097_v14, %s14100_s23 }
0x45fc   :  { %v8633_v41 = vpop.xlane.xlu1 %8632 }
0x45fd   :  { %13374 = vrcp.f32 %v8633_v41  ;;  %v8630_v43 = vpop.xlane.xlu0 %8629 }
0x45fe   :  { %13376 = vrcp.f32 %v8630_v43 }
0x4600   :  { %v12998_v18 = vpop.permute.xlu1 %12997 }
0x4601   :  { %v13000_v21 = vunpack.i.h.bf16 %v12998_v18  ;;  %v12999_v28 = vunpack.i.l.bf16 %v12998_v18  ;;  %v8636_v29 = vpop.xlane.xlu0 %8635 }
0x4602   :  { %13378 = vrcp.f32 %v8636_v29 }
0x4603   :  { %v12485_v32 = vpack.c.bf16 %v13000_v21, %v12999_v28 }
0x4605   :  { %v13003_v30 = vpop.permute.xlu0 %13002  ;;  %12487 = vmatprep.subr.msk.bf16.mxu0 %vm14564_vm2, %v12485_v32 }
0x4606   :  { %v13005_v31 = vunpack.i.h.bf16 %v13003_v30  ;;  %v13004_v53 = vunpack.i.l.bf16 %v13003_v30 }
0x4607   :  { %v13375_v9 = vpop.eup %13374 }
0x4608   :  { %v13377_v34 = vpop.eup %13376  ;;  %v8645_v3 = vmul.f32 %v13375_v9, %v13367_v62  ;;  %v12491_v11 = vpack.c.bf16 %v13005_v31, %v13004_v53 }
0x4609   :  { %v8644_v45 = vmul.f32 %v13377_v34, %v13369_v1  ;;  %v8764_v2 = vpop.permute.xlu0 %8763 }
0x460b   :  { %11807 = vmatprep.mubr.msk.f32.mxu0 %vm501_vm0, %v8644_v45 }
0x460c   :  { %v13379_v59 = vpop.eup %13378  ;;  %11808 = vmatmul.mubr.msk.f32.vlgmr.msra.gmra.mrb[104].mxu0 %vm501_vm0, %v8645_v3 }
0x460d   :  { %12490 = vmatpush3.bf16.xpose.msk.msra.mxu0 %vm14564_vm2, %v12485_v32  ;;  %v8646_v22 = vmul.f32 %v13379_v59, %v13371_v12  ;;  %v8768_v27 = vpop.permute.xlu0 %8767 }
0x460e   :  { %12493 = vmatprep.subr.msk.bf16.mxu0 %vm14564_vm2, %v12491_v11 }
0x460f   :  { %11810 = vmatprep.mubr.msk.f32.mxu0 %vm501_vm0, %v8646_v22 }
0x4615   :  { %12496 = vmatpush3.bf16.xpose.msk.msra.mxu0 %vm14564_vm2, %v12491_v11 }
0x4631   :  { %v8639_v8 = vpop.xlane.xlu1 %8638 }
0x4632   :  { %13380 = vrcp.f32 %v8639_v8 }
0x4635   :  { %v8762_v61 = vpop.permute.xlu1 %8761 }
0x4639   :  { %v8766_v39 = vpop.permute.xlu1 %8765 }
0x463c   :  { %v13381_v58 = vpop.eup %13380 }
0x463d   :  { %v8647_v23 = vmul.f32 %v13381_v58, %v13373_v0 }
0x463f   :  { %11811 = vmatmul.mubr.msk.f32.gmra.mrb[106].mxu0 %vm501_vm0, %v8647_v23 }
0x4640   :  { %11821 = vmatprep.mubr.msk.f32.mxu0 %vm731_vm1, %v8762_v61 }
0x4643   :  { %11822 = vmatmul.mubr.msk.f32.vlgmr.msra.gmra.mrb[108].mxu0 %vm731_vm1, %v8764_v2 }
0x4644   :  { %11824 = vmatprep.mubr.msk.f32.mxu0 %vm731_vm1, %v8766_v39 }
0x4647   :  { %11825 = vmatmul.mubr.msk.f32.gmra.mrb[110].mxu0 %vm731_vm1, %v8768_v27 }
0x46df   :  { %v16217_v15 = vpop.f32.mrb[104].mxu0 }
0x46e0   :  { %v16219_v26 = vpop.f32.mrb[105].mxu0 }
0x4712   :  { %v16221_v54 = vpop.f32.mrb[106].mxu0 }
0x4713   :  { %v16223_v60 = vpop.f32.mrb[107].mxu0 }
0x4716   :  { %v11823_v25 = vpop.f32.mrb[108].mxu0 }
0x4717   :  { %v8865_v62 = vadd.f32 %v16108_v6, %v11823_v25  ;;  %v8859_v1 = vpop.f32.mrb[109].mxu0 }
0x4718   :  { %v8860_v48 = vadd.f32 %v16112_v51, %v8859_v1 }
0x4719   :  { %v8881_v17 = vsel %vm501_vm0, %v8865_v62, -inf }
0x471a   :  { %8882 = vmax.xlane.f32.xlu0 %v8881_v17  ;;  %v11826_v12 = vpop.f32.mrb[110].mxu0  ;;  %v8878_v63 = vsel %vm501_vm0, %v8860_v48, -inf }
0x471b   :  { %v8875_v16 = vadd.f32 %v16122_v13, %v11826_v12  ;;  %v8869_v37 = vpop.f32.mrb[111].mxu0  ;;  %8879 = vmax.xlane.f32.xlu1 %v8878_v63 }
0x471c   :  { %v8870_v0 = vadd.f32 %v16118_v4, %v8869_v37 }
0x471d   :  { %v8887_v42 = vsel %vm501_vm0, %v8875_v16, -inf }
0x471e   :  { %v8884_v41 = vsel %vm501_vm0, %v8870_v0, -inf }
0x471f   :  { %8885 = vmax.xlane.f32.xlu0 %v8884_v41  ;;  %8888 = vmax.xlane.f32.xlu1 %v8887_v42 }
0x4730   :  { %13012 = vrot.lane.b32.xlu1 %v16131_v46, %s14100_s23 }
0x4735   :  { %13007 = vrot.lane.b32.xlu0 %v16129_v33, %s14100_s23 }
0x47a7   :  { %v8883_v43 = vpop.xlane.xlu0 %8882 }
0x47a8   :  { %v8891_v18 = vsub.f32 %v8865_v62, %v8883_v43  ;;  %v8880_v21 = vpop.xlane.xlu1 %8879 }
0x47a9   :  { %v8890_v28 = vsub.f32 %v8860_v48, %v8880_v21 }
0x47aa   :  { %v8896_v29 = vmul.f32 1.442695, %v8891_v18 }
0x47ab   :  { %v8894_v32 = vmul.f32 1.442695, %v8890_v28 }
0x47ac   :  { %13382 = vpow2.f32 %v8896_v29  ;;  %v8886_v30 = vpop.xlane.xlu0 %8885  ;;  %v8889_v9 = vpop.xlane.xlu1 %8888 }
0x47ad   :  { %13384 = vpow2.f32 %v8894_v32  ;;  %v8892_v34 = vsub.f32 %v8870_v0, %v8886_v30  ;;  %v8893_v62 = vsub.f32 %v8875_v16, %v8889_v9 }
0x47af   :  { %v8898_v31 = vmul.f32 1.442695, %v8892_v34  ;;  %v8900_v1 = vmul.f32 1.442695, %v8893_v62 }
0x47b0   :  { %v13008_v53 = vpop.permute.xlu0 %13007  ;;  %v13013_v45 = vpop.permute.xlu1 %13012 }
0x47b1   :  { %13386 = vpow2.f32 %v8898_v31  ;;  %v13010_v3 = vunpack.i.h.bf16 %v13008_v53  ;;  %v13009_v59 = vunpack.i.l.bf16 %v13008_v53  ;;  %v13015_v11 = vunpack.i.h.bf16 %v13013_v45 }
0x47b2   :  { %v13014_v22 = vunpack.i.l.bf16 %v13013_v45  ;;  %13388 = vpow2.f32 %v8900_v1 }
0x47b3   :  { %v12497_v8 = vpack.c.bf16 %v13010_v3, %v13009_v59 }
0x47b4   :  { %v12501_v58 = vpack.c.bf16 %v13015_v11, %v13014_v22 }
0x47b5   :  { %12498 = vmatprep.subr.bf16.mxu1 %v12497_v8 }
0x47b6   :  { %v13383_v61 = vpop.eup %13382  ;;  %12500 = vmatpush3.bf16.msra.mxu1 %v12497_v8 }
0x47b7   :  { %v13385_v23 = vpop.eup %13384  ;;  %12502 = vmatprep.subr.bf16.mxu1 %v12501_v58  ;;  %v8905_v2 = vsel %vm501_vm0, %v13383_v61, 0.0 }
0x47b8   :  { %8906 = vadd.xlane.f32.xlu1 %v8905_v2  ;;  %v8902_v39 = vsel %vm501_vm0, %v13385_v23, 0.0 }
0x47b9   :  { %8903 = vadd.xlane.f32.xlu0 %v8902_v39 }
0x47ba   :  { %12504 = vmatpush3.bf16.msra.mxu1 %v12501_v58 }
0x47bb   :  { %v13387_v27 = vpop.eup %13386 }
0x47bc   :  { %v8908_v25 = vsel %vm501_vm0, %v13387_v27, 0.0  ;;  %v13389_v48 = vpop.eup %13388 }
0x47bd   :  { %8909 = vadd.xlane.f32.xlu0 %v8908_v25  ;;  %v8911_v17 = vsel %vm501_vm0, %v13389_v48, 0.0 }
0x47c9   :  { %13017 = vrot.lane.b32.xlu1 %v16080_v7, %s14102_s26 }
0x47d3   :  { %13022 = vrot.lane.b32.xlu0 %v16086_v44, %s14102_s26 }
0x47d7   :  { %9033 = vrot.lane.b32.xlu0 %v16094_v10, %s14102_s26 }
0x47db   :  { %9037 = vrot.lane.b32.xlu0 %v16103_v55, %s14102_s26 }
0x47ed   :  { %8912 = vadd.xlane.f32.xlu1 %v8911_v17 }
0x47fe   :  { %9031 = vrot.lane.b32.xlu1 %v16076_v5, %s14102_s26 }
0x4802   :  { %9035 = vrot.lane.b32.xlu1 %v16097_v14, %s14102_s26 }
0x4845   :  { %v8907_v7 = vpop.xlane.xlu1 %8906 }
0x4846   :  { %13390 = vrcp.f32 %v8907_v7  ;;  %v8904_v44 = vpop.xlane.xlu0 %8903 }
0x4847   :  { %13392 = vrcp.f32 %v8904_v44 }
0x4849   :  { %v13018_v10 = vpop.permute.xlu1 %13017 }
0x484a   :  { %v13020_v12 = vunpack.i.h.bf16 %v13018_v10  ;;  %v13019_v63 = vunpack.i.l.bf16 %v13018_v10  ;;  %v8910_v16 = vpop.xlane.xlu0 %8909 }
0x484b   :  { %13394 = vrcp.f32 %v8910_v16 }
0x484c   :  { %v12505_v55 = vpack.c.bf16 %v13020_v12, %v13019_v63 }
0x484e   :  { %v13023_v37 = vpop.permute.xlu0 %13022  ;;  %12507 = vmatprep.subr.msk.bf16.mxu1 %vm14564_vm2, %v12505_v55 }
0x484f   :  { %v13025_v5 = vunpack.i.h.bf16 %v13023_v37  ;;  %v13024_v41 = vunpack.i.l.bf16 %v13023_v37 }
0x4850   :  { %v13391_v0 = vpop.eup %13390 }
0x4851   :  { %v13393_v42 = vpop.eup %13392  ;;  %v8919_v14 = vmul.f32 %v13391_v0, %v13383_v61  ;;  %v12511_v21 = vpack.c.bf16 %v13025_v5, %v13024_v41 }
0x4852   :  { %v8918_v43 = vmul.f32 %v13393_v42, %v13385_v23  ;;  %v9034_v34 = vpop.permute.xlu0 %9033 }
0x4854   :  { %11835 = vmatprep.mubr.msk.f32.mxu1 %vm501_vm0, %v8918_v43 }
0x4855   :  { %v13395_v18 = vpop.eup %13394  ;;  %11836 = vmatmul.mubr.msk.f32.vlgmr.msra.gmra.mrb[126].mxu1 %vm501_vm0, %v8919_v14 }
0x4856   :  { %12510 = vmatpush3.bf16.xpose.msk.msra.mxu1 %vm14564_vm2, %v12505_v55  ;;  %v8920_v28 = vmul.f32 %v13395_v18, %v13387_v27  ;;  %v9038_v53 = vpop.permute.xlu0 %9037 }
0x4857   :  { %12513 = vmatprep.subr.msk.bf16.mxu1 %vm14564_vm2, %v12511_v21 }
0x4858   :  { %11838 = vmatprep.mubr.msk.f32.mxu1 %vm501_vm0, %v8920_v28 }
0x485e   :  { %12516 = vmatpush3.bf16.xpose.msk.msra.mxu1 %vm14564_vm2, %v12511_v21 }
0x487a   :  { %v8913_v29 = vpop.xlane.xlu1 %8912 }
0x487b   :  { %13396 = vrcp.f32 %v8913_v29 }
0x487e   :  { %v9032_v30 = vpop.permute.xlu1 %9031 }
0x4882   :  { %v9036_v31 = vpop.permute.xlu1 %9035 }
0x4885   :  { %v13397_v32 = vpop.eup %13396 }
0x4886   :  { %v8921_v9 = vmul.f32 %v13397_v32, %v13389_v48 }
0x4888   :  { %11839 = vmatmul.mubr.msk.f32.gmra.mrb[128].mxu1 %vm501_vm0, %v8921_v9 }
0x4889   :  { %11849 = vmatprep.mubr.msk.f32.mxu1 %vm731_vm1, %v9032_v30 }
0x488c   :  { %11850 = vmatmul.mubr.msk.f32.vlgmr.msra.gmra.mrb[130].mxu1 %vm731_vm1, %v9034_v34 }
0x488d   :  { %11852 = vmatprep.mubr.msk.f32.mxu1 %vm731_vm1, %v9036_v31 }
0x4890   :  { %11853 = vmatmul.mubr.msk.f32.gmra.mrb[132].mxu1 %vm731_vm1, %v9038_v53 }
0x4928   :  { %v11837_v35 = vpop.f32.mrb[126].mxu1 }
0x4929   :  { %v9012_v45 = vpop.f32.mrb[127].mxu1 }
0x495b   :  { %v11840_v3 = vpop.f32.mrb[128].mxu1 }
0x495c   :  { %v9022_v59 = vpop.f32.mrb[129].mxu1 }
0x495f   :  { %v11851_v11 = vpop.f32.mrb[130].mxu1 }
0x4960   :  { %v9135_v22 = vadd.f32 %v16108_v6, %v11851_v11  ;;  %v9129_v8 = vpop.f32.mrb[131].mxu1  ;;  %v7920_v11 = vld [vmem:[#allocation22 + $0x20] sm:$0xff] }
0x4961   :  { %v9130_v58 = vadd.f32 %v16112_v51, %v9129_v8  ;;  %v7922_v8 = vld [vmem:[#allocation22 + $0x30] sm:$0xff] }
0x4962   :  { %v9151_v61 = vsel %vm501_vm0, %v9135_v22, -inf }
0x4963   :  { %9152 = vmax.xlane.f32.xlu0 %v9151_v61  ;;  %v11854_v23 = vpop.f32.mrb[132].mxu1  ;;  %v9148_v2 = vsel %vm501_vm0, %v9130_v58, -inf  ;;  %v7923_v61 = vld [vmem:[#allocation22 + $0x38] sm:$0xff] }
0x4964   :  { %v9145_v39 = vadd.f32 %v16122_v13, %v11854_v23  ;;  %v9139_v27 = vpop.f32.mrb[133].mxu1  ;;  %9149 = vmax.xlane.f32.xlu1 %v9148_v2  ;;  %v12529_v23 = vpack.c.bf16 %v7923_v61, %v7922_v8 }
0x4965   :  { %v9140_v25 = vadd.f32 %v16118_v4, %v9139_v27 }
0x4966   :  { %v9157_v62 = vsel %vm501_vm0, %v9145_v39, -inf }
0x4967   :  { %v9154_v1 = vsel %vm501_vm0, %v9140_v25, -inf }
0x4968   :  { %9155 = vmax.xlane.f32.xlu0 %v9154_v1  ;;  %9158 = vmax.xlane.f32.xlu1 %v9157_v62 }
0x49f0   :  { %v9153_v6 = vpop.xlane.xlu0 %9152 }
0x49f1   :  { %v9161_v51 = vsub.f32 %v9135_v22, %v9153_v6  ;;  %v9150_v48 = vpop.xlane.xlu1 %9149  ;;  %v7921_v22 = vld [vmem:[#allocation22 + $0x28] sm:$0xff] }
0x49f2   :  { %v9160_v17 = vsub.f32 %v9130_v58, %v9150_v48  ;;  %v12525_v58 = vpack.c.bf16 %v7921_v22, %v7920_v11 }
0x49f3   :  { %v9166_v7 = vmul.f32 1.442695, %v9161_v51 }
0x49f4   :  { %v9164_v44 = vmul.f32 1.442695, %v9160_v17 }
0x49f5   :  { %13398 = vpow2.f32 %v9166_v7  ;;  %v9156_v10 = vpop.xlane.xlu0 %9155  ;;  %v9159_v12 = vpop.xlane.xlu1 %9158 }
0x49f6   :  { %13400 = vpow2.f32 %v9164_v44  ;;  %v9162_v13 = vsub.f32 %v9140_v25, %v9156_v10  ;;  %v9163_v63 = vsub.f32 %v9145_v39, %v9159_v12 }
0x49f8   :  { %v9168_v16 = vmul.f32 1.442695, %v9162_v13  ;;  %v9170_v4 = vmul.f32 1.442695, %v9163_v63 }
0x49fa   :  { %13402 = vpow2.f32 %v9168_v16 }
0x49fb   :  { %13404 = vpow2.f32 %v9170_v4 }
0x49ff   :  { %v13399_v55 = vpop.eup %13398 }
0x4a00   :  { %v13401_v37 = vpop.eup %13400  ;;  %v9175_v0 = vsel %vm501_vm0, %v13399_v55, 0.0 }
0x4a01   :  { %9176 = vadd.xlane.f32.xlu1 %v9175_v0  ;;  %v9172_v42 = vsel %vm501_vm0, %v13401_v37, 0.0 }
0x4a02   :  { %9173 = vadd.xlane.f32.xlu0 %v9172_v42 }
0x4a04   :  { %v13403_v5 = vpop.eup %13402 }
0x4a05   :  { %v13405_v41 = vpop.eup %13404  ;;  %v9178_v43 = vsel %vm501_vm0, %v13403_v5, 0.0 }
0x4a06   :  { %9179 = vadd.xlane.f32.xlu0 %v9178_v43  ;;  %v9181_v14 = vsel %vm501_vm0, %v13405_v41, 0.0 }
0x4a07   :  { %9182 = vadd.xlane.f32.xlu1 %v9181_v14 }
0x4a18   :  { %13032 = vrot.lane.b32.xlu1 %v16131_v46, %s14102_s26 }
0x4a1c   :  { %9305 = vrot.lane.b32.xlu1 %v16219_v26, %s14089_s14  ;;  %13027 = vrot.lane.b32.xlu0 %v16129_v33, %s14102_s26 }
0x4a20   :  { %9321 = vrot.lane.b32.xlu1 %v9012_v45, %s14071_s2  ;;  %9307 = vrot.lane.b32.xlu0 %v16217_v15, %s14089_s14 }
0x4a24   :  { %9309 = vrot.lane.b32.xlu1 %v16223_v60, %s14089_s14  ;;  %9323 = vrot.lane.b32.xlu0 %v11837_v35, %s14071_s2 }
0x4a28   :  { %9325 = vrot.lane.b32.xlu1 %v9022_v59, %s14071_s2  ;;  %9311 = vrot.lane.b32.xlu0 %v16221_v54, %s14089_s14 }
0x4a2c   :  { %9327 = vrot.lane.b32.xlu0 %v11840_v3, %s14071_s2  ;;  %s14107_s2 = smov [#allocation38]  }
0x4a2d   :  { %s9934_s16 = sshll.u32 %s14107_s2, 4  ;;  %s9935_s16 = int_to_ptr.vmem [resolvable:$true] %s9934_s16 }
0x4a2e   :  { %s13958_s13 = scalar_lea.vmem %s9935_s16, 512  ;;  %p13963_p9 = scmp.lt.s32.totalorder %s9935_s16, %s9935_s16 }
0x4a2f   :  { %p13959_p8 = scmp.ne.s32.totalorder %s9935_s16, %s13958_s13  ;;  %p13964_p10 = scmp.lt.s32.totalorder %s13958_s13, %s13958_s13 }
0x4a31   :  { %p13965_p11 = por %p13964_p10, %p13963_p9 }
0x4a33   :  { %p13966_p12 = pnand %p13965_p11, %p13959_p8 }
0x4a8e   :  { %v9177_v46 = vpop.xlane.xlu1 %9176 }
0x4a8f   :  { %v9174_v26 = vpop.xlane.xlu0 %9173 }
0x4a90   :  { %13406 = vrcp.f32 %v9174_v26 }
0x4a91   :  { %13408 = vrcp.f32 %v9177_v46 }
0x4a93   :  { %v9180_v33 = vpop.xlane.xlu0 %9179 }
0x4a94   :  { %v9183_v18 = vpop.xlane.xlu1 %9182  ;;  %13410 = vrcp.f32 %v9180_v33 }
0x4a95   :  { %13412 = vrcp.f32 %v9183_v18 }
0x4a97   :  { %v13028_v15 = vpop.permute.xlu0 %13027 }
0x4a98   :  { %v13030_v21 = vunpack.i.h.bf16 %v13028_v15  ;;  %v13029_v28 = vunpack.i.l.bf16 %v13028_v15  ;;  %v13033_v60 = vpop.permute.xlu1 %13032 }
0x4a99   :  { %v13035_v29 = vunpack.i.h.bf16 %v13033_v60  ;;  %v13034_v32 = vunpack.i.l.bf16 %v13033_v60 }
0x4a9a   :  { %v13407_v30 = vpop.eup %13406  ;;  %v12517_v9 = vpack.c.bf16 %v13030_v21, %v13029_v28 }
0x4a9b   :  { %v9188_v34 = vmul.f32 %v13407_v30, %v13401_v37  ;;  %v12521_v54 = vpack.c.bf16 %v13035_v29, %v13034_v32  ;;  %v13409_v31 = vpop.eup %13408  ;;  %v9308_v62 = vpop.permute.xlu0 %9307 }
0x4a9c   :  { %12518 = vmatprep.subr.bf16.mxu0 %v12517_v9  ;;  %v9189_v35 = vmul.f32 %v13409_v31, %v13399_v55  ;;  %v9306_v1 = vpop.permute.xlu1 %9305  ;;  %v9350_v13 = vsel %vm731_vm1, %v16165_v19, %v9308_v62 }
0x4a9d   :  { %12520 = vmatpush3.bf16.msra.mxu0 %v12517_v9  ;;  %11863 = vmatprep.mubr.msk.f32.mxu0 %vm501_vm0, %v9188_v34  ;;  %v9349_v10 = vsel %vm731_vm1, %v16167_v50, %v9306_v1  ;;  %v10401_v1 = vld [vmem:[%s16556_s7 + $0x20] sm:$0xff] }
0x4a9e   :  { %12522 = vmatprep.subr.bf16.mxu0 %v12521_v54  ;;  %v13411_v53 = vpop.eup %13410 }
0x4a9f   :  { %v13413_v45 = vpop.eup %13412  ;;  %v9190_v3 = vmul.f32 %v13411_v53, %v13403_v5  ;;  %v9324_v6 = vpop.permute.xlu0 %9323 }
0x4aa0   :  { %v9191_v59 = vmul.f32 %v13413_v45, %v13405_v41  ;;  %v9322_v51 = vpop.permute.xlu1 %9321  ;;  %v9354_v4 = vsel %vm1844_vm3, %v9350_v13, %v9324_v6  ;;  %v10402_v6 = vld [vmem:[%s16556_s7 + $0x28] sm:$0xff] }
0x4aa1   :  { %12524 = vmatpush3.bf16.msra.mxu0 %v12521_v54  ;;  %v9353_v63 = vsel %vm1844_vm3, %v9349_v10, %v9322_v51  ;;  %v12533_v51 = vpack.c.bf16 %v10402_v6, %v10401_v1  ;;  %v10406_v10 = vld [vmem:[%s16557_s19 + $0x48] sm:$0xff]  ;;  %v10418_v6 = vld [vmem:[#allocation29 + $0x1] ss:$0 sm:$0xff] }
0x4aa2   :  { %12526 = vmatprep.subr.bf16.mxu0 %v12525_v58 }
0x4aa3   :  { %v9312_v48 = vpop.permute.xlu0 %9311  ;;  %12534 = vmatprep.subr.bf16.mxu1 %v12533_v51 }
0x4aa4   :  { %11864 = vmatmul.mubr.msk.f32.vlgmr.msra.gmra.mrb[112].mxu0 %vm501_vm0, %v9189_v35  ;;  %v9310_v17 = vpop.permute.xlu1 %9309  ;;  %v9352_v19 = vsel %vm731_vm1, %v16169_v40, %v9312_v48  ;;  %v10403_v48 = vld [vmem:[%s16556_s7 + $0x30] sm:$0xff]  ;;  %12536 = vmatpush3.bf16.msra.mxu1 %v12533_v51 }
0x4aa5   :  { %11866 = vmatprep.mubr.msk.f32.mxu0 %vm501_vm0, %v9190_v3  ;;  %12528 = vmatpush3.bf16.msra.mxu0 %v12525_v58  ;;  %v9351_v0 = vsel %vm731_vm1, %v16171_v38, %v9310_v17  ;;  %v10394_v38 = vld [vmem:[#allocation23 + $0x1] ss:$0 sm:$0xff] }
0x4aa6   :  { %12530 = vmatprep.subr.bf16.mxu0 %v12529_v23  ;;  %v10404_v17 = vld [vmem:[%s16556_s7 + $0x38] sm:$0xff] }
0x4aa7   :  { %v9328_v7 = vpop.permute.xlu0 %9327 }
0x4aa8   :  { %11867 = vmatmul.mubr.msk.f32.gmra.mrb[114].mxu0 %vm501_vm0, %v9191_v59  ;;  %v9326_v44 = vpop.permute.xlu1 %9325  ;;  %v9356_v41 = vsel %vm1844_vm3, %v9352_v19, %v9328_v7  ;;  %v12537_v7 = vpack.c.bf16 %v10404_v17, %v10403_v48 }
0x4aa9   :  { %12532 = vmatpush3.bf16.msra.mxu0 %v12529_v23  ;;  %v9355_v42 = vsel %vm1844_vm3, %v9351_v0, %v9326_v44  ;;  %v10405_v44 = vld [vmem:[%s16557_s19 + $0x40] sm:$0xff] }
0x4aaa   :  { %12538 = vmatprep.subr.bf16.mxu1 %v12537_v7  ;;  %v12541_v13 = vpack.c.bf16 %v10406_v10, %v10405_v44 }
0x4aab   :  { %12540 = vmatpush3.bf16.msra.mxu1 %v12537_v7 }
0x4aac   :  { %12542 = vmatprep.subr.bf16.mxu0 %v12541_v13 }
0x4b77   :  { %v11865_v2 = vpop.f32.mrb[112].mxu0 }
0x4b78   :  { %9339 = vrot.lane.b32.xlu0 %v11865_v2, %s14103_s1  ;;  %v9282_v39 = vpop.f32.mrb[113].mxu0 }
0x4b79   :  { %9337 = vrot.lane.b32.xlu1 %v9282_v39, %s14103_s1 }
0x4b7b   :  { %v11868_v27 = vpop.f32.mrb[114].mxu0 }
0x4b7c   :  { %9343 = vrot.lane.b32.xlu0 %v11868_v27, %s14103_s1  ;;  %v9292_v25 = vpop.f32.mrb[115].mxu0 }
0x4b7d   :  { %9341 = vrot.lane.b32.xlu1 %v9292_v25, %s14103_s1 }
0x4bea   :  { %v9340_v12 = vpop.permute.xlu0 %9339 }
0x4beb   :  { %v9338_v16 = vpop.permute.xlu1 %9337  ;;  %v9358_v37 = vsel %vm1849_vm4, %v9354_v4, %v9340_v12  ;;  %v10407_v12 = vld [vmem:[%s16557_s19 + $0x50] sm:$0xff]  ;;  %v10409_v4 = vld [vmem:[%s16557_s19 + $0x60] sm:$0xff] }
0x4bec   :  { %v9357_v55 = vsel %vm1849_vm4, %v9353_v63, %v9338_v16  ;;  %v10408_v63 = vld [vmem:[%s16557_s19 + $0x58] sm:$0xff] }
0x4bed   :  { %11877 = vmatprep.mubr.msk.f32.mxu0 %vm501_vm0, %v9357_v55  ;;  %v12545_v16 = vpack.c.bf16 %v10408_v63, %v10407_v12  ;;  %v10410_v55 = vld [vmem:[%s16557_s19 + $0x68] sm:$0xff] }
0x4bee   :  { %11878 = vmatmul.mubr.msk.f32.vlgmr.msra.gmra.mrb[116].mxu0 %vm501_vm0, %v9358_v37  ;;  %v9344_v50 = vpop.permute.xlu0 %9343  ;;  %v12549_v37 = vpack.c.bf16 %v10410_v55, %v10409_v4 }
0x4bef   :  { %v9342_v5 = vpop.permute.xlu1 %9341  ;;  %v9360_v14 = vsel %vm1849_vm4, %v9356_v41, %v9344_v50  ;;  %12544 = vmatpush3.bf16.msra.mxu0 %v12541_v13 }
0x4bf0   :  { %v9359_v43 = vsel %vm1849_vm4, %v9355_v42, %v9342_v5  ;;  %12546 = vmatprep.subr.bf16.mxu0 %v12545_v16 }
0x4bf1   :  { %11880 = vmatprep.mubr.msk.f32.mxu0 %vm501_vm0, %v9359_v43 }
0x4bf2   :  { %11881 = vmatmul.mubr.msk.f32.gmra.mrb[118].mxu0 %vm501_vm0, %v9360_v14 }
0x4bf3   :  { %12548 = vmatpush3.bf16.msra.mxu0 %v12545_v16 }
0x4bf4   :  { %12550 = vmatprep.subr.bf16.mxu0 %v12549_v37 }
0x4bf7   :  { %12552 = vmatpush3.bf16.msra.mxu0 %v12549_v37 }
0x4cc1   :  { %v11879_v46 = vpop.f32.mrb[116].mxu0 }
0x4cc2   :  { %v9451_v26 = vadd.f32 %v11879_v46, %v10394_v38  ;;  %v9445_v33 = vpop.f32.mrb[117].mxu0 }
0x4cc3   :  { %v9446_v18 = vadd.f32 %v10394_v38, %v9445_v33 }
0x4cc4   :  { %v9469_v40 = vadd.f32 %v9451_v26, %v16039_v49 }
0x4cc5   :  { %v9468_v15 = vadd.f32 %v9446_v18, %v16041_v57  ;;  %v11882_v21 = vpop.f32.mrb[118].mxu0 }
0x4cc6   :  { %v9461_v28 = vadd.f32 %v11882_v21, %v10394_v38  ;;  %v9455_v60 = vpop.f32.mrb[119].mxu0  ;;  %v9475_v29 = vsel %vm501_vm0, %v9469_v40, 0.0 }
0x4cc7   :  { %v9456_v32 = vadd.f32 %v10394_v38, %v9455_v60  ;;  %9476 = vadd.xlane.f32.xlu0 %v9475_v29  ;;  %v9472_v30 = vsel %vm501_vm0, %v9468_v15, 0.0  ;;  %v10400_v60 = vld [vmem:[#allocation26 + $0x1] ss:$0 sm:$0xff] }
0x4cc8   :  { %v9471_v9 = vadd.f32 %v9461_v28, %v16055_v36  ;;  %9473 = vadd.xlane.f32.xlu1 %v9472_v30 }
0x4cc9   :  { %v9470_v34 = vadd.f32 %v9456_v32, %v16057_v24 }
0x4cca   :  { %v9481_v54 = vsel %vm501_vm0, %v9471_v9, 0.0 }
0x4ccb   :  { %v9478_v49 = vsel %vm501_vm0, %v9470_v34, 0.0 }
0x4ccc   :  { %9479 = vadd.xlane.f32.xlu0 %v9478_v49  ;;  %9482 = vadd.xlane.f32.xlu1 %v9481_v54 }
0x4d54   :  { %v9477_v57 = vpop.xlane.xlu0 %9476 }
0x4d55   :  { %v9485_v31 = vmul.f32 0.03125, %v9477_v57  ;;  %v9474_v53 = vpop.xlane.xlu1 %9473 }
0x4d56   :  { %v9484_v35 = vmul.f32 0.03125, %v9474_v53 }
0x4d57   :  { %v16333_v45 = vsub.f32 %v9469_v40, %v9485_v31  ;;  %v10399_v40 = vld [vmem:[#allocation25 + $0x1] ss:$0 sm:$0xff] }
0x4d58   :  { %v16335_v3 = vsub.f32 %v9468_v15, %v9484_v35 }
0x4d59   :  { %v9480_v59 = vpop.xlane.xlu0 %9479  ;;  %v9483_v11 = vpop.xlane.xlu1 %9482  ;;  %v9493_v36 = vmul.f32 %v16333_v45, %v16333_v45 }
0x4d5a   :  { %v9486_v24 = vmul.f32 0.03125, %v9480_v59  ;;  %v9487_v22 = vmul.f32 0.03125, %v9483_v11  ;;  %v9492_v8 = vmul.f32 %v16335_v3, %v16335_v3  ;;  %v10412_v59 = vld [vmem:[%s16557_s19 + $0x78] sm:$0xff] }
0x4d5b   :  { %v9499_v58 = vsel %vm501_vm0, %v9493_v36, 0.0  ;;  %v10413_v36 = vld [vmem:[#allocation28 + $0x1] ss:$0 sm:$0xff] }
0x4d5c   :  { %v16342_v61 = vsub.f32 %v9470_v34, %v9486_v24  ;;  %v16344_v23 = vsub.f32 %v9471_v9, %v9487_v22  ;;  %9500 = vadd.xlane.f32.xlu1 %v9499_v58  ;;  %v9496_v2 = vsel %vm501_vm0, %v9492_v8, 0.0 }
0x4d5d   :  { %9497 = vadd.xlane.f32.xlu0 %v9496_v2 }
0x4d5e   :  { %v9494_v39 = vmul.f32 %v16342_v61, %v16342_v61  ;;  %v9495_v27 = vmul.f32 %v16344_v23, %v16344_v23 }
0x4d60   :  { %v9502_v25 = vsel %vm501_vm0, %v9494_v39, 0.0  ;;  %v9505_v62 = vsel %vm501_vm0, %v9495_v27, 0.0 }
0x4d61   :  { %9503 = vadd.xlane.f32.xlu0 %v9502_v25  ;;  %9506 = vadd.xlane.f32.xlu1 %v9505_v62 }
0x4de9   :  { %v9501_v0 = vpop.xlane.xlu1 %9500 }
0x4dea   :  { %v9509_v50 = vmul.f32 0.03125, %v9501_v0  ;;  %v9498_v19 = vpop.xlane.xlu0 %9497 }
0x4deb   :  { %v9508_v42 = vmul.f32 0.03125, %v9498_v19 }
0x4dec   :  { %v9513_v5 = vadd.f32 1e-05, %v9509_v50 }
0x4ded   :  { %v9512_v41 = vadd.f32 1e-05, %v9508_v42 }
0x4dee   :  { %13414 = vrsqrt.f32 %v9513_v5  ;;  %v9504_v43 = vpop.xlane.xlu0 %9503  ;;  %v9507_v14 = vpop.xlane.xlu1 %9506 }
0x4def   :  { %13416 = vrsqrt.f32 %v9512_v41  ;;  %v9510_v38 = vmul.f32 0.03125, %v9504_v43  ;;  %v9511_v46 = vmul.f32 0.03125, %v9507_v14 }
0x4df1   :  { %v9514_v26 = vadd.f32 1e-05, %v9510_v38  ;;  %v9515_v33 = vadd.f32 1e-05, %v9511_v46 }
0x4df3   :  { %13418 = vrsqrt.f32 %v9514_v26 }
0x4df4   :  { %13420 = vrsqrt.f32 %v9515_v33 }
0x4df8   :  { %v13415_v18 = vpop.eup %13414 }
0x4df9   :  { %v13417_v15 = vpop.eup %13416  ;;  %v9521_v21 = vmul.f32 %v13415_v18, %v16333_v45 }
0x4dfa   :  { %v9520_v28 = vmul.f32 %v13417_v15, %v16335_v3  ;;  %v10411_v3 = vld [vmem:[%s16557_s19 + $0x70] sm:$0xff] }
0x4dfb   :  { %v9531_v29 = vmul.f32 %v10399_v40, %v9521_v21  ;;  %v12553_v11 = vpack.c.bf16 %v10412_v59, %v10411_v3 }
0x4dfc   :  { %v9530_v32 = vmul.f32 %v10399_v40, %v9520_v28 }
0x4dfd   :  { %v13419_v30 = vpop.eup %13418  ;;  %v9541_v49 = vadd.f32 %v10400_v60, %v9531_v29  ;;  %12554 = vmatprep.subr.bf16.mxu0 %v12553_v11 }
0x4dfe   :  { %v13421_v9 = vpop.eup %13420  ;;  %v9540_v34 = vadd.f32 %v10400_v60, %v9530_v32  ;;  %v9522_v54 = vmul.f32 %v13419_v30, %v16342_v61  ;;  %12556 = vmatpush3.bf16.msra.mxu0 %v12553_v11 }
0x4dff   :  { %v9523_v57 = vmul.f32 %v13421_v9, %v16344_v23 }
0x4e00   :  { %11891 = vmatprep.mubr.msk.f32.mxu1 %vm501_vm0, %v9540_v34  ;;  %v9532_v31 = vmul.f32 %v10399_v40, %v9522_v54  ;;  %v6279_v54 = vsel %vm501_vm0, %v15709_v20, 0.0 }
0x4e01   :  { %11892 = vmatmul.mubr.msk.f32.vlgmr.msra.gmra.mrb[134].mxu1 %vm501_vm0, %v9541_v49  ;;  %v9533_v53 = vmul.f32 %v10399_v40, %v9523_v57  ;;  %v6285_v57 = vsel %vm501_vm0, %v15719_v52, 0.0 }
0x4e02   :  { %v9542_v35 = vadd.f32 %v10400_v60, %v9532_v31  ;;  %v6282_v31 = vsel %vm501_vm0, %v15721_v56, 0.0 }
0x4e03   :  { %v9543_v45 = vadd.f32 %v10400_v60, %v9533_v53 }
0x4e04   :  { %11894 = vmatprep.mubr.msk.f32.mxu1 %vm501_vm0, %v9542_v35 }
0x4e05   :  { %11895 = vmatmul.mubr.msk.f32.gmra.mrb[136].mxu1 %vm501_vm0, %v9543_v45 }
0x4ed4   :  { %v11893_v24 = vpop.f32.mrb[134].mxu1 }
0x4ed5   :  { %v9652_v22 = vadd.f32 %v11893_v24, %v10413_v36  ;;  %v9646_v8 = vpop.f32.mrb[135].mxu1 }
0x4ed6   :  { %v9647_v58 = vadd.f32 %v10413_v36, %v9646_v8 }
0x4ed7   :  { %v9666_v2 = vmax.f32 %v9652_v22, 0.0 }
0x4ed8   :  { %v9665_v61 = vmax.f32 %v9647_v58, 0.0  ;;  %v11896_v23 = vpop.f32.mrb[136].mxu1 }
0x4ed9   :  { %v9662_v39 = vadd.f32 %v11896_v23, %v10413_v36  ;;  %v9656_v27 = vpop.f32.mrb[137].mxu1 }
0x4eda   :  { %v9657_v25 = vadd.f32 %v10413_v36, %v9656_v27  ;;  %11913 = vmatprep.mubr.msk.f32.mxu0 %vm2163_vm5, %v9665_v61  ;;  %v10423_v27 = vld [vmem:[#allocation31 + $0x1] ss:$0 sm:$0xff] }
0x4edb   :  { %11914 = vmatmul.mubr.msk.f32.vlgmr.msra.gmra.mrb[120].mxu0 %vm2163_vm5, %v9666_v2  ;;  %v9668_v1 = vmax.f32 %v9662_v39, 0.0 }
0x4edc   :  { %v9667_v62 = vmax.f32 %v9657_v25, 0.0 }
0x4ede   :  { %11916 = vmatprep.mubr.msk.f32.mxu0 %vm2163_vm5, %v9667_v62 }
0x4edf   :  { %11917 = vmatmul.mubr.msk.f32.gmra.mrb[122].mxu0 %vm2163_vm5, %v9668_v1  ;;  %v10424_v1 = vld [vmem:[#allocation32 + $0x1] ss:$0 sm:$0xff] }
0x4fae   :  { %v11915_v51 = vpop.f32.mrb[120].mxu0 }
0x4faf   :  { %v9759_v48 = vadd.f32 %v11915_v51, %v10418_v6  ;;  %v9753_v17 = vpop.f32.mrb[121].mxu0 }
0x4fb0   :  { %v9754_v7 = vadd.f32 %v10418_v6, %v9753_v17 }
0x4fb1   :  { %v9777_v44 = vadd.f32 %v9759_v48, %v9541_v49  ;;  %v6276_v49 = vsel %vm501_vm0, %v15711_v47, 0.0 }
0x4fb2   :  { %v9776_v10 = vadd.f32 %v9754_v7, %v9540_v34  ;;  %v11918_v12 = vpop.f32.mrb[122].mxu0 }
0x4fb3   :  { %v9769_v13 = vadd.f32 %v11918_v12, %v10418_v6  ;;  %v9763_v63 = vpop.f32.mrb[123].mxu0  ;;  %v9783_v16 = vsel %vm501_vm0, %v9777_v44, 0.0 }
0x4fb4   :  { %v9764_v4 = vadd.f32 %v10418_v6, %v9763_v63  ;;  %9784 = vadd.xlane.f32.xlu1 %v9783_v16  ;;  %v9780_v55 = vsel %vm501_vm0, %v9776_v10, 0.0 }
0x4fb5   :  { %v9779_v37 = vadd.f32 %v9769_v13, %v9543_v45  ;;  %9781 = vadd.xlane.f32.xlu0 %v9780_v55 }
0x4fb6   :  { %v9778_v0 = vadd.f32 %v9764_v4, %v9542_v35 }
0x4fb7   :  { %v9789_v50 = vsel %vm501_vm0, %v9779_v37, 0.0 }
0x4fb8   :  { %9790 = vadd.xlane.f32.xlu1 %v9789_v50  ;;  %v9786_v19 = vsel %vm501_vm0, %v9778_v0, 0.0 }
0x4fb9   :  { %9787 = vadd.xlane.f32.xlu0 %v9786_v19 }
0x5041   :  { %v9785_v42 = vpop.xlane.xlu1 %9784 }
0x5042   :  { %v9793_v5 = vmul.f32 0.03125, %v9785_v42  ;;  %v9782_v41 = vpop.xlane.xlu0 %9781 }
0x5043   :  { %v9792_v43 = vmul.f32 0.03125, %v9782_v41 }
0x5044   :  { %v9797_v14 = vsub.f32 %v9777_v44, %v9793_v5 }
0x5045   :  { %v9796_v38 = vsub.f32 %v9776_v10, %v9792_v43  ;;  %v9791_v46 = vpop.xlane.xlu1 %9790 }
0x5046   :  { %v9795_v26 = vmul.f32 0.03125, %v9791_v46  ;;  %v9788_v33 = vpop.xlane.xlu0 %9787  ;;  %v9801_v18 = vmul.f32 %v9797_v14, %v9797_v14 }
0x5047   :  { %v9794_v40 = vmul.f32 0.03125, %v9788_v33  ;;  %v9800_v15 = vmul.f32 %v9796_v38, %v9796_v38 }
0x5048   :  { %v9799_v21 = vsub.f32 %v9779_v37, %v9795_v26  ;;  %v9807_v28 = vsel %vm501_vm0, %v9801_v18, 0.0 }
0x5049   :  { %v9798_v60 = vsub.f32 %v9778_v0, %v9794_v40  ;;  %9808 = vadd.xlane.f32.xlu1 %v9807_v28  ;;  %v9804_v29 = vsel %vm501_vm0, %v9800_v15, 0.0 }
0x504a   :  { %9805 = vadd.xlane.f32.xlu0 %v9804_v29  ;;  %v9803_v32 = vmul.f32 %v9799_v21, %v9799_v21 }
0x504b   :  { %v9802_v30 = vmul.f32 %v9798_v60, %v9798_v60 }
0x504c   :  { %v9813_v9 = vsel %vm501_vm0, %v9803_v32, 0.0 }
0x504d   :  { %9814 = vadd.xlane.f32.xlu1 %v9813_v9  ;;  %v9810_v34 = vsel %vm501_vm0, %v9802_v30, 0.0 }
0x504e   :  { %9811 = vadd.xlane.f32.xlu0 %v9810_v34 }
0x5051   :  { %6280 = vadd.xlane.f32.xlu1 %v6279_v54 }
0x5052   :  { %6277 = vadd.xlane.f32.xlu0 %v6276_v49 }
0x5055   :  { %6286 = vadd.xlane.f32.xlu1 %v6285_v57 }
0x5056   :  { %6283 = vadd.xlane.f32.xlu0 %v6282_v31 }
0x50d6   :  { %v9809_v53 = vpop.xlane.xlu1 %9808 }
0x50d7   :  { %v9817_v35 = vmul.f32 0.03125, %v9809_v53  ;;  %v9806_v45 = vpop.xlane.xlu0 %9805 }
0x50d8   :  { %v9816_v3 = vmul.f32 0.03125, %v9806_v45 }
0x50d9   :  { %v9821_v59 = vadd.f32 1e-05, %v9817_v35 }
0x50da   :  { %v9820_v11 = vadd.f32 1e-05, %v9816_v3  ;;  %v9815_v36 = vpop.xlane.xlu1 %9814 }
0x50db   :  { %13422 = vrsqrt.f32 %v9821_v59  ;;  %v9819_v24 = vmul.f32 0.03125, %v9815_v36  ;;  %v9812_v22 = vpop.xlane.xlu0 %9811 }
0x50dc   :  { %13424 = vrsqrt.f32 %v9820_v11  ;;  %v9818_v8 = vmul.f32 0.03125, %v9812_v22 }
0x50dd   :  { %v9823_v58 = vadd.f32 1e-05, %v9819_v24 }
0x50de   :  { %v9822_v61 = vadd.f32 1e-05, %v9818_v8  ;;  %v6281_v23 = vpop.xlane.xlu1 %6280 }
0x50df   :  { %13426 = vrsqrt.f32 %v9823_v58  ;;  %v6278_v2 = vpop.xlane.xlu0 %6277  ;;  %v6289_v51 = vmul.f32 0.03125, %v6281_v23 }
0x50e0   :  { %13428 = vrsqrt.f32 %v9822_v61  ;;  %v6288_v7 = vmul.f32 0.03125, %v6278_v2 }
0x50e1   :  { %v16394_v37 = vsub.f32 %v15709_v20, %v6289_v51 }
0x50e2   :  { %v6287_v44 = vpop.xlane.xlu1 %6286  ;;  %v16398_v42 = vsub.f32 %v15711_v47, %v6288_v7  ;;  %v16441_v7 = vld [vmem:[#allocation34] ss:$0 sm:$0xff] }
0x50e3   :  { %v6284_v13 = vpop.xlane.xlu0 %6283  ;;  %v6291_v0 = vmul.f32 0.03125, %v6287_v44  ;;  %v6297_v26 = vmul.f32 %v16394_v37, %v16394_v37 }
0x50e4   :  { %v6290_v5 = vmul.f32 0.03125, %v6284_v13  ;;  %v6296_v18 = vmul.f32 %v16398_v42, %v16398_v42 }
0x50e5   :  { %v13423_v39 = vpop.eup %13422  ;;  %v16402_v46 = vsub.f32 %v15719_v52, %v6291_v0  ;;  %v6303_v40 = vsel %vm501_vm0, %v6297_v26, 0.0 }
0x50e6   :  { %v13425_v25 = vpop.eup %13424  ;;  %v9829_v62 = vmul.f32 %v13423_v39, %v9797_v14  ;;  %v16408_v33 = vsub.f32 %v15721_v56, %v6290_v5  ;;  %v6300_v15 = vsel %vm501_vm0, %v6296_v18, 0.0 }
0x50e7   :  { %v9828_v6 = vmul.f32 %v13425_v25, %v9796_v38  ;;  %v6299_v52 = vmul.f32 %v16402_v46, %v16402_v46 }
0x50e8   :  { %v9839_v48 = vmul.f32 %v10423_v27, %v9829_v62 }
0x50e9   :  { %v13427_v17 = vpop.eup %13426  ;;  %v9838_v10 = vmul.f32 %v10423_v27, %v9828_v6  ;;  %v6309_v56 = vsel %vm501_vm0, %v6299_v52, 0.0 }
0x50ea   :  { %v13429_v12 = vpop.eup %13428  ;;  %v9849_v63 = vadd.f32 %v10424_v1, %v9839_v48  ;;  %v9831_v16 = vmul.f32 %v13427_v17, %v9799_v21  ;;  %v6298_v21 = vmul.f32 %v16408_v33, %v16408_v33 }
0x50eb   :  { %v9848_v4 = vadd.f32 %v10424_v1, %v9838_v10  ;;  %v9830_v55 = vmul.f32 %v13429_v12, %v9798_v60  ;;  %v16444_v12 = vld [vmem:[#allocation35] ss:$0 sm:$0xff] }
0x50ec   :  { %v9855_v50 = vsel %vm501_vm0, %v9849_v63, 0.0  ;;  %v9841_v19 = vmul.f32 %v10423_v27, %v9831_v16  ;;  %v6306_v28 = vsel %vm501_vm0, %v6298_v21, 0.0 }
0x50ed   :  { %9856 = vadd.xlane.f32.xlu1 %v9855_v50  ;;  %v9852_v41 = vsel %vm501_vm0, %v9848_v4, 0.0  ;;  %v9840_v43 = vmul.f32 %v10423_v27, %v9830_v55 }
0x50ee   :  { %9853 = vadd.xlane.f32.xlu0 %v9852_v41  ;;  %v9851_v14 = vadd.f32 %v10424_v1, %v9841_v19 }
0x50ef   :  { %v9850_v38 = vadd.f32 %v10424_v1, %v9840_v43 }
0x50f0   :  { %v9861_v20 = vsel %vm501_vm0, %v9851_v14, 0.0 }
0x50f1   :  { %9862 = vadd.xlane.f32.xlu1 %v9861_v20  ;;  %v9858_v47 = vsel %vm501_vm0, %v9850_v38, 0.0 }
0x50f2   :  { %9859 = vadd.xlane.f32.xlu0 %v9858_v47 }
0x50f5   :  { %6304 = vadd.xlane.f32.xlu1 %v6303_v40 }
0x50f6   :  { %6301 = vadd.xlane.f32.xlu0 %v6300_v15 }
0x50f9   :  { %6310 = vadd.xlane.f32.xlu1 %v6309_v56 }
0x50fa   :  { %6307 = vadd.xlane.f32.xlu0 %v6306_v28 }
0x517a   :  { %v9857_v60 = vpop.xlane.xlu1 %9856 }
0x517b   :  { %v9865_v29 = vmul.f32 0.03125, %v9857_v60  ;;  %v9854_v32 = vpop.xlane.xlu0 %9853 }
0x517c   :  { %v9864_v30 = vmul.f32 0.03125, %v9854_v32 }
0x517d   :  { %v16421_v9 = vsub.f32 %v9849_v63, %v9865_v29 }
0x517e   :  { %v16423_v34 = vsub.f32 %v9848_v4, %v9864_v30  ;;  %v9863_v54 = vpop.xlane.xlu1 %9862 }
0x517f   :  { %v9867_v49 = vmul.f32 0.03125, %v9863_v54  ;;  %v9860_v57 = vpop.xlane.xlu0 %9859  ;;  %v9873_v31 = vmul.f32 %v16421_v9, %v16421_v9 }
0x5180   :  { %v9866_v53 = vmul.f32 0.03125, %v9860_v57  ;;  %v9872_v35 = vmul.f32 %v16423_v34, %v16423_v34 }
0x5181   :  { %v16429_v45 = vsub.f32 %v9851_v14, %v9867_v49  ;;  %v9879_v3 = vsel %vm501_vm0, %v9873_v31, 0.0 }
0x5182   :  { %v16432_v59 = vsub.f32 %v9850_v38, %v9866_v53  ;;  %9880 = vadd.xlane.f32.xlu1 %v9879_v3  ;;  %v6305_v11 = vpop.xlane.xlu1 %6304  ;;  %v9876_v36 = vsel %vm501_vm0, %v9872_v35, 0.0 }
0x5183   :  { %v6313_v24 = vmul.f32 0.03125, %v6305_v11  ;;  %9877 = vadd.xlane.f32.xlu0 %v9876_v36  ;;  %v6302_v22 = vpop.xlane.xlu0 %6301  ;;  %v9875_v8 = vmul.f32 %v16429_v45, %v16429_v45 }
0x5184   :  { %v6312_v58 = vmul.f32 0.03125, %v6302_v22  ;;  %v9874_v61 = vmul.f32 %v16432_v59, %v16432_v59 }
0x5185   :  { %v6317_v23 = vadd.f32 1e-05, %v6313_v24  ;;  %v9885_v2 = vsel %vm501_vm0, %v9875_v8, 0.0 }
0x5186   :  { %v6316_v39 = vadd.f32 1e-05, %v6312_v58  ;;  %9886 = vadd.xlane.f32.xlu1 %v9885_v2  ;;  %v6311_v27 = vpop.xlane.xlu1 %6310  ;;  %v9882_v25 = vsel %vm501_vm0, %v9874_v61, 0.0 }
0x5187   :  { %13430 = vrsqrt.f32 %v6317_v23  ;;  %v6315_v62 = vmul.f32 0.03125, %v6311_v27  ;;  %9883 = vadd.xlane.f32.xlu0 %v9882_v25  ;;  %v6308_v1 = vpop.xlane.xlu0 %6307 }
0x5188   :  { %13432 = vrsqrt.f32 %v6316_v39  ;;  %v6314_v6 = vmul.f32 0.03125, %v6308_v1 }
0x5189   :  { %v6319_v51 = vadd.f32 1e-05, %v6315_v62 }
0x518a   :  { %v6318_v48 = vadd.f32 1e-05, %v6314_v6 }
0x518b   :  { %13434 = vrsqrt.f32 %v6319_v51 }
0x518c   :  { %13436 = vrsqrt.f32 %v6318_v48 }
0x5191   :  { %v13431_v17 = vpop.eup %13430 }
0x5192   :  { %v13433_v44 = vpop.eup %13432  ;;  %v6325_v10 = vmul.f32 %v13431_v17, %v16394_v37 }
0x5193   :  { %v6324_v13 = vmul.f32 %v13433_v44, %v16398_v42 }
0x5194   :  { %v6335_v63 = vmul.f32 %v16441_v7, %v6325_v10 }
0x5195   :  { %v13435_v16 = vpop.eup %13434  ;;  %v6334_v4 = vmul.f32 %v16441_v7, %v6324_v13 }
0x5196   :  { %v13437_v55 = vpop.eup %13436  ;;  %v6345_v0 = vadd.f32 %v16444_v12, %v6335_v63  ;;  %v6327_v50 = vmul.f32 %v13435_v16, %v16402_v46 }
0x5197   :  { %v6344_v19 = vadd.f32 %v16444_v12, %v6334_v4  ;;  %v6326_v5 = vmul.f32 %v13437_v55, %v16408_v33 }
0x5198   :  { %6349 = vst.msk [vmem:[#allocation37 + $0x8] sm:$0xff] %vm501_vm0, %v6345_v0  ;;  %v6337_v37 = vmul.f32 %v16441_v7, %v6327_v50 }
0x5199   :  { %6348 = vst.msk [vmem:[#allocation37] sm:$0xff] %vm501_vm0, %v6344_v19  ;;  %v6336_v42 = vmul.f32 %v16441_v7, %v6326_v5 }
0x519a   :  { %v6347_v41 = vadd.f32 %v16444_v12, %v6337_v37 }
0x519b   :  { %v6346_v43 = vadd.f32 %v16444_v12, %v6336_v42 }
0x519c   :  { %6351 = vst.msk [vmem:[#allocation37 + $0x18] sm:$0xff] %vm501_vm0, %v6347_v41 }
0x519d   :  { %6350 = vst.msk [vmem:[#allocation37 + $0x10] sm:$0xff] %vm501_vm0, %v6346_v43 }
0x519e   :  { %13969 = shalt.err (!%p13966_p12)
}
0x519f   :  { %s13970_s30 = scalar_lea.hbm %s14312_s12, 512 }
0x51a0   :  { %p13971_p13 = scmp.ne.s32.totalorder %s14312_s12, %s13970_s30  ;;  %p13974_p0 = scmp.lt.u32.totalorder %s13970_s30, %s14312_s12 }
0x51a2   :  { %p13976_p1 = pnand %p13974_p0, %p13971_p13 }
0x51a4   :  { %13979 = shalt.err (!%p13976_p1)
}
0x51a5   :  { %9940 = dma.vmem_to_hbm [thread:$0]  %s9935_s16, 512, %s14312_s12, [#allocation39], %s14088_s29, %s14088_s29, %s14089_s14  }
0x51a6   :  { %s14108_s12 = smov [#allocation37]  }
0x51a7   :  { %s9922_s18 = sshll.u32 %s14108_s12, 4  ;;  %s9923_s18 = int_to_ptr.vmem [resolvable:$true] %s9922_s18 }
0x51a8   :  { %s13980_s22 = scalar_lea.vmem %s9923_s18, 1024  ;;  %p13985_p3 = scmp.lt.s32.totalorder %s9923_s18, %s9923_s18 }
0x51a9   :  { %p13981_p2 = scmp.ne.s32.totalorder %s9923_s18, %s13980_s22  ;;  %p13986_p4 = scmp.lt.s32.totalorder %s13980_s22, %s13980_s22 }
0x51ab   :  { %p13987_p5 = por %p13986_p4, %p13985_p3 }
0x51ad   :  { %p13988_p6 = pnand %p13987_p5, %p13981_p2 }
0x520f   :  { %v9881_v14 = vpop.xlane.xlu1 %9880 }
0x5210   :  { %v9889_v38 = vmul.f32 0.03125, %v9881_v14  ;;  %v9878_v46 = vpop.xlane.xlu0 %9877 }
0x5211   :  { %v9888_v20 = vmul.f32 0.03125, %v9878_v46 }
0x5212   :  { %v9893_v26 = vadd.f32 1e-05, %v9889_v38 }
0x5213   :  { %v9892_v33 = vadd.f32 1e-05, %v9888_v20  ;;  %v9887_v47 = vpop.xlane.xlu1 %9886 }
0x5214   :  { %13438 = vrsqrt.f32 %v9893_v26  ;;  %v9891_v18 = vmul.f32 0.03125, %v9887_v47  ;;  %v9884_v40 = vpop.xlane.xlu0 %9883 }
0x5215   :  { %13440 = vrsqrt.f32 %v9892_v33  ;;  %v9890_v52 = vmul.f32 0.03125, %v9884_v40 }
0x5216   :  { %v9895_v15 = vadd.f32 1e-05, %v9891_v18 }
0x5217   :  { %v9894_v21 = vadd.f32 1e-05, %v9890_v52 }
0x5218   :  { %13442 = vrsqrt.f32 %v9895_v15 }
0x5219   :  { %13444 = vrsqrt.f32 %v9894_v21 }
0x521e   :  { %v13439_v56 = vpop.eup %13438 }
0x521f   :  { %v13441_v28 = vpop.eup %13440  ;;  %v9901_v60 = vmul.f32 %v13439_v56, %v16421_v9 }
0x5220   :  { %v9900_v29 = vmul.f32 %v13441_v28, %v16423_v34 }
0x5221   :  { %v9905_v32 = vmul.f32 %v16441_v7, %v9901_v60 }
0x5222   :  { %v13443_v30 = vpop.eup %13442  ;;  %v9904_v54 = vmul.f32 %v16441_v7, %v9900_v29 }
0x5223   :  { %v13445_v49 = vpop.eup %13444  ;;  %v9909_v57 = vadd.f32 %v16444_v12, %v9905_v32  ;;  %v9903_v31 = vmul.f32 %v13443_v30, %v16429_v45 }
0x5224   :  { %v9908_v53 = vadd.f32 %v16444_v12, %v9904_v54  ;;  %v9902_v35 = vmul.f32 %v13445_v49, %v16432_v59 }
0x5225   :  { %9914 = vst.msk [vmem:[#allocation37 + $0x28] sm:$0xff] %vm501_vm0, %v9909_v57  ;;  %v9907_v9 = vmul.f32 %v16441_v7, %v9903_v31 }
0x5226   :  { %9913 = vst.msk [vmem:[#allocation37 + $0x20] sm:$0xff] %vm501_vm0, %v9908_v53  ;;  %v9906_v34 = vmul.f32 %v16441_v7, %v9902_v35 }
0x5227   :  { %v9911_v3 = vadd.f32 %v16444_v12, %v9907_v9 }
0x5228   :  { %v9910_v11 = vadd.f32 %v16444_v12, %v9906_v34 }
0x5229   :  { %9916 = vst.msk [vmem:[#allocation37 + $0x38] sm:$0xff] %vm501_vm0, %v9911_v3 }
0x522a   :  { %9915 = vst.msk [vmem:[#allocation37 + $0x30] sm:$0xff] %vm501_vm0, %v9910_v11 }
0x522b   :  { %13991 = shalt.err (!%p13988_p6)
}
0x522c   :  { %s13992_s0 = scalar_lea.hbm %s14307_s5, 1024 }
0x522d   :  { %p13993_p7 = scmp.ne.s32.totalorder %s14307_s5, %s13992_s0  ;;  %p13996_p8 = scmp.lt.u32.totalorder %s13992_s0, %s14307_s5 }
0x522f   :  { %p13998_p9 = pnand %p13996_p8, %p13993_p7 }
0x5231   :  { %14001 = shalt.err (!%p13998_p9)
}
0x5232   :  { %9928 = dma.vmem_to_hbm [thread:$0]  %s9923_s18, 1024, %s14307_s5, [#allocation4], %s14088_s29, %s14088_s29, %s14089_s14  }
0x5233   :  { %14026 = dma.done.wait [#allocation4], 1024  }
0x5234   :  { %14027 = vsyncadd [#allocation4], 4294966272 }
0x5235   :  { %14028 = dma.done.wait [#allocation39], 512  }
0x5236   :  { %14029 = vsyncadd [#allocation39], 4294966784 }
0x5237   :  { %9947 = vsyncpa [#allocation3], 1 }
0x5238   :  { %9948 = vsyncpa [#allocation6], 1 }
0x5239   :  { %9949 = vsyncpa [#allocation9], 1 }
0x523a   :  { %9950 = vsyncpa [#allocation12], 1 }
0x523b   :  { %9951 = vsyncpa [#allocation15], 1 }
0x523c   :  { %9952 = vsyncpa [#allocation18], 1 }
0x523d   :  { %9953 = vsyncpa [#allocation21], 1 }
0x523e   :  { %9954 = vsyncpa [#allocation24], 1 }
0x523f   :  { %9955 = vsyncpa [#allocation27], 1 }
0x5240   :  { %9956 = vsyncpa [#allocation30], 1 }
0x5241   :  { %9957 = vsyncpa [#allocation33], 1 }
0x5242   :  { %9958 = vsyncpa [#allocation36], 1 }
0x5243   :  { %9959 = vsyncpa [#allocation4], 1 }
0x5244   :  { %9960 = vsyncpa [#allocation39], 1 }

</bundles_post_ra>
